<compile_context>
chip_gen: v7x
topology: tpu7x:2x2x1
jax: 0.10.0
libtpu: 0.0.40
codegen_flags: <defaults>
</compile_context>

<pallas_src>
import functools

import jax
import jax.numpy as jnp
from jax.experimental import pallas as pl
from jax.experimental.pallas import tpu as pltpu

N_BATCH = 128      # hard-coded by the module's reshapes
C_IN = 512
H = W = 14
HW = H * W         # 196
GROUPS = 32        # j
SUBC = 8           # i1 (sub-channels per group)
KTAP = 3           # both unfold kernel sizes
KOUT = 16          # k
C_MID = GROUPS * SUBC    # 256
C_OUT = GROUPS * KOUT    # 512
BATCH_BLOCK = 16         # batch elements per grid step (grid=8, even for v7x 2 TCs)

# The hard-coded roll/mask tables below assume exactly this geometry.
assert H == 14 and W == 14 and HW == 196 and KTAP == 3 and C_IN == 2 * C_MID


def _dense_weight(w):
    """w: (32, 3, 8, 3, 16) = (j, m1, i1, m2, k)  (torch einsum 'jimlk' order).

    Returns (512, 3*256): column blocks [tap0 | tap1 | tap2], each a dense
    (out_ch, in_ch) matrix with the first unfold's 3-neighbour group mixing
    (zero padded along the 32-group axis) embedded block-banded."""
    wt = jnp.transpose(w, (3, 0, 4, 1, 2))                       # (m2, j, k, m1, i1)
    j = jnp.arange(GROUPS)
    m1 = jnp.arange(KTAP)
    g = jnp.arange(GROUPS)
    sel = (g[None, None, :] == (j[None, :, None] + m1[:, None, None] - 1))
    sel = sel.astype(w.dtype)                                    # (m1, j, g)
    dense = jnp.einsum('ojkmi,mjg->ojkgi', wt, sel)              # (m2, j, k, g, i1)
    dense = dense.reshape(KTAP, C_OUT, C_MID)                    # (3, 512, 256)
    return jnp.transpose(dense, (1, 0, 2)).reshape(C_OUT, KTAP * C_MID)


def _masks(shift):
    """(8, 196) f32 mask rows (rows 6,7 are padding) for the fused roll/mask taps."""
    q = jnp.arange(HW) % W
    z = jnp.zeros((HW,), jnp.float32)
    if shift == 1:
        rows = [q >= 2, q == 1, q != 0, q == 0, q != W - 1, None]
    else:
        rows = [q != 0, None, q != W - 1, q == W - 1, q <= W - 3, q == W - 2]
    rows = rows + [None, None]                                   # pad sublanes to 8
    return jnp.stack([z if r is None else r.astype(jnp.float32) for r in rows])


def _make_kernel(shift, batch_block):
    # Per tap: (lane roll A, mask row A, optional lane roll B, mask row B).
    # These encode SHIFT-roll + unfold-tap + final H-roll, all commuted through
    # the matmul onto the 256-row operand (circular rolls over 196 lanes plus
    # boundary masks that emulate the zero-padded W unfold).
    if shift == 1:
        taps = ((16, 0, 2, 1), (15, 2, 1, 3), (14, 4, None, None))
    else:
        taps = ((-14, 0, None, None), (-15, 2, -1, 3), (-16, 4, -2, 5))

    assert batch_block % 2 == 0

    def kernel(x_ref, w_ref, m_ref, o_ref, tap_ref):
        # x_ref: (BB, 512, 196) f32    w_ref: (512, 768) bf16
        # m_ref: (8, 196) f32          o_ref: (BB, 512, 196) f32
        # tap_ref: (2, 768, 196) bf16 scratch, double-buffered across the two
        #          batch elements handled per loop iteration so tap building of
        #          element 2p+1 can overlap the MXU matmul of element 2p.
        w_all = w_ref[...]
        mrows = [m_ref[i:i + 1, :] for i in range(6)]            # (1, 196) rows

        def one_element(b, slot):
            # reshape(N,2,256,14,14).sum(dim=1) == sum of the two channel halves
            t = x_ref[b, :C_MID, :] + x_ref[b, C_MID:, :]        # (256, 196) f32
            for l, (sa, ma, sb, mb) in enumerate(taps):
                v = jnp.roll(t, sa, axis=1) * mrows[ma]
                if sb is not None:
                    v = v + jnp.roll(t, sb, axis=1) * mrows[mb]
                tap_ref[slot, l * C_MID:(l + 1) * C_MID, :] = v.astype(jnp.bfloat16)
            # single bf16 MXU matmul over K = 3*256, f32 accumulation
            o_ref[b] = jnp.dot(w_all, tap_ref[slot],
                               preferred_element_type=jnp.float32)

        def body(p, carry):
            one_element(2 * p, 0)
            one_element(2 * p + 1, 1)
            return carry

        jax.lax.fori_loop(0, batch_block // 2, body, 0)

    return kernel


@functools.partial(jax.jit, static_argnames=("shift", "batch_block"))
def forward(x, w, shift=1, batch_block=BATCH_BLOCK):
    # TODO(synk): the torch module draws shift_direction = +/-1 with
    # random.random() at __init__; here it is a static argument (both values
    # are implemented and validated in __main__).
    n = x.shape[0]
    assert n % batch_block == 0 and batch_block % 2 == 0
    assert shift in (1, -1)
    x2 = x.reshape(n, C_IN, HW)
    w_all = _dense_weight(w).astype(jnp.bfloat16)
    m = _masks(shift)
    y2 = pl.pallas_call(
        _make_kernel(shift, batch_block),
        out_shape=jax.ShapeDtypeStruct((n, C_OUT, HW), jnp.float32),
        grid=(n // batch_block,),
        in_specs=[
            pl.BlockSpec((batch_block, C_IN, HW), lambda i: (i, 0, 0)),
            pl.BlockSpec((C_OUT, KTAP * C_MID), lambda i: (0, 0)),
            pl.BlockSpec((8, HW), lambda i: (0, 0)),
        ],
        out_specs=pl.BlockSpec((batch_block, C_OUT, HW), lambda i: (i, 0, 0)),
        scratch_shapes=[pltpu.VMEM((2, KTAP * C_MID, HW), jnp.bfloat16)],
        compiler_params=pltpu.CompilerParams(
            dimension_semantics=("parallel",),
            vmem_limit_bytes=48 * 1024 * 1024),
    )(x2, w_all, m)
    return y2.reshape(n, C_OUT, H, W)


def ref_forward(x, w, shift):
    """Pure-JAX mirror of the PyTorch ops (reshape/unfold/roll/permute/einsum)."""
    n = x.shape[0]
    t2 = x.reshape(n, 2, 256, 14, 14).sum(axis=1)
    t3 = t2.reshape(n, 32, 8, 14, 14).reshape(n, 1, 32, 1568)
    t3p = jnp.pad(t3, ((0, 0), (0, 0), (1, 1), (0, 0)))
    t3 = jnp.stack([t3p[:, :, m:m + 32, :] for m in range(3)], axis=2)
    t3 = t3.reshape(n, 3, 32, 8, 14, 14)
    t3 = jnp.roll(t3, shift, axis=5)
    t3 = t3.reshape(n, 10752, 14, 1)
    t3p = jnp.pad(t3, ((0, 0), (0, 0), (1, 1), (0, 0)))
    t3 = jnp.stack([t3p[:, :, o:o + 14, :] for o in range(3)], axis=2)
    t3 = t3.reshape(n, 3, 32, 8, 14, 3, 14)
    t3 = jnp.transpose(t3, (0, 2, 1, 3, 4, 6, 5))
    t4 = jnp.einsum('njimpol,jimlk->njpok', t3, w,
                    precision=jax.lax.Precision.HIGHEST)
    t5 = jnp.transpose(t4, (0, 2, 3, 1, 4)).reshape(n, 14, 14, 512)
    t5 = jnp.roll(t5, shift, axis=1)
    return jnp.transpose(t5, (0, 3, 1, 2))


if __name__ == "__main__":
    key = jax.random.PRNGKey(0)
    kx, kw = jax.random.split(key)
    x = jax.random.normal(kx, (N_BATCH, C_IN, H, W), jnp.float32)
    w = jax.random.normal(kw, (GROUPS, KTAP, SUBC, KTAP, KOUT), jnp.float32)

    # correctness check vs. the pure-JAX mirror of the torch graph on batch
    # elements drawn from the first, a middle and the last grid step.
    check_idx = jnp.array([0, 1, 62, 63, 126, 127], dtype=jnp.int32)
    for shift in (1, -1):
        y = jax.block_until_ready(forward(x, w, shift=shift))
        assert y.shape == (N_BATCH, C_OUT, H, W) and y.dtype == jnp.float32
        y_ref = ref_forward(x[check_idx], w, shift)
        diff = float(jnp.max(jnp.abs(y[check_idx] - y_ref)))
        scale = float(jnp.max(jnp.abs(y_ref)))
        assert diff <= 2e-2 * scale, (shift, diff, scale)

    print("KERNEL_OK")
</pallas_src>

<mosaic_0001>
module attributes {stable_mosaic.version = 11 : i64} {
  func.func @kernel(%arg0: i32, %arg1: memref<16x512x196xf32, #tpu.memory_space<vmem>>, %arg2: memref<512x768xbf16, #tpu.memory_space<vmem>>, %arg3: memref<8x196xf32, #tpu.memory_space<vmem>>, %arg4: memref<16x512x196xf32, #tpu.memory_space<vmem>>, %arg5: memref<2x768x196xbf16, #tpu.memory_space<vmem>>) attributes {dimension_semantics = [#tpu.dimension_semantics<parallel>], iteration_bounds = array<i64: 8>, scalar_prefetch = 0 : i64, scratch_operands = 1 : i64, tpu.core_type = #tpu.core_type<tc>, window_params = [{transform_indices = @transform_0, window_bounds = array<i64: 16, 512, 196>}, {pipeline_mode = #tpu.pipeline_mode<synchronous>, transform_indices = @transform_1, window_bounds = array<i64: 512, 768>}, {pipeline_mode = #tpu.pipeline_mode<synchronous>, transform_indices = @transform_2, window_bounds = array<i64: 8, 196>}, {transform_indices = @transform_3, window_bounds = array<i64: 16, 512, 196>}]} {
    %c0 = arith.constant 0 : index
    %c0_0 = arith.constant 0 : index
    %0 = vector.load %arg2[%c0, %c0_0] : memref<512x768xbf16, #tpu.memory_space<vmem>>, vector<512x768xbf16>
    %c0_1 = arith.constant 0 : index
    %c0_2 = arith.constant 0 : index
    %1 = vector.load %arg3[%c0_1, %c0_2] : memref<8x196xf32, #tpu.memory_space<vmem>>, vector<1x196xf32>
    %c1 = arith.constant 1 : index
    %c0_3 = arith.constant 0 : index
    %2 = vector.load %arg3[%c1, %c0_3] : memref<8x196xf32, #tpu.memory_space<vmem>>, vector<1x196xf32>
    %c2 = arith.constant 2 : index
    %c0_4 = arith.constant 0 : index
    %3 = vector.load %arg3[%c2, %c0_4] : memref<8x196xf32, #tpu.memory_space<vmem>>, vector<1x196xf32>
    %c3 = arith.constant 3 : index
    %c0_5 = arith.constant 0 : index
    %4 = vector.load %arg3[%c3, %c0_5] : memref<8x196xf32, #tpu.memory_space<vmem>>, vector<1x196xf32>
    %c4 = arith.constant 4 : index
    %c0_6 = arith.constant 0 : index
    %5 = vector.load %arg3[%c4, %c0_6] : memref<8x196xf32, #tpu.memory_space<vmem>>, vector<1x196xf32>
    %c0_i32 = arith.constant 0 : i32
    %c8_i32 = arith.constant 8 : i32
    %6 = arith.addi %c0_i32, %c8_i32 : i32
    %c1_i32 = arith.constant 1 : i32
    scf.for %arg6 = %c0_i32 to %6 step %c1_i32  : i32 {
      %c2_i32 = arith.constant 2 : i32
      %7 = arith.muli %c2_i32, %arg6 : i32
      %8 = arith.index_cast %7 : i32 to index
      %c0_8 = arith.constant 0 : index
      %c0_9 = arith.constant 0 : index
      %9 = vector.load %arg1[%8, %c0_8, %c0_9] : memref<16x512x196xf32, #tpu.memory_space<vmem>>, vector<1x256x196xf32>
      %10 = vector.shape_cast %9 : vector<1x256x196xf32> to vector<256x196xf32>
      %11 = arith.index_cast %7 : i32 to index
      %c256 = arith.constant 256 : index
      %c0_10 = arith.constant 0 : index
      %12 = vector.load %arg1[%11, %c256, %c0_10] : memref<16x512x196xf32, #tpu.memory_space<vmem>>, vector<1x256x196xf32>
      %13 = vector.shape_cast %12 : vector<1x256x196xf32> to vector<256x196xf32>
      %14 = arith.addf %10, %13 : vector<256x196xf32>
      %15 = vector.extract_strided_slice %14 {offsets = [0, 180], sizes = [256, 16], strides = [1, 1]} : vector<256x196xf32> to vector<256x16xf32>
      %16 = vector.extract_strided_slice %14 {offsets = [0, 0], sizes = [256, 180], strides = [1, 1]} : vector<256x196xf32> to vector<256x180xf32>
      %17 = tpu.concatenate %15, %16 in 1 : vector<256x16xf32>, vector<256x180xf32> -> vector<256x196xf32>
      %18 = vector.broadcast %1 : vector<1x196xf32> to vector<256x196xf32>
      %19 = arith.mulf %17, %18 : vector<256x196xf32>
      %20 = vector.extract_strided_slice %14 {offsets = [0, 194], sizes = [256, 2], strides = [1, 1]} : vector<256x196xf32> to vector<256x2xf32>
      %21 = vector.extract_strided_slice %14 {offsets = [0, 0], sizes = [256, 194], strides = [1, 1]} : vector<256x196xf32> to vector<256x194xf32>
      %22 = tpu.concatenate %20, %21 in 1 : vector<256x2xf32>, vector<256x194xf32> -> vector<256x196xf32>
      %23 = vector.broadcast %2 : vector<1x196xf32> to vector<256x196xf32>
      %24 = arith.mulf %22, %23 : vector<256x196xf32>
      %25 = arith.addf %19, %24 : vector<256x196xf32>
      %26 = arith.truncf %25 : vector<256x196xf32> to vector<256x196xbf16>
      %c0_11 = arith.constant 0 : index
      %c0_12 = arith.constant 0 : index
      %c0_13 = arith.constant 0 : index
      %27 = vector.load %arg5[%c0_11, %c0_12, %c0_13] : memref<2x768x196xbf16, #tpu.memory_space<vmem>>, vector<1x256x196xbf16>
      %28 = vector.shape_cast %27 : vector<1x256x196xbf16> to vector<256x196xbf16>
      %29 = vector.shape_cast %26 : vector<256x196xbf16> to vector<1x256x196xbf16>
      tpu.vector_store %arg5[%c0_11, %c0_12, %c0_13], %29 {strides = array<i32>} : memref<2x768x196xbf16, #tpu.memory_space<vmem>>, vector<1x256x196xbf16>,
      %30 = vector.extract_strided_slice %14 {offsets = [0, 181], sizes = [256, 15], strides = [1, 1]} : vector<256x196xf32> to vector<256x15xf32>
      %31 = vector.extract_strided_slice %14 {offsets = [0, 0], sizes = [256, 181], strides = [1, 1]} : vector<256x196xf32> to vector<256x181xf32>
      %32 = tpu.concatenate %30, %31 in 1 : vector<256x15xf32>, vector<256x181xf32> -> vector<256x196xf32>
      %33 = vector.broadcast %3 : vector<1x196xf32> to vector<256x196xf32>
      %34 = arith.mulf %32, %33 : vector<256x196xf32>
      %35 = vector.extract_strided_slice %14 {offsets = [0, 195], sizes = [256, 1], strides = [1, 1]} : vector<256x196xf32> to vector<256x1xf32>
      %36 = vector.extract_strided_slice %14 {offsets = [0, 0], sizes = [256, 195], strides = [1, 1]} : vector<256x196xf32> to vector<256x195xf32>
      %37 = tpu.concatenate %35, %36 in 1 : vector<256x1xf32>, vector<256x195xf32> -> vector<256x196xf32>
      %38 = vector.broadcast %4 : vector<1x196xf32> to vector<256x196xf32>
      %39 = arith.mulf %37, %38 : vector<256x196xf32>
      %40 = arith.addf %34, %39 : vector<256x196xf32>
      %41 = arith.truncf %40 : vector<256x196xf32> to vector<256x196xbf16>
      %c0_14 = arith.constant 0 : index
      %c256_15 = arith.constant 256 : index
      %c0_16 = arith.constant 0 : index
      %42 = vector.load %arg5[%c0_14, %c256_15, %c0_16] : memref<2x768x196xbf16, #tpu.memory_space<vmem>>, vector<1x256x196xbf16>
      %43 = vector.shape_cast %42 : vector<1x256x196xbf16> to vector<256x196xbf16>
      %44 = vector.shape_cast %41 : vector<256x196xbf16> to vector<1x256x196xbf16>
      tpu.vector_store %arg5[%c0_14, %c256_15, %c0_16], %44 {strides = array<i32>} : memref<2x768x196xbf16, #tpu.memory_space<vmem>>, vector<1x256x196xbf16>,
      %45 = vector.extract_strided_slice %14 {offsets = [0, 182], sizes = [256, 14], strides = [1, 1]} : vector<256x196xf32> to vector<256x14xf32>
      %46 = vector.extract_strided_slice %14 {offsets = [0, 0], sizes = [256, 182], strides = [1, 1]} : vector<256x196xf32> to vector<256x182xf32>
      %47 = tpu.concatenate %45, %46 in 1 : vector<256x14xf32>, vector<256x182xf32> -> vector<256x196xf32>
      %48 = vector.broadcast %5 : vector<1x196xf32> to vector<256x196xf32>
      %49 = arith.mulf %47, %48 : vector<256x196xf32>
      %50 = arith.truncf %49 : vector<256x196xf32> to vector<256x196xbf16>
      %c0_17 = arith.constant 0 : index
      %c512 = arith.constant 512 : index
      %c0_18 = arith.constant 0 : index
      %51 = vector.load %arg5[%c0_17, %c512, %c0_18] : memref<2x768x196xbf16, #tpu.memory_space<vmem>>, vector<1x256x196xbf16>
      %52 = vector.shape_cast %51 : vector<1x256x196xbf16> to vector<256x196xbf16>
      %53 = vector.shape_cast %50 : vector<256x196xbf16> to vector<1x256x196xbf16>
      tpu.vector_store %arg5[%c0_17, %c512, %c0_18], %53 {strides = array<i32>} : memref<2x768x196xbf16, #tpu.memory_space<vmem>>, vector<1x256x196xbf16>,
      %c0_19 = arith.constant 0 : index
      %c0_20 = arith.constant 0 : index
      %c0_21 = arith.constant 0 : index
      %54 = vector.load %arg5[%c0_19, %c0_20, %c0_21] : memref<2x768x196xbf16, #tpu.memory_space<vmem>>, vector<1x768x196xbf16>
      %55 = vector.shape_cast %54 : vector<1x768x196xbf16> to vector<768x196xbf16>
      %cst = arith.constant dense<0.000000e+00> : vector<512x196xf32>
      %56 = tpu.matmul %0, %55, %cst {dimension_numbers = #tpu.dot_dimension_numbers<[1], [0], [0], [1], [0, 0, 1, 1], [], []>} : vector<512x768xbf16>, vector<768x196xbf16>, vector<512x196xf32> -> vector<512x196xf32>
      %57 = arith.index_cast %7 : i32 to index
      %c0_22 = arith.constant 0 : index
      %c0_23 = arith.constant 0 : index
      %58 = vector.load %arg4[%57, %c0_22, %c0_23] : memref<16x512x196xf32, #tpu.memory_space<vmem>>, vector<1x512x196xf32>
      %59 = vector.shape_cast %58 : vector<1x512x196xf32> to vector<512x196xf32>
      %60 = vector.shape_cast %56 : vector<512x196xf32> to vector<1x512x196xf32>
      tpu.vector_store %arg4[%57, %c0_22, %c0_23], %60 {strides = array<i32>} : memref<16x512x196xf32, #tpu.memory_space<vmem>>, vector<1x512x196xf32>,
      %c2_i32_24 = arith.constant 2 : i32
      %61 = arith.muli %c2_i32_24, %arg6 : i32
      %c1_i32_25 = arith.constant 1 : i32
      %62 = arith.addi %61, %c1_i32_25 : i32
      %63 = arith.index_cast %62 : i32 to index
      %c0_26 = arith.constant 0 : index
      %c0_27 = arith.constant 0 : index
      %64 = vector.load %arg1[%63, %c0_26, %c0_27] : memref<16x512x196xf32, #tpu.memory_space<vmem>>, vector<1x256x196xf32>
      %65 = vector.shape_cast %64 : vector<1x256x196xf32> to vector<256x196xf32>
      %66 = arith.index_cast %62 : i32 to index
      %c256_28 = arith.constant 256 : index
      %c0_29 = arith.constant 0 : index
      %67 = vector.load %arg1[%66, %c256_28, %c0_29] : memref<16x512x196xf32, #tpu.memory_space<vmem>>, vector<1x256x196xf32>
      %68 = vector.shape_cast %67 : vector<1x256x196xf32> to vector<256x196xf32>
      %69 = arith.addf %65, %68 : vector<256x196xf32>
      %70 = vector.extract_strided_slice %69 {offsets = [0, 180], sizes = [256, 16], strides = [1, 1]} : vector<256x196xf32> to vector<256x16xf32>
      %71 = vector.extract_strided_slice %69 {offsets = [0, 0], sizes = [256, 180], strides = [1, 1]} : vector<256x196xf32> to vector<256x180xf32>
      %72 = tpu.concatenate %70, %71 in 1 : vector<256x16xf32>, vector<256x180xf32> -> vector<256x196xf32>
      %73 = vector.broadcast %1 : vector<1x196xf32> to vector<256x196xf32>
      %74 = arith.mulf %72, %73 : vector<256x196xf32>
      %75 = vector.extract_strided_slice %69 {offsets = [0, 194], sizes = [256, 2], strides = [1, 1]} : vector<256x196xf32> to vector<256x2xf32>
      %76 = vector.extract_strided_slice %69 {offsets = [0, 0], sizes = [256, 194], strides = [1, 1]} : vector<256x196xf32> to vector<256x194xf32>
      %77 = tpu.concatenate %75, %76 in 1 : vector<256x2xf32>, vector<256x194xf32> -> vector<256x196xf32>
      %78 = vector.broadcast %2 : vector<1x196xf32> to vector<256x196xf32>
      %79 = arith.mulf %77, %78 : vector<256x196xf32>
      %80 = arith.addf %74, %79 : vector<256x196xf32>
      %81 = arith.truncf %80 : vector<256x196xf32> to vector<256x196xbf16>
      %c1_30 = arith.constant 1 : index
      %c0_31 = arith.constant 0 : index
      %c0_32 = arith.constant 0 : index
      %82 = vector.load %arg5[%c1_30, %c0_31, %c0_32] : memref<2x768x196xbf16, #tpu.memory_space<vmem>>, vector<1x256x196xbf16>
      %83 = vector.shape_cast %82 : vector<1x256x196xbf16> to vector<256x196xbf16>
      %84 = vector.shape_cast %81 : vector<256x196xbf16> to vector<1x256x196xbf16>
      tpu.vector_store %arg5[%c1_30, %c0_31, %c0_32], %84 {strides = array<i32>} : memref<2x768x196xbf16, #tpu.memory_space<vmem>>, vector<1x256x196xbf16>,
      %85 = vector.extract_strided_slice %69 {offsets = [0, 181], sizes = [256, 15], strides = [1, 1]} : vector<256x196xf32> to vector<256x15xf32>
      %86 = vector.extract_strided_slice %69 {offsets = [0, 0], sizes = [256, 181], strides = [1, 1]} : vector<256x196xf32> to vector<256x181xf32>
      %87 = tpu.concatenate %85, %86 in 1 : vector<256x15xf32>, vector<256x181xf32> -> vector<256x196xf32>
      %88 = vector.broadcast %3 : vector<1x196xf32> to vector<256x196xf32>
      %89 = arith.mulf %87, %88 : vector<256x196xf32>
      %90 = vector.extract_strided_slice %69 {offsets = [0, 195], sizes = [256, 1], strides = [1, 1]} : vector<256x196xf32> to vector<256x1xf32>
      %91 = vector.extract_strided_slice %69 {offsets = [0, 0], sizes = [256, 195], strides = [1, 1]} : vector<256x196xf32> to vector<256x195xf32>
      %92 = tpu.concatenate %90, %91 in 1 : vector<256x1xf32>, vector<256x195xf32> -> vector<256x196xf32>
      %93 = vector.broadcast %4 : vector<1x196xf32> to vector<256x196xf32>
      %94 = arith.mulf %92, %93 : vector<256x196xf32>
      %95 = arith.addf %89, %94 : vector<256x196xf32>
      %96 = arith.truncf %95 : vector<256x196xf32> to vector<256x196xbf16>
      %c1_33 = arith.constant 1 : index
      %c256_34 = arith.constant 256 : index
      %c0_35 = arith.constant 0 : index
      %97 = vector.load %arg5[%c1_33, %c256_34, %c0_35] : memref<2x768x196xbf16, #tpu.memory_space<vmem>>, vector<1x256x196xbf16>
      %98 = vector.shape_cast %97 : vector<1x256x196xbf16> to vector<256x196xbf16>
      %99 = vector.shape_cast %96 : vector<256x196xbf16> to vector<1x256x196xbf16>
      tpu.vector_store %arg5[%c1_33, %c256_34, %c0_35], %99 {strides = array<i32>} : memref<2x768x196xbf16, #tpu.memory_space<vmem>>, vector<1x256x196xbf16>,
      %100 = vector.extract_strided_slice %69 {offsets = [0, 182], sizes = [256, 14], strides = [1, 1]} : vector<256x196xf32> to vector<256x14xf32>
      %101 = vector.extract_strided_slice %69 {offsets = [0, 0], sizes = [256, 182], strides = [1, 1]} : vector<256x196xf32> to vector<256x182xf32>
      %102 = tpu.concatenate %100, %101 in 1 : vector<256x14xf32>, vector<256x182xf32> -> vector<256x196xf32>
      %103 = vector.broadcast %5 : vector<1x196xf32> to vector<256x196xf32>
      %104 = arith.mulf %102, %103 : vector<256x196xf32>
      %105 = arith.truncf %104 : vector<256x196xf32> to vector<256x196xbf16>
      %c1_36 = arith.constant 1 : index
      %c512_37 = arith.constant 512 : index
      %c0_38 = arith.constant 0 : index
      %106 = vector.load %arg5[%c1_36, %c512_37, %c0_38] : memref<2x768x196xbf16, #tpu.memory_space<vmem>>, vector<1x256x196xbf16>
      %107 = vector.shape_cast %106 : vector<1x256x196xbf16> to vector<256x196xbf16>
      %108 = vector.shape_cast %105 : vector<256x196xbf16> to vector<1x256x196xbf16>
      tpu.vector_store %arg5[%c1_36, %c512_37, %c0_38], %108 {strides = array<i32>} : memref<2x768x196xbf16, #tpu.memory_space<vmem>>, vector<1x256x196xbf16>,
      %c1_39 = arith.constant 1 : index
      %c0_40 = arith.constant 0 : index
      %c0_41 = arith.constant 0 : index
      %109 = vector.load %arg5[%c1_39, %c0_40, %c0_41] : memref<2x768x196xbf16, #tpu.memory_space<vmem>>, vector<1x768x196xbf16>
      %110 = vector.shape_cast %109 : vector<1x768x196xbf16> to vector<768x196xbf16>
      %cst_42 = arith.constant dense<0.000000e+00> : vector<512x196xf32>
      %111 = tpu.matmul %0, %110, %cst_42 {dimension_numbers = #tpu.dot_dimension_numbers<[1], [0], [0], [1], [0, 0, 1, 1], [], []>} : vector<512x768xbf16>, vector<768x196xbf16>, vector<512x196xf32> -> vector<512x196xf32>
      %112 = arith.index_cast %62 : i32 to index
      %c0_43 = arith.constant 0 : index
      %c0_44 = arith.constant 0 : index
      %113 = vector.load %arg4[%112, %c0_43, %c0_44] : memref<16x512x196xf32, #tpu.memory_space<vmem>>, vector<1x512x196xf32>
      %114 = vector.shape_cast %113 : vector<1x512x196xf32> to vector<512x196xf32>
      %115 = vector.shape_cast %111 : vector<512x196xf32> to vector<1x512x196xf32>
      tpu.vector_store %arg4[%112, %c0_43, %c0_44], %115 {strides = array<i32>} : memref<16x512x196xf32, #tpu.memory_space<vmem>>, vector<1x512x196xf32>,
    }
    %c8_i32_7 = arith.constant 8 : i32
    return
  }
  func.func @transform_0(%arg0: i32) -> (i32, i32, i32) {
    %c0_i32 = arith.constant 0 : i32
    %c0_i32_0 = arith.constant 0 : i32
    %c0_i32_1 = arith.constant 0 : i32
    return %arg0, %c0_i32, %c0_i32_0 : i32, i32, i32
  }
  func.func @transform_1(%arg0: i32) -> (i32, i32) {
    %c0_i32 = arith.constant 0 : i32
    %c0_i32_0 = arith.constant 0 : i32
    %c0_i32_1 = arith.constant 0 : i32
    return %c0_i32, %c0_i32_0 : i32, i32
  }
  func.func @transform_2(%arg0: i32) -> (i32, i32) {
    %c0_i32 = arith.constant 0 : i32
    %c0_i32_0 = arith.constant 0 : i32
    %c0_i32_1 = arith.constant 0 : i32
    return %c0_i32, %c0_i32_0 : i32, i32
  }
  func.func @transform_3(%arg0: i32) -> (i32, i32, i32) {
    %c0_i32 = arith.constant 0 : i32
    %c0_i32_0 = arith.constant 0 : i32
    %c0_i32_1 = arith.constant 0 : i32
    return %arg0, %c0_i32, %c0_i32_0 : i32, i32, i32
  }
}

</mosaic_0001>

<bundles_post_ra>
// kernel: forward.1
= control target key start
LH: loop header
LB: loop body
LE: loop exit
PB: predicated region body
PF: predicated region fallthrough
CT: control target
= control target key end

     0   :  { %8 = vsyncpa [#allocation4], 0  ;;  %s17610_s0 = inlined_call_operand.hbm [shape: f32[128,512,196], index: 0, kind: input, shape index: {}]   ;;  %s17611_s1 = inlined_call_operand.vmem [shape: bf16[512,768], index: 1, kind: input, shape index: {}]   ;;  %s17612_s2 = inlined_call_operand.vmem [shape: f32[8,196], index: 2, kind: input, shape index: {}]   ;;  %s17613_s3 = inlined_call_operand.hbm [shape: f32[128,512,196], index: 3, kind: output, shape index: {}]  }
   0x1   :  { %10 = vsyncpa [#allocation4 + $0x1], 0 }
   0x2   :  { %11 = vsyncpa [#allocation5], 0 }
   0x3   :  { %13 = vsyncpa [#allocation5 + $0x1], 0  ;;  %s10623_s12 = smov 0   ;;  %s10625_s13 = smov 0  }
   0x4   :  { %s10627_s14 = smov 0   ;;  %s10629_s15 = smov 0  }
   0x5 LB: > { %s10644_s16 = sadd.s32 4294967295, %s10581_s15   ;;  %s9416_s17 = sadd.s32 4294967294, %s10581_s15   ;;  %s10581_s15 = sphi %s10629_s15, %s19387_s15   ;;  %s10577_s14 = sphi %s10627_s14, %s19386_s14   ;;  %s10573_s13 = sphi %s10625_s13, %s19385_s13   ;;  %s10569_s12 = sphi %s10623_s12, %s19384_s12  }
   0x6   : > { %s10648_s18 = sadd.s32 1, %s10581_s15   ;;  %s26_s19 = sadd.s32 1, %s10577_s14 }
   0x7   : > { %s23_s20 = ssub.s32 %s10581_s15, %s10648_s18  ;;  %p33_p0 = scmp.ne.s32.totalorder %s10577_s14, %s10573_s13 }
   0x8   : > { %p24_p1 = scmp.eq.s32.totalorder %s23_s20, 0  ;;  %p34_p2 = scmp.eq.s32.totalorder %s10581_s15, 0 }
   0x9   : > { %p39_p3 = scmp.ne.s32.totalorder %s10573_s13, %s10569_s12  ;;  %p40_p4 = scmp.eq.s32.totalorder %s10644_s16, 0 }
   0xa   : > { %s10660_s21 = scalar_select %p24_p1, %s10577_s14, %s26_s19  }
   0xb   : > { %p10662_p5 = por %p34_p2, %p33_p0  ;;  %p10666_p6 = por %p40_p4, %p39_p3 }
   0xc   : > { %p105_p7 = scmp.eq.s32.totalorder %s10644_s16, 7  ;;  %p111_p8 = scmp.eq.s32.totalorder %s9416_s17, 7 }
   0xd   : > { %p10425_p9 = scmp.lt.s32.totalorder %s10581_s15, 8  ;;  %s137_s26 = sand.u32 1, %s10577_s14  }
   0xe   : > { %p10672_p10 = por %p105_p7, %p33_p0  ;;  %p10676_p11 = por %p111_p8, %p39_p3 }
   0xf   : > { %s9893_s27 = sshll.u32 %s10581_s15, 18  ;;  %s9419_s28 = sshll.u32 %s137_s26, 14 }
  0x10   : > { %s18246_s24 = scalar_select %p10672_p10, 1, 0 }
  0x11   : > { %s18247_s25 = scalar_select %p10676_p11, 1, 0 }
  0x12   : > { %s10685_s4 = scalar_lea.hbm %s17610_s0, %s9893_s27  ;;  %s141_s5 = scalar_lea.vmem [#allocation3], %s9419_s28 }
  0x13   : > { %s149_s6 = sshll.u32 %s141_s5, 4  ;;  %p10689_p12 = pnand %p10425_p9, %p10662_p5  ;;  %s10693_s6 = int_to_ptr.vmem [resolvable:$true] %s149_s6 }
  0x14   : > { %s10695_s8 = scalar_lea.sflag [#allocation4], %s137_s26  ;;  %s10481_s9 = scalar_lea.hbm %s10685_s4, 262144 }
  0x15   : > { %p10482_p13 = scmp.ne.s32.totalorder %s10685_s4, %s10481_s9  ;;  %p10483_p0 = pneg %p10689_p12 }
  0x16   : > { %s10486_s17 = scalar_lea.hbm %s17610_s0, 2097152  ;;  %p10487_p3 = scmp.lt.u32.totalorder %s10685_s4, %s17610_s0 }
  0x17   : > { %p10484_p1 = pnand %p10483_p0, %p10482_p13  ;;  %p10488_p4 = scmp.lt.u32.totalorder %s10486_s17, %s10481_s9 }
  0x18   : > { %p10490_p7 = scmp.lt.u32.totalorder %s10481_s9, %s10685_s4 }
  0x19   : > { %p10485_p2 = pneg %p10484_p1  ;;  %p10489_p5 = por %p10488_p4, %p10487_p3 }
  0x1b   : > { %p10491_p8 = por %p10490_p7, %p10489_p5 }
  0x1d   : > { %p10492_p9 = pnand %p10491_p8, %p10485_p2 }
  0x1f   : > { %10495 = shalt.err (!%p10492_p9)
}
  0x20   : > { %s10496_s22 = scalar_lea.vmem %s10693_s6, 262144  ;;  %s10587_s26 = smov [#allocation3]  }
  0x21   : > { %p10497_p13 = scmp.ne.s32.totalorder %s10693_s6, %s10496_s22  ;;  %s10501_s27 = sshll.u32 %s10587_s26, 4  ;;  %s10502_s27 = int_to_ptr.vmem [resolvable:$false] %s10501_s27 }
  0x22   : > { %s10503_s28 = scalar_lea.vmem %s10502_s27, 524288  ;;  %p10504_p10 = scmp.lt.s32.totalorder %s10693_s6, %s10502_s27 }
  0x23   : > { %p10499_p1 = pnand %p10497_p13, %p10483_p0  ;;  %p10505_p3 = scmp.lt.s32.totalorder %s10503_s28, %s10496_s22 }
  0x25   : > { %p10500_p11 = pneg %p10499_p1  ;;  %p10506_p4 = por %p10505_p3, %p10504_p10 }
  0x27   : > { %p10507_p5 = pnand %p10506_p4, %p10500_p11 }
  0x29   : > { %10510 = shalt.err (!%p10507_p5)
}
  0x2a   : > { %s10588_s29 = smov 256   ;;  %s10589_s30 = smov 16  }
  0x2b   : > { %10420 = dma.hbm_to_vmem [thread:$0]  (!%p10689_p12), %s10685_s4, 262144, %s10693_s6, %s10695_s8, %s10588_s29, %s10588_s29, %s10589_s30  }
  0x2c   : > { %p9423_p0 = scmp.ge.s32.totalorder %s10581_s15, 1  ;;  %p157_p2 = scmp.lt.s32.totalorder %s10581_s15, 9 }
  0x2e   : > { %p158_p7 = pnand %p9423_p0, %p157_p2 }
  0x30   : > { %161 = sbr.rel (%p158_p7) target bundleno = 2687 (0xa7f), region = 32 }
  0x37   : > { %s10726_s5 = sand.u32 1, %s10573_s13  }
  0x38   : > { %s9424_s9 = sshll.u32 %s10726_s5, 14  ;;  %s164_s10 = scalar_lea.sflag [#allocation4], %s10726_s5 }
  0x39   : > { %s10732_s11 = scalar_lea.vmem [#allocation3], %s9424_s9 }
  0x3a   : > { %10560 = dma.done.wait (%p10666_p6), %s164_s10, 262144  }
  0x3b   : > { %10562 = vsyncadd (%p10666_p6), %s164_s10, 4294705152  ;;  %v10741_v0 = vld [vmem:[%s17611_s1] sm:$0xff]  ;;  %v10746_v1 = vld [vmem:[%s17611_s1 + $0x8] sm:$0xff]  ;;  %s11725_s17 = scalar_lea.vmem [#allocation6], %s9424_s9  ;;  %s11727_s19 = smov 0  }
  0x3c   : > { %18249 = vst [vmem:[#allocation9_spill] sm:$0xff] %v10741_v0  ;;  %18250 = vst [vmem:[#allocation10_spill] sm:$0xff] %v10746_v1  ;;  %v10751_v2 = vld [vmem:[%s17611_s1 + $0x10] sm:$0xff]  ;;  %v10756_v3 = vld [vmem:[%s17611_s1 + $0x18] sm:$0xff] }
  0x3d   : > { %18251 = vst [vmem:[#allocation11_spill] sm:$0xff] %v10751_v2  ;;  %18252 = vst [vmem:[#allocation12_spill] sm:$0xff] %v10756_v3  ;;  %v10761_v4 = vld [vmem:[%s17611_s1 + $0x20] sm:$0xff]  ;;  %v10766_v5 = vld [vmem:[%s17611_s1 + $0x28] sm:$0xff] }
  0x3e   : > { %18253 = vst [vmem:[#allocation13_spill] sm:$0xff] %v10761_v4  ;;  %18254 = vst [vmem:[#allocation14_spill] sm:$0xff] %v10766_v5  ;;  %v10771_v6 = vld [vmem:[%s17611_s1 + $0x30] sm:$0xff]  ;;  %v10776_v7 = vld [vmem:[%s17611_s1 + $0x38] sm:$0xff] }
  0x3f   : > { %18255 = vst [vmem:[#allocation15_spill] sm:$0xff] %v10771_v6  ;;  %18256 = vst [vmem:[#allocation16_spill] sm:$0xff] %v10776_v7  ;;  %v10781_v8 = vld [vmem:[%s17611_s1 + $0x40] sm:$0xff]  ;;  %v10786_v9 = vld [vmem:[%s17611_s1 + $0x48] sm:$0xff] }
  0x40   : > { %18257 = vst [vmem:[#allocation17_spill] sm:$0xff] %v10781_v8  ;;  %18258 = vst [vmem:[#allocation18_spill] sm:$0xff] %v10786_v9  ;;  %v10791_v10 = vld [vmem:[%s17611_s1 + $0x50] sm:$0xff]  ;;  %v10796_v11 = vld [vmem:[%s17611_s1 + $0x58] sm:$0xff] }
  0x41   : > { %18259 = vst [vmem:[#allocation19_spill] sm:$0xff] %v10791_v10  ;;  %18260 = vst [vmem:[#allocation20_spill] sm:$0xff] %v10796_v11  ;;  %v10801_v12 = vld [vmem:[%s17611_s1 + $0x60] sm:$0xff]  ;;  %v10806_v13 = vld [vmem:[%s17611_s1 + $0x68] sm:$0xff] }
  0x42   : > { %18261 = vst [vmem:[#allocation21_spill] sm:$0xff] %v10801_v12  ;;  %18262 = vst [vmem:[#allocation22_spill] sm:$0xff] %v10806_v13  ;;  %v10811_v14 = vld [vmem:[%s17611_s1 + $0x70] sm:$0xff]  ;;  %v10816_v15 = vld [vmem:[%s17611_s1 + $0x78] sm:$0xff] }
  0x43   : > { %18263 = vst [vmem:[#allocation23_spill] sm:$0xff] %v10811_v14  ;;  %18264 = vst [vmem:[#allocation24_spill] sm:$0xff] %v10816_v15  ;;  %v10821_v16 = vld [vmem:[%s17611_s1 + $0x80] sm:$0xff]  ;;  %v10826_v17 = vld [vmem:[%s17611_s1 + $0x88] sm:$0xff] }
  0x44   : > { %18265 = vst [vmem:[#allocation25_spill] sm:$0xff] %v10821_v16  ;;  %18266 = vst [vmem:[#allocation26_spill] sm:$0xff] %v10826_v17  ;;  %v10831_v18 = vld [vmem:[%s17611_s1 + $0x90] sm:$0xff]  ;;  %v10836_v19 = vld [vmem:[%s17611_s1 + $0x98] sm:$0xff] }
  0x45   : > { %18267 = vst [vmem:[#allocation27_spill] sm:$0xff] %v10831_v18  ;;  %18268 = vst [vmem:[#allocation28_spill] sm:$0xff] %v10836_v19  ;;  %v10841_v20 = vld [vmem:[%s17611_s1 + $0xa0] sm:$0xff]  ;;  %v10846_v21 = vld [vmem:[%s17611_s1 + $0xa8] sm:$0xff] }
  0x46   : > { %18269 = vst [vmem:[#allocation29_spill] sm:$0xff] %v10841_v20  ;;  %18270 = vst [vmem:[#allocation30_spill] sm:$0xff] %v10846_v21  ;;  %v10851_v22 = vld [vmem:[%s17611_s1 + $0xb0] sm:$0xff]  ;;  %v10856_v23 = vld [vmem:[%s17611_s1 + $0xb8] sm:$0xff] }
  0x47   : > { %18271 = vst [vmem:[#allocation31_spill] sm:$0xff] %v10851_v22  ;;  %18272 = vst [vmem:[#allocation32_spill] sm:$0xff] %v10856_v23  ;;  %v10861_v24 = vld [vmem:[%s17611_s1 + $0xc0] sm:$0xff]  ;;  %v10866_v25 = vld [vmem:[%s17611_s1 + $0xc8] sm:$0xff] }
  0x48   : > { %18273 = vst [vmem:[#allocation33_spill] sm:$0xff] %v10861_v24  ;;  %18274 = vst [vmem:[#allocation34_spill] sm:$0xff] %v10866_v25  ;;  %v10871_v26 = vld [vmem:[%s17611_s1 + $0xd0] sm:$0xff]  ;;  %v10876_v27 = vld [vmem:[%s17611_s1 + $0xd8] sm:$0xff] }
  0x49   : > { %18275 = vst [vmem:[#allocation35_spill] sm:$0xff] %v10871_v26  ;;  %18276 = vst [vmem:[#allocation36_spill] sm:$0xff] %v10876_v27  ;;  %v10881_v28 = vld [vmem:[%s17611_s1 + $0xe0] sm:$0xff]  ;;  %v10886_v29 = vld [vmem:[%s17611_s1 + $0xe8] sm:$0xff] }
  0x4a   : > { %18277 = vst [vmem:[#allocation37_spill] sm:$0xff] %v10881_v28  ;;  %18278 = vst [vmem:[#allocation38_spill] sm:$0xff] %v10886_v29  ;;  %v10891_v30 = vld [vmem:[%s17611_s1 + $0xf0] sm:$0xff]  ;;  %v10896_v31 = vld [vmem:[%s17611_s1 + $0xf8] sm:$0xff] }
  0x4b   : > { %18279 = vst [vmem:[#allocation39_spill] sm:$0xff] %v10891_v30  ;;  %18280 = vst [vmem:[#allocation40_spill] sm:$0xff] %v10896_v31  ;;  %v10901_v32 = vld [vmem:[%s17611_s1 + $0x100] sm:$0xff]  ;;  %v10906_v33 = vld [vmem:[%s17611_s1 + $0x108] sm:$0xff] }
  0x4c   : > { %18281 = vst [vmem:[#allocation41_spill] sm:$0xff] %v10901_v32  ;;  %18282 = vst [vmem:[#allocation42_spill] sm:$0xff] %v10906_v33  ;;  %v10911_v34 = vld [vmem:[%s17611_s1 + $0x110] sm:$0xff]  ;;  %v10916_v35 = vld [vmem:[%s17611_s1 + $0x118] sm:$0xff] }
  0x4d   : > { %18283 = vst [vmem:[#allocation43_spill] sm:$0xff] %v10911_v34  ;;  %18284 = vst [vmem:[#allocation44_spill] sm:$0xff] %v10916_v35  ;;  %v10921_v36 = vld [vmem:[%s17611_s1 + $0x120] sm:$0xff]  ;;  %v10926_v37 = vld [vmem:[%s17611_s1 + $0x128] sm:$0xff] }
  0x4e   : > { %18285 = vst [vmem:[#allocation45_spill] sm:$0xff] %v10921_v36  ;;  %18286 = vst [vmem:[#allocation46_spill] sm:$0xff] %v10926_v37  ;;  %v10931_v38 = vld [vmem:[%s17611_s1 + $0x130] sm:$0xff]  ;;  %v10936_v39 = vld [vmem:[%s17611_s1 + $0x138] sm:$0xff] }
  0x4f   : > { %18287 = vst [vmem:[#allocation47_spill] sm:$0xff] %v10931_v38  ;;  %18288 = vst [vmem:[#allocation48_spill] sm:$0xff] %v10936_v39  ;;  %v10941_v40 = vld [vmem:[%s17611_s1 + $0x140] sm:$0xff]  ;;  %v10946_v41 = vld [vmem:[%s17611_s1 + $0x148] sm:$0xff] }
  0x50   : > { %18289 = vst [vmem:[#allocation49_spill] sm:$0xff] %v10941_v40  ;;  %18290 = vst [vmem:[#allocation50_spill] sm:$0xff] %v10946_v41  ;;  %v10951_v42 = vld [vmem:[%s17611_s1 + $0x150] sm:$0xff]  ;;  %v10956_v43 = vld [vmem:[%s17611_s1 + $0x158] sm:$0xff] }
  0x51   : > { %18291 = vst [vmem:[#allocation51_spill] sm:$0xff] %v10951_v42  ;;  %18292 = vst [vmem:[#allocation52_spill] sm:$0xff] %v10956_v43  ;;  %v10961_v44 = vld [vmem:[%s17611_s1 + $0x160] sm:$0xff]  ;;  %v10966_v45 = vld [vmem:[%s17611_s1 + $0x168] sm:$0xff] }
  0x52   : > { %18293 = vst [vmem:[#allocation53_spill] sm:$0xff] %v10961_v44  ;;  %18294 = vst [vmem:[#allocation54_spill] sm:$0xff] %v10966_v45  ;;  %v10971_v46 = vld [vmem:[%s17611_s1 + $0x170] sm:$0xff]  ;;  %v10976_v47 = vld [vmem:[%s17611_s1 + $0x178] sm:$0xff] }
  0x53   : > { %18295 = vst [vmem:[#allocation55_spill] sm:$0xff] %v10971_v46  ;;  %18296 = vst [vmem:[#allocation56_spill] sm:$0xff] %v10976_v47  ;;  %v10981_v48 = vld [vmem:[%s17611_s1 + $0x180] sm:$0xff]  ;;  %v10986_v49 = vld [vmem:[%s17611_s1 + $0x188] sm:$0xff] }
  0x54   : > { %18297 = vst [vmem:[#allocation57_spill] sm:$0xff] %v10981_v48  ;;  %18298 = vst [vmem:[#allocation58_spill] sm:$0xff] %v10986_v49  ;;  %v10991_v50 = vld [vmem:[%s17611_s1 + $0x190] sm:$0xff]  ;;  %v10996_v51 = vld [vmem:[%s17611_s1 + $0x198] sm:$0xff] }
  0x55   : > { %18299 = vst [vmem:[#allocation59_spill] sm:$0xff] %v10991_v50  ;;  %18300 = vst [vmem:[#allocation60_spill] sm:$0xff] %v10996_v51  ;;  %v11001_v52 = vld [vmem:[%s17611_s1 + $0x1a0] sm:$0xff]  ;;  %v11006_v53 = vld [vmem:[%s17611_s1 + $0x1a8] sm:$0xff] }
  0x56   : > { %18301 = vst [vmem:[#allocation61_spill] sm:$0xff] %v11001_v52  ;;  %18302 = vst [vmem:[#allocation62_spill] sm:$0xff] %v11006_v53  ;;  %v11011_v54 = vld [vmem:[%s17611_s1 + $0x1b0] sm:$0xff]  ;;  %v11016_v55 = vld [vmem:[%s17611_s1 + $0x1b8] sm:$0xff] }
  0x57   : > { %18303 = vst [vmem:[#allocation63_spill] sm:$0xff] %v11011_v54  ;;  %18304 = vst [vmem:[#allocation64_spill] sm:$0xff] %v11016_v55  ;;  %v11021_v56 = vld [vmem:[%s17611_s1 + $0x1c0] sm:$0xff]  ;;  %v11026_v57 = vld [vmem:[%s17611_s1 + $0x1c8] sm:$0xff] }
  0x58   : > { %18305 = vst [vmem:[#allocation65_spill] sm:$0xff] %v11021_v56  ;;  %18306 = vst [vmem:[#allocation66_spill] sm:$0xff] %v11026_v57  ;;  %v11031_v58 = vld [vmem:[%s17611_s1 + $0x1d0] sm:$0xff]  ;;  %v11036_v59 = vld [vmem:[%s17611_s1 + $0x1d8] sm:$0xff] }
  0x59   : > { %18307 = vst [vmem:[#allocation67_spill] sm:$0xff] %v11031_v58  ;;  %18308 = vst [vmem:[#allocation68_spill] sm:$0xff] %v11036_v59  ;;  %v11041_v60 = vld [vmem:[%s17611_s1 + $0x1e0] sm:$0xff]  ;;  %v11046_v61 = vld [vmem:[%s17611_s1 + $0x1e8] sm:$0xff] }
  0x5a   : > { %18309 = vst [vmem:[#allocation69_spill] sm:$0xff] %v11041_v60  ;;  %18310 = vst [vmem:[#allocation70_spill] sm:$0xff] %v11046_v61  ;;  %v11051_v62 = vld [vmem:[%s17611_s1 + $0x1f0] sm:$0xff]  ;;  %v11056_v63 = vld [vmem:[%s17611_s1 + $0x1f8] sm:$0xff] }
  0x5b   : > { %18311 = vst [vmem:[#allocation71_spill] sm:$0xff] %v11051_v62  ;;  %18312 = vst [vmem:[#allocation72_spill] sm:$0xff] %v11056_v63  ;;  %v11061_v56 = vld [vmem:[%s17611_s1 + $0x200] sm:$0xff]  ;;  %v11066_v59 = vld [vmem:[%s17611_s1 + $0x208] sm:$0xff] }
  0x5c   : > { %18313 = vst [vmem:[#allocation73_spill] sm:$0xff] %v11061_v56  ;;  %18314 = vst [vmem:[#allocation74_spill] sm:$0xff] %v11066_v59  ;;  %v11071_v50 = vld [vmem:[%s17611_s1 + $0x210] sm:$0xff]  ;;  %v11076_v62 = vld [vmem:[%s17611_s1 + $0x218] sm:$0xff] }
  0x5d   : > { %18315 = vst [vmem:[#allocation75_spill] sm:$0xff] %v11071_v50  ;;  %18316 = vst [vmem:[#allocation76_spill] sm:$0xff] %v11076_v62  ;;  %v11081_v53 = vld [vmem:[%s17611_s1 + $0x220] sm:$0xff]  ;;  %v11086_v44 = vld [vmem:[%s17611_s1 + $0x228] sm:$0xff] }
  0x5e   : > { %18317 = vst [vmem:[#allocation77_spill] sm:$0xff] %v11081_v53  ;;  %18318 = vst [vmem:[#allocation78_spill] sm:$0xff] %v11086_v44  ;;  %v11091_v59 = vld [vmem:[%s17611_s1 + $0x230] sm:$0xff]  ;;  %v11096_v47 = vld [vmem:[%s17611_s1 + $0x238] sm:$0xff] }
  0x5f   : > { %18319 = vst [vmem:[#allocation79_spill] sm:$0xff] %v11091_v59  ;;  %18320 = vst [vmem:[#allocation80_spill] sm:$0xff] %v11096_v47  ;;  %v11101_v38 = vld [vmem:[%s17611_s1 + $0x240] sm:$0xff]  ;;  %v11106_v53 = vld [vmem:[%s17611_s1 + $0x248] sm:$0xff] }
  0x60   : > { %18321 = vst [vmem:[#allocation81_spill] sm:$0xff] %v11101_v38  ;;  %18322 = vst [vmem:[#allocation82_spill] sm:$0xff] %v11106_v53  ;;  %v11111_v41 = vld [vmem:[%s17611_s1 + $0x250] sm:$0xff]  ;;  %v11116_v32 = vld [vmem:[%s17611_s1 + $0x258] sm:$0xff] }
  0x61   : > { %18323 = vst [vmem:[#allocation83_spill] sm:$0xff] %v11111_v41  ;;  %18324 = vst [vmem:[#allocation84_spill] sm:$0xff] %v11116_v32  ;;  %v11121_v47 = vld [vmem:[%s17611_s1 + $0x260] sm:$0xff]  ;;  %v11126_v35 = vld [vmem:[%s17611_s1 + $0x268] sm:$0xff] }
  0x62   : > { %18325 = vst [vmem:[#allocation85_spill] sm:$0xff] %v11121_v47  ;;  %18326 = vst [vmem:[#allocation86_spill] sm:$0xff] %v11126_v35  ;;  %v11131_v26 = vld [vmem:[%s17611_s1 + $0x270] sm:$0xff]  ;;  %v11136_v41 = vld [vmem:[%s17611_s1 + $0x278] sm:$0xff] }
  0x63   : > { %18327 = vst [vmem:[#allocation87_spill] sm:$0xff] %v11131_v26  ;;  %18328 = vst [vmem:[#allocation88_spill] sm:$0xff] %v11136_v41  ;;  %v11141_v29 = vld [vmem:[%s17611_s1 + $0x280] sm:$0xff]  ;;  %v11146_v20 = vld [vmem:[%s17611_s1 + $0x288] sm:$0xff] }
  0x64   : > { %18329 = vst [vmem:[#allocation89_spill] sm:$0xff] %v11141_v29  ;;  %18330 = vst [vmem:[#allocation90_spill] sm:$0xff] %v11146_v20  ;;  %v11151_v35 = vld [vmem:[%s17611_s1 + $0x290] sm:$0xff]  ;;  %v11156_v23 = vld [vmem:[%s17611_s1 + $0x298] sm:$0xff] }
  0x65   : > { %18331 = vst [vmem:[#allocation91_spill] sm:$0xff] %v11151_v35  ;;  %18332 = vst [vmem:[#allocation92_spill] sm:$0xff] %v11156_v23  ;;  %v11161_v14 = vld [vmem:[%s17611_s1 + $0x2a0] sm:$0xff]  ;;  %v11166_v29 = vld [vmem:[%s17611_s1 + $0x2a8] sm:$0xff] }
  0x66   : > { %18333 = vst [vmem:[#allocation93_spill] sm:$0xff] %v11161_v14  ;;  %18334 = vst [vmem:[#allocation94_spill] sm:$0xff] %v11166_v29  ;;  %v11171_v17 = vld [vmem:[%s17611_s1 + $0x2b0] sm:$0xff]  ;;  %v11176_v8 = vld [vmem:[%s17611_s1 + $0x2b8] sm:$0xff] }
  0x67   : > { %18335 = vst [vmem:[#allocation95_spill] sm:$0xff] %v11171_v17  ;;  %18336 = vst [vmem:[#allocation96_spill] sm:$0xff] %v11176_v8  ;;  %v11181_v23 = vld [vmem:[%s17611_s1 + $0x2c0] sm:$0xff]  ;;  %v11186_v11 = vld [vmem:[%s17611_s1 + $0x2c8] sm:$0xff] }
  0x68   : > { %18337 = vst [vmem:[#allocation97_spill] sm:$0xff] %v11181_v23  ;;  %18338 = vst [vmem:[#allocation98_spill] sm:$0xff] %v11186_v11  ;;  %v11191_v2 = vld [vmem:[%s17611_s1 + $0x2d0] sm:$0xff]  ;;  %v11196_v17 = vld [vmem:[%s17611_s1 + $0x2d8] sm:$0xff] }
  0x69   : > { %18339 = vst [vmem:[#allocation99_spill] sm:$0xff] %v11191_v2  ;;  %18340 = vst [vmem:[#allocation100_spill] sm:$0xff] %v11196_v17  ;;  %v11201_v5 = vld [vmem:[%s17611_s1 + $0x2e0] sm:$0xff]  ;;  %v11206_v29 = vld [vmem:[%s17611_s1 + $0x2e8] sm:$0xff] }
  0x6a   : > { %18341 = vst [vmem:[#allocation101_spill] sm:$0xff] %v11201_v5  ;;  %18342 = vst [vmem:[#allocation102_spill] sm:$0xff] %v11206_v29  ;;  %v11211_v11 = vld [vmem:[%s17611_s1 + $0x2f0] sm:$0xff]  ;;  %v11216_v23 = vld [vmem:[%s17611_s1 + $0x2f8] sm:$0xff] }
  0x6b   : > { %18343 = vst [vmem:[#allocation103_spill] sm:$0xff] %v11211_v11  ;;  %18344 = vst [vmem:[#allocation104_spill] sm:$0xff] %v11216_v23  ;;  %v11221_v17 = vld [vmem:[%s17611_s1 + $0x300] sm:$0xff]  ;;  %v11226_v5 = vld [vmem:[%s17611_s1 + $0x308] sm:$0xff] }
  0x6c   : > { %18345 = vst [vmem:[#allocation105_spill] sm:$0xff] %v11221_v17  ;;  %18346 = vst [vmem:[#allocation106_spill] sm:$0xff] %v11226_v5  ;;  %v11231_v41 = vld [vmem:[%s17611_s1 + $0x310] sm:$0xff]  ;;  %v11236_v11 = vld [vmem:[%s17611_s1 + $0x318] sm:$0xff] }
  0x6d   : > { %18347 = vst [vmem:[#allocation107_spill] sm:$0xff] %v11231_v41  ;;  %18348 = vst [vmem:[#allocation108_spill] sm:$0xff] %v11236_v11  ;;  %v11241_v23 = vld [vmem:[%s17611_s1 + $0x320] sm:$0xff]  ;;  %v11246_v35 = vld [vmem:[%s17611_s1 + $0x328] sm:$0xff] }
  0x6e   : > { %18349 = vst [vmem:[#allocation109_spill] sm:$0xff] %v11241_v23  ;;  %18350 = vst [vmem:[#allocation110_spill] sm:$0xff] %v11246_v35  ;;  %v11251_v5 = vld [vmem:[%s17611_s1 + $0x330] sm:$0xff]  ;;  %v11256_v41 = vld [vmem:[%s17611_s1 + $0x338] sm:$0xff] }
  0x6f   : > { %18351 = vst [vmem:[#allocation111_spill] sm:$0xff] %v11251_v5  ;;  %18352 = vst [vmem:[#allocation112_spill] sm:$0xff] %v11256_v41  ;;  %v11261_v53 = vld [vmem:[%s17611_s1 + $0x340] sm:$0xff]  ;;  %v11266_v23 = vld [vmem:[%s17611_s1 + $0x348] sm:$0xff] }
  0x70   : > { %18353 = vst [vmem:[#allocation113_spill] sm:$0xff] %v11261_v53  ;;  %18354 = vst [vmem:[#allocation114_spill] sm:$0xff] %v11266_v23  ;;  %v11271_v35 = vld [vmem:[%s17611_s1 + $0x350] sm:$0xff]  ;;  %v11276_v47 = vld [vmem:[%s17611_s1 + $0x358] sm:$0xff] }
  0x71   : > { %18355 = vst [vmem:[#allocation115_spill] sm:$0xff] %v11271_v35  ;;  %18356 = vst [vmem:[#allocation116_spill] sm:$0xff] %v11276_v47  ;;  %v11281_v41 = vld [vmem:[%s17611_s1 + $0x360] sm:$0xff]  ;;  %v11286_v53 = vld [vmem:[%s17611_s1 + $0x368] sm:$0xff] }
  0x72   : > { %18357 = vst [vmem:[#allocation117_spill] sm:$0xff] %v11281_v41  ;;  %18358 = vst [vmem:[#allocation118_spill] sm:$0xff] %v11286_v53  ;;  %v11291_v62 = vld [vmem:[%s17611_s1 + $0x370] sm:$0xff]  ;;  %v11296_v35 = vld [vmem:[%s17611_s1 + $0x378] sm:$0xff] }
  0x73   : > { %18359 = vst [vmem:[#allocation119_spill] sm:$0xff] %v11291_v62  ;;  %18360 = vst [vmem:[#allocation120_spill] sm:$0xff] %v11296_v35  ;;  %v11301_v47 = vld [vmem:[%s17611_s1 + $0x380] sm:$0xff]  ;;  %v11306_v59 = vld [vmem:[%s17611_s1 + $0x388] sm:$0xff] }
  0x74   : > { %18361 = vst [vmem:[#allocation121_spill] sm:$0xff] %v11301_v47  ;;  %18362 = vst [vmem:[#allocation122_spill] sm:$0xff] %v11306_v59  ;;  %v11311_v53 = vld [vmem:[%s17611_s1 + $0x390] sm:$0xff]  ;;  %v11316_v62 = vld [vmem:[%s17611_s1 + $0x398] sm:$0xff] }
  0x75   : > { %18363 = vst [vmem:[#allocation123_spill] sm:$0xff] %v11311_v53  ;;  %18364 = vst [vmem:[#allocation124_spill] sm:$0xff] %v11316_v62  ;;  %v11321_v61 = vld [vmem:[%s17611_s1 + $0x3a0] sm:$0xff]  ;;  %v11326_v47 = vld [vmem:[%s17611_s1 + $0x3a8] sm:$0xff] }
  0x76   : > { %18365 = vst [vmem:[#allocation125_spill] sm:$0xff] %v11321_v61  ;;  %18366 = vst [vmem:[#allocation126_spill] sm:$0xff] %v11326_v47  ;;  %v11331_v59 = vld [vmem:[%s17611_s1 + $0x3b0] sm:$0xff]  ;;  %v11336_v56 = vld [vmem:[%s17611_s1 + $0x3b8] sm:$0xff] }
  0x77   : > { %18367 = vst [vmem:[#allocation127_spill] sm:$0xff] %v11331_v59  ;;  %18368 = vst [vmem:[#allocation128_spill] sm:$0xff] %v11336_v56  ;;  %v11341_v62 = vld [vmem:[%s17611_s1 + $0x3c0] sm:$0xff]  ;;  %v11346_v61 = vld [vmem:[%s17611_s1 + $0x3c8] sm:$0xff] }
  0x78   : > { %18369 = vst [vmem:[#allocation129_spill] sm:$0xff] %v11341_v62  ;;  %18370 = vst [vmem:[#allocation130_spill] sm:$0xff] %v11346_v61  ;;  %v11351_v55 = vld [vmem:[%s17611_s1 + $0x3d0] sm:$0xff]  ;;  %v11356_v59 = vld [vmem:[%s17611_s1 + $0x3d8] sm:$0xff] }
  0x79   : > { %18371 = vst [vmem:[#allocation131_spill] sm:$0xff] %v11351_v55  ;;  %18372 = vst [vmem:[#allocation132_spill] sm:$0xff] %v11356_v59  ;;  %v11361_v56 = vld [vmem:[%s17611_s1 + $0x3e0] sm:$0xff]  ;;  %v11366_v58 = vld [vmem:[%s17611_s1 + $0x3e8] sm:$0xff] }
  0x7a   : > { %18373 = vst [vmem:[#allocation133_spill] sm:$0xff] %v11361_v56  ;;  %18374 = vst [vmem:[#allocation134_spill] sm:$0xff] %v11366_v58  ;;  %v11371_v61 = vld [vmem:[%s17611_s1 + $0x3f0] sm:$0xff]  ;;  %v11376_v55 = vld [vmem:[%s17611_s1 + $0x3f8] sm:$0xff] }
  0x7b   : > { %18375 = vst [vmem:[#allocation135_spill] sm:$0xff] %v11371_v61  ;;  %18376 = vst [vmem:[#allocation136_spill] sm:$0xff] %v11376_v55  ;;  %v11381_v49 = vld [vmem:[%s17611_s1 + $0x400] sm:$0xff]  ;;  %v11386_v56 = vld [vmem:[%s17611_s1 + $0x408] sm:$0xff] }
  0x7c   : > { %18377 = vst [vmem:[#allocation137_spill] sm:$0xff] %v11381_v49  ;;  %18378 = vst [vmem:[#allocation138_spill] sm:$0xff] %v11386_v56  ;;  %v11391_v58 = vld [vmem:[%s17611_s1 + $0x410] sm:$0xff]  ;;  %v11396_v52 = vld [vmem:[%s17611_s1 + $0x418] sm:$0xff] }
  0x7d   : > { %18379 = vst [vmem:[#allocation139_spill] sm:$0xff] %v11391_v58  ;;  %18380 = vst [vmem:[#allocation140_spill] sm:$0xff] %v11396_v52  ;;  %v11401_v55 = vld [vmem:[%s17611_s1 + $0x420] sm:$0xff]  ;;  %v11406_v49 = vld [vmem:[%s17611_s1 + $0x428] sm:$0xff] }
  0x7e   : > { %18381 = vst [vmem:[#allocation141_spill] sm:$0xff] %v11401_v55  ;;  %18382 = vst [vmem:[#allocation142_spill] sm:$0xff] %v11406_v49  ;;  %v11411_v43 = vld [vmem:[%s17611_s1 + $0x430] sm:$0xff]  ;;  %v11416_v58 = vld [vmem:[%s17611_s1 + $0x438] sm:$0xff] }
  0x7f   : > { %18383 = vst [vmem:[#allocation143_spill] sm:$0xff] %v11411_v43  ;;  %18384 = vst [vmem:[#allocation144_spill] sm:$0xff] %v11416_v58  ;;  %v11421_v52 = vld [vmem:[%s17611_s1 + $0x440] sm:$0xff]  ;;  %v11426_v46 = vld [vmem:[%s17611_s1 + $0x448] sm:$0xff] }
  0x80   : > { %18385 = vst [vmem:[#allocation145_spill] sm:$0xff] %v11421_v52  ;;  %18386 = vst [vmem:[#allocation146_spill] sm:$0xff] %v11426_v46  ;;  %v11431_v49 = vld [vmem:[%s17611_s1 + $0x450] sm:$0xff]  ;;  %v11436_v43 = vld [vmem:[%s17611_s1 + $0x458] sm:$0xff] }
  0x81   : > { %18387 = vst [vmem:[#allocation147_spill] sm:$0xff] %v11431_v49  ;;  %18388 = vst [vmem:[#allocation148_spill] sm:$0xff] %v11436_v43  ;;  %v11441_v37 = vld [vmem:[%s17611_s1 + $0x460] sm:$0xff]  ;;  %v11446_v52 = vld [vmem:[%s17611_s1 + $0x468] sm:$0xff] }
  0x82   : > { %18389 = vst [vmem:[#allocation149_spill] sm:$0xff] %v11441_v37  ;;  %18390 = vst [vmem:[#allocation150_spill] sm:$0xff] %v11446_v52  ;;  %v11451_v46 = vld [vmem:[%s17611_s1 + $0x470] sm:$0xff]  ;;  %v11456_v40 = vld [vmem:[%s17611_s1 + $0x478] sm:$0xff] }
  0x83   : > { %18391 = vst [vmem:[#allocation151_spill] sm:$0xff] %v11451_v46  ;;  %18392 = vst [vmem:[#allocation152_spill] sm:$0xff] %v11456_v40  ;;  %v11461_v43 = vld [vmem:[%s17611_s1 + $0x480] sm:$0xff]  ;;  %v11466_v37 = vld [vmem:[%s17611_s1 + $0x488] sm:$0xff] }
  0x84   : > { %18393 = vst [vmem:[#allocation153_spill] sm:$0xff] %v11461_v43  ;;  %18394 = vst [vmem:[#allocation154_spill] sm:$0xff] %v11466_v37  ;;  %v11471_v31 = vld [vmem:[%s17611_s1 + $0x490] sm:$0xff]  ;;  %v11476_v46 = vld [vmem:[%s17611_s1 + $0x498] sm:$0xff] }
  0x85   : > { %18395 = vst [vmem:[#allocation155_spill] sm:$0xff] %v11471_v31  ;;  %18396 = vst [vmem:[#allocation156_spill] sm:$0xff] %v11476_v46  ;;  %v11481_v40 = vld [vmem:[%s17611_s1 + $0x4a0] sm:$0xff]  ;;  %v11486_v34 = vld [vmem:[%s17611_s1 + $0x4a8] sm:$0xff] }
  0x86   : > { %18397 = vst [vmem:[#allocation157_spill] sm:$0xff] %v11481_v40  ;;  %18398 = vst [vmem:[#allocation158_spill] sm:$0xff] %v11486_v34  ;;  %v11491_v37 = vld [vmem:[%s17611_s1 + $0x4b0] sm:$0xff]  ;;  %v11496_v31 = vld [vmem:[%s17611_s1 + $0x4b8] sm:$0xff] }
  0x87   : > { %18399 = vst [vmem:[#allocation159_spill] sm:$0xff] %v11491_v37  ;;  %18400 = vst [vmem:[#allocation160_spill] sm:$0xff] %v11496_v31  ;;  %v11501_v25 = vld [vmem:[%s17611_s1 + $0x4c0] sm:$0xff]  ;;  %v11506_v40 = vld [vmem:[%s17611_s1 + $0x4c8] sm:$0xff] }
  0x88   : > { %18401 = vst [vmem:[#allocation161_spill] sm:$0xff] %v11501_v25  ;;  %18402 = vst [vmem:[#allocation162_spill] sm:$0xff] %v11506_v40  ;;  %v11511_v34 = vld [vmem:[%s17611_s1 + $0x4d0] sm:$0xff]  ;;  %v11516_v28 = vld [vmem:[%s17611_s1 + $0x4d8] sm:$0xff] }
  0x89   : > { %18403 = vst [vmem:[#allocation163_spill] sm:$0xff] %v11511_v34  ;;  %18404 = vst [vmem:[#allocation164_spill] sm:$0xff] %v11516_v28  ;;  %v11521_v31 = vld [vmem:[%s17611_s1 + $0x4e0] sm:$0xff]  ;;  %v11526_v25 = vld [vmem:[%s17611_s1 + $0x4e8] sm:$0xff] }
  0x8a   : > { %18405 = vst [vmem:[#allocation165_spill] sm:$0xff] %v11521_v31  ;;  %18406 = vst [vmem:[#allocation166_spill] sm:$0xff] %v11526_v25  ;;  %v11531_v19 = vld [vmem:[%s17611_s1 + $0x4f0] sm:$0xff]  ;;  %v11536_v34 = vld [vmem:[%s17611_s1 + $0x4f8] sm:$0xff] }
  0x8b   : > { %18407 = vst [vmem:[#allocation167_spill] sm:$0xff] %v11531_v19  ;;  %18408 = vst [vmem:[#allocation168_spill] sm:$0xff] %v11536_v34  ;;  %v11541_v28 = vld [vmem:[%s17611_s1 + $0x500] sm:$0xff]  ;;  %v11546_v22 = vld [vmem:[%s17611_s1 + $0x508] sm:$0xff] }
  0x8c   : > { %18409 = vst [vmem:[#allocation169_spill] sm:$0xff] %v11541_v28  ;;  %18410 = vst [vmem:[#allocation170_spill] sm:$0xff] %v11546_v22  ;;  %v11551_v25 = vld [vmem:[%s17611_s1 + $0x510] sm:$0xff]  ;;  %v11556_v19 = vld [vmem:[%s17611_s1 + $0x518] sm:$0xff] }
  0x8d   : > { %18411 = vst [vmem:[#allocation171_spill] sm:$0xff] %v11551_v25  ;;  %18412 = vst [vmem:[#allocation172_spill] sm:$0xff] %v11556_v19  ;;  %v11561_v13 = vld [vmem:[%s17611_s1 + $0x520] sm:$0xff]  ;;  %v11566_v28 = vld [vmem:[%s17611_s1 + $0x528] sm:$0xff] }
  0x8e   : > { %18413 = vst [vmem:[#allocation173_spill] sm:$0xff] %v11561_v13  ;;  %18414 = vst [vmem:[#allocation174_spill] sm:$0xff] %v11566_v28  ;;  %v11571_v22 = vld [vmem:[%s17611_s1 + $0x530] sm:$0xff]  ;;  %v11576_v16 = vld [vmem:[%s17611_s1 + $0x538] sm:$0xff] }
  0x8f   : > { %18415 = vst [vmem:[#allocation175_spill] sm:$0xff] %v11571_v22  ;;  %18416 = vst [vmem:[#allocation176_spill] sm:$0xff] %v11576_v16  ;;  %v11581_v19 = vld [vmem:[%s17611_s1 + $0x540] sm:$0xff]  ;;  %v11586_v13 = vld [vmem:[%s17611_s1 + $0x548] sm:$0xff] }
  0x90   : > { %18417 = vst [vmem:[#allocation177_spill] sm:$0xff] %v11581_v19  ;;  %18418 = vst [vmem:[#allocation178_spill] sm:$0xff] %v11586_v13  ;;  %v11591_v7 = vld [vmem:[%s17611_s1 + $0x550] sm:$0xff]  ;;  %v11596_v22 = vld [vmem:[%s17611_s1 + $0x558] sm:$0xff] }
  0x91   : > { %18419 = vst [vmem:[#allocation179_spill] sm:$0xff] %v11591_v7  ;;  %18420 = vst [vmem:[#allocation180_spill] sm:$0xff] %v11596_v22  ;;  %v11601_v16 = vld [vmem:[%s17611_s1 + $0x560] sm:$0xff]  ;;  %v11606_v10 = vld [vmem:[%s17611_s1 + $0x568] sm:$0xff] }
  0x92   : > { %18421 = vst [vmem:[#allocation181_spill] sm:$0xff] %v11601_v16  ;;  %18422 = vst [vmem:[#allocation182_spill] sm:$0xff] %v11606_v10  ;;  %v11611_v13 = vld [vmem:[%s17611_s1 + $0x570] sm:$0xff]  ;;  %v11616_v7 = vld [vmem:[%s17611_s1 + $0x578] sm:$0xff] }
  0x93   : > { %18423 = vst [vmem:[#allocation183_spill] sm:$0xff] %v11611_v13  ;;  %18424 = vst [vmem:[#allocation184_spill] sm:$0xff] %v11616_v7  ;;  %v11621_v1 = vld [vmem:[%s17611_s1 + $0x580] sm:$0xff]  ;;  %v11626_v16 = vld [vmem:[%s17611_s1 + $0x588] sm:$0xff] }
  0x94   : > { %18425 = vst [vmem:[#allocation185_spill] sm:$0xff] %v11621_v1  ;;  %18426 = vst [vmem:[#allocation186_spill] sm:$0xff] %v11626_v16  ;;  %v11631_v10 = vld [vmem:[%s17611_s1 + $0x590] sm:$0xff]  ;;  %v11636_v4 = vld [vmem:[%s17611_s1 + $0x598] sm:$0xff] }
  0x95   : > { %18427 = vst [vmem:[#allocation187_spill] sm:$0xff] %v11631_v10  ;;  %18428 = vst [vmem:[#allocation188_spill] sm:$0xff] %v11636_v4  ;;  %v11641_v7 = vld [vmem:[%s17611_s1 + $0x5a0] sm:$0xff]  ;;  %v11646_v1 = vld [vmem:[%s17611_s1 + $0x5a8] sm:$0xff] }
  0x96   : > { %18429 = vst [vmem:[#allocation189_spill] sm:$0xff] %v11641_v7  ;;  %18430 = vst [vmem:[#allocation190_spill] sm:$0xff] %v11646_v1  ;;  %v11651_v10 = vld [vmem:[%s17611_s1 + $0x5b0] sm:$0xff]  ;;  %v11656_v4 = vld [vmem:[%s17611_s1 + $0x5b8] sm:$0xff] }
  0x97   : > { %18431 = vst [vmem:[#allocation191_spill] sm:$0xff] %v11651_v10  ;;  %18432 = vst [vmem:[#allocation192_spill] sm:$0xff] %v11656_v4  ;;  %v11661_v7 = vld [vmem:[%s17611_s1 + $0x5c0] sm:$0xff]  ;;  %v11666_v1 = vld [vmem:[%s17611_s1 + $0x5c8] sm:$0xff] }
  0x98   : > { %18433 = vst [vmem:[#allocation193_spill] sm:$0xff] %v11661_v7  ;;  %18434 = vst [vmem:[#allocation194_spill] sm:$0xff] %v11666_v1  ;;  %v11671_v13 = vld [vmem:[%s17611_s1 + $0x5d0] sm:$0xff]  ;;  %v11676_v10 = vld [vmem:[%s17611_s1 + $0x5d8] sm:$0xff] }
  0x99   : > { %18435 = vst [vmem:[#allocation195_spill] sm:$0xff] %v11671_v13  ;;  %18436 = vst [vmem:[#allocation196_spill] sm:$0xff] %v11676_v10  ;;  %v11681_v4 = vld [vmem:[%s17611_s1 + $0x5e0] sm:$0xff]  ;;  %v11686_v7 = vld [vmem:[%s17611_s1 + $0x5e8] sm:$0xff] }
  0x9a   : > { %18437 = vst [vmem:[#allocation197_spill] sm:$0xff] %v11681_v4  ;;  %18438 = vst [vmem:[#allocation198_spill] sm:$0xff] %v11686_v7  ;;  %v11691_v1 = vld [vmem:[%s17611_s1 + $0x5f0] sm:$0xff]  ;;  %v11696_v13 = vld [vmem:[%s17611_s1 + $0x5f8] sm:$0xff] }
  0x9b   : > { %18439 = vst [vmem:[#allocation199_spill] sm:$0xff] %v11691_v1  ;;  %18440 = vst [vmem:[#allocation200_spill] sm:$0xff] %v11696_v13  ;;  %v11701_v10 = vld [vmem:[%s17612_s2] ss:$8 sm:$0x3] }
  0x9c   : > { %18441 = vst [vmem:[#allocation201_spill] sm:$0xff] %v11701_v10  ;;  %v11706_v4 = vld [vmem:[%s17612_s2 + $0x1] ss:$8 sm:$0x3] }
  0x9d   : > { %18442 = vst [vmem:[#allocation202_spill] sm:$0xff] %v11706_v4  ;;  %v11711_v7 = vld [vmem:[%s17612_s2 + $0x2] ss:$8 sm:$0x3] }
  0x9e   : > { %18443 = vst [vmem:[#allocation203_spill] sm:$0xff] %v11711_v7  ;;  %v11716_v1 = vld [vmem:[%s17612_s2 + $0x3] ss:$8 sm:$0x3] }
  0x9f   : > { %18444 = vst [vmem:[#allocation204_spill] sm:$0xff] %v11716_v1  ;;  %v11721_v13 = vld [vmem:[%s17612_s2 + $0x4] ss:$8 sm:$0x3] }
  0xa0   : > { %18445 = vst [vmem:[#allocation205_spill] sm:$0xff] %v11721_v13 }
  0xa1 LB: >> { %s9895_s20 = sshll.u32 %s10585_s19, 11  ;;  %s10590_s9 = smov 76   ;;  %vm1311_vm0 = vcmask 15360   ;;  %vm883_vm1 = vcmask 130048   ;;  %vm1612_vm2 = vcmask 556032   ;;  %vm2296_vm3 = vcmask 7168   ;;  %s10585_s19 = sphi %s11727_s19, %s398_s19  }
  0xa2   : >> { %s11736_s22 = scalar_lea.vmem %s10732_s11, %s9895_s20 [#allocation3]  ;;  %s10591_s23 = smov 16   ;;  %vm1868_vm4 = vcmask 121856   ;;  %vm2852_vm5 = vcmask 113664  }
  0xa3   : >> { %v408_v13 = vld [vmem:[%s11736_s22 + $0x28] sm:$0xff]  ;;  %v410_v28 = vld [vmem:[%s11736_s22 + $0x38] sm:$0xff]  ;;  %v405_v63 = vld [vmem:[%s11736_s22 + $0x10] sm:$0xff]  ;;  %s10592_s26 = smov 62   ;;  %s10593_s27 = smov 2  }
  0xa4   : >> { %v472_v16 = vld [vmem:[%s11736_s22 + $0x228] sm:$0xff]  ;;  %v474_v31 = vld [vmem:[%s11736_s22 + $0x238] sm:$0xff]  ;;  %v473_v54 = vld [vmem:[%s11736_s22 + $0x230] sm:$0xff]  ;;  %s10594_s28 = smov 75   ;;  %s10595_s29 = smov 15  }
  0xa5   : >> { %v404_v19 = vld [vmem:[%s11736_s22 + $0x8] sm:$0xff]  ;;  %v11741_v22 = vadd.f32 %v472_v16, %v408_v13  ;;  %v406_v37 = vld [vmem:[%s11736_s22 + $0x18] sm:$0xff]  ;;  %v11752_v43 = vadd.f32 %v474_v31, %v410_v28  ;;  %v475_v57 = vld [vmem:[%s11736_s22 + $0x240] sm:$0xff]  ;;  %s10596_s30 = smov 61   ;;  %s10597_s10 = smov 1  }
  0xa6   : >> { %v468_v25 = vld [vmem:[%s11736_s22 + $0x208] sm:$0xff]  ;;  %v470_v40 = vld [vmem:[%s11736_s22 + $0x218] sm:$0xff]  ;;  %v477_v48 = vld [vmem:[%s11736_s22 + $0x250] sm:$0xff]  ;;  %s10598_s4 = smov 74   ;;  %s10599_s6 = smov 14  }
  0xa7   : >> { %18446 = vst [vmem:[#allocation206_spill] sm:$0xff] %v11741_v22  ;;  %v11746_v34 = vadd.f32 %v468_v25, %v404_v19  ;;  %631 = vrot.lane.b32.xlu1 %v11741_v22, %s10590_s9  ;;  %18448 = vst [vmem:[#allocation208_spill] sm:$0xff] %v11752_v43  ;;  %v11756_v13 = vadd.f32 %v470_v40, %v406_v37  ;;  %v414_v16 = vld [vmem:[%s11736_s22 + $0x58] sm:$0xff]  ;;  %v412_v25 = vld [vmem:[%s11736_s22 + $0x48] sm:$0xff]  ;;  %s17153_s7 = scalar_lea.vmem %s11725_s17, %s9895_s20 [#allocation6]  ;;  %s398_s19 = sadd.s32 1, %s10585_s19  }
  0xa8   : >> { %v478_v19 = vld [vmem:[%s11736_s22 + $0x258] sm:$0xff]  ;;  %v476_v46 = vld [vmem:[%s11736_s22 + $0x248] sm:$0xff]  ;;  %v479_v51 = vld [vmem:[%s11736_s22 + $0x260] sm:$0xff]  ;;  %p395_p6 = scmp.ge.s32.totalorder %s398_s19, 8  }
  0xa9   : >> { %18447 = vst [vmem:[#allocation207_spill] sm:$0xff] %v11746_v34  ;;  %627 = vrot.lane.b32.xlu0 %v11746_v34, %s10590_s9  ;;  %18449 = vst [vmem:[#allocation209_spill] sm:$0xff] %v11756_v13  ;;  %v11764_v49 = vadd.f32 %v478_v19, %v414_v16  ;;  %v11768_v28 = vadd.f32 %v476_v46, %v412_v25  ;;  %v418_v31 = vld [vmem:[%s11736_s22 + $0x78] sm:$0xff]  ;;  %v416_v40 = vld [vmem:[%s11736_s22 + $0x68] sm:$0xff]  ;;  %s9900_s8 = sshll.u32 (%p395_p6), %s10644_s16, 18  ;;  %p19382_p11 = scmp.ne.s32.totalorder (%p395_p6), %s18246_s24, 0 }
  0xaa   : >> { %v482_v37 = vld [vmem:[%s11736_s22 + $0x278] sm:$0xff]  ;;  %v480_v52 = vld [vmem:[%s11736_s22 + $0x268] sm:$0xff]  ;;  %v481_v42 = vld [vmem:[%s11736_s22 + $0x270] sm:$0xff]  ;;  %s10600_s11 = smov (%p395_p6), [#allocation6]  }
  0xab   : >> { %633 = vrot.lane.b32.xlu1 %v11752_v43, %s10590_s9  ;;  %18450 = vst [vmem:[#allocation210_spill] sm:$0xff] %v11764_v49  ;;  %18451 = vst [vmem:[#allocation211_spill] sm:$0xff] %v11768_v28  ;;  %v11776_v55 = vadd.f32 %v482_v37, %v418_v31  ;;  %v11780_v16 = vadd.f32 %v480_v52, %v416_v40  ;;  %v422_v46 = vld [vmem:[%s11736_s22 + $0x98] sm:$0xff]  ;;  %v420_v25 = vld [vmem:[%s11736_s22 + $0x88] sm:$0xff]  ;;  %s10515_s19 = sshll.u32 (%p395_p6), %s10600_s11, 4  ;;  %s10516_s19 = int_to_ptr.vmem [resolvable:$false] %s10515_s19 }
  0xac   : >> { %v486_v19 = vld [vmem:[%s11736_s22 + $0x298] sm:$0xff]  ;;  %v484_v58 = vld [vmem:[%s11736_s22 + $0x288] sm:$0xff]  ;;  %v483_v45 = vld [vmem:[%s11736_s22 + $0x280] sm:$0xff]  ;;  %s10517_s16 = scalar_lea.vmem (%p395_p6), %s10516_s19, 524288 }
  0xad   : >> { %629 = vrot.lane.b32.xlu0 %v11756_v13, %s10590_s9  ;;  %18452 = vst [vmem:[#allocation212_spill] sm:$0xff] %v11776_v55  ;;  %18453 = vst [vmem:[#allocation213_spill] sm:$0xff] %v11780_v16  ;;  %v11788_v61 = vadd.f32 %v486_v19, %v422_v46  ;;  %v11792_v31 = vadd.f32 %v484_v58, %v420_v25  ;;  %v426_v52 = vld [vmem:[%s11736_s22 + $0xb8] sm:$0xff]  ;;  %v424_v40 = vld [vmem:[%s11736_s22 + $0xa8] sm:$0xff] }
  0xae   : >> { %v490_v37 = vld [vmem:[%s11736_s22 + $0x2b8] sm:$0xff]  ;;  %v488_v56 = vld [vmem:[%s11736_s22 + $0x2a8] sm:$0xff]  ;;  %v485_v36 = vld [vmem:[%s11736_s22 + $0x290] sm:$0xff] }
  0xaf   : >> { %637 = vrot.lane.b32.xlu1 %v11764_v49, %s10590_s9  ;;  %18454 = vst [vmem:[#allocation214_spill] sm:$0xff] %v11788_v61  ;;  %18455 = vst [vmem:[#allocation215_spill] sm:$0xff] %v11792_v31  ;;  %v11800_v62 = vadd.f32 %v490_v37, %v426_v52  ;;  %v11804_v46 = vadd.f32 %v488_v56, %v424_v40  ;;  %v430_v58 = vld [vmem:[%s11736_s22 + $0xd8] sm:$0xff]  ;;  %v428_v25 = vld [vmem:[%s11736_s22 + $0xc8] sm:$0xff] }
  0xb0   : >> { %v494_v19 = vld [vmem:[%s11736_s22 + $0x2d8] sm:$0xff]  ;;  %v492_v59 = vld [vmem:[%s11736_s22 + $0x2c8] sm:$0xff]  ;;  %v487_v39 = vld [vmem:[%s11736_s22 + $0x2a0] sm:$0xff] }
  0xb1   : >> { %635 = vrot.lane.b32.xlu0 %v11768_v28, %s10590_s9  ;;  %18456 = vst [vmem:[#allocation216_spill] sm:$0xff] %v11800_v62  ;;  %18457 = vst [vmem:[#allocation217_spill] sm:$0xff] %v11804_v46  ;;  %v11812_v53 = vadd.f32 %v494_v19, %v430_v58  ;;  %v11816_v52 = vadd.f32 %v492_v59, %v428_v25  ;;  %v434_v56 = vld [vmem:[%s11736_s22 + $0xf8] sm:$0xff]  ;;  %v432_v40 = vld [vmem:[%s11736_s22 + $0xe8] sm:$0xff] }
  0xb2   : >> { %v498_v37 = vld [vmem:[%s11736_s22 + $0x2f8] sm:$0xff]  ;;  %v496_v47 = vld [vmem:[%s11736_s22 + $0x2e8] sm:$0xff]  ;;  %v489_v30 = vld [vmem:[%s11736_s22 + $0x2b0] sm:$0xff] }
  0xb3   : >> { %641 = vrot.lane.b32.xlu1 %v11776_v55, %s10590_s9  ;;  %18458 = vst [vmem:[#allocation218_spill] sm:$0xff] %v11812_v53  ;;  %18459 = vst [vmem:[#allocation219_spill] sm:$0xff] %v11816_v52  ;;  %v11824_v41 = vadd.f32 %v498_v37, %v434_v56  ;;  %v11828_v58 = vadd.f32 %v496_v47, %v432_v40  ;;  %v438_v59 = vld [vmem:[%s11736_s22 + $0x118] sm:$0xff]  ;;  %v436_v25 = vld [vmem:[%s11736_s22 + $0x108] sm:$0xff] }
  0xb4   : >> { %v502_v19 = vld [vmem:[%s11736_s22 + $0x318] sm:$0xff]  ;;  %v500_v35 = vld [vmem:[%s11736_s22 + $0x308] sm:$0xff]  ;;  %v491_v33 = vld [vmem:[%s11736_s22 + $0x2c0] sm:$0xff] }
  0xb5   : >> { %639 = vrot.lane.b32.xlu0 %v11780_v16, %s10590_s9  ;;  %18460 = vst [vmem:[#allocation220_spill] sm:$0xff] %v11824_v41  ;;  %18461 = vst [vmem:[#allocation221_spill] sm:$0xff] %v11828_v58  ;;  %v11836_v5 = vadd.f32 %v502_v19, %v438_v59  ;;  %v11840_v56 = vadd.f32 %v500_v35, %v436_v25  ;;  %v442_v47 = vld [vmem:[%s11736_s22 + $0x138] sm:$0xff]  ;;  %v440_v40 = vld [vmem:[%s11736_s22 + $0x128] sm:$0xff] }
  0xb6   : >> { %v506_v37 = vld [vmem:[%s11736_s22 + $0x338] sm:$0xff]  ;;  %v504_v23 = vld [vmem:[%s11736_s22 + $0x328] sm:$0xff]  ;;  %v493_v24 = vld [vmem:[%s11736_s22 + $0x2d0] sm:$0xff] }
  0xb7   : >> { %645 = vrot.lane.b32.xlu1 %v11788_v61, %s10590_s9  ;;  %18462 = vst [vmem:[#allocation222_spill] sm:$0xff] %v11836_v5  ;;  %18463 = vst [vmem:[#allocation223_spill] sm:$0xff] %v11840_v56  ;;  %v11848_v17 = vadd.f32 %v506_v37, %v442_v47  ;;  %v11852_v59 = vadd.f32 %v504_v23, %v440_v40  ;;  %v446_v35 = vld [vmem:[%s11736_s22 + $0x158] sm:$0xff]  ;;  %v444_v25 = vld [vmem:[%s11736_s22 + $0x148] sm:$0xff] }
  0xb8   : >> { %v510_v19 = vld [vmem:[%s11736_s22 + $0x358] sm:$0xff]  ;;  %v508_v11 = vld [vmem:[%s11736_s22 + $0x348] sm:$0xff]  ;;  %v431_v27 = vld [vmem:[%s11736_s22 + $0xe0] sm:$0xff] }
  0xb9   : >> { %643 = vrot.lane.b32.xlu0 %v11792_v31, %s10590_s9  ;;  %18464 = vst [vmem:[#allocation224_spill] sm:$0xff] %v11848_v17  ;;  %18465 = vst [vmem:[#allocation225_spill] sm:$0xff] %v11852_v59  ;;  %v11860_v2 = vadd.f32 %v510_v19, %v446_v35  ;;  %v11864_v47 = vadd.f32 %v508_v11, %v444_v25  ;;  %v450_v23 = vld [vmem:[%s11736_s22 + $0x178] sm:$0xff]  ;;  %v448_v40 = vld [vmem:[%s11736_s22 + $0x168] sm:$0xff] }
  0xba   : >> { %v514_v37 = vld [vmem:[%s11736_s22 + $0x378] sm:$0xff]  ;;  %v512_v29 = vld [vmem:[%s11736_s22 + $0x368] sm:$0xff]  ;;  %v495_v18 = vld [vmem:[%s11736_s22 + $0x2e0] sm:$0xff] }
  0xbb   : >> { %649 = vrot.lane.b32.xlu1 %v11800_v62, %s10590_s9  ;;  %18466 = vst [vmem:[#allocation226_spill] sm:$0xff] %v11860_v2  ;;  %18467 = vst [vmem:[#allocation227_spill] sm:$0xff] %v11864_v47  ;;  %v11872_v14 = vadd.f32 %v514_v37, %v450_v23  ;;  %v11876_v35 = vadd.f32 %v512_v29, %v448_v40  ;;  %v454_v11 = vld [vmem:[%s11736_s22 + $0x198] sm:$0xff]  ;;  %v452_v25 = vld [vmem:[%s11736_s22 + $0x188] sm:$0xff] }
  0xbc   : >> { %v518_v19 = vld [vmem:[%s11736_s22 + $0x398] sm:$0xff]  ;;  %v516_v8 = vld [vmem:[%s11736_s22 + $0x388] sm:$0xff] }
  0xbd   : >> { %647 = vrot.lane.b32.xlu0 %v11804_v46, %s10590_s9  ;;  %18468 = vst [vmem:[#allocation228_spill] sm:$0xff] %v11872_v14  ;;  %18469 = vst [vmem:[#allocation229_spill] sm:$0xff] %v11876_v35  ;;  %v11884_v26 = vadd.f32 %v518_v19, %v454_v11  ;;  %v11888_v23 = vadd.f32 %v516_v8, %v452_v25  ;;  %v458_v29 = vld [vmem:[%s11736_s22 + $0x1b8] sm:$0xff]  ;;  %v456_v40 = vld [vmem:[%s11736_s22 + $0x1a8] sm:$0xff] }
  0xbe   : >> { %v522_v37 = vld [vmem:[%s11736_s22 + $0x3b8] sm:$0xff]  ;;  %v520_v20 = vld [vmem:[%s11736_s22 + $0x3a8] sm:$0xff] }
  0xbf   : >> { %653 = vrot.lane.b32.xlu1 %v11812_v53, %s10590_s9  ;;  %18470 = vst [vmem:[#allocation230_spill] sm:$0xff] %v11884_v26  ;;  %18471 = vst [vmem:[#allocation231_spill] sm:$0xff] %v11888_v23  ;;  %v11896_v38 = vadd.f32 %v522_v37, %v458_v29  ;;  %v11900_v11 = vadd.f32 %v520_v20, %v456_v40  ;;  %v462_v8 = vld [vmem:[%s11736_s22 + $0x1d8] sm:$0xff]  ;;  %v460_v25 = vld [vmem:[%s11736_s22 + $0x1c8] sm:$0xff] }
  0xc0   : >> { %v526_v19 = vld [vmem:[%s11736_s22 + $0x3d8] sm:$0xff]  ;;  %v524_v32 = vld [vmem:[%s11736_s22 + $0x3c8] sm:$0xff] }
  0xc1   : >> { %651 = vrot.lane.b32.xlu0 %v11816_v52, %s10590_s9  ;;  %18472 = vst [vmem:[#allocation232_spill] sm:$0xff] %v11896_v38  ;;  %18473 = vst [vmem:[#allocation233_spill] sm:$0xff] %v11900_v11  ;;  %v11908_v50 = vadd.f32 %v526_v19, %v462_v8  ;;  %v11912_v29 = vadd.f32 %v524_v32, %v460_v25  ;;  %v466_v20 = vld [vmem:[%s11736_s22 + $0x1f8] sm:$0xff]  ;;  %v464_v40 = vld [vmem:[%s11736_s22 + $0x1e8] sm:$0xff] }
  0xc2   : >> { %v530_v37 = vld [vmem:[%s11736_s22 + $0x3f8] sm:$0xff]  ;;  %v528_v44 = vld [vmem:[%s11736_s22 + $0x3e8] sm:$0xff]  ;;  %v403_v19 = vld [vmem:[%s11736_s22] sm:$0xff] }
  0xc3   : >> { %657 = vrot.lane.b32.xlu1 %v11824_v41, %s10590_s9  ;;  %18474 = vst [vmem:[#allocation234_spill] sm:$0xff] %v11908_v50  ;;  %18475 = vst [vmem:[#allocation235_spill] sm:$0xff] %v11912_v29  ;;  %v11920_v60 = vadd.f32 %v530_v37, %v466_v20  ;;  %v11924_v8 = vadd.f32 %v528_v44, %v464_v40  ;;  %v467_v32 = vld [vmem:[%s11736_s22 + $0x200] sm:$0xff]  ;;  %v469_v20 = vld [vmem:[%s11736_s22 + $0x210] sm:$0xff] }
  0xc4   : >> { %v11932_v25 = vadd.f32 %v467_v32, %v403_v19  ;;  %v11940_v44 = vadd.f32 %v469_v20, %v405_v63  ;;  %v407_v37 = vld [vmem:[%s11736_s22 + $0x20] sm:$0xff]  ;;  %v409_v32 = vld [vmem:[%s11736_s22 + $0x30] sm:$0xff] }
  0xc5   : >> { %655 = vrot.lane.b32.xlu0 %v11828_v58, %s10590_s9  ;;  %18476 = vst [vmem:[#allocation236_spill] sm:$0xff] %v11920_v60  ;;  %18477 = vst [vmem:[#allocation237_spill] sm:$0xff] %v11924_v8  ;;  %v471_v40 = vld [vmem:[%s11736_s22 + $0x220] sm:$0xff]  ;;  %v11956_v63 = vadd.f32 %v473_v54, %v409_v32 }
  0xc6   : >> { %18478 = vst [vmem:[#allocation238_spill] sm:$0xff] %v11932_v25  ;;  %18479 = vst [vmem:[#allocation239_spill] sm:$0xff] %v11940_v44  ;;  %v11948_v19 = vadd.f32 %v471_v40, %v407_v37  ;;  %v411_v20 = vld [vmem:[%s11736_s22 + $0x40] sm:$0xff]  ;;  %v413_v40 = vld [vmem:[%s11736_s22 + $0x50] sm:$0xff] }
  0xc7   : >> { %661 = vrot.lane.b32.xlu1 %v11836_v5, %s10590_s9  ;;  %18481 = vst [vmem:[#allocation241_spill] sm:$0xff] %v11956_v63  ;;  %v11964_v37 = vadd.f32 %v475_v57, %v411_v20  ;;  %v11972_v54 = vadd.f32 %v477_v48, %v413_v40  ;;  %v415_v32 = vld [vmem:[%s11736_s22 + $0x60] sm:$0xff]  ;;  %v417_v20 = vld [vmem:[%s11736_s22 + $0x70] sm:$0xff] }
  0xc8   : >> { %18480 = vst [vmem:[#allocation240_spill] sm:$0xff] %v11948_v19  ;;  %v11980_v57 = vadd.f32 %v479_v51, %v415_v32  ;;  %v11988_v48 = vadd.f32 %v481_v42, %v417_v20  ;;  %v419_v40 = vld [vmem:[%s11736_s22 + $0x80] sm:$0xff]  ;;  %v421_v32 = vld [vmem:[%s11736_s22 + $0x90] sm:$0xff] }
  0xc9   : >> { %659 = vrot.lane.b32.xlu0 %v11840_v56, %s10590_s9  ;;  %18482 = vst [vmem:[#allocation242_spill] sm:$0xff] %v11964_v37  ;;  %18483 = vst [vmem:[#allocation243_spill] sm:$0xff] %v11972_v54  ;;  %v11996_v51 = vadd.f32 %v483_v45, %v419_v40  ;;  %v12004_v42 = vadd.f32 %v485_v36, %v421_v32  ;;  %v423_v20 = vld [vmem:[%s11736_s22 + $0xa0] sm:$0xff]  ;;  %v425_v40 = vld [vmem:[%s11736_s22 + $0xb0] sm:$0xff] }
  0xca   : >> { %18484 = vst [vmem:[#allocation244_spill] sm:$0xff] %v11980_v57  ;;  %18485 = vst [vmem:[#allocation245_spill] sm:$0xff] %v11988_v48  ;;  %v12012_v45 = vadd.f32 %v487_v39, %v423_v20  ;;  %v12020_v36 = vadd.f32 %v489_v30, %v425_v40  ;;  %v427_v32 = vld [vmem:[%s11736_s22 + $0xc0] sm:$0xff]  ;;  %v429_v20 = vld [vmem:[%s11736_s22 + $0xd0] sm:$0xff] }
  0xcb   : >> { %665 = vrot.lane.b32.xlu1 %v11848_v17, %s10590_s9  ;;  %18486 = vst [vmem:[#allocation246_spill] sm:$0xff] %v11996_v51  ;;  %18487 = vst [vmem:[#allocation247_spill] sm:$0xff] %v12004_v42  ;;  %v12028_v39 = vadd.f32 %v491_v33, %v427_v32  ;;  %v12036_v30 = vadd.f32 %v493_v24, %v429_v20  ;;  %v12048_v33 = vadd.f32 %v495_v18, %v431_v27  ;;  %v433_v24 = vld [vmem:[%s11736_s22 + $0xf0] sm:$0xff]  ;;  %v435_v18 = vld [vmem:[%s11736_s22 + $0x100] sm:$0xff] }
  0xcc   : >> { %18488 = vst [vmem:[#allocation248_spill] sm:$0xff] %v12012_v45  ;;  %18489 = vst [vmem:[#allocation249_spill] sm:$0xff] %v12020_v36  ;;  %v497_v20 = vld [vmem:[%s11736_s22 + $0x2f0] sm:$0xff]  ;;  %v499_v27 = vld [vmem:[%s11736_s22 + $0x300] sm:$0xff] }
  0xcd   : >> { %663 = vrot.lane.b32.xlu0 %v11852_v59, %s10590_s9  ;;  %18490 = vst [vmem:[#allocation250_spill] sm:$0xff] %v12028_v39  ;;  %18491 = vst [vmem:[#allocation251_spill] sm:$0xff] %v12036_v30  ;;  %v12060_v15 = vadd.f32 %v497_v20, %v433_v24  ;;  %v12072_v7 = vadd.f32 %v499_v27, %v435_v18  ;;  %v437_v24 = vld [vmem:[%s11736_s22 + $0x110] sm:$0xff]  ;;  %v439_v18 = vld [vmem:[%s11736_s22 + $0x120] sm:$0xff] }
  0xce   : >> { %18494 = vst [vmem:[#allocation254_spill] sm:$0xff] %v12048_v33  ;;  %v501_v20 = vld [vmem:[%s11736_s22 + $0x310] sm:$0xff]  ;;  %v503_v27 = vld [vmem:[%s11736_s22 + $0x320] sm:$0xff] }
  0xcf   : >> { %669 = vrot.lane.b32.xlu1 %v11860_v2, %s10590_s9  ;;  %18497 = vst [vmem:[#allocation257_spill] sm:$0xff] %v12060_v15  ;;  %18500 = vst [vmem:[#allocation260_spill] sm:$0xff] %v12072_v7  ;;  %v12084_v3 = vadd.f32 %v501_v20, %v437_v24  ;;  %v441_v24 = vld [vmem:[%s11736_s22 + $0x130] sm:$0xff] }
  0xd0   : >> { %v505_v20 = vld [vmem:[%s11736_s22 + $0x330] sm:$0xff] }
  0xd1   : >> { %667 = vrot.lane.b32.xlu0 %v11864_v47, %s10590_s9  ;;  %18503 = vst [vmem:[#allocation263_spill] sm:$0xff] %v12084_v3 }
  0xd3   : >> { %673 = vrot.lane.b32.xlu1 %v11872_v14, %s10590_s9 }
  0xd5   : >> { %671 = vrot.lane.b32.xlu0 %v11876_v35, %s10590_s9 }
  0xd7   : >> { %677 = vrot.lane.b32.xlu1 %v11884_v26, %s10590_s9 }
  0xd9   : >> { %675 = vrot.lane.b32.xlu0 %v11888_v23, %s10590_s9 }
  0xdb   : >> { %681 = vrot.lane.b32.xlu1 %v11896_v38, %s10590_s9 }
  0xdd   : >> { %679 = vrot.lane.b32.xlu0 %v11900_v11, %s10590_s9 }
  0xdf   : >> { %685 = vrot.lane.b32.xlu1 %v11908_v50, %s10590_s9 }
  0xe1   : >> { %683 = vrot.lane.b32.xlu0 %v11912_v29, %s10590_s9 }
  0xe3   : >> { %689 = vrot.lane.b32.xlu1 %v11920_v60, %s10590_s9 }
  0xe5   : >> { %687 = vrot.lane.b32.xlu0 %v11924_v8, %s10590_s9 }
  0xe7   : >> { %757 = vrot.lane.b32.xlu1 %v11746_v34, %s10591_s23 }
  0xe9   : >> { %755 = vrot.lane.b32.xlu0 %v11932_v25, %s10591_s23 }
  0xeb   : >> { %761 = vrot.lane.b32.xlu1 %v11756_v13, %s10591_s23 }
  0xed   : >> { %759 = vrot.lane.b32.xlu0 %v11940_v44, %s10591_s23 }
  0xef   : >> { %765 = vrot.lane.b32.xlu1 %v11741_v22, %s10591_s23 }
  0xf1   : >> { %763 = vrot.lane.b32.xlu0 %v11948_v19, %s10591_s23 }
  0xf3   : >> { %769 = vrot.lane.b32.xlu1 %v11752_v43, %s10591_s23 }
  0xf5   : >> { %767 = vrot.lane.b32.xlu0 %v11956_v63, %s10591_s23 }
  0xf7   : >> { %773 = vrot.lane.b32.xlu1 %v11768_v28, %s10591_s23 }
  0xf9   : >> { %771 = vrot.lane.b32.xlu0 %v11964_v37, %s10591_s23 }
  0xfb   : >> { %777 = vrot.lane.b32.xlu1 %v11764_v49, %s10591_s23 }
  0xfd   : >> { %775 = vrot.lane.b32.xlu0 %v11972_v54, %s10591_s23 }
  0xff   : >> { %781 = vrot.lane.b32.xlu1 %v11780_v16, %s10591_s23 }
 0x101   : >> { %779 = vrot.lane.b32.xlu0 %v11980_v57, %s10591_s23 }
 0x103   : >> { %785 = vrot.lane.b32.xlu1 %v11776_v55, %s10591_s23 }
 0x105   : >> { %783 = vrot.lane.b32.xlu0 %v11988_v48, %s10591_s23 }
 0x107   : >> { %789 = vrot.lane.b32.xlu1 %v11792_v31, %s10591_s23 }
 0x109   : >> { %787 = vrot.lane.b32.xlu0 %v11996_v51, %s10591_s23 }
 0x10b   : >> { %793 = vrot.lane.b32.xlu1 %v11788_v61, %s10591_s23 }
 0x10d   : >> { %791 = vrot.lane.b32.xlu0 %v12004_v42, %s10591_s23 }
 0x10f   : >> { %797 = vrot.lane.b32.xlu1 %v11804_v46, %s10591_s23 }
 0x111   : >> { %795 = vrot.lane.b32.xlu0 %v12012_v45, %s10591_s23 }
 0x113   : >> { %801 = vrot.lane.b32.xlu1 %v11800_v62, %s10591_s23 }
 0x115   : >> { %799 = vrot.lane.b32.xlu0 %v12020_v36, %s10591_s23 }
 0x117   : >> { %805 = vrot.lane.b32.xlu1 %v11816_v52, %s10591_s23 }
 0x119   : >> { %803 = vrot.lane.b32.xlu0 %v12028_v39, %s10591_s23  ;;  %v12038_v40 = vpop.permute.xlu1 %631 }
 0x11a   : >> { %18492 = vst [vmem:[#allocation252_spill] sm:$0xff] %v12038_v40 }
 0x11b   : >> { %v12042_v21 = vpop.permute.xlu0 %627  ;;  %809 = vrot.lane.b32.xlu1 %v11812_v53, %s10591_s23 }
 0x11c   : >> { %18493 = vst [vmem:[#allocation253_spill] sm:$0xff] %v12042_v21 }
 0x11d   : >> { %807 = vrot.lane.b32.xlu0 %v12036_v30, %s10591_s23  ;;  %v12050_v32 = vpop.permute.xlu1 %633 }
 0x11e   : >> { %18495 = vst [vmem:[#allocation255_spill] sm:$0xff] %v12050_v32 }
 0x11f   : >> { %v12054_v12 = vpop.permute.xlu0 %629  ;;  %813 = vrot.lane.b32.xlu1 %v11828_v58, %s10591_s23 }
 0x120   : >> { %18496 = vst [vmem:[#allocation256_spill] sm:$0xff] %v12054_v12 }
 0x121   : >> { %811 = vrot.lane.b32.xlu0 %v12048_v33, %s10591_s23  ;;  %v12062_v6 = vpop.permute.xlu1 %637 }
 0x122   : >> { %18498 = vst [vmem:[#allocation258_spill] sm:$0xff] %v12062_v6 }
 0x123   : >> { %v12066_v9 = vpop.permute.xlu0 %635  ;;  %817 = vrot.lane.b32.xlu1 %v11824_v41, %s10591_s23 }
 0x124   : >> { %18499 = vst [vmem:[#allocation259_spill] sm:$0xff] %v12066_v9 }
 0x125   : >> { %815 = vrot.lane.b32.xlu0 %v12060_v15, %s10591_s23  ;;  %v12074_v1 = vpop.permute.xlu1 %641 }
 0x126   : >> { %18501 = vst [vmem:[#allocation261_spill] sm:$0xff] %v12074_v1 }
 0x127   : >> { %v12078_v0 = vpop.permute.xlu0 %639  ;;  %821 = vrot.lane.b32.xlu1 %v11840_v56, %s10591_s23 }
 0x128   : >> { %18502 = vst [vmem:[#allocation262_spill] sm:$0xff] %v12078_v0  ;;  %v12096_v0 = vadd.f32 %v503_v27, %v439_v18  ;;  %v443_v18 = vld [vmem:[%s11736_s22 + $0x140] sm:$0xff] }
 0x129   : >> { %819 = vrot.lane.b32.xlu0 %v12072_v7, %s10591_s23  ;;  %v12086_v6 = vpop.permute.xlu1 %645  ;;  %v507_v27 = vld [vmem:[%s11736_s22 + $0x340] sm:$0xff] }
 0x12a   : >> { %18504 = vst [vmem:[#allocation264_spill] sm:$0xff] %v12086_v6  ;;  %18506 = vst [vmem:[#allocation266_spill] sm:$0xff] %v12096_v0 }
 0x12b   : >> { %v12090_v1 = vpop.permute.xlu0 %643  ;;  %825 = vrot.lane.b32.xlu1 %v11836_v5, %s10591_s23 }
 0x12c   : >> { %18505 = vst [vmem:[#allocation265_spill] sm:$0xff] %v12090_v1  ;;  %v12108_v1 = vadd.f32 %v505_v20, %v441_v24  ;;  %v445_v24 = vld [vmem:[%s11736_s22 + $0x150] sm:$0xff] }
 0x12d   : >> { %823 = vrot.lane.b32.xlu0 %v12084_v3, %s10591_s23  ;;  %v12098_v9 = vpop.permute.xlu1 %649  ;;  %v509_v20 = vld [vmem:[%s11736_s22 + $0x350] sm:$0xff] }
 0x12e   : >> { %18507 = vst [vmem:[#allocation267_spill] sm:$0xff] %v12098_v9  ;;  %18509 = vst [vmem:[#allocation269_spill] sm:$0xff] %v12108_v1 }
 0x12f   : >> { %v12102_v6 = vpop.permute.xlu0 %647  ;;  %829 = vrot.lane.b32.xlu1 %v11852_v59, %s10591_s23 }
 0x130   : >> { %18508 = vst [vmem:[#allocation268_spill] sm:$0xff] %v12102_v6  ;;  %v12120_v6 = vadd.f32 %v507_v27, %v443_v18  ;;  %v447_v18 = vld [vmem:[%s11736_s22 + $0x160] sm:$0xff] }
 0x131   : >> { %827 = vrot.lane.b32.xlu0 %v12096_v0, %s10591_s23  ;;  %v12110_v32 = vpop.permute.xlu1 %653  ;;  %v511_v27 = vld [vmem:[%s11736_s22 + $0x360] sm:$0xff] }
 0x132   : >> { %18510 = vst [vmem:[#allocation270_spill] sm:$0xff] %v12110_v32  ;;  %18512 = vst [vmem:[#allocation272_spill] sm:$0xff] %v12120_v6 }
 0x133   : >> { %v12114_v9 = vpop.permute.xlu0 %651  ;;  %833 = vrot.lane.b32.xlu1 %v11848_v17, %s10591_s23 }
 0x134   : >> { %18511 = vst [vmem:[#allocation271_spill] sm:$0xff] %v12114_v9  ;;  %v12132_v9 = vadd.f32 %v509_v20, %v445_v24  ;;  %v449_v24 = vld [vmem:[%s11736_s22 + $0x170] sm:$0xff] }
 0x135   : >> { %831 = vrot.lane.b32.xlu0 %v12108_v1, %s10591_s23  ;;  %v12122_v40 = vpop.permute.xlu1 %657  ;;  %v513_v20 = vld [vmem:[%s11736_s22 + $0x370] sm:$0xff] }
 0x136   : >> { %18513 = vst [vmem:[#allocation273_spill] sm:$0xff] %v12122_v40  ;;  %18515 = vst [vmem:[#allocation275_spill] sm:$0xff] %v12132_v9 }
 0x137   : >> { %v12126_v32 = vpop.permute.xlu0 %655  ;;  %837 = vrot.lane.b32.xlu1 %v11864_v47, %s10591_s23 }
 0x138   : >> { %18514 = vst [vmem:[#allocation274_spill] sm:$0xff] %v12126_v32  ;;  %v12144_v32 = vadd.f32 %v511_v27, %v447_v18  ;;  %v451_v18 = vld [vmem:[%s11736_s22 + $0x180] sm:$0xff] }
 0x139   : >> { %835 = vrot.lane.b32.xlu0 %v12120_v6, %s10591_s23  ;;  %v12134_v12 = vpop.permute.xlu1 %661  ;;  %v515_v27 = vld [vmem:[%s11736_s22 + $0x380] sm:$0xff] }
 0x13a   : >> { %18516 = vst [vmem:[#allocation276_spill] sm:$0xff] %v12134_v12  ;;  %18518 = vst [vmem:[#allocation278_spill] sm:$0xff] %v12144_v32 }
 0x13b   : >> { %v12138_v40 = vpop.permute.xlu0 %659  ;;  %841 = vrot.lane.b32.xlu1 %v11860_v2, %s10591_s23 }
 0x13c   : >> { %18517 = vst [vmem:[#allocation277_spill] sm:$0xff] %v12138_v40  ;;  %v12156_v40 = vadd.f32 %v513_v20, %v449_v24  ;;  %v453_v24 = vld [vmem:[%s11736_s22 + $0x190] sm:$0xff] }
 0x13d   : >> { %839 = vrot.lane.b32.xlu0 %v12132_v9, %s10591_s23  ;;  %v12146_v21 = vpop.permute.xlu1 %665  ;;  %v517_v20 = vld [vmem:[%s11736_s22 + $0x390] sm:$0xff] }
 0x13e   : >> { %18519 = vst [vmem:[#allocation279_spill] sm:$0xff] %v12146_v21  ;;  %18521 = vst [vmem:[#allocation281_spill] sm:$0xff] %v12156_v40  ;;  %v465_v9 = vld [vmem:[%s11736_s22 + $0x1f0] sm:$0xff] }
 0x13f   : >> { %v12150_v12 = vpop.permute.xlu0 %663  ;;  %845 = vrot.lane.b32.xlu1 %v11876_v35, %s10591_s23 }
 0x140   : >> { %18520 = vst [vmem:[#allocation280_spill] sm:$0xff] %v12150_v12  ;;  %v12168_v12 = vadd.f32 %v515_v27, %v451_v18  ;;  %v455_v18 = vld [vmem:[%s11736_s22 + $0x1a0] sm:$0xff] }
 0x141   : >> { %843 = vrot.lane.b32.xlu0 %v12144_v32, %s10591_s23  ;;  %v12158_v10 = vpop.permute.xlu1 %669  ;;  %v519_v27 = vld [vmem:[%s11736_s22 + $0x3a0] sm:$0xff] }
 0x142   : >> { %18522 = vst [vmem:[#allocation282_spill] sm:$0xff] %v12158_v10  ;;  %18524 = vst [vmem:[#allocation284_spill] sm:$0xff] %v12168_v12 }
 0x143   : >> { %v12162_v21 = vpop.permute.xlu0 %667  ;;  %849 = vrot.lane.b32.xlu1 %v11872_v14, %s10591_s23 }
 0x144   : >> { %18523 = vst [vmem:[#allocation283_spill] sm:$0xff] %v12162_v21  ;;  %v12180_v21 = vadd.f32 %v517_v20, %v453_v24  ;;  %v457_v24 = vld [vmem:[%s11736_s22 + $0x1b0] sm:$0xff] }
 0x145   : >> { %847 = vrot.lane.b32.xlu0 %v12156_v40, %s10591_s23  ;;  %v12170_v4 = vpop.permute.xlu1 %673  ;;  %v521_v20 = vld [vmem:[%s11736_s22 + $0x3b0] sm:$0xff] }
 0x146   : >> { %18525 = vst [vmem:[#allocation285_spill] sm:$0xff] %v12170_v4  ;;  %18527 = vst [vmem:[#allocation287_spill] sm:$0xff] %v12180_v21 }
 0x147   : >> { %v12174_v10 = vpop.permute.xlu0 %671  ;;  %853 = vrot.lane.b32.xlu1 %v11888_v23, %s10591_s23 }
 0x148   : >> { %18526 = vst [vmem:[#allocation286_spill] sm:$0xff] %v12174_v10  ;;  %v12192_v10 = vadd.f32 %v519_v27, %v455_v18  ;;  %v459_v18 = vld [vmem:[%s11736_s22 + $0x1c0] sm:$0xff] }
 0x149   : >> { %851 = vrot.lane.b32.xlu0 %v12168_v12, %s10591_s23  ;;  %v12182_v40 = vpop.permute.xlu1 %677  ;;  %v523_v27 = vld [vmem:[%s11736_s22 + $0x3c0] sm:$0xff] }
 0x14a   : >> { %18528 = vst [vmem:[#allocation288_spill] sm:$0xff] %v12182_v40  ;;  %18530 = vst [vmem:[#allocation290_spill] sm:$0xff] %v12192_v10 }
 0x14b   : >> { %v12186_v4 = vpop.permute.xlu0 %675  ;;  %857 = vrot.lane.b32.xlu1 %v11884_v26, %s10591_s23 }
 0x14c   : >> { %18529 = vst [vmem:[#allocation289_spill] sm:$0xff] %v12186_v4  ;;  %v12204_v4 = vadd.f32 %v521_v20, %v457_v24  ;;  %v461_v24 = vld [vmem:[%s11736_s22 + $0x1d0] sm:$0xff] }
 0x14d   : >> { %855 = vrot.lane.b32.xlu0 %v12180_v21, %s10591_s23  ;;  %v12194_v12 = vpop.permute.xlu1 %681  ;;  %v525_v20 = vld [vmem:[%s11736_s22 + $0x3d0] sm:$0xff] }
 0x14e   : >> { %18531 = vst [vmem:[#allocation291_spill] sm:$0xff] %v12194_v12  ;;  %18533 = vst [vmem:[#allocation293_spill] sm:$0xff] %v12204_v4 }
 0x14f   : >> { %v12198_v40 = vpop.permute.xlu0 %679  ;;  %861 = vrot.lane.b32.xlu1 %v11900_v11, %s10591_s23 }
 0x150   : >> { %18532 = vst [vmem:[#allocation292_spill] sm:$0xff] %v12198_v40  ;;  %v12216_v40 = vadd.f32 %v523_v27, %v459_v18  ;;  %v463_v18 = vld [vmem:[%s11736_s22 + $0x1e0] sm:$0xff] }
 0x151   : >> { %859 = vrot.lane.b32.xlu0 %v12192_v10, %s10591_s23  ;;  %v12206_v21 = vpop.permute.xlu1 %685  ;;  %v527_v27 = vld [vmem:[%s11736_s22 + $0x3e0] sm:$0xff] }
 0x152   : >> { %18534 = vst [vmem:[#allocation294_spill] sm:$0xff] %v12206_v21  ;;  %18536 = vst [vmem:[#allocation296_spill] sm:$0xff] %v12216_v40 }
 0x153   : >> { %v12210_v12 = vpop.permute.xlu0 %683  ;;  %865 = vrot.lane.b32.xlu1 %v11896_v38, %s10591_s23 }
 0x154   : >> { %18535 = vst [vmem:[#allocation295_spill] sm:$0xff] %v12210_v12  ;;  %v12228_v12 = vadd.f32 %v525_v20, %v461_v24 }
 0x155   : >> { %863 = vrot.lane.b32.xlu0 %v12204_v4, %s10591_s23  ;;  %v12218_v10 = vpop.permute.xlu1 %689 }
 0x156   : >> { %18537 = vst [vmem:[#allocation297_spill] sm:$0xff] %v12218_v10  ;;  %18539 = vst [vmem:[#allocation299_spill] sm:$0xff] %v12228_v12  ;;  %v12240_v10 = vadd.f32 %v527_v27, %v463_v18 }
 0x157   : >> { %v12222_v21 = vpop.permute.xlu0 %687  ;;  %869 = vrot.lane.b32.xlu1 %v11912_v29, %s10591_s23 }
 0x158   : >> { %18538 = vst [vmem:[#allocation298_spill] sm:$0xff] %v12222_v21  ;;  %18542 = vst [vmem:[#allocation302_spill] sm:$0xff] %v12240_v10 }
 0x159   : >> { %867 = vrot.lane.b32.xlu0 %v12216_v40, %s10591_s23  ;;  %v12230_v32 = vpop.permute.xlu1 %757  ;;  %v529_v40 = vld [vmem:[%s11736_s22 + $0x3f0] sm:$0xff] }
 0x15a   : >> { %18540 = vst [vmem:[#allocation300_spill] sm:$0xff] %v12230_v32  ;;  %v12252_v20 = vadd.f32 %v529_v40, %v465_v9 }
 0x15b   : >> { %v12234_v4 = vpop.permute.xlu0 %755  ;;  %873 = vrot.lane.b32.xlu1 %v11908_v50, %s10591_s23 }
 0x15c   : >> { %18541 = vst [vmem:[#allocation301_spill] sm:$0xff] %v12234_v4  ;;  %18543 = vst [vmem:[#allocation303_spill] sm:$0xff] %v12252_v20 }
 0x15d   : >> { %871 = vrot.lane.b32.xlu0 %v12228_v12, %s10591_s23  ;;  %v12242_v21 = vpop.permute.xlu1 %761 }
 0x15f   : >> { %v12246_v24 = vpop.permute.xlu0 %759  ;;  %877 = vrot.lane.b32.xlu1 %v11924_v8, %s10591_s23 }
 0x161   : >> { %875 = vrot.lane.b32.xlu0 %v12240_v10, %s10591_s23  ;;  %v12254_v4 = vpop.permute.xlu1 %765 }
 0x163   : >> { %v12256_v32 = vpop.permute.xlu0 %763  ;;  %881 = vrot.lane.b32.xlu1 %v11920_v60, %s10591_s23 }
 0x165   : >> { %879 = vrot.lane.b32.xlu0 %v12252_v20, %s10591_s23  ;;  %v12262_v18 = vpop.permute.xlu1 %769 }
 0x166   : >> { %18544 = vst [vmem:[#allocation304_spill] sm:$0xff] %v12262_v18 }
 0x167   : >> { %v12264_v27 = vpop.permute.xlu0 %767  ;;  %1089 = vrot.lane.b32.xlu1 %v11756_v13, %s10592_s26 }
 0x168   : >> { %18545 = vst [vmem:[#allocation305_spill] sm:$0xff] %v12264_v27 }
 0x169   : >> { %1087 = vrot.lane.b32.xlu0 %v11746_v34, %s10592_s26  ;;  %v12270_v9 = vpop.permute.xlu1 %773 }
 0x16a   : >> { %18546 = vst [vmem:[#allocation306_spill] sm:$0xff] %v12270_v9 }
 0x16b   : >> { %v12272_v40 = vpop.permute.xlu0 %771  ;;  %1093 = vrot.lane.b32.xlu1 %v11752_v43, %s10592_s26 }
 0x16c   : >> { %18547 = vst [vmem:[#allocation307_spill] sm:$0xff] %v12272_v40 }
 0x16d   : >> { %1091 = vrot.lane.b32.xlu0 %v11741_v22, %s10592_s26  ;;  %v12278_v18 = vpop.permute.xlu1 %777 }
 0x16e   : >> { %18548 = vst [vmem:[#allocation308_spill] sm:$0xff] %v12278_v18 }
 0x16f   : >> { %v12280_v27 = vpop.permute.xlu0 %775  ;;  %1097 = vrot.lane.b32.xlu1 %v11764_v49, %s10592_s26 }
 0x170   : >> { %18549 = vst [vmem:[#allocation309_spill] sm:$0xff] %v12280_v27 }
 0x171   : >> { %1095 = vrot.lane.b32.xlu0 %v11768_v28, %s10592_s26  ;;  %v12286_v20 = vpop.permute.xlu1 %781 }
 0x172   : >> { %18550 = vst [vmem:[#allocation310_spill] sm:$0xff] %v12286_v20 }
 0x173   : >> { %v12288_v9 = vpop.permute.xlu0 %779  ;;  %1101 = vrot.lane.b32.xlu1 %v11776_v55, %s10592_s26 }
 0x174   : >> { %18551 = vst [vmem:[#allocation311_spill] sm:$0xff] %v12288_v9 }
 0x175   : >> { %1099 = vrot.lane.b32.xlu0 %v11780_v16, %s10592_s26  ;;  %v12294_v40 = vpop.permute.xlu1 %785 }
 0x176   : >> { %18552 = vst [vmem:[#allocation312_spill] sm:$0xff] %v12294_v40 }
 0x177   : >> { %v12296_v18 = vpop.permute.xlu0 %783  ;;  %1105 = vrot.lane.b32.xlu1 %v11788_v61, %s10592_s26 }
 0x178   : >> { %18553 = vst [vmem:[#allocation313_spill] sm:$0xff] %v12296_v18 }
 0x179   : >> { %1103 = vrot.lane.b32.xlu0 %v11792_v31, %s10592_s26  ;;  %v12302_v27 = vpop.permute.xlu1 %789 }
 0x17a   : >> { %18554 = vst [vmem:[#allocation314_spill] sm:$0xff] %v12302_v27 }
 0x17b   : >> { %v12304_v20 = vpop.permute.xlu0 %787  ;;  %1109 = vrot.lane.b32.xlu1 %v11800_v62, %s10592_s26 }
 0x17c   : >> { %18555 = vst [vmem:[#allocation315_spill] sm:$0xff] %v12304_v20 }
 0x17d   : >> { %1107 = vrot.lane.b32.xlu0 %v11804_v46, %s10592_s26  ;;  %v12310_v9 = vpop.permute.xlu1 %793 }
 0x17e   : >> { %18556 = vst [vmem:[#allocation316_spill] sm:$0xff] %v12310_v9 }
 0x17f   : >> { %v12312_v40 = vpop.permute.xlu0 %791  ;;  %1113 = vrot.lane.b32.xlu1 %v11812_v53, %s10592_s26 }
 0x180   : >> { %18557 = vst [vmem:[#allocation317_spill] sm:$0xff] %v12312_v40 }
 0x181   : >> { %1111 = vrot.lane.b32.xlu0 %v11816_v52, %s10592_s26  ;;  %v12318_v18 = vpop.permute.xlu1 %797 }
 0x182   : >> { %18558 = vst [vmem:[#allocation318_spill] sm:$0xff] %v12318_v18 }
 0x183   : >> { %v12320_v27 = vpop.permute.xlu0 %795  ;;  %1117 = vrot.lane.b32.xlu1 %v11824_v41, %s10592_s26 }
 0x184   : >> { %18559 = vst [vmem:[#allocation319_spill] sm:$0xff] %v12320_v27 }
 0x185   : >> { %1115 = vrot.lane.b32.xlu0 %v11828_v58, %s10592_s26  ;;  %v12326_v20 = vpop.permute.xlu1 %801 }
 0x186   : >> { %18560 = vst [vmem:[#allocation320_spill] sm:$0xff] %v12326_v20 }
 0x187   : >> { %v12328_v9 = vpop.permute.xlu0 %799  ;;  %1121 = vrot.lane.b32.xlu1 %v11836_v5, %s10592_s26 }
 0x188   : >> { %18561 = vst [vmem:[#allocation321_spill] sm:$0xff] %v12328_v9 }
 0x189   : >> { %1119 = vrot.lane.b32.xlu0 %v11840_v56, %s10592_s26  ;;  %v12334_v40 = vpop.permute.xlu1 %805 }
 0x18a   : >> { %18562 = vst [vmem:[#allocation322_spill] sm:$0xff] %v12334_v40 }
 0x18b   : >> { %v12336_v18 = vpop.permute.xlu0 %803  ;;  %1125 = vrot.lane.b32.xlu1 %v11848_v17, %s10592_s26 }
 0x18c   : >> { %18563 = vst [vmem:[#allocation323_spill] sm:$0xff] %v12336_v18 }
 0x18d   : >> { %1123 = vrot.lane.b32.xlu0 %v11852_v59, %s10592_s26  ;;  %v12342_v27 = vpop.permute.xlu1 %809 }
 0x18e   : >> { %18564 = vst [vmem:[#allocation324_spill] sm:$0xff] %v12342_v27 }
 0x18f   : >> { %v12344_v20 = vpop.permute.xlu0 %807  ;;  %1129 = vrot.lane.b32.xlu1 %v11860_v2, %s10592_s26 }
 0x190   : >> { %18565 = vst [vmem:[#allocation325_spill] sm:$0xff] %v12344_v20 }
 0x191   : >> { %1127 = vrot.lane.b32.xlu0 %v11864_v47, %s10592_s26  ;;  %v12350_v9 = vpop.permute.xlu1 %813 }
 0x192   : >> { %18566 = vst [vmem:[#allocation326_spill] sm:$0xff] %v12350_v9 }
 0x193   : >> { %v12352_v40 = vpop.permute.xlu0 %811  ;;  %1133 = vrot.lane.b32.xlu1 %v11872_v14, %s10592_s26 }
 0x194   : >> { %18567 = vst [vmem:[#allocation327_spill] sm:$0xff] %v12352_v40 }
 0x195   : >> { %1131 = vrot.lane.b32.xlu0 %v11876_v35, %s10592_s26  ;;  %v12358_v18 = vpop.permute.xlu1 %817 }
 0x196   : >> { %18568 = vst [vmem:[#allocation328_spill] sm:$0xff] %v12358_v18 }
 0x197   : >> { %v12360_v27 = vpop.permute.xlu0 %815  ;;  %1137 = vrot.lane.b32.xlu1 %v11884_v26, %s10592_s26 }
 0x198   : >> { %18569 = vst [vmem:[#allocation329_spill] sm:$0xff] %v12360_v27 }
 0x199   : >> { %1135 = vrot.lane.b32.xlu0 %v11888_v23, %s10592_s26  ;;  %v12366_v20 = vpop.permute.xlu1 %821 }
 0x19a   : >> { %18570 = vst [vmem:[#allocation330_spill] sm:$0xff] %v12366_v20 }
 0x19b   : >> { %v12368_v9 = vpop.permute.xlu0 %819  ;;  %1141 = vrot.lane.b32.xlu1 %v11896_v38, %s10592_s26 }
 0x19c   : >> { %18571 = vst [vmem:[#allocation331_spill] sm:$0xff] %v12368_v9 }
 0x19d   : >> { %1139 = vrot.lane.b32.xlu0 %v11900_v11, %s10592_s26  ;;  %v12374_v40 = vpop.permute.xlu1 %825 }
 0x19e   : >> { %18572 = vst [vmem:[#allocation332_spill] sm:$0xff] %v12374_v40 }
 0x19f   : >> { %v12376_v18 = vpop.permute.xlu0 %823  ;;  %1145 = vrot.lane.b32.xlu1 %v11908_v50, %s10592_s26 }
 0x1a0   : >> { %18573 = vst [vmem:[#allocation333_spill] sm:$0xff] %v12376_v18 }
 0x1a1   : >> { %1143 = vrot.lane.b32.xlu0 %v11912_v29, %s10592_s26  ;;  %v12382_v27 = vpop.permute.xlu1 %829 }
 0x1a2   : >> { %18574 = vst [vmem:[#allocation334_spill] sm:$0xff] %v12382_v27 }
 0x1a3   : >> { %v12384_v20 = vpop.permute.xlu0 %827  ;;  %1149 = vrot.lane.b32.xlu1 %v11920_v60, %s10592_s26 }
 0x1a4   : >> { %18575 = vst [vmem:[#allocation335_spill] sm:$0xff] %v12384_v20 }
 0x1a5   : >> { %1147 = vrot.lane.b32.xlu0 %v11924_v8, %s10592_s26  ;;  %v12390_v9 = vpop.permute.xlu1 %833 }
 0x1a6   : >> { %18576 = vst [vmem:[#allocation336_spill] sm:$0xff] %v12390_v9 }
 0x1a7   : >> { %v12392_v40 = vpop.permute.xlu0 %831  ;;  %1185 = vrot.lane.b32.xlu1 %v11746_v34, %s10593_s27 }
 0x1a8   : >> { %18577 = vst [vmem:[#allocation337_spill] sm:$0xff] %v12392_v40 }
 0x1a9   : >> { %1183 = vrot.lane.b32.xlu0 %v11932_v25, %s10593_s27  ;;  %v12398_v27 = vpop.permute.xlu1 %837 }
 0x1aa   : >> { %18578 = vst [vmem:[#allocation338_spill] sm:$0xff] %v12398_v27 }
 0x1ab   : >> { %v12400_v20 = vpop.permute.xlu0 %835  ;;  %1189 = vrot.lane.b32.xlu1 %v11756_v13, %s10593_s27 }
 0x1ac   : >> { %18579 = vst [vmem:[#allocation339_spill] sm:$0xff] %v12400_v20  ;;  %v18611_v20 = vld [vmem:[#allocation281_spill] sm:$0xff] }
 0x1ad   : >> { %1187 = vrot.lane.b32.xlu0 %v11940_v44, %s10593_s27  ;;  %v12406_v9 = vpop.permute.xlu1 %841 }
 0x1ae   : >> { %18580 = vst [vmem:[#allocation340_spill] sm:$0xff] %v12406_v9 }
 0x1af   : >> { %v12408_v40 = vpop.permute.xlu0 %839  ;;  %1193 = vrot.lane.b32.xlu1 %v11741_v22, %s10593_s27 }
 0x1b0   : >> { %18581 = vst [vmem:[#allocation341_spill] sm:$0xff] %v12408_v40 }
 0x1b1   : >> { %1191 = vrot.lane.b32.xlu0 %v11948_v19, %s10593_s27  ;;  %v12414_v25 = vpop.permute.xlu1 %845 }
 0x1b2   : >> { %18582 = vst [vmem:[#allocation342_spill] sm:$0xff] %v12414_v25 }
 0x1b3   : >> { %v12416_v27 = vpop.permute.xlu0 %843  ;;  %1197 = vrot.lane.b32.xlu1 %v11752_v43, %s10593_s27 }
 0x1b4   : >> { %18583 = vst [vmem:[#allocation343_spill] sm:$0xff] %v12416_v27  ;;  %v18608_v27 = vld [vmem:[#allocation278_spill] sm:$0xff] }
 0x1b5   : >> { %1195 = vrot.lane.b32.xlu0 %v11956_v63, %s10593_s27  ;;  %v12422_v44 = vpop.permute.xlu1 %849 }
 0x1b6   : >> { %18584 = vst [vmem:[#allocation344_spill] sm:$0xff] %v12422_v44 }
 0x1b7   : >> { %v12424_v9 = vpop.permute.xlu0 %847  ;;  %1201 = vrot.lane.b32.xlu1 %v11768_v28, %s10593_s27 }
 0x1b8   : >> { %18585 = vst [vmem:[#allocation345_spill] sm:$0xff] %v12424_v9 }
 0x1b9   : >> { %1199 = vrot.lane.b32.xlu0 %v11964_v37, %s10593_s27  ;;  %v12430_v19 = vpop.permute.xlu1 %853 }
 0x1ba   : >> { %18586 = vst [vmem:[#allocation346_spill] sm:$0xff] %v12430_v19 }
 0x1bb   : >> { %v12432_v25 = vpop.permute.xlu0 %851  ;;  %1205 = vrot.lane.b32.xlu1 %v11764_v49, %s10593_s27 }
 0x1bc   : >> { %18587 = vst [vmem:[#allocation347_spill] sm:$0xff] %v12432_v25  ;;  %v18605_v25 = vld [vmem:[#allocation275_spill] sm:$0xff] }
 0x1bd   : >> { %1203 = vrot.lane.b32.xlu0 %v11972_v54, %s10593_s27  ;;  %v12438_v63 = vpop.permute.xlu1 %857 }
 0x1be   : >> { %18588 = vst [vmem:[#allocation348_spill] sm:$0xff] %v12438_v63 }
 0x1bf   : >> { %v12440_v44 = vpop.permute.xlu0 %855  ;;  %1209 = vrot.lane.b32.xlu1 %v11780_v16, %s10593_s27 }
 0x1c0   : >> { %18589 = vst [vmem:[#allocation349_spill] sm:$0xff] %v12440_v44 }
 0x1c1   : >> { %1207 = vrot.lane.b32.xlu0 %v11980_v57, %s10593_s27  ;;  %v12446_v37 = vpop.permute.xlu1 %861 }
 0x1c2   : >> { %18590 = vst [vmem:[#allocation350_spill] sm:$0xff] %v12446_v37 }
 0x1c3   : >> { %v12448_v19 = vpop.permute.xlu0 %859  ;;  %1213 = vrot.lane.b32.xlu1 %v11776_v55, %s10593_s27 }
 0x1c4   : >> { %18591 = vst [vmem:[#allocation351_spill] sm:$0xff] %v12448_v19 }
 0x1c5   : >> { %1211 = vrot.lane.b32.xlu0 %v11988_v48, %s10593_s27  ;;  %v12454_v54 = vpop.permute.xlu1 %865 }
 0x1c6   : >> { %18592 = vst [vmem:[#allocation352_spill] sm:$0xff] %v12454_v54 }
 0x1c7   : >> { %v12456_v63 = vpop.permute.xlu0 %863  ;;  %1217 = vrot.lane.b32.xlu1 %v11792_v31, %s10593_s27 }
 0x1c8   : >> { %18593 = vst [vmem:[#allocation353_spill] sm:$0xff] %v12456_v63 }
 0x1c9   : >> { %1215 = vrot.lane.b32.xlu0 %v11996_v51, %s10593_s27  ;;  %v12462_v57 = vpop.permute.xlu1 %869 }
 0x1ca   : >> { %18594 = vst [vmem:[#allocation354_spill] sm:$0xff] %v12462_v57 }
 0x1cb   : >> { %v12464_v37 = vpop.permute.xlu0 %867  ;;  %1221 = vrot.lane.b32.xlu1 %v11788_v61, %s10593_s27 }
 0x1cc   : >> { %18595 = vst [vmem:[#allocation355_spill] sm:$0xff] %v12464_v37 }
 0x1cd   : >> { %1219 = vrot.lane.b32.xlu0 %v12004_v42, %s10593_s27  ;;  %v12470_v48 = vpop.permute.xlu1 %873 }
 0x1ce   : >> { %18596 = vst [vmem:[#allocation356_spill] sm:$0xff] %v12470_v48 }
 0x1cf   : >> { %v12472_v54 = vpop.permute.xlu0 %871  ;;  %1225 = vrot.lane.b32.xlu1 %v11804_v46, %s10593_s27 }
 0x1d0   : >> { %18597 = vst [vmem:[#allocation357_spill] sm:$0xff] %v12472_v54 }
 0x1d1   : >> { %1223 = vrot.lane.b32.xlu0 %v12012_v45, %s10593_s27  ;;  %v12478_v51 = vpop.permute.xlu1 %877 }
 0x1d2   : >> { %18598 = vst [vmem:[#allocation358_spill] sm:$0xff] %v12478_v51 }
 0x1d3   : >> { %v12480_v57 = vpop.permute.xlu0 %875  ;;  %1229 = vrot.lane.b32.xlu1 %v11800_v62, %s10593_s27 }
 0x1d4   : >> { %18599 = vst [vmem:[#allocation359_spill] sm:$0xff] %v12480_v57 }
 0x1d5   : >> { %1227 = vrot.lane.b32.xlu0 %v12020_v36, %s10593_s27  ;;  %v12486_v42 = vpop.permute.xlu1 %881 }
 0x1d6   : >> { %18600 = vst [vmem:[#allocation360_spill] sm:$0xff] %v12486_v42 }
 0x1d7   : >> { %v12488_v48 = vpop.permute.xlu0 %879  ;;  %1233 = vrot.lane.b32.xlu1 %v11816_v52, %s10593_s27 }
 0x1d8   : >> { %18601 = vst [vmem:[#allocation361_spill] sm:$0xff] %v12488_v48 }
 0x1d9   : >> { %1231 = vrot.lane.b32.xlu0 %v12028_v39, %s10593_s27  ;;  %v12494_v45 = vpop.permute.xlu1 %1089 }
 0x1db   : >> { %v12496_v51 = vpop.permute.xlu0 %1087  ;;  %1237 = vrot.lane.b32.xlu1 %v11812_v53, %s10593_s27 }
 0x1dd   : >> { %1235 = vrot.lane.b32.xlu0 %v12036_v30, %s10593_s27  ;;  %v12502_v36 = vpop.permute.xlu1 %1093 }
 0x1df   : >> { %v12504_v42 = vpop.permute.xlu0 %1091  ;;  %1241 = vrot.lane.b32.xlu1 %v11828_v58, %s10593_s27 }
 0x1e1   : >> { %1239 = vrot.lane.b32.xlu0 %v12048_v33, %s10593_s27  ;;  %v12510_v39 = vpop.permute.xlu1 %1097 }
 0x1e3   : >> { %v12512_v48 = vpop.permute.xlu0 %1095  ;;  %1245 = vrot.lane.b32.xlu1 %v11824_v41, %s10593_s27 }
 0x1e5   : >> { %1243 = vrot.lane.b32.xlu0 %v12060_v15, %s10593_s27  ;;  %v12518_v30 = vpop.permute.xlu1 %1101 }
 0x1e7   : >> { %v12520_v57 = vpop.permute.xlu0 %1099  ;;  %1249 = vrot.lane.b32.xlu1 %v11840_v56, %s10593_s27 }
 0x1e9   : >> { %1247 = vrot.lane.b32.xlu0 %v12072_v7, %s10593_s27  ;;  %v12526_v33 = vpop.permute.xlu1 %1105 }
 0x1eb   : >> { %v12528_v54 = vpop.permute.xlu0 %1103  ;;  %1253 = vrot.lane.b32.xlu1 %v11836_v5, %s10593_s27 }
 0x1ed   : >> { %1251 = vrot.lane.b32.xlu0 %v12084_v3, %s10593_s27  ;;  %v12534_v15 = vpop.permute.xlu1 %1109 }
 0x1ef   : >> { %v12536_v37 = vpop.permute.xlu0 %1107  ;;  %1257 = vrot.lane.b32.xlu1 %v11852_v59, %s10593_s27 }
 0x1f1   : >> { %1255 = vrot.lane.b32.xlu0 %v12096_v0, %s10593_s27  ;;  %v12542_v7 = vpop.permute.xlu1 %1113 }
 0x1f3   : >> { %v12544_v63 = vpop.permute.xlu0 %1111  ;;  %1261 = vrot.lane.b32.xlu1 %v11848_v17, %s10593_s27 }
 0x1f5   : >> { %1259 = vrot.lane.b32.xlu0 %v12108_v1, %s10593_s27  ;;  %v12550_v3 = vpop.permute.xlu1 %1117 }
 0x1f6   : >> { %18602 = vst [vmem:[#allocation362_spill] sm:$0xff] %v12550_v3 }
 0x1f7   : >> { %v12552_v19 = vpop.permute.xlu0 %1115  ;;  %1265 = vrot.lane.b32.xlu1 %v11864_v47, %s10593_s27 }
 0x1f9   : >> { %1263 = vrot.lane.b32.xlu0 %v12120_v6, %s10593_s27  ;;  %v12558_v0 = vpop.permute.xlu1 %1121 }
 0x1fa   : >> { %18603 = vst [vmem:[#allocation363_spill] sm:$0xff] %v12558_v0 }
 0x1fb   : >> { %v12560_v44 = vpop.permute.xlu0 %1119  ;;  %1269 = vrot.lane.b32.xlu1 %v11860_v2, %s10593_s27 }
 0x1fc   : >> { %18604 = vst [vmem:[#allocation364_spill] sm:$0xff] %v12560_v44  ;;  %v18635_v44 = vld [vmem:[#allocation300_spill] sm:$0xff] }
 0x1fd   : >> { %1267 = vrot.lane.b32.xlu0 %v18605_v25, %s10593_s27  ;;  %v12566_v1 = vpop.permute.xlu1 %1125 }
 0x1fe   : >> { %18606 = vst [vmem:[#allocation365_spill] sm:$0xff] %v12566_v1 }
 0x1ff   : >> { %v12568_v9 = vpop.permute.xlu0 %1123  ;;  %1273 = vrot.lane.b32.xlu1 %v11876_v35, %s10593_s27 }
 0x200   : >> { %18607 = vst [vmem:[#allocation366_spill] sm:$0xff] %v12568_v9  ;;  %v18614_v9 = vld [vmem:[#allocation284_spill] sm:$0xff] }
 0x201   : >> { %1271 = vrot.lane.b32.xlu0 %v18608_v27, %s10593_s27  ;;  %v12574_v6 = vpop.permute.xlu1 %1129 }
 0x202   : >> { %18609 = vst [vmem:[#allocation367_spill] sm:$0xff] %v12574_v6 }
 0x203   : >> { %v12576_v40 = vpop.permute.xlu0 %1127  ;;  %1277 = vrot.lane.b32.xlu1 %v11872_v14, %s10593_s27 }
 0x204   : >> { %18610 = vst [vmem:[#allocation368_spill] sm:$0xff] %v12576_v40  ;;  %v18617_v40 = vld [vmem:[#allocation287_spill] sm:$0xff] }
 0x205   : >> { %1275 = vrot.lane.b32.xlu0 %v18611_v20, %s10593_s27  ;;  %v12582_v25 = vpop.permute.xlu1 %1133 }
 0x206   : >> { %18612 = vst [vmem:[#allocation369_spill] sm:$0xff] %v12582_v25 }
 0x207   : >> { %v12584_v1 = vpop.permute.xlu0 %1131  ;;  %1281 = vrot.lane.b32.xlu1 %v11888_v23, %s10593_s27 }
 0x208   : >> { %18613 = vst [vmem:[#allocation370_spill] sm:$0xff] %v12584_v1  ;;  %v1013_v1 = vlaneseq }
 0x209   : >> { %1279 = vrot.lane.b32.xlu0 %v18614_v9, %s10593_s27  ;;  %v12590_v27 = vpop.permute.xlu1 %1137  ;;  %v18620_v9 = vld [vmem:[#allocation290_spill] sm:$0xff] }
 0x20a   : >> { %18615 = vst [vmem:[#allocation371_spill] sm:$0xff] %v12590_v27  ;;  %v1014_v0 = vshrl.u32 %v1013_v1, 7 }
 0x20b   : >> { %v12592_v6 = vpop.permute.xlu0 %1135  ;;  %1285 = vrot.lane.b32.xlu1 %v11884_v26, %s10593_s27  ;;  %v18637_v26 = vld [vmem:[#allocation253_spill] sm:$0xff] }
 0x20c   : >> { %18616 = vst [vmem:[#allocation372_spill] sm:$0xff] %v12592_v6  ;;  %v12618_v18 = vsub.s32 0, %v1014_v0 }
 0x20d   : >> { %1283 = vrot.lane.b32.xlu0 %v18617_v40, %s10593_s27  ;;  %v12598_v20 = vpop.permute.xlu1 %1141  ;;  %v18623_v40 = vld [vmem:[#allocation293_spill] sm:$0xff] }
 0x20e   : >> { %18618 = vst [vmem:[#allocation373_spill] sm:$0xff] %v12598_v20  ;;  %18626 = vst [vmem:[#allocation379_spill] sm:$0xff] %v12618_v18 }
 0x20f   : >> { %v12600_v25 = vpop.permute.xlu0 %1139  ;;  %1289 = vrot.lane.b32.xlu1 %v11900_v11, %s10593_s27  ;;  %v12620_v11 = vsub.s32 1, %v1014_v0  ;;  %v18632_v0 = vld [vmem:[#allocation201_spill] sm:$0xff] }
 0x210   : >> { %18619 = vst [vmem:[#allocation374_spill] sm:$0xff] %v12600_v25 }
 0x211   : >> { %1287 = vrot.lane.b32.xlu0 %v18620_v9, %s10593_s27  ;;  %v12606_v27 = vpop.permute.xlu1 %1145  ;;  %18627 = vst [vmem:[#allocation380_spill] sm:$0xff] %v12620_v11  ;;  %v18628_v9 = vld [vmem:[#allocation296_spill] sm:$0xff] }
 0x212   : >> { %18621 = vst [vmem:[#allocation375_spill] sm:$0xff] %v12606_v27  ;;  %v18629_v27 = vld [vmem:[#allocation202_spill] sm:$0xff] }
 0x213   : >> { %v12608_v6 = vpop.permute.xlu0 %1143  ;;  %1293 = vrot.lane.b32.xlu1 %v11896_v38, %s10593_s27 }
 0x214   : >> { %18622 = vst [vmem:[#allocation376_spill] sm:$0xff] %v12608_v6  ;;  %v12636_v6 = vrot.slane %v18632_v0, %v12618_v18 }
 0x215   : >> { %1291 = vrot.lane.b32.xlu0 %v18623_v40, %s10593_s27  ;;  %v12614_v20 = vpop.permute.xlu1 %1149  ;;  %v12628_v40 = vrot.slane %v18629_v27, %v12618_v18 }
 0x216   : >> { %18624 = vst [vmem:[#allocation377_spill] sm:$0xff] %v12614_v20  ;;  %v12632_v20 = vrot.slane %v18629_v27, %v12620_v11  ;;  %18633 = vst [vmem:[#allocation383_spill] sm:$0xff] %v12636_v6  ;;  %v18636_v27 = vld [vmem:[#allocation301_spill] sm:$0xff] }
 0x217   : >> { %v12616_v25 = vpop.permute.xlu0 %1147  ;;  %1297 = vrot.lane.b32.xlu1 %v11912_v29, %s10593_s27  ;;  %18630 = vst [vmem:[#allocation381_spill] sm:$0xff] %v12628_v40  ;;  %v12640_v29 = vrot.slane %v18632_v0, %v12620_v11  ;;  %v884_v23 = vsel %vm883_vm1, %v18636_v27, %v18635_v44  ;;  %v980_v18 = vsel %vm883_vm1, %v18637_v26, %v18636_v27 }
 0x218   : >> { %18625 = vst [vmem:[#allocation378_spill] sm:$0xff] %v12616_v25  ;;  %18631 = vst [vmem:[#allocation382_spill] sm:$0xff] %v12632_v20  ;;  %v1023_v3 = vmul.f32 %v12636_v6, %v980_v18 }
 0x219   : >> { %1295 = vrot.lane.b32.xlu0 %v18628_v9, %s10593_s27  ;;  %v1186_v1 = vpop.permute.xlu1 %1185  ;;  %18634 = vst [vmem:[#allocation384_spill] sm:$0xff] %v12640_v29  ;;  %v1024_v26 = vmul.f32 %v12640_v29, %v884_v23 }
 0x21b   : >> { %v1184_v25 = vpop.permute.xlu0 %1183  ;;  %1301 = vrot.lane.b32.xlu1 %v11908_v50, %s10593_s27 }
 0x21c   : >> { %v1312_v9 = vsel %vm1311_vm0, %v1184_v25, %v1186_v1  ;;  %v1408_v38 = vsel %vm1311_vm0, %v12496_v51, %v1184_v25  ;;  %v885_v1 = vsel %vm883_vm1, %v12246_v24, %v12242_v21  ;;  %v18638_v25 = vld [vmem:[#allocation256_spill] sm:$0xff] }
 0x21d   : >> { %1299 = vrot.lane.b32.xlu0 %v12228_v12, %s10593_s27  ;;  %v981_v51 = vsel %vm883_vm1, %v18638_v25, %v12246_v24  ;;  %v1190_v0 = vpop.permute.xlu1 %1189  ;;  %v1451_v11 = vmul.f32 %v12628_v40, %v1408_v38  ;;  %v1452_v44 = vmul.f32 %v12632_v20, %v1312_v9  ;;  %v1026_v24 = vmul.f32 %v12640_v29, %v885_v1  ;;  %v18639_v1 = vld [vmem:[#allocation252_spill] sm:$0xff] }
 0x21e   : >> { %v1025_v21 = vmul.f32 %v12636_v6, %v981_v51 }
 0x21f   : >> { %v1188_v50 = vpop.permute.xlu0 %1187  ;;  %1305 = vrot.lane.b32.xlu1 %v11924_v8, %s10593_s27  ;;  %v1515_v18 = vadd.f32 %v1451_v11, %v1023_v3  ;;  %v982_v3 = vsel %vm883_vm1, %v18639_v1, %v12256_v32 }
 0x220   : >> { %v1313_v27 = vsel %vm1311_vm0, %v1188_v50, %v1190_v0  ;;  %v1409_v12 = vsel %vm1311_vm0, %v12494_v45, %v1188_v50  ;;  %v1516_v0 = vadd.f32 %v1452_v44, %v1024_v26  ;;  %v18640_v26 = vld [vmem:[#allocation303_spill] sm:$0xff] }
 0x221   : >> { %v1453_v38 = vmul.f32 %v12628_v40, %v1409_v12  ;;  %v1454_v9 = vmul.f32 %v12632_v20, %v1313_v27  ;;  %1303 = vrot.lane.b32.xlu0 %v12240_v10, %s10593_s27  ;;  %v1194_v23 = vpop.permute.xlu1 %1193  ;;  %v886_v12 = vsel %vm883_vm1, %v12256_v32, %v12254_v4  ;;  %v18641_v27 = vld [vmem:[#allocation304_spill] sm:$0xff] }
 0x223   : >> { %v1517_v25 = vadd.f32 %v1453_v38, %v1025_v21  ;;  %v1518_v35 = vadd.f32 %v1454_v9, %v1026_v24  ;;  %v1192_v50 = vpop.permute.xlu0 %1191  ;;  %1309 = vrot.lane.b32.xlu1 %v11920_v60, %s10593_s27  ;;  %v18642_v21 = vld [vmem:[#allocation305_spill] sm:$0xff]  ;;  %v18643_v24 = vld [vmem:[#allocation255_spill] sm:$0xff] }
 0x224   : >> { %v1314_v45 = vsel %vm1311_vm0, %v1192_v50, %v1194_v23  ;;  %v1410_v51 = vsel %vm1311_vm0, %v12504_v42, %v1192_v50  ;;  %v887_v42 = vsel %vm883_vm1, %v18642_v21, %v18641_v27  ;;  %v983_v38 = vsel %vm883_vm1, %v18643_v24, %v18642_v21  ;;  %v18644_v24 = vld [vmem:[#allocation307_spill] sm:$0xff] }
 0x225   : >> { %v1579_v11 = vpack.c.bf16 %v1517_v25, %v1515_v18  ;;  %v1580_v44 = vpack.c.bf16 %v1518_v35, %v1516_v0  ;;  %1307 = vrot.lane.b32.xlu0 %v18640_v26, %s10593_s27  ;;  %v1198_v9 = vpop.permute.xlu1 %1197  ;;  %v1455_v4 = vmul.f32 %v12628_v40, %v1410_v51  ;;  %v1456_v32 = vmul.f32 %v12632_v20, %v1314_v45 }
 0x226   : >> { %v1027_v35 = vmul.f32 %v12636_v6, %v982_v3  ;;  %v1028_v18 = vmul.f32 %v12640_v29, %v886_v12  ;;  %v1029_v50 = vmul.f32 %v12636_v6, %v983_v38  ;;  %v1030_v51 = vmul.f32 %v12640_v29, %v887_v42 }
 0x227   : >> { %1613 = vst.msk [vmem:[#allocation2 + $0x8] sm:$0xff] %vm1612_vm2, %v1580_v44  ;;  %v1196_v23 = vpop.permute.xlu0 %1195  ;;  %1646 = vrot.lane.b32.xlu1 %v11756_v13, %s10594_s28 }
 0x228   : >> { %v1315_v0 = vsel %vm1311_vm0, %v1196_v23, %v1198_v9  ;;  %v1411_v25 = vsel %vm1311_vm0, %v12502_v36, %v1196_v23  ;;  %v1519_v3 = vadd.f32 %v1455_v4, %v1027_v35  ;;  %v1520_v44 = vadd.f32 %v1456_v32, %v1028_v18  ;;  %v18645_v9 = vld [vmem:[#allocation259_spill] sm:$0xff]  ;;  %v18647_v18 = vld [vmem:[#allocation308_spill] sm:$0xff] }
 0x229   : >> { %v1457_v45 = vmul.f32 %v12628_v40, %v1411_v25  ;;  %v1458_v1 = vmul.f32 %v12632_v20, %v1315_v0  ;;  %1644 = vrot.lane.b32.xlu0 %v11746_v34, %s10594_s28  ;;  %v1202_v12 = vpop.permute.xlu1 %1201  ;;  %v984_v23 = vsel %vm883_vm1, %v18645_v9, %v18644_v24  ;;  %v18646_v0 = vld [vmem:[#allocation306_spill] sm:$0xff]  ;;  %v18648_v25 = vld [vmem:[#allocation309_spill] sm:$0xff] }
 0x22a   : >> { %v888_v4 = vsel %vm883_vm1, %v18644_v24, %v18646_v0 }
 0x22b   : >> { %v1521_v27 = vadd.f32 %v1457_v45, %v1029_v50  ;;  %v1522_v36 = vadd.f32 %v1458_v1, %v1030_v51  ;;  %v1200_v21 = vpop.permute.xlu0 %1199  ;;  %1650 = vrot.lane.b32.xlu1 %v11752_v43, %s10594_s28  ;;  %v889_v50 = vsel %vm883_vm1, %v18648_v25, %v18647_v18  ;;  %v18649_v51 = vld [vmem:[#allocation258_spill] sm:$0xff] }
 0x22c   : >> { %v1316_v38 = vsel %vm1311_vm0, %v1200_v21, %v1202_v12  ;;  %v1412_v42 = vsel %vm1311_vm0, %v12512_v48, %v1200_v21  ;;  %v985_v48 = vsel %vm883_vm1, %v18649_v51, %v18648_v25  ;;  %v1031_v12 = vmul.f32 %v12636_v6, %v984_v23  ;;  %v18650_v25 = vld [vmem:[#allocation311_spill] sm:$0xff]  ;;  %v18651_v51 = vld [vmem:[#allocation262_spill] sm:$0xff] }
 0x22d   : >> { %v1581_v32 = vpack.c.bf16 %v1521_v27, %v1519_v3  ;;  %v1582_v35 = vpack.c.bf16 %v1522_v36, %v1520_v44  ;;  %1648 = vrot.lane.b32.xlu0 %v11741_v22, %s10594_s28  ;;  %v1206_v45 = vpop.permute.xlu1 %1205  ;;  %v1459_v3 = vmul.f32 %v12628_v40, %v1412_v42  ;;  %v1460_v44 = vmul.f32 %v12632_v20, %v1316_v38 }
 0x22e   : >> { %v3121_v1 = vld [vmem:[#allocation2 + $0x8] sm:$0xff]  ;;  %v1032_v36 = vmul.f32 %v12640_v29, %v888_v4  ;;  %v1033_v9 = vmul.f32 %v12636_v6, %v985_v48  ;;  %v1034_v23 = vmul.f32 %v12640_v29, %v889_v50 }
 0x22f   : >> { %1615 = vst.msk [vmem:[#allocation2 + $0x18] sm:$0xff] %vm1612_vm2, %v1582_v35  ;;  %4176 = vmatprep.subr.bf16.mxu0 %v3121_v1  ;;  %v1204_v27 = vpop.permute.xlu0 %1203  ;;  %1654 = vrot.lane.b32.xlu1 %v11764_v49, %s10594_s28  ;;  %v1523_v4 = vadd.f32 %v1459_v3, %v1031_v12  ;;  %v18652_v1 = vld [vmem:[#allocation310_spill] sm:$0xff] }
 0x230   : >> { %v1317_v21 = vsel %vm1311_vm0, %v1204_v27, %v1206_v45  ;;  %v1413_v24 = vsel %vm1311_vm0, %v12510_v39, %v1204_v27  ;;  %4177 = vmatpush1.bf16.msra.mxu0 %v1579_v11  ;;  %v1524_v35 = vadd.f32 %v1460_v44, %v1032_v36  ;;  %v986_v45 = vsel %vm883_vm1, %v18651_v51, %v18650_v25  ;;  %v18653_v27 = vld [vmem:[#allocation312_spill] sm:$0xff]  ;;  %v18654_v36 = vld [vmem:[#allocation313_spill] sm:$0xff] }
 0x231   : >> { %v1461_v42 = vmul.f32 %v12628_v40, %v1413_v24  ;;  %v1462_v38 = vmul.f32 %v12632_v20, %v1317_v21  ;;  %1652 = vrot.lane.b32.xlu0 %v11768_v28, %s10594_s28  ;;  %v1210_v0 = vpop.permute.xlu1 %1209  ;;  %v890_v12 = vsel %vm883_vm1, %v18650_v25, %v18652_v1  ;;  %v891_v21 = vsel %vm883_vm1, %v18654_v36, %v18653_v27  ;;  %v18655_v24 = vld [vmem:[#allocation261_spill] sm:$0xff] }
 0x232   : >> { %v1038_v25 = vmul.f32 %v12640_v29, %v891_v21  ;;  %v18657_v27 = vld [vmem:[#allocation265_spill] sm:$0xff] }
 0x233   : >> { %v1525_v18 = vadd.f32 %v1461_v42, %v1033_v9  ;;  %v1526_v39 = vadd.f32 %v1462_v38, %v1034_v23  ;;  %v1208_v11 = vpop.permute.xlu0 %1207  ;;  %1658 = vrot.lane.b32.xlu1 %v11776_v55, %s10594_s28  ;;  %v1035_v42 = vmul.f32 %v12636_v6, %v986_v45 }
 0x234   : >> { %v1318_v48 = vsel %vm1311_vm0, %v1208_v11, %v1210_v0  ;;  %v1414_v50 = vsel %vm1311_vm0, %v12520_v57, %v1208_v11  ;;  %v987_v57 = vsel %vm883_vm1, %v18655_v24, %v18654_v36 }
 0x235   : >> { %v1583_v3 = vpack.c.bf16 %v1525_v18, %v1523_v4  ;;  %v1584_v44 = vpack.c.bf16 %v1526_v39, %v1524_v35  ;;  %1656 = vrot.lane.b32.xlu0 %v11780_v16, %s10594_s28  ;;  %v1214_v9 = vpop.permute.xlu1 %1213  ;;  %v1463_v38 = vmul.f32 %v12628_v40, %v1414_v50  ;;  %v1464_v0 = vmul.f32 %v12632_v20, %v1318_v48 }
 0x236   : >> { %v3123_v23 = vld [vmem:[#allocation2 + $0x18] sm:$0xff]  ;;  %v1036_v35 = vmul.f32 %v12640_v29, %v890_v12  ;;  %v1037_v11 = vmul.f32 %v12636_v6, %v987_v57  ;;  %v18658_v57 = vld [vmem:[#allocation314_spill] sm:$0xff] }
 0x237   : >> { %1617 = vst.msk [vmem:[#allocation2 + $0x28] sm:$0xff] %vm1612_vm2, %v1584_v44  ;;  %4178 = vmatprep.subr.bf16.mxu0 %v3123_v23  ;;  %v1212_v4 = vpop.permute.xlu0 %1211  ;;  %1662 = vrot.lane.b32.xlu1 %v11788_v61, %s10594_s28  ;;  %v1527_v50 = vadd.f32 %v1463_v38, %v1035_v42  ;;  %v18656_v44 = vld [vmem:[#allocation315_spill] sm:$0xff]  ;;  %v18659_v38 = vld [vmem:[#allocation316_spill] sm:$0xff] }
 0x238   : >> { %v1319_v18 = vsel %vm1311_vm0, %v1212_v4, %v1214_v9  ;;  %v1415_v39 = vsel %vm1311_vm0, %v12518_v30, %v1212_v4  ;;  %4179 = vmatpush1.bf16.msra.mxu0 %v1581_v32  ;;  %v1528_v1 = vadd.f32 %v1464_v0, %v1036_v35  ;;  %v988_v36 = vsel %vm883_vm1, %v18657_v27, %v18656_v44  ;;  %v18660_v0 = vld [vmem:[#allocation317_spill] sm:$0xff]  ;;  %v18661_v35 = vld [vmem:[#allocation264_spill] sm:$0xff] }
 0x239   : >> { %v1465_v51 = vmul.f32 %v12628_v40, %v1415_v39  ;;  %v1466_v45 = vmul.f32 %v12632_v20, %v1319_v18  ;;  %1660 = vrot.lane.b32.xlu0 %v11792_v31, %s10594_s28  ;;  %v1218_v48 = vpop.permute.xlu1 %1217  ;;  %v892_v9 = vsel %vm883_vm1, %v18656_v44, %v18658_v57  ;;  %v893_v4 = vsel %vm883_vm1, %v18660_v0, %v18659_v38  ;;  %v18662_v57 = vld [vmem:[#allocation319_spill] sm:$0xff] }
 0x23b   : >> { %v1529_v12 = vadd.f32 %v1465_v51, %v1037_v11  ;;  %v1530_v30 = vadd.f32 %v1466_v45, %v1038_v25  ;;  %v1216_v32 = vpop.permute.xlu0 %1215  ;;  %1666 = vrot.lane.b32.xlu1 %v11800_v62, %s10594_s28  ;;  %v1039_v11 = vmul.f32 %v12636_v6, %v988_v36 }
 0x23c   : >> { %v1320_v24 = vsel %vm1311_vm0, %v1216_v32, %v1218_v48  ;;  %v1416_v21 = vsel %vm1311_vm0, %v12528_v54, %v1216_v32  ;;  %v989_v54 = vsel %vm883_vm1, %v18661_v35, %v18660_v0  ;;  %v1040_v48 = vmul.f32 %v12640_v29, %v892_v9  ;;  %v18663_v9 = vld [vmem:[#allocation268_spill] sm:$0xff] }
 0x23d   : >> { %v1585_v23 = vpack.c.bf16 %v1529_v12, %v1527_v50  ;;  %v1586_v42 = vpack.c.bf16 %v1530_v30, %v1528_v1  ;;  %1664 = vrot.lane.b32.xlu0 %v11804_v46, %s10594_s28  ;;  %v1222_v18 = vpop.permute.xlu1 %1221  ;;  %v1467_v25 = vmul.f32 %v12628_v40, %v1416_v21  ;;  %v1468_v51 = vmul.f32 %v12632_v20, %v1320_v24 }
 0x23e   : >> { %v3125_v39 = vld [vmem:[#allocation2 + $0x28] sm:$0xff]  ;;  %v1041_v12 = vmul.f32 %v12636_v6, %v989_v54  ;;  %v1042_v30 = vmul.f32 %v12640_v29, %v893_v4 }
 0x23f   : >> { %1619 = vst.msk [vmem:[#allocation2 + $0x38] sm:$0xff] %vm1612_vm2, %v1586_v42  ;;  %4180 = vmatprep.subr.bf16.mxu0 %v3125_v39  ;;  %v1220_v45 = vpop.permute.xlu0 %1219  ;;  %1670 = vrot.lane.b32.xlu1 %v11812_v53, %s10594_s28  ;;  %v1531_v36 = vadd.f32 %v1467_v25, %v1039_v11  ;;  %v1532_v24 = vadd.f32 %v1468_v51, %v1040_v48  ;;  %v18664_v4 = vld [vmem:[#allocation318_spill] sm:$0xff]  ;;  %v18665_v39 = vld [vmem:[#allocation320_spill] sm:$0xff]  ;;  %v18666_v11 = vld [vmem:[#allocation321_spill] sm:$0xff] }
 0x240   : >> { %v1321_v50 = vsel %vm1311_vm0, %v1220_v45, %v1222_v18  ;;  %v1417_v1 = vsel %vm1311_vm0, %v12526_v33, %v1220_v45  ;;  %4181 = vmatpush1.bf16.msra.mxu0 %v1583_v3  ;;  %v990_v42 = vsel %vm883_vm1, %v18663_v9, %v18662_v57  ;;  %v894_v35 = vsel %vm883_vm1, %v18662_v57, %v18664_v4  ;;  %v18667_v51 = vld [vmem:[#allocation267_spill] sm:$0xff] }
 0x241   : >> { %v1469_v32 = vmul.f32 %v12628_v40, %v1417_v1  ;;  %v1470_v44 = vmul.f32 %v12632_v20, %v1321_v50  ;;  %1668 = vrot.lane.b32.xlu0 %v11816_v52, %s10594_s28  ;;  %v1226_v27 = vpop.permute.xlu1 %1225  ;;  %v895_v25 = vsel %vm883_vm1, %v18666_v11, %v18665_v39  ;;  %v1043_v50 = vmul.f32 %v12636_v6, %v990_v42  ;;  %v18670_v39 = vld [vmem:[#allocation322_spill] sm:$0xff] }
 0x243   : >> { %v1533_v21 = vadd.f32 %v1469_v32, %v1041_v12  ;;  %v1534_v33 = vadd.f32 %v1470_v44, %v1042_v30  ;;  %v1224_v3 = vpop.permute.xlu0 %1223  ;;  %1674 = vrot.lane.b32.xlu1 %v11824_v41, %s10594_s28  ;;  %v1044_v32 = vmul.f32 %v12640_v29, %v894_v35 }
 0x244   : >> { %v1322_v38 = vsel %vm1311_vm0, %v1224_v3, %v1226_v27  ;;  %v1418_v0 = vsel %vm1311_vm0, %v12536_v37, %v1224_v3  ;;  %v991_v37 = vsel %vm883_vm1, %v18667_v51, %v18666_v11 }
 0x245   : >> { %v1587_v54 = vpack.c.bf16 %v1533_v21, %v1531_v36  ;;  %v1588_v18 = vpack.c.bf16 %v1534_v33, %v1532_v24  ;;  %1672 = vrot.lane.b32.xlu0 %v11828_v58, %s10594_s28  ;;  %v1230_v45 = vpop.permute.xlu1 %1229  ;;  %v1471_v1 = vmul.f32 %v12628_v40, %v1418_v0  ;;  %v1472_v12 = vmul.f32 %v12632_v20, %v1322_v38  ;;  %v18668_v38 = vld [vmem:[#allocation323_spill] sm:$0xff] }
 0x246   : >> { %v3127_v48 = vld [vmem:[#allocation2 + $0x38] sm:$0xff]  ;;  %v1045_v36 = vmul.f32 %v12636_v6, %v991_v37  ;;  %v1046_v24 = vmul.f32 %v12640_v29, %v895_v25  ;;  %v18669_v0 = vld [vmem:[#allocation271_spill] sm:$0xff]  ;;  %v896_v11 = vsel %vm883_vm1, %v18668_v38, %v18670_v39 }
 0x247   : >> { %1621 = vst.msk [vmem:[#allocation2 + $0x48] sm:$0xff] %vm1612_vm2, %v1588_v18  ;;  %4182 = vmatprep.subr.bf16.mxu0 %v3127_v48  ;;  %v1228_v30 = vpop.permute.xlu0 %1227  ;;  %1678 = vrot.lane.b32.xlu1 %v11836_v5, %s10594_s28  ;;  %v1535_v57 = vadd.f32 %v1471_v1, %v1043_v50  ;;  %v1536_v9 = vadd.f32 %v1472_v12, %v1044_v32  ;;  %v18671_v37 = vld [vmem:[#allocation324_spill] sm:$0xff]  ;;  %v18673_v50 = vld [vmem:[#allocation270_spill] sm:$0xff] }
 0x248   : >> { %v1323_v44 = vsel %vm1311_vm0, %v1228_v30, %v1230_v45  ;;  %v1419_v27 = vsel %vm1311_vm0, %v12534_v15, %v1228_v30  ;;  %4183 = vmatpush1.bf16.msra.mxu0 %v1585_v23  ;;  %v992_v4 = vsel %vm883_vm1, %v18669_v0, %v18668_v38  ;;  %v18672_v45 = vld [vmem:[#allocation325_spill] sm:$0xff]  ;;  %v18674_v0 = vld [vmem:[#allocation327_spill] sm:$0xff] }
 0x249   : >> { %v1473_v21 = vmul.f32 %v12628_v40, %v1419_v27  ;;  %v1474_v33 = vmul.f32 %v12632_v20, %v1323_v44  ;;  %1676 = vrot.lane.b32.xlu0 %v11840_v56, %s10594_s28  ;;  %v1234_v3 = vpop.permute.xlu1 %1233  ;;  %v897_v48 = vsel %vm883_vm1, %v18672_v45, %v18671_v37  ;;  %v1047_v30 = vmul.f32 %v12636_v6, %v992_v4  ;;  %v18675_v4 = vld [vmem:[#allocation274_spill] sm:$0xff] }
 0x24b   : >> { %v1537_v42 = vadd.f32 %v1473_v21, %v1045_v36  ;;  %v1538_v15 = vadd.f32 %v1474_v33, %v1046_v24  ;;  %v1232_v23 = vpop.permute.xlu0 %1231  ;;  %1682 = vrot.lane.b32.xlu1 %v11848_v17, %s10594_s28  ;;  %v1048_v36 = vmul.f32 %v12640_v29, %v896_v11  ;;  %v18676_v11 = vld [vmem:[#allocation326_spill] sm:$0xff] }
 0x24c   : >> { %v1324_v35 = vsel %vm1311_vm0, %v1232_v23, %v1234_v3  ;;  %v1420_v18 = vsel %vm1311_vm0, %v12544_v63, %v1232_v23  ;;  %v993_v63 = vsel %vm883_vm1, %v18673_v50, %v18672_v45  ;;  %v1050_v3 = vmul.f32 %v12640_v29, %v897_v48  ;;  %v18677_v48 = vld [vmem:[#allocation229_spill] sm:$0xff]  ;;  %v18678_v50 = vld [vmem:[#allocation328_spill] sm:$0xff] }
 0x24d   : >> { %v1589_v25 = vpack.c.bf16 %v1537_v42, %v1535_v57  ;;  %v1590_v51 = vpack.c.bf16 %v1538_v15, %v1536_v9  ;;  %1680 = vrot.lane.b32.xlu0 %v11852_v59, %s10594_s28  ;;  %v1238_v1 = vpop.permute.xlu1 %1237  ;;  %v1475_v32 = vmul.f32 %v12628_v40, %v1420_v18  ;;  %v1476_v44 = vmul.f32 %v12632_v20, %v1324_v35 }
 0x24e   : >> { %v3129_v12 = vld [vmem:[#allocation2 + $0x48] sm:$0xff]  ;;  %v1049_v33 = vmul.f32 %v12636_v6, %v993_v63  ;;  %v994_v35 = vsel %vm883_vm1, %v18675_v4, %v18674_v0  ;;  %v18679_v63 = vld [vmem:[#allocation329_spill] sm:$0xff] }
 0x24f   : >> { %1623 = vst.msk [vmem:[#allocation2 + $0x58] sm:$0xff] %vm1612_vm2, %v1590_v51  ;;  %4184 = vmatprep.subr.bf16.mxu0 %v3129_v12  ;;  %v1236_v27 = vpop.permute.xlu0 %1235  ;;  %1686 = vrot.lane.b32.xlu1 %v11860_v2, %s10594_s28  ;;  %v1539_v15 = vadd.f32 %v1475_v32, %v1047_v30  ;;  %v1540_v23 = vadd.f32 %v1476_v44, %v1048_v36  ;;  %v18680_v12 = vld [vmem:[#allocation273_spill] sm:$0xff] }
 0x250   : >> { %v1325_v24 = vsel %vm1311_vm0, %v1236_v27, %v1238_v1  ;;  %v1421_v21 = vsel %vm1311_vm0, %v12542_v7, %v1236_v27  ;;  %4185 = vmatpush1.bf16.msra.mxu0 %v1587_v54  ;;  %v898_v51 = vsel %vm883_vm1, %v18674_v0, %v18676_v11  ;;  %v899_v1 = vsel %vm883_vm1, %v18679_v63, %v18678_v50  ;;  %v18685_v11 = vld [vmem:[#allocation277_spill] sm:$0xff]  ;;  %v18686_v50 = vld [vmem:[#allocation364_spill] sm:$0xff] }
 0x251   : >> { %v1477_v57 = vmul.f32 %v12628_v40, %v1421_v21  ;;  %v1478_v9 = vmul.f32 %v12632_v20, %v1325_v24  ;;  %1684 = vrot.lane.b32.xlu0 %v11864_v47, %s10594_s28  ;;  %v1242_v42 = vpop.permute.xlu1 %1241  ;;  %v1051_v44 = vmul.f32 %v12636_v6, %v994_v35  ;;  %v1052_v21 = vmul.f32 %v12640_v29, %v898_v51 }
 0x253   : >> { %v1541_v38 = vadd.f32 %v1477_v57, %v1049_v33  ;;  %v1542_v7 = vadd.f32 %v1478_v9, %v1050_v3  ;;  %v1240_v54 = vpop.permute.xlu0 %1239  ;;  %1690 = vrot.lane.b32.xlu1 %v11872_v14, %s10594_s28  ;;  %v18681_v3 = vld [vmem:[#allocation362_spill] sm:$0xff] }
 0x254   : >> { %v1326_v18 = vsel %vm1311_vm0, %v1240_v54, %v1242_v42  ;;  %v1422_v39 = vsel %vm1311_vm0, %v12552_v19, %v1240_v54  ;;  %v995_v19 = vsel %vm883_vm1, %v18680_v12, %v18679_v63  ;;  %v18682_v9 = vld [vmem:[#allocation230_spill] sm:$0xff] }
 0x255   : >> { %v1591_v37 = vpack.c.bf16 %v1541_v38, %v1539_v15  ;;  %v1592_v45 = vpack.c.bf16 %v1542_v7, %v1540_v23  ;;  %1688 = vrot.lane.b32.xlu0 %v18677_v48, %s10594_s28  ;;  %v1246_v30 = vpop.permute.xlu1 %1245  ;;  %v1479_v27 = vmul.f32 %v12628_v40, %v1422_v39  ;;  %v1480_v36 = vmul.f32 %v12632_v20, %v1326_v18  ;;  %v18683_v7 = vld [vmem:[#allocation231_spill] sm:$0xff]  ;;  %v18688_v12 = vld [vmem:[#allocation330_spill] sm:$0xff] }
 0x256   : >> { %v3131_v32 = vld [vmem:[#allocation2 + $0x58] sm:$0xff]  ;;  %v1053_v42 = vmul.f32 %v12636_v6, %v995_v19  ;;  %v1054_v15 = vmul.f32 %v12640_v29, %v899_v1  ;;  %v18684_v39 = vld [vmem:[#allocation331_spill] sm:$0xff] }
 0x257   : >> { %1625 = vst.msk [vmem:[#allocation2 + $0x68] sm:$0xff] %vm1612_vm2, %v1592_v45  ;;  %4186 = vmatprep.subr.bf16.mxu0 %v3131_v32  ;;  %v1244_v24 = vpop.permute.xlu0 %1243  ;;  %1694 = vrot.lane.b32.xlu1 %v18682_v9, %s10594_s28  ;;  %v1543_v0 = vadd.f32 %v1479_v27, %v1051_v44  ;;  %v1544_v4 = vadd.f32 %v1480_v36, %v1052_v21  ;;  %v18687_v1 = vld [vmem:[#allocation232_spill] sm:$0xff]  ;;  %v18689_v44 = vld [vmem:[#allocation233_spill] sm:$0xff] }
 0x258   : >> { %v1327_v33 = vsel %vm1311_vm0, %v1244_v24, %v1246_v30  ;;  %v1423_v57 = vsel %vm1311_vm0, %v18681_v3, %v1244_v24  ;;  %4187 = vmatpush1.bf16.msra.mxu0 %v1589_v25  ;;  %v996_v51 = vsel %vm883_vm1, %v18685_v11, %v18684_v39  ;;  %v900_v19 = vsel %vm883_vm1, %v18684_v39, %v18688_v12  ;;  %v18690_v27 = vld [vmem:[#allocation332_spill] sm:$0xff]  ;;  %v18691_v36 = vld [vmem:[#allocation333_spill] sm:$0xff] }
 0x259   : >> { %v1481_v23 = vmul.f32 %v12628_v40, %v1423_v57  ;;  %v1482_v38 = vmul.f32 %v12632_v20, %v1327_v33  ;;  %1692 = vrot.lane.b32.xlu0 %v18683_v7, %s10594_s28  ;;  %v1250_v54 = vpop.permute.xlu1 %1249  ;;  %v901_v24 = vsel %vm883_vm1, %v18691_v36, %v18690_v27  ;;  %v18692_v21 = vld [vmem:[#allocation276_spill] sm:$0xff]  ;;  %v18696_v27 = vld [vmem:[#allocation335_spill] sm:$0xff] }
 0x25a   : >> { %v997_v33 = vsel %vm883_vm1, %v18692_v21, %v18691_v36  ;;  %v1058_v39 = vmul.f32 %v12640_v29, %v901_v24  ;;  %v18697_v36 = vld [vmem:[#allocation280_spill] sm:$0xff]  ;;  %v18698_v24 = vld [vmem:[#allocation366_spill] sm:$0xff] }
 0x25b   : >> { %v1545_v35 = vadd.f32 %v1481_v23, %v1053_v42  ;;  %v1546_v18 = vadd.f32 %v1482_v38, %v1054_v15  ;;  %v1248_v25 = vpop.permute.xlu0 %1247  ;;  %1698 = vrot.lane.b32.xlu1 %v18687_v1, %s10594_s28  ;;  %v1055_v42 = vmul.f32 %v12636_v6, %v996_v51  ;;  %v998_v21 = vsel %vm883_vm1, %v18697_v36, %v18696_v27 }
 0x25c   : >> { %v1328_v45 = vsel %vm1311_vm0, %v1248_v25, %v1250_v54  ;;  %v1424_v63 = vsel %vm1311_vm0, %v18686_v50, %v1248_v25  ;;  %v1056_v54 = vmul.f32 %v12640_v29, %v900_v19  ;;  %v1057_v25 = vmul.f32 %v12636_v6, %v997_v33 }
 0x25d   : >> { %v1593_v30 = vpack.c.bf16 %v1545_v35, %v1543_v0  ;;  %v1594_v32 = vpack.c.bf16 %v1546_v18, %v1544_v4  ;;  %1696 = vrot.lane.b32.xlu0 %v18689_v44, %s10594_s28  ;;  %v1254_v3 = vpop.permute.xlu1 %1253  ;;  %v1483_v15 = vmul.f32 %v12628_v40, %v1424_v63  ;;  %v1484_v23 = vmul.f32 %v12632_v20, %v1328_v45  ;;  %v18693_v4 = vld [vmem:[#allocation363_spill] sm:$0xff]  ;;  %v18694_v18 = vld [vmem:[#allocation234_spill] sm:$0xff] }
 0x25e   : >> { %v3133_v57 = vld [vmem:[#allocation2 + $0x68] sm:$0xff]  ;;  %v18695_v45 = vld [vmem:[#allocation235_spill] sm:$0xff] }
 0x25f   : >> { %1627 = vst.msk [vmem:[#allocation2 + $0x78] sm:$0xff] %vm1612_vm2, %v1594_v32  ;;  %4188 = vmatprep.subr.bf16.mxu0 %v3133_v57  ;;  %v1252_v38 = vpop.permute.xlu0 %1251  ;;  %1702 = vrot.lane.b32.xlu1 %v18694_v18, %s10594_s28  ;;  %v1547_v63 = vadd.f32 %v1483_v15, %v1055_v42  ;;  %v1548_v12 = vadd.f32 %v1484_v23, %v1056_v54  ;;  %v18699_v57 = vld [vmem:[#allocation334_spill] sm:$0xff]  ;;  %v18701_v54 = vld [vmem:[#allocation337_spill] sm:$0xff] }
 0x260   : >> { %v1329_v0 = vsel %vm1311_vm0, %v1252_v38, %v1254_v3  ;;  %v1425_v35 = vsel %vm1311_vm0, %v18693_v4, %v1252_v38  ;;  %4189 = vmatpush1.bf16.msra.mxu0 %v1591_v37  ;;  %v902_v42 = vsel %vm883_vm1, %v18696_v27, %v18699_v57  ;;  %v18700_v38 = vld [vmem:[#allocation336_spill] sm:$0xff]  ;;  %v18702_v4 = vld [vmem:[#allocation279_spill] sm:$0xff] }
 0x261   : >> { %v1485_v11 = vmul.f32 %v12628_v40, %v1425_v35  ;;  %v1486_v51 = vmul.f32 %v12632_v20, %v1329_v0  ;;  %1700 = vrot.lane.b32.xlu0 %v18695_v45, %s10594_s28  ;;  %v1258_v50 = vpop.permute.xlu1 %1257  ;;  %v903_v0 = vsel %vm883_vm1, %v18701_v54, %v18700_v38  ;;  %v999_v35 = vsel %vm883_vm1, %v18702_v4, %v18701_v54  ;;  %v18705_v54 = vld [vmem:[#allocation339_spill] sm:$0xff] }
 0x262   : >> { %v1061_v27 = vmul.f32 %v12636_v6, %v999_v35  ;;  %v1062_v36 = vmul.f32 %v12640_v29, %v903_v0  ;;  %v18706_v4 = vld [vmem:[#allocation283_spill] sm:$0xff]  ;;  %v18707_v0 = vld [vmem:[#allocation368_spill] sm:$0xff] }
 0x263   : >> { %v1549_v19 = vadd.f32 %v1485_v11, %v1057_v25  ;;  %v1550_v32 = vadd.f32 %v1486_v51, %v1058_v39  ;;  %v1256_v37 = vpop.permute.xlu0 %1255  ;;  %1706 = vrot.lane.b32.xlu1 %v11920_v60, %s10594_s28  ;;  %v1059_v11 = vmul.f32 %v12636_v6, %v998_v21 }
 0x264   : >> { %v1330_v33 = vsel %vm1311_vm0, %v1256_v37, %v1258_v50  ;;  %v1426_v3 = vsel %vm1311_vm0, %v18698_v24, %v1256_v37  ;;  %v18704_v24 = vld [vmem:[#allocation238_spill] sm:$0xff] }
 0x265   : >> { %v1595_v15 = vpack.c.bf16 %v1549_v19, %v1547_v63  ;;  %v1596_v23 = vpack.c.bf16 %v1550_v32, %v1548_v12  ;;  %1704 = vrot.lane.b32.xlu0 %v11924_v8, %s10594_s28  ;;  %v1262_v25 = vpop.permute.xlu1 %1261  ;;  %v1487_v51 = vmul.f32 %v12628_v40, %v1426_v3  ;;  %v1488_v50 = vmul.f32 %v12632_v20, %v1330_v33  ;;  %v18703_v32 = vld [vmem:[#allocation365_spill] sm:$0xff] }
 0x266   : >> { %v3135_v39 = vld [vmem:[#allocation2 + $0x78] sm:$0xff]  ;;  %v1060_v12 = vmul.f32 %v12640_v29, %v902_v42 }
 0x267   : >> { %1629 = vst.msk [vmem:[#allocation2 + $0x88] sm:$0xff] %vm1612_vm2, %v1596_v23  ;;  %4190 = vmatprep.subr.bf16.mxu0 %v3135_v39  ;;  %v1260_v63 = vpop.permute.xlu0 %1259  ;;  %1742 = vrot.lane.b32.xlu1 %v11746_v34, %s10595_s29  ;;  %v1551_v57 = vadd.f32 %v1487_v51, %v1059_v11 }
 0x268   : >> { %v1331_v19 = vsel %vm1311_vm0, %v1260_v63, %v1262_v25  ;;  %v1427_v37 = vsel %vm1311_vm0, %v18703_v32, %v1260_v63  ;;  %4191 = vmatpush1.bf16.msra.mxu0 %v1593_v30  ;;  %v1552_v42 = vadd.f32 %v1488_v50, %v1060_v12  ;;  %v1000_v25 = vsel %vm883_vm1, %v18706_v4, %v18705_v54  ;;  %v18708_v63 = vld [vmem:[#allocation338_spill] sm:$0xff]  ;;  %v18709_v12 = vld [vmem:[#allocation239_spill] sm:$0xff]  ;;  %v18711_v32 = vld [vmem:[#allocation341_spill] sm:$0xff] }
 0x269   : >> { %v1489_v21 = vmul.f32 %v12628_v40, %v1427_v37  ;;  %v1490_v33 = vmul.f32 %v12632_v20, %v1331_v19  ;;  %1740 = vrot.lane.b32.xlu0 %v18704_v24, %s10595_s29  ;;  %v1266_v3 = vpop.permute.xlu1 %1265  ;;  %v904_v11 = vsel %vm883_vm1, %v18705_v54, %v18708_v63  ;;  %v18710_v19 = vld [vmem:[#allocation340_spill] sm:$0xff]  ;;  %v18713_v54 = vld [vmem:[#allocation367_spill] sm:$0xff] }
 0x26a   : >> { %v905_v37 = vsel %vm883_vm1, %v18711_v32, %v18710_v19  ;;  %v18714_v63 = vld [vmem:[#allocation240_spill] sm:$0xff] }
 0x26b   : >> { %v1553_v23 = vadd.f32 %v1489_v21, %v1061_v27  ;;  %v1554_v30 = vadd.f32 %v1490_v33, %v1062_v36  ;;  %v1264_v38 = vpop.permute.xlu0 %1263  ;;  %1746 = vrot.lane.b32.xlu1 %v11756_v13, %s10595_s29  ;;  %v18712_v27 = vld [vmem:[#allocation282_spill] sm:$0xff] }
 0x26c   : >> { %v1332_v35 = vsel %vm1311_vm0, %v1264_v38, %v1266_v3  ;;  %v1428_v39 = vsel %vm1311_vm0, %v18707_v0, %v1264_v38  ;;  %v1001_v36 = vsel %vm883_vm1, %v18712_v27, %v18711_v32  ;;  %v1063_v3 = vmul.f32 %v12636_v6, %v1000_v25 }
 0x26d   : >> { %v1597_v51 = vpack.c.bf16 %v1553_v23, %v1551_v57  ;;  %v1598_v50 = vpack.c.bf16 %v1554_v30, %v1552_v42  ;;  %1744 = vrot.lane.b32.xlu0 %v18709_v12, %s10595_s29  ;;  %v1270_v21 = vpop.permute.xlu1 %1269  ;;  %v1491_v57 = vmul.f32 %v12628_v40, %v1428_v39  ;;  %v1492_v42 = vmul.f32 %v12632_v20, %v1332_v35 }
 0x26e   : >> { %v3137_v33 = vld [vmem:[#allocation2 + $0x88] sm:$0xff]  ;;  %v1064_v30 = vmul.f32 %v12640_v29, %v904_v11  ;;  %v1065_v25 = vmul.f32 %v12636_v6, %v1001_v36  ;;  %v1066_v0 = vmul.f32 %v12640_v29, %v905_v37 }
 0x26f   : >> { %1631 = vst.msk [vmem:[#allocation2 + $0x98] sm:$0xff] %vm1612_vm2, %v1598_v50  ;;  %4192 = vmatprep.subr.bf16.mxu0 %v3137_v33  ;;  %v1268_v23 = vpop.permute.xlu0 %1267  ;;  %1750 = vrot.lane.b32.xlu1 %v11741_v22, %s10595_s29  ;;  %v1555_v50 = vadd.f32 %v1491_v57, %v1063_v3  ;;  %v18716_v33 = vld [vmem:[#allocation286_spill] sm:$0xff] }
 0x270   : >> { %v1333_v38 = vsel %vm1311_vm0, %v1268_v23, %v1270_v21  ;;  %v1429_v4 = vsel %vm1311_vm0, %v18713_v54, %v1268_v23  ;;  %4193 = vmatpush1.bf16.msra.mxu0 %v1595_v15  ;;  %v1556_v19 = vadd.f32 %v1492_v42, %v1064_v30  ;;  %v18715_v21 = vld [vmem:[#allocation343_spill] sm:$0xff]  ;;  %v18717_v37 = vld [vmem:[#allocation370_spill] sm:$0xff]  ;;  %v18719_v30 = vld [vmem:[#allocation241_spill] sm:$0xff] }
 0x271   : >> { %v1493_v39 = vmul.f32 %v12628_v40, %v1429_v4  ;;  %v1494_v35 = vmul.f32 %v12632_v20, %v1333_v38  ;;  %1748 = vrot.lane.b32.xlu0 %v18714_v63, %s10595_s29  ;;  %v1274_v11 = vpop.permute.xlu1 %1273  ;;  %v1002_v23 = vsel %vm883_vm1, %v18716_v33, %v18715_v21  ;;  %v18718_v38 = vld [vmem:[#allocation342_spill] sm:$0xff]  ;;  %v18720_v4 = vld [vmem:[#allocation344_spill] sm:$0xff] }
 0x272   : >> { %v906_v3 = vsel %vm883_vm1, %v18715_v21, %v18718_v38  ;;  %v1067_v33 = vmul.f32 %v12636_v6, %v1002_v23 }
 0x273   : >> { %v1557_v32 = vadd.f32 %v1493_v39, %v1065_v25  ;;  %v1558_v27 = vadd.f32 %v1494_v35, %v1066_v0  ;;  %v1272_v15 = vpop.permute.xlu0 %1271  ;;  %1754 = vrot.lane.b32.xlu1 %v11752_v43, %s10595_s29  ;;  %v18721_v25 = vld [vmem:[#allocation345_spill] sm:$0xff] }
 0x274   : >> { %v1334_v36 = vsel %vm1311_vm0, %v1272_v15, %v1274_v11  ;;  %v1430_v54 = vsel %vm1311_vm0, %v18717_v37, %v1272_v15  ;;  %v907_v0 = vsel %vm883_vm1, %v18721_v25, %v18720_v4  ;;  %v18722_v39 = vld [vmem:[#allocation285_spill] sm:$0xff]  ;;  %v18724_v4 = vld [vmem:[#allocation242_spill] sm:$0xff] }
 0x275   : >> { %v1599_v57 = vpack.c.bf16 %v1557_v32, %v1555_v50  ;;  %v1600_v42 = vpack.c.bf16 %v1558_v27, %v1556_v19  ;;  %1752 = vrot.lane.b32.xlu0 %v18719_v30, %s10595_s29  ;;  %v1003_v35 = vsel %vm883_vm1, %v18722_v39, %v18721_v25  ;;  %v1278_v11 = vpop.permute.xlu1 %1277  ;;  %v1495_v50 = vmul.f32 %v12628_v40, %v1430_v54  ;;  %v18723_v37 = vld [vmem:[#allocation369_spill] sm:$0xff] }
 0x276   : >> { %v3139_v15 = vld [vmem:[#allocation2 + $0x98] sm:$0xff]  ;;  %v1496_v19 = vmul.f32 %v12632_v20, %v1334_v36  ;;  %v1068_v27 = vmul.f32 %v12640_v29, %v906_v3  ;;  %v1069_v23 = vmul.f32 %v12636_v6, %v1003_v35 }
 0x277   : >> { %1633 = vst.msk [vmem:[#allocation2 + $0xa8] sm:$0xff] %vm1612_vm2, %v1600_v42  ;;  %4194 = vmatprep.subr.bf16.mxu0 %v3139_v15  ;;  %v1276_v32 = vpop.permute.xlu0 %1275  ;;  %1758 = vrot.lane.b32.xlu1 %v11768_v28, %s10595_s29  ;;  %v1070_v42 = vmul.f32 %v12640_v29, %v907_v0  ;;  %v1559_v25 = vadd.f32 %v1495_v50, %v1067_v33  ;;  %v18727_v0 = vld [vmem:[#allocation372_spill] sm:$0xff] }
 0x278   : >> { %v1335_v21 = vsel %vm1311_vm0, %v1276_v32, %v1278_v11  ;;  %v1431_v38 = vsel %vm1311_vm0, %v18723_v37, %v1276_v32  ;;  %4195 = vmatpush1.bf16.msra.mxu0 %v1597_v51  ;;  %v1560_v39 = vadd.f32 %v1496_v19, %v1068_v27  ;;  %v18725_v32 = vld [vmem:[#allocation347_spill] sm:$0xff]  ;;  %v18726_v37 = vld [vmem:[#allocation289_spill] sm:$0xff] }
 0x279   : >> { %v1497_v54 = vmul.f32 %v12628_v40, %v1431_v38  ;;  %v1498_v36 = vmul.f32 %v12632_v20, %v1335_v21  ;;  %1756 = vrot.lane.b32.xlu0 %v18724_v4, %s10595_s29  ;;  %v1282_v3 = vpop.permute.xlu1 %1281  ;;  %v1004_v30 = vsel %vm883_vm1, %v18726_v37, %v18725_v32  ;;  %v18728_v21 = vld [vmem:[#allocation346_spill] sm:$0xff]  ;;  %v18729_v27 = vld [vmem:[#allocation243_spill] sm:$0xff] }
 0x27a   : >> { %v908_v33 = vsel %vm883_vm1, %v18725_v32, %v18728_v21  ;;  %v18733_v21 = vld [vmem:[#allocation371_spill] sm:$0xff] }
 0x27b   : >> { %v1561_v11 = vadd.f32 %v1497_v54, %v1069_v23  ;;  %v1562_v15 = vadd.f32 %v1498_v36, %v1070_v42  ;;  %v1280_v51 = vpop.permute.xlu0 %1279  ;;  %1762 = vrot.lane.b32.xlu1 %v11764_v49, %s10595_s29  ;;  %v18730_v23 = vld [vmem:[#allocation348_spill] sm:$0xff]  ;;  %v18731_v42 = vld [vmem:[#allocation349_spill] sm:$0xff] }
 0x27c   : >> { %v1336_v35 = vsel %vm1311_vm0, %v1280_v51, %v1282_v3  ;;  %v1432_v38 = vsel %vm1311_vm0, %v18727_v0, %v1280_v51  ;;  %v909_v54 = vsel %vm883_vm1, %v18731_v42, %v18730_v23  ;;  %v18732_v36 = vld [vmem:[#allocation288_spill] sm:$0xff]  ;;  %v1071_v0 = vmul.f32 %v12636_v6, %v1004_v30 }
 0x27d   : >> { %v1601_v50 = vpack.c.bf16 %v1561_v11, %v1559_v25  ;;  %v1602_v19 = vpack.c.bf16 %v1562_v15, %v1560_v39  ;;  %1760 = vrot.lane.b32.xlu0 %v18729_v27, %s10595_s29  ;;  %v1005_v3 = vsel %vm883_vm1, %v18732_v36, %v18731_v42  ;;  %v1286_v51 = vpop.permute.xlu1 %1285  ;;  %v1499_v25 = vmul.f32 %v12628_v40, %v1432_v38  ;;  %v18734_v42 = vld [vmem:[#allocation244_spill] sm:$0xff] }
 0x27e   : >> { %v3141_v37 = vld [vmem:[#allocation2 + $0xa8] sm:$0xff]  ;;  %v1500_v39 = vmul.f32 %v12632_v20, %v1336_v35  ;;  %v1072_v15 = vmul.f32 %v12640_v29, %v908_v33  ;;  %v1073_v30 = vmul.f32 %v12636_v6, %v1005_v3  ;;  %v18736_v27 = vld [vmem:[#allocation292_spill] sm:$0xff] }
 0x27f   : >> { %1635 = vst.msk [vmem:[#allocation2 + $0xb8] sm:$0xff] %vm1612_vm2, %v1602_v19  ;;  %4196 = vmatprep.subr.bf16.mxu0 %v3141_v37  ;;  %v1284_v11 = vpop.permute.xlu0 %1283  ;;  %1766 = vrot.lane.b32.xlu1 %v11780_v16, %s10595_s29  ;;  %v1074_v19 = vmul.f32 %v12640_v29, %v909_v54  ;;  %v1563_v36 = vadd.f32 %v1499_v25, %v1071_v0  ;;  %v18737_v54 = vld [vmem:[#allocation374_spill] sm:$0xff] }
 0x280   : >> { %v1337_v32 = vsel %vm1311_vm0, %v1284_v11, %v1286_v51  ;;  %v1433_v23 = vsel %vm1311_vm0, %v18733_v21, %v1284_v11  ;;  %4197 = vmatpush1.bf16.msra.mxu0 %v1599_v57  ;;  %v1564_v51 = vadd.f32 %v1500_v39, %v1072_v15  ;;  %v18735_v21 = vld [vmem:[#allocation351_spill] sm:$0xff]  ;;  %v18739_v15 = vld [vmem:[#allocation245_spill] sm:$0xff] }
 0x281   : >> { %v1501_v38 = vmul.f32 %v12628_v40, %v1433_v23  ;;  %v1502_v35 = vmul.f32 %v12632_v20, %v1337_v32  ;;  %1764 = vrot.lane.b32.xlu0 %v18734_v42, %s10595_s29  ;;  %v1290_v33 = vpop.permute.xlu1 %1289  ;;  %v1006_v4 = vsel %vm883_vm1, %v18736_v27, %v18735_v21  ;;  %v18738_v32 = vld [vmem:[#allocation350_spill] sm:$0xff] }
 0x282   : >> { %v910_v0 = vsel %vm883_vm1, %v18735_v21, %v18738_v32  ;;  %v18743_v32 = vld [vmem:[#allocation373_spill] sm:$0xff] }
 0x283   : >> { %v1565_v37 = vadd.f32 %v1501_v38, %v1073_v30  ;;  %v1566_v11 = vadd.f32 %v1502_v35, %v1074_v19  ;;  %v1288_v57 = vpop.permute.xlu0 %1287  ;;  %1770 = vrot.lane.b32.xlu1 %v11776_v55, %s10595_s29  ;;  %v18740_v30 = vld [vmem:[#allocation352_spill] sm:$0xff]  ;;  %v18741_v19 = vld [vmem:[#allocation353_spill] sm:$0xff]  ;;  %v18742_v38 = vld [vmem:[#allocation291_spill] sm:$0xff] }
 0x284   : >> { %v1338_v3 = vsel %vm1311_vm0, %v1288_v57, %v1290_v33  ;;  %v1434_v23 = vsel %vm1311_vm0, %v18737_v54, %v1288_v57  ;;  %v911_v27 = vsel %vm883_vm1, %v18741_v19, %v18740_v30  ;;  %v1007_v35 = vsel %vm883_vm1, %v18742_v38, %v18741_v19  ;;  %v18744_v19 = vld [vmem:[#allocation246_spill] sm:$0xff] }
 0x285   : >> { %v1603_v25 = vpack.c.bf16 %v1565_v37, %v1563_v36  ;;  %v1604_v39 = vpack.c.bf16 %v1566_v11, %v1564_v51  ;;  %1768 = vrot.lane.b32.xlu0 %v18739_v15, %s10595_s29  ;;  %v1294_v33 = vpop.permute.xlu1 %1293  ;;  %v1075_v54 = vmul.f32 %v12636_v6, %v1006_v4  ;;  %v1503_v36 = vmul.f32 %v12628_v40, %v1434_v23  ;;  %v18746_v15 = vld [vmem:[#allocation295_spill] sm:$0xff] }
 0x286   : >> { %v3143_v57 = vld [vmem:[#allocation2 + $0xb8] sm:$0xff]  ;;  %v1504_v51 = vmul.f32 %v12632_v20, %v1338_v3  ;;  %v1076_v11 = vmul.f32 %v12640_v29, %v910_v0  ;;  %v1077_v4 = vmul.f32 %v12636_v6, %v1007_v35 }
 0x287   : >> { %1637 = vst.msk [vmem:[#allocation2 + $0xc8] sm:$0xff] %vm1612_vm2, %v1604_v39  ;;  %4198 = vmatprep.subr.bf16.mxu0 %v3143_v57  ;;  %v1292_v37 = vpop.permute.xlu0 %1291  ;;  %1774 = vrot.lane.b32.xlu1 %v11792_v31, %s10595_s29  ;;  %v1078_v39 = vmul.f32 %v12640_v29, %v911_v27  ;;  %v1567_v38 = vadd.f32 %v1503_v36, %v1075_v54  ;;  %v18747_v27 = vld [vmem:[#allocation376_spill] sm:$0xff] }
 0x288   : >> { %v1339_v21 = vsel %vm1311_vm0, %v1292_v37, %v1294_v33  ;;  %v1435_v30 = vsel %vm1311_vm0, %v18743_v32, %v1292_v37  ;;  %4199 = vmatpush1.bf16.msra.mxu0 %v1601_v50  ;;  %v1568_v33 = vadd.f32 %v1504_v51, %v1076_v11  ;;  %v18745_v32 = vld [vmem:[#allocation355_spill] sm:$0xff] }
 0x289   : >> { %v1505_v23 = vmul.f32 %v12628_v40, %v1435_v30  ;;  %v1506_v3 = vmul.f32 %v12632_v20, %v1339_v21  ;;  %1772 = vrot.lane.b32.xlu0 %v18744_v19, %s10595_s29  ;;  %v1298_v0 = vpop.permute.xlu1 %1297  ;;  %v1008_v42 = vsel %vm883_vm1, %v18746_v15, %v18745_v32  ;;  %v18748_v21 = vld [vmem:[#allocation354_spill] sm:$0xff]  ;;  %v18749_v11 = vld [vmem:[#allocation247_spill] sm:$0xff] }
 0x28a   : >> { %v912_v54 = vsel %vm883_vm1, %v18745_v32, %v18748_v21  ;;  %v18753_v21 = vld [vmem:[#allocation375_spill] sm:$0xff] }
 0x28b   : >> { %v1569_v57 = vadd.f32 %v1505_v23, %v1077_v4  ;;  %v1570_v37 = vadd.f32 %v1506_v3, %v1078_v39  ;;  %v1296_v50 = vpop.permute.xlu0 %1295  ;;  %1778 = vrot.lane.b32.xlu1 %v11788_v61, %s10595_s29  ;;  %v18750_v4 = vld [vmem:[#allocation356_spill] sm:$0xff]  ;;  %v18751_v39 = vld [vmem:[#allocation357_spill] sm:$0xff]  ;;  %v18752_v23 = vld [vmem:[#allocation294_spill] sm:$0xff] }
 0x28c   : >> { %v1340_v35 = vsel %vm1311_vm0, %v1296_v50, %v1298_v0  ;;  %v1436_v30 = vsel %vm1311_vm0, %v18747_v27, %v1296_v50  ;;  %v913_v15 = vsel %vm883_vm1, %v18751_v39, %v18750_v4  ;;  %v1009_v3 = vsel %vm883_vm1, %v18752_v23, %v18751_v39  ;;  %v18754_v39 = vld [vmem:[#allocation248_spill] sm:$0xff] }
 0x28d   : >> { %v1605_v36 = vpack.c.bf16 %v1569_v57, %v1567_v38  ;;  %v1606_v51 = vpack.c.bf16 %v1570_v37, %v1568_v33  ;;  %1776 = vrot.lane.b32.xlu0 %v18749_v11, %s10595_s29  ;;  %v1302_v0 = vpop.permute.xlu1 %1301  ;;  %v1079_v27 = vmul.f32 %v12636_v6, %v1008_v42  ;;  %v1507_v38 = vmul.f32 %v12628_v40, %v1436_v30  ;;  %v18756_v11 = vld [vmem:[#allocation298_spill] sm:$0xff] }
 0x28e   : >> { %v3145_v50 = vld [vmem:[#allocation2 + $0xc8] sm:$0xff]  ;;  %v1508_v33 = vmul.f32 %v12632_v20, %v1340_v35  ;;  %v1080_v37 = vmul.f32 %v12640_v29, %v912_v54  ;;  %v1081_v42 = vmul.f32 %v12636_v6, %v1009_v3 }
 0x28f   : >> { %1639 = vst.msk [vmem:[#allocation2 + $0xd8] sm:$0xff] %vm1612_vm2, %v1606_v51  ;;  %4200 = vmatprep.subr.bf16.mxu0 %v3145_v50  ;;  %v1300_v57 = vpop.permute.xlu0 %1299  ;;  %1782 = vrot.lane.b32.xlu1 %v11804_v46, %s10595_s29  ;;  %v1082_v51 = vmul.f32 %v12640_v29, %v913_v15  ;;  %v1571_v23 = vadd.f32 %v1507_v38, %v1079_v27  ;;  %v18757_v15 = vld [vmem:[#allocation378_spill] sm:$0xff] }
 0x290   : >> { %v1341_v32 = vsel %vm1311_vm0, %v1300_v57, %v1302_v0  ;;  %v1437_v4 = vsel %vm1311_vm0, %v18753_v21, %v1300_v57  ;;  %4201 = vmatpush1.bf16.msra.mxu0 %v1603_v25  ;;  %v1572_v0 = vadd.f32 %v1508_v33, %v1080_v37  ;;  %v18755_v21 = vld [vmem:[#allocation359_spill] sm:$0xff]  ;;  %v18759_v37 = vld [vmem:[#allocation249_spill] sm:$0xff] }
 0x291   : >> { %v1509_v30 = vmul.f32 %v12628_v40, %v1437_v4  ;;  %v1510_v35 = vmul.f32 %v12632_v20, %v1341_v32  ;;  %1780 = vrot.lane.b32.xlu0 %v18754_v39, %s10595_s29  ;;  %v1306_v54 = vpop.permute.xlu1 %1305  ;;  %v1010_v19 = vsel %vm883_vm1, %v18756_v11, %v18755_v21  ;;  %v18758_v32 = vld [vmem:[#allocation358_spill] sm:$0xff] }
 0x292   : >> { %v914_v27 = vsel %vm883_vm1, %v18755_v21, %v18758_v32  ;;  %v18763_v32 = vld [vmem:[#allocation377_spill] sm:$0xff] }
 0x293   : >> { %v1573_v50 = vadd.f32 %v1509_v30, %v1081_v42  ;;  %v1574_v57 = vadd.f32 %v1510_v35, %v1082_v51  ;;  %v1304_v25 = vpop.permute.xlu0 %1303  ;;  %1786 = vrot.lane.b32.xlu1 %v11800_v62, %s10595_s29  ;;  %v18760_v42 = vld [vmem:[#allocation360_spill] sm:$0xff]  ;;  %v18761_v51 = vld [vmem:[#allocation361_spill] sm:$0xff] }
 0x294   : >> { %v1342_v3 = vsel %vm1311_vm0, %v1304_v25, %v1306_v54  ;;  %v1438_v4 = vsel %vm1311_vm0, %v18757_v15, %v1304_v25  ;;  %v915_v11 = vsel %vm883_vm1, %v18761_v51, %v18760_v42  ;;  %v18762_v30 = vld [vmem:[#allocation297_spill] sm:$0xff]  ;;  %v1083_v15 = vmul.f32 %v12636_v6, %v1010_v19 }
 0x295   : >> { %v1607_v38 = vpack.c.bf16 %v1573_v50, %v1571_v23  ;;  %v1608_v33 = vpack.c.bf16 %v1574_v57, %v1572_v0  ;;  %1784 = vrot.lane.b32.xlu0 %v18759_v37, %s10595_s29  ;;  %v1011_v35 = vsel %vm883_vm1, %v18762_v30, %v18761_v51  ;;  %v1310_v54 = vpop.permute.xlu1 %1309  ;;  %v1511_v23 = vmul.f32 %v12628_v40, %v1438_v4  ;;  %v18764_v51 = vld [vmem:[#allocation250_spill] sm:$0xff] }
 0x296   : >> { %v3147_v25 = vld [vmem:[#allocation2 + $0xd8] sm:$0xff]  ;;  %v1512_v0 = vmul.f32 %v12632_v20, %v1342_v3  ;;  %v1084_v57 = vmul.f32 %v12640_v29, %v914_v27  ;;  %v1085_v19 = vmul.f32 %v12636_v6, %v1011_v35 }
 0x297   : >> { %1641 = vst.msk [vmem:[#allocation2 + $0xe8] sm:$0xff] %vm1612_vm2, %v1608_v33  ;;  %4202 = vmatprep.subr.bf16.mxu0 %v3147_v25  ;;  %v1308_v50 = vpop.permute.xlu0 %1307  ;;  %1790 = vrot.lane.b32.xlu1 %v11816_v52, %s10595_s29  ;;  %v1086_v33 = vmul.f32 %v12640_v29, %v915_v11  ;;  %v1575_v30 = vadd.f32 %v1511_v23, %v1083_v15  ;;  %v18769_v23 = vld [vmem:[#allocation254_spill] sm:$0xff] }
 0x298   : >> { %v1343_v21 = vsel %vm1311_vm0, %v1308_v50, %v1310_v54  ;;  %v1439_v42 = vsel %vm1311_vm0, %v18763_v32, %v1308_v50  ;;  %4203 = vmatpush1.bf16.msra.mxu0 %v1605_v36  ;;  %v1576_v54 = vadd.f32 %v1512_v0, %v1084_v57  ;;  %v18766_v32 = vld [vmem:[#allocation251_spill] sm:$0xff] }
 0x299   : >> { %v1513_v4 = vmul.f32 %v12628_v40, %v1439_v42  ;;  %v1514_v3 = vmul.f32 %v12632_v20, %v1343_v21  ;;  %1788 = vrot.lane.b32.xlu0 %v18764_v51, %s10595_s29  ;;  %v13201_v27 = vpop.permute.xlu1 %1646  ;;  %v18784_v40 = vld [vmem:[#allocation269_spill] sm:$0xff]  ;;  %v18787_v20 = vld [vmem:[#allocation272_spill] sm:$0xff] }
 0x29a   : >> { %18765 = vst [vmem:[#allocation300_spill] sm:$0xff] %v13201_v27 }
 0x29b   : >> { %v1577_v25 = vadd.f32 %v1513_v4, %v1085_v19  ;;  %v1578_v36 = vadd.f32 %v1514_v3, %v1086_v33  ;;  %v13203_v50 = vpop.permute.xlu0 %1644  ;;  %1794 = vrot.lane.b32.xlu1 %v11812_v53, %s10595_s29  ;;  %v18772_v19 = vld [vmem:[#allocation257_spill] sm:$0xff]  ;;  %v18775_v3 = vld [vmem:[#allocation260_spill] sm:$0xff] }
 0x29d   : >> { %v1609_v35 = vpack.c.bf16 %v1577_v25, %v1575_v30  ;;  %v1610_v11 = vpack.c.bf16 %v1578_v36, %v1576_v54  ;;  %1792 = vrot.lane.b32.xlu0 %v18766_v32, %s10595_s29  ;;  %v13209_v21 = vpop.permute.xlu1 %1650  ;;  %v18778_v25 = vld [vmem:[#allocation263_spill] sm:$0xff] }
 0x29e   : >> { %18767 = vst [vmem:[#allocation301_spill] sm:$0xff] %v13209_v21  ;;  %v3149_v42 = vld [vmem:[#allocation2 + $0xe8] sm:$0xff] }
 0x29f   : >> { %1643 = vst.msk [vmem:[#allocation2 + $0xf8] sm:$0xff] %vm1612_vm2, %v1610_v11  ;;  %4204 = vmatprep.subr.bf16.mxu0 %v3149_v42  ;;  %v13212_v15 = vpop.permute.xlu0 %1648  ;;  %1798 = vrot.lane.b32.xlu1 %v11828_v58, %s10595_s29 }
 0x2a0   : >> { %18768 = vst [vmem:[#allocation253_spill] sm:$0xff] %v13212_v15  ;;  %4205 = vmatpush1.bf16.msra.mxu0 %v1607_v38 }
 0x2a1   : >> { %1796 = vrot.lane.b32.xlu0 %v18769_v23, %s10595_s29  ;;  %v13218_v0 = vpop.permute.xlu1 %1654 }
 0x2a2   : >> { %18770 = vst [vmem:[#allocation256_spill] sm:$0xff] %v13218_v0 }
 0x2a3   : >> { %v13220_v57 = vpop.permute.xlu0 %1652  ;;  %1802 = vrot.lane.b32.xlu1 %v11824_v41, %s10595_s29 }
 0x2a4   : >> { %18771 = vst [vmem:[#allocation252_spill] sm:$0xff] %v13220_v57 }
 0x2a5   : >> { %1800 = vrot.lane.b32.xlu0 %v18772_v19, %s10595_s29  ;;  %v13226_v33 = vpop.permute.xlu1 %1658 }
 0x2a6   : >> { %18773 = vst [vmem:[#allocation304_spill] sm:$0xff] %v13226_v33  ;;  %v3151_v4 = vld [vmem:[#allocation2 + $0xf8] sm:$0xff] }
 0x2a7   : >> { %4206 = vmatprep.subr.bf16.mxu0 %v3151_v4  ;;  %v13228_v38 = vpop.permute.xlu0 %1656  ;;  %1806 = vrot.lane.b32.xlu1 %v11840_v56, %s10595_s29 }
 0x2a8   : >> { %18774 = vst [vmem:[#allocation305_spill] sm:$0xff] %v13228_v38  ;;  %4207 = vmatpush1.bf16.msra.mxu0 %v1609_v35  ;;  %v18781_v35 = vld [vmem:[#allocation266_spill] sm:$0xff] }
 0x2a9   : >> { %1804 = vrot.lane.b32.xlu0 %v18775_v3, %s10595_s29  ;;  %v13234_v30 = vpop.permute.xlu1 %1662 }
 0x2aa   : >> { %18776 = vst [vmem:[#allocation255_spill] sm:$0xff] %v13234_v30 }
 0x2ab   : >> { %v13236_v54 = vpop.permute.xlu0 %1660  ;;  %1810 = vrot.lane.b32.xlu1 %v11836_v5, %s10595_s29 }
 0x2ac   : >> { %18777 = vst [vmem:[#allocation307_spill] sm:$0xff] %v13236_v54 }
 0x2ad   : >> { %1808 = vrot.lane.b32.xlu0 %v18778_v25, %s10595_s29  ;;  %v13242_v36 = vpop.permute.xlu1 %1666 }
 0x2ae   : >> { %18779 = vst [vmem:[#allocation259_spill] sm:$0xff] %v13242_v36 }
 0x2af   : >> { %v13244_v11 = vpop.permute.xlu0 %1664  ;;  %1814 = vrot.lane.b32.xlu1 %v11852_v59, %s10595_s29 }
 0x2b0   : >> { %18780 = vst [vmem:[#allocation306_spill] sm:$0xff] %v13244_v11 }
 0x2b1   : >> { %1812 = vrot.lane.b32.xlu0 %v18781_v35, %s10595_s29  ;;  %v13250_v42 = vpop.permute.xlu1 %1670 }
 0x2b2   : >> { %18782 = vst [vmem:[#allocation308_spill] sm:$0xff] %v13250_v42 }
 0x2b3   : >> { %v13252_v4 = vpop.permute.xlu0 %1668  ;;  %1818 = vrot.lane.b32.xlu1 %v11848_v17, %s10595_s29 }
 0x2b4   : >> { %18783 = vst [vmem:[#allocation309_spill] sm:$0xff] %v13252_v4  ;;  %v18790_v4 = vld [vmem:[#allocation275_spill] sm:$0xff] }
 0x2b5   : >> { %1816 = vrot.lane.b32.xlu0 %v18784_v40, %s10595_s29  ;;  %v13258_v6 = vpop.permute.xlu1 %1674 }
 0x2b6   : >> { %18785 = vst [vmem:[#allocation258_spill] sm:$0xff] %v13258_v6 }
 0x2b7   : >> { %v13260_v29 = vpop.permute.xlu0 %1672  ;;  %1822 = vrot.lane.b32.xlu1 %v11864_v47, %s10595_s29 }
 0x2b8   : >> { %18786 = vst [vmem:[#allocation311_spill] sm:$0xff] %v13260_v29  ;;  %v18793_v29 = vld [vmem:[#allocation278_spill] sm:$0xff] }
 0x2b9   : >> { %1820 = vrot.lane.b32.xlu0 %v18787_v20, %s10595_s29  ;;  %v13266_v36 = vpop.permute.xlu1 %1678 }
 0x2ba   : >> { %18788 = vst [vmem:[#allocation262_spill] sm:$0xff] %v13266_v36 }
 0x2bb   : >> { %v13268_v42 = vpop.permute.xlu0 %1676  ;;  %1826 = vrot.lane.b32.xlu1 %v11860_v2, %s10595_s29 }
 0x2bc   : >> { %18789 = vst [vmem:[#allocation310_spill] sm:$0xff] %v13268_v42  ;;  %v18796_v42 = vld [vmem:[#allocation281_spill] sm:$0xff] }
 0x2bd   : >> { %1824 = vrot.lane.b32.xlu0 %v18790_v4, %s10595_s29  ;;  %v13274_v11 = vpop.permute.xlu1 %1682 }
 0x2be   : >> { %18791 = vst [vmem:[#allocation312_spill] sm:$0xff] %v13274_v11 }
 0x2bf   : >> { %v13276_v6 = vpop.permute.xlu0 %1680  ;;  %1830 = vrot.lane.b32.xlu1 %v18677_v48, %s10595_s29 }
 0x2c0   : >> { %18792 = vst [vmem:[#allocation313_spill] sm:$0xff] %v13276_v6  ;;  %v18799_v6 = vld [vmem:[#allocation284_spill] sm:$0xff] }
 0x2c1   : >> { %1828 = vrot.lane.b32.xlu0 %v18793_v29, %s10595_s29  ;;  %v13282_v30 = vpop.permute.xlu1 %1686 }
 0x2c2   : >> { %18794 = vst [vmem:[#allocation261_spill] sm:$0xff] %v13282_v30 }
 0x2c3   : >> { %v13284_v36 = vpop.permute.xlu0 %1684  ;;  %1834 = vrot.lane.b32.xlu1 %v11872_v14, %s10595_s29 }
 0x2c4   : >> { %18795 = vst [vmem:[#allocation315_spill] sm:$0xff] %v13284_v36  ;;  %v18802_v36 = vld [vmem:[#allocation287_spill] sm:$0xff] }
 0x2c5   : >> { %1832 = vrot.lane.b32.xlu0 %v18796_v42, %s10595_s29  ;;  %v13290_v54 = vpop.permute.xlu1 %1690 }
 0x2c6   : >> { %18797 = vst [vmem:[#allocation265_spill] sm:$0xff] %v13290_v54 }
 0x2c7   : >> { %v13292_v11 = vpop.permute.xlu0 %1688  ;;  %1838 = vrot.lane.b32.xlu1 %v18683_v7, %s10595_s29 }
 0x2c8   : >> { %18798 = vst [vmem:[#allocation314_spill] sm:$0xff] %v13292_v11  ;;  %v18805_v11 = vld [vmem:[#allocation290_spill] sm:$0xff] }
 0x2c9   : >> { %1836 = vrot.lane.b32.xlu0 %v18799_v6, %s10595_s29  ;;  %v13298_v33 = vpop.permute.xlu1 %1694 }
 0x2ca   : >> { %18800 = vst [vmem:[#allocation316_spill] sm:$0xff] %v13298_v33 }
 0x2cb   : >> { %v13300_v30 = vpop.permute.xlu0 %1692  ;;  %1842 = vrot.lane.b32.xlu1 %v18682_v9, %s10595_s29 }
 0x2cc   : >> { %18801 = vst [vmem:[#allocation317_spill] sm:$0xff] %v13300_v30  ;;  %v18808_v30 = vld [vmem:[#allocation293_spill] sm:$0xff] }
 0x2cd   : >> { %1840 = vrot.lane.b32.xlu0 %v18802_v36, %s10595_s29  ;;  %v13306_v38 = vpop.permute.xlu1 %1698 }
 0x2ce   : >> { %18803 = vst [vmem:[#allocation264_spill] sm:$0xff] %v13306_v38 }
 0x2cf   : >> { %v13308_v54 = vpop.permute.xlu0 %1696  ;;  %1846 = vrot.lane.b32.xlu1 %v18689_v44, %s10595_s29 }
 0x2d0   : >> { %18804 = vst [vmem:[#allocation319_spill] sm:$0xff] %v13308_v54  ;;  %v18811_v54 = vld [vmem:[#allocation296_spill] sm:$0xff] }
 0x2d1   : >> { %1844 = vrot.lane.b32.xlu0 %v18805_v11, %s10595_s29  ;;  %v13314_v0 = vpop.permute.xlu1 %1702 }
 0x2d2   : >> { %18806 = vst [vmem:[#allocation268_spill] sm:$0xff] %v13314_v0 }
 0x2d3   : >> { %v13316_v33 = vpop.permute.xlu0 %1700  ;;  %1850 = vrot.lane.b32.xlu1 %v18687_v1, %s10595_s29 }
 0x2d4   : >> { %18807 = vst [vmem:[#allocation318_spill] sm:$0xff] %v13316_v33  ;;  %v18812_v33 = vld [vmem:[#allocation299_spill] sm:$0xff] }
 0x2d5   : >> { %1848 = vrot.lane.b32.xlu0 %v18808_v30, %s10595_s29  ;;  %v13322_v57 = vpop.permute.xlu1 %1706 }
 0x2d6   : >> { %18809 = vst [vmem:[#allocation320_spill] sm:$0xff] %v13322_v57 }
 0x2d7   : >> { %v13324_v38 = vpop.permute.xlu0 %1704  ;;  %1854 = vrot.lane.b32.xlu1 %v18695_v45, %s10595_s29 }
 0x2d8   : >> { %18810 = vst [vmem:[#allocation321_spill] sm:$0xff] %v13324_v38 }
 0x2d9   : >> { %1852 = vrot.lane.b32.xlu0 %v18811_v54, %s10595_s29  ;;  %v13330_v21 = vpop.permute.xlu1 %1742 }
 0x2db   : >> { %v13332_v0 = vpop.permute.xlu0 %1740  ;;  %1858 = vrot.lane.b32.xlu1 %v18694_v18, %s10595_s29 }
 0x2dd   : >> { %1856 = vrot.lane.b32.xlu0 %v18812_v33, %s10595_s29  ;;  %v13338_v15 = vpop.permute.xlu1 %1746 }
 0x2de   : >> { %18813 = vst [vmem:[#allocation267_spill] sm:$0xff] %v13338_v15 }
 0x2df   : >> { %v13340_v57 = vpop.permute.xlu0 %1744  ;;  %1862 = vrot.lane.b32.xlu1 %v11924_v8, %s10595_s29 }
 0x2e1   : >> { %1860 = vrot.lane.b32.xlu0 %v12240_v10, %s10595_s29  ;;  %v13346_v38 = vpop.permute.xlu1 %1750 }
 0x2e2   : >> { %18814 = vst [vmem:[#allocation323_spill] sm:$0xff] %v13346_v38 }
 0x2e3   : >> { %v13348_v27 = vpop.permute.xlu0 %1748  ;;  %1866 = vrot.lane.b32.xlu1 %v11920_v60, %s10595_s29 }
 0x2e4   : >> { %18815 = vst [vmem:[#allocation271_spill] sm:$0xff] %v13348_v27 }
 0x2e5   : >> { %1864 = vrot.lane.b32.xlu0 %v18640_v26, %s10595_s29  ;;  %v13354_v33 = vpop.permute.xlu1 %1754 }
 0x2e6   : >> { %18816 = vst [vmem:[#allocation322_spill] sm:$0xff] %v13354_v33 }
 0x2e7   : >> { %v13356_v15 = vpop.permute.xlu0 %1752  ;;  %2074 = vrot.lane.b32.xlu1 %v11756_v13, %s10596_s30 }
 0x2e8   : >> { %18817 = vst [vmem:[#allocation324_spill] sm:$0xff] %v13356_v15 }
 0x2e9   : >> { %2072 = vrot.lane.b32.xlu0 %v11746_v34, %s10596_s30  ;;  %v13362_v38 = vpop.permute.xlu1 %1758 }
 0x2ea   : >> { %18818 = vst [vmem:[#allocation325_spill] sm:$0xff] %v13362_v38 }
 0x2eb   : >> { %v13364_v27 = vpop.permute.xlu0 %1756  ;;  %2078 = vrot.lane.b32.xlu1 %v11752_v43, %s10596_s30 }
 0x2ec   : >> { %18819 = vst [vmem:[#allocation270_spill] sm:$0xff] %v13364_v27 }
 0x2ed   : >> { %2076 = vrot.lane.b32.xlu0 %v11741_v22, %s10596_s30  ;;  %v13370_v33 = vpop.permute.xlu1 %1762 }
 0x2ee   : >> { %18820 = vst [vmem:[#allocation327_spill] sm:$0xff] %v13370_v33 }
 0x2ef   : >> { %v13372_v15 = vpop.permute.xlu0 %1760  ;;  %2082 = vrot.lane.b32.xlu1 %v11764_v49, %s10596_s30 }
 0x2f0   : >> { %18821 = vst [vmem:[#allocation274_spill] sm:$0xff] %v13372_v15 }
 0x2f1   : >> { %2080 = vrot.lane.b32.xlu0 %v11768_v28, %s10596_s30  ;;  %v13378_v26 = vpop.permute.xlu1 %1766 }
 0x2f2   : >> { %18822 = vst [vmem:[#allocation326_spill] sm:$0xff] %v13378_v26 }
 0x2f3   : >> { %v13380_v38 = vpop.permute.xlu0 %1764  ;;  %2086 = vrot.lane.b32.xlu1 %v11776_v55, %s10596_s30 }
 0x2f4   : >> { %18823 = vst [vmem:[#allocation328_spill] sm:$0xff] %v13380_v38 }
 0x2f5   : >> { %2084 = vrot.lane.b32.xlu0 %v11780_v16, %s10596_s30  ;;  %v13386_v27 = vpop.permute.xlu1 %1770 }
 0x2f6   : >> { %18824 = vst [vmem:[#allocation329_spill] sm:$0xff] %v13386_v27 }
 0x2f7   : >> { %v13388_v33 = vpop.permute.xlu0 %1768  ;;  %2090 = vrot.lane.b32.xlu1 %v11788_v61, %s10596_s30 }
 0x2f8   : >> { %18825 = vst [vmem:[#allocation273_spill] sm:$0xff] %v13388_v33 }
 0x2f9   : >> { %2088 = vrot.lane.b32.xlu0 %v11792_v31, %s10596_s30  ;;  %v13394_v15 = vpop.permute.xlu1 %1774 }
 0x2fa   : >> { %18826 = vst [vmem:[#allocation362_spill] sm:$0xff] %v13394_v15 }
 0x2fb   : >> { %v13396_v26 = vpop.permute.xlu0 %1772  ;;  %2094 = vrot.lane.b32.xlu1 %v11800_v62, %s10596_s30 }
 0x2fc   : >> { %18827 = vst [vmem:[#allocation331_spill] sm:$0xff] %v13396_v26 }
 0x2fd   : >> { %2092 = vrot.lane.b32.xlu0 %v11804_v46, %s10596_s30  ;;  %v13402_v38 = vpop.permute.xlu1 %1778 }
 0x2fe   : >> { %18828 = vst [vmem:[#allocation277_spill] sm:$0xff] %v13402_v38 }
 0x2ff   : >> { %v13404_v27 = vpop.permute.xlu0 %1776  ;;  %2098 = vrot.lane.b32.xlu1 %v11812_v53, %s10596_s30 }
 0x300   : >> { %18829 = vst [vmem:[#allocation364_spill] sm:$0xff] %v13404_v27 }
 0x301   : >> { %2096 = vrot.lane.b32.xlu0 %v11816_v52, %s10596_s30  ;;  %v13410_v33 = vpop.permute.xlu1 %1782 }
 0x302   : >> { %18830 = vst [vmem:[#allocation330_spill] sm:$0xff] %v13410_v33 }
 0x303   : >> { %v13412_v15 = vpop.permute.xlu0 %1780  ;;  %2102 = vrot.lane.b32.xlu1 %v11824_v41, %s10596_s30 }
 0x304   : >> { %18831 = vst [vmem:[#allocation332_spill] sm:$0xff] %v13412_v15 }
 0x305   : >> { %2100 = vrot.lane.b32.xlu0 %v11828_v58, %s10596_s30  ;;  %v13418_v26 = vpop.permute.xlu1 %1786 }
 0x306   : >> { %18832 = vst [vmem:[#allocation333_spill] sm:$0xff] %v13418_v26 }
 0x307   : >> { %v13420_v38 = vpop.permute.xlu0 %1784  ;;  %2106 = vrot.lane.b32.xlu1 %v11836_v5, %s10596_s30 }
 0x308   : >> { %18833 = vst [vmem:[#allocation276_spill] sm:$0xff] %v13420_v38 }
 0x309   : >> { %2104 = vrot.lane.b32.xlu0 %v11840_v56, %s10596_s30  ;;  %v13426_v27 = vpop.permute.xlu1 %1790 }
 0x30a   : >> { %18834 = vst [vmem:[#allocation363_spill] sm:$0xff] %v13426_v27 }
 0x30b   : >> { %v13428_v33 = vpop.permute.xlu0 %1788  ;;  %2110 = vrot.lane.b32.xlu1 %v11848_v17, %s10596_s30 }
 0x30c   : >> { %18835 = vst [vmem:[#allocation335_spill] sm:$0xff] %v13428_v33 }
 0x30d   : >> { %2108 = vrot.lane.b32.xlu0 %v11852_v59, %s10596_s30  ;;  %v13434_v15 = vpop.permute.xlu1 %1794 }
 0x30e   : >> { %18836 = vst [vmem:[#allocation280_spill] sm:$0xff] %v13434_v15 }
 0x30f   : >> { %v13436_v26 = vpop.permute.xlu0 %1792  ;;  %2114 = vrot.lane.b32.xlu1 %v11860_v2, %s10596_s30 }
 0x310   : >> { %18837 = vst [vmem:[#allocation366_spill] sm:$0xff] %v13436_v26 }
 0x311   : >> { %2112 = vrot.lane.b32.xlu0 %v11864_v47, %s10596_s30  ;;  %v13442_v38 = vpop.permute.xlu1 %1798 }
 0x312   : >> { %18838 = vst [vmem:[#allocation334_spill] sm:$0xff] %v13442_v38 }
 0x313   : >> { %v13444_v27 = vpop.permute.xlu0 %1796  ;;  %2118 = vrot.lane.b32.xlu1 %v11872_v14, %s10596_s30 }
 0x314   : >> { %18839 = vst [vmem:[#allocation336_spill] sm:$0xff] %v13444_v27 }
 0x315   : >> { %2116 = vrot.lane.b32.xlu0 %v18677_v48, %s10596_s30  ;;  %v13450_v33 = vpop.permute.xlu1 %1802 }
 0x316   : >> { %18840 = vst [vmem:[#allocation337_spill] sm:$0xff] %v13450_v33 }
 0x317   : >> { %v13452_v15 = vpop.permute.xlu0 %1800  ;;  %2122 = vrot.lane.b32.xlu1 %v18682_v9, %s10596_s30 }
 0x318   : >> { %18841 = vst [vmem:[#allocation279_spill] sm:$0xff] %v13452_v15 }
 0x319   : >> { %2120 = vrot.lane.b32.xlu0 %v18683_v7, %s10596_s30  ;;  %v13458_v26 = vpop.permute.xlu1 %1806 }
 0x31a   : >> { %18842 = vst [vmem:[#allocation365_spill] sm:$0xff] %v13458_v26 }
 0x31b   : >> { %v13460_v38 = vpop.permute.xlu0 %1804  ;;  %2126 = vrot.lane.b32.xlu1 %v18687_v1, %s10596_s30 }
 0x31c   : >> { %18843 = vst [vmem:[#allocation339_spill] sm:$0xff] %v13460_v38 }
 0x31d   : >> { %2124 = vrot.lane.b32.xlu0 %v18689_v44, %s10596_s30  ;;  %v13466_v27 = vpop.permute.xlu1 %1810 }
 0x31e   : >> { %18844 = vst [vmem:[#allocation283_spill] sm:$0xff] %v13466_v27 }
 0x31f   : >> { %v13468_v33 = vpop.permute.xlu0 %1808  ;;  %2130 = vrot.lane.b32.xlu1 %v18694_v18, %s10596_s30 }
 0x320   : >> { %18845 = vst [vmem:[#allocation368_spill] sm:$0xff] %v13468_v33  ;;  %v18853_v33 = vld [vmem:[#allocation9_spill] sm:$0xff] }
 0x321   : >> { %2128 = vrot.lane.b32.xlu0 %v18695_v45, %s10596_s30  ;;  %v13474_v15 = vpop.permute.xlu1 %1814 }
 0x322   : >> { %18846 = vst [vmem:[#allocation338_spill] sm:$0xff] %v13474_v15 }
 0x323   : >> { %v13476_v26 = vpop.permute.xlu0 %1812  ;;  %2134 = vrot.lane.b32.xlu1 %v11920_v60, %s10596_s30 }
 0x324   : >> { %18847 = vst [vmem:[#allocation340_spill] sm:$0xff] %v13476_v26 }
 0x325   : >> { %2132 = vrot.lane.b32.xlu0 %v11924_v8, %s10596_s30  ;;  %v13482_v38 = vpop.permute.xlu1 %1818 }
 0x326   : >> { %18848 = vst [vmem:[#allocation341_spill] sm:$0xff] %v13482_v38  ;;  %v18852_v38 = vld [vmem:[#allocation12_spill] sm:$0xff] }
 0x327   : >> { %v13484_v27 = vpop.permute.xlu0 %1816  ;;  %2170 = vrot.lane.b32.xlu1 %v11746_v34, %s10597_s10  ;;  %v13504_v34 = vcombine.low %v18853_v33, %v18852_v38 }
 0x328   : >> { %18849 = vst [vmem:[#allocation282_spill] sm:$0xff] %v13484_v27  ;;  %v9434_v27 = vcombine.high %v18853_v33, %v18852_v38  ;;  %v18859_v33 = vld [vmem:[#allocation241_spill] sm:$0xff] }
 0x329   : >> { %2168 = vrot.lane.b32.xlu0 %v18704_v24, %s10597_s10  ;;  %v13490_v15 = vpop.permute.xlu1 %1822  ;;  %18855 = vst [vmem:[#allocation370_spill] sm:$0xff] %v13504_v34 }
 0x32a   : >> { %18850 = vst [vmem:[#allocation367_spill] sm:$0xff] %v13490_v15  ;;  %4208 = vmatprep.mubr.bf16.mxu0 %v9434_v27  ;;  %8154 = vmatprep.mubr.bf16.mxu1 %v9434_v27 }
 0x32b   : >> { %v13492_v26 = vpop.permute.xlu0 %1820  ;;  %2174 = vrot.lane.b32.xlu1 %v11756_v13, %s10597_s10  ;;  %4209 = vmatmul.mubr.bf16.vlgmr.msra.gmra.mrb[0].mxu0 %v13504_v34  ;;  %v18862_v34 = vld [vmem:[#allocation242_spill] sm:$0xff] }
 0x32c   : >> { %18851 = vst [vmem:[#allocation343_spill] sm:$0xff] %v13492_v26 }
 0x32d   : >> { %2172 = vrot.lane.b32.xlu0 %v18709_v12, %s10597_s10  ;;  %v13500_v60 = vpop.permute.xlu1 %1826 }
 0x32e   : >> { %18854 = vst [vmem:[#allocation286_spill] sm:$0xff] %v13500_v60 }
 0x32f   : >> { %v13506_v24 = vpop.permute.xlu0 %1824  ;;  %2178 = vrot.lane.b32.xlu1 %v11741_v22, %s10597_s10 }
 0x330   : >> { %18856 = vst [vmem:[#allocation342_spill] sm:$0xff] %v13506_v24 }
 0x331   : >> { %2176 = vrot.lane.b32.xlu0 %v18714_v63, %s10597_s10  ;;  %v13513_v12 = vpop.permute.xlu1 %1830 }
 0x332   : >> { %18857 = vst [vmem:[#allocation344_spill] sm:$0xff] %v13513_v12 }
 0x333   : >> { %v13515_v15 = vpop.permute.xlu0 %1828  ;;  %2182 = vrot.lane.b32.xlu1 %v11752_v43, %s10597_s10 }
 0x334   : >> { %18858 = vst [vmem:[#allocation345_spill] sm:$0xff] %v13515_v15  ;;  %v18865_v15 = vld [vmem:[#allocation243_spill] sm:$0xff] }
 0x335   : >> { %2180 = vrot.lane.b32.xlu0 %v18859_v33, %s10597_s10  ;;  %v13521_v38 = vpop.permute.xlu1 %1834 }
 0x336   : >> { %18860 = vst [vmem:[#allocation285_spill] sm:$0xff] %v13521_v38 }
 0x337   : >> { %v13523_v27 = vpop.permute.xlu0 %1832  ;;  %2186 = vrot.lane.b32.xlu1 %v11768_v28, %s10597_s10 }
 0x338   : >> { %18861 = vst [vmem:[#allocation369_spill] sm:$0xff] %v13523_v27  ;;  %v18868_v27 = vld [vmem:[#allocation244_spill] sm:$0xff] }
 0x339   : >> { %2184 = vrot.lane.b32.xlu0 %v18862_v34, %s10597_s10  ;;  %v13529_v63 = vpop.permute.xlu1 %1838 }
 0x33a   : >> { %18863 = vst [vmem:[#allocation347_spill] sm:$0xff] %v13529_v63 }
 0x33b   : >> { %v13531_v12 = vpop.permute.xlu0 %1836  ;;  %2190 = vrot.lane.b32.xlu1 %v11764_v49, %s10597_s10 }
 0x33c   : >> { %18864 = vst [vmem:[#allocation289_spill] sm:$0xff] %v13531_v12  ;;  %v18871_v12 = vld [vmem:[#allocation245_spill] sm:$0xff] }
 0x33d   : >> { %2188 = vrot.lane.b32.xlu0 %v18865_v15, %s10597_s10  ;;  %v13537_v33 = vpop.permute.xlu1 %1842 }
 0x33e   : >> { %18866 = vst [vmem:[#allocation372_spill] sm:$0xff] %v13537_v33 }
 0x33f   : >> { %v13539_v38 = vpop.permute.xlu0 %1840  ;;  %2194 = vrot.lane.b32.xlu1 %v11780_v16, %s10597_s10 }
 0x340   : >> { %18867 = vst [vmem:[#allocation346_spill] sm:$0xff] %v13539_v38  ;;  %v18874_v38 = vld [vmem:[#allocation246_spill] sm:$0xff] }
 0x341   : >> { %2192 = vrot.lane.b32.xlu0 %v18868_v27, %s10597_s10  ;;  %v13545_v34 = vpop.permute.xlu1 %1846 }
 0x342   : >> { %18869 = vst [vmem:[#allocation348_spill] sm:$0xff] %v13545_v34 }
 0x343   : >> { %v13547_v63 = vpop.permute.xlu0 %1844  ;;  %2198 = vrot.lane.b32.xlu1 %v11776_v55, %s10597_s10 }
 0x344   : >> { %18870 = vst [vmem:[#allocation349_spill] sm:$0xff] %v13547_v63  ;;  %v18877_v63 = vld [vmem:[#allocation247_spill] sm:$0xff] }
 0x345   : >> { %2196 = vrot.lane.b32.xlu0 %v18871_v12, %s10597_s10  ;;  %v13553_v15 = vpop.permute.xlu1 %1850 }
 0x346   : >> { %18872 = vst [vmem:[#allocation288_spill] sm:$0xff] %v13553_v15 }
 0x347   : >> { %v13555_v33 = vpop.permute.xlu0 %1848  ;;  %2202 = vrot.lane.b32.xlu1 %v11792_v31, %s10597_s10 }
 0x348   : >> { %18873 = vst [vmem:[#allocation371_spill] sm:$0xff] %v13555_v33 }
 0x349   : >> { %2200 = vrot.lane.b32.xlu0 %v18874_v38, %s10597_s10  ;;  %v13561_v27 = vpop.permute.xlu1 %1854 }
 0x34a   : >> { %18875 = vst [vmem:[#allocation351_spill] sm:$0xff] %v13561_v27 }
 0x34b   : >> { %v13563_v34 = vpop.permute.xlu0 %1852  ;;  %2206 = vrot.lane.b32.xlu1 %v11788_v61, %s10597_s10 }
 0x34c   : >> { %18876 = vst [vmem:[#allocation292_spill] sm:$0xff] %v13563_v34 }
 0x34d   : >> { %2204 = vrot.lane.b32.xlu0 %v18877_v63, %s10597_s10  ;;  %v13569_v12 = vpop.permute.xlu1 %1858 }
 0x34e   : >> { %18878 = vst [vmem:[#allocation374_spill] sm:$0xff] %v13569_v12 }
 0x34f   : >> { %v13571_v15 = vpop.permute.xlu0 %1856  ;;  %2210 = vrot.lane.b32.xlu1 %v11804_v46, %s10597_s10 }
 0x350   : >> { %18879 = vst [vmem:[#allocation350_spill] sm:$0xff] %v13571_v15 }
 0x351   : >> { %2208 = vrot.lane.b32.xlu0 %v18754_v39, %s10597_s10  ;;  %v13577_v38 = vpop.permute.xlu1 %1862 }
 0x352   : >> { %18880 = vst [vmem:[#allocation352_spill] sm:$0xff] %v13577_v38 }
 0x353   : >> { %v13579_v27 = vpop.permute.xlu0 %1860  ;;  %2214 = vrot.lane.b32.xlu1 %v11800_v62, %s10597_s10 }
 0x354   : >> { %18881 = vst [vmem:[#allocation353_spill] sm:$0xff] %v13579_v27 }
 0x355   : >> { %2212 = vrot.lane.b32.xlu0 %v18759_v37, %s10597_s10  ;;  %v13585_v63 = vpop.permute.xlu1 %1866 }
 0x356   : >> { %18882 = vst [vmem:[#allocation291_spill] sm:$0xff] %v13585_v63 }
 0x357   : >> { %v13587_v12 = vpop.permute.xlu0 %1864  ;;  %2218 = vrot.lane.b32.xlu1 %v11816_v52, %s10597_s10 }
 0x358   : >> { %18883 = vst [vmem:[#allocation373_spill] sm:$0xff] %v13587_v12 }
 0x359   : >> { %2216 = vrot.lane.b32.xlu0 %v18764_v51, %s10597_s10  ;;  %v13593_v39 = vpop.permute.xlu1 %2074 }
 0x35b   : >> { %v13595_v38 = vpop.permute.xlu0 %2072  ;;  %2222 = vrot.lane.b32.xlu1 %v11812_v53, %s10597_s10 }
 0x35d   : >> { %2220 = vrot.lane.b32.xlu0 %v18766_v32, %s10597_s10  ;;  %v13601_v37 = vpop.permute.xlu1 %2078 }
 0x35f   : >> { %v13603_v63 = vpop.permute.xlu0 %2076  ;;  %2226 = vrot.lane.b32.xlu1 %v11828_v58, %s10597_s10 }
 0x361   : >> { %2224 = vrot.lane.b32.xlu0 %v18769_v23, %s10597_s10  ;;  %v13609_v51 = vpop.permute.xlu1 %2082 }
 0x363   : >> { %v13611_v12 = vpop.permute.xlu0 %2080  ;;  %2230 = vrot.lane.b32.xlu1 %v11824_v41, %s10597_s10 }
 0x365   : >> { %2228 = vrot.lane.b32.xlu0 %v18772_v19, %s10597_s10  ;;  %v13617_v32 = vpop.permute.xlu1 %2086 }
 0x367   : >> { %v13619_v27 = vpop.permute.xlu0 %2084  ;;  %2234 = vrot.lane.b32.xlu1 %v11840_v56, %s10597_s10 }
 0x369   : >> { %2232 = vrot.lane.b32.xlu0 %v18775_v3, %s10597_s10  ;;  %v13625_v23 = vpop.permute.xlu1 %2090 }
 0x36b   : >> { %v13627_v15 = vpop.permute.xlu0 %2088  ;;  %2238 = vrot.lane.b32.xlu1 %v11836_v5, %s10597_s10 }
 0x36d   : >> { %2236 = vrot.lane.b32.xlu0 %v18778_v25, %s10597_s10  ;;  %v13633_v19 = vpop.permute.xlu1 %2094 }
 0x36f   : >> { %v13635_v34 = vpop.permute.xlu0 %2092  ;;  %2242 = vrot.lane.b32.xlu1 %v11852_v59, %s10597_s10 }
 0x371   : >> { %2240 = vrot.lane.b32.xlu0 %v18781_v35, %s10597_s10  ;;  %v13641_v3 = vpop.permute.xlu1 %2098 }
 0x373   : >> { %v13643_v33 = vpop.permute.xlu0 %2096  ;;  %2246 = vrot.lane.b32.xlu1 %v11848_v17, %s10597_s10 }
 0x375   : >> { %2244 = vrot.lane.b32.xlu0 %v18784_v40, %s10597_s10  ;;  %v13649_v25 = vpop.permute.xlu1 %2102 }
 0x377   : >> { %v13651_v24 = vpop.permute.xlu0 %2100  ;;  %2250 = vrot.lane.b32.xlu1 %v11864_v47, %s10597_s10 }
 0x379   : >> { %2248 = vrot.lane.b32.xlu0 %v18787_v20, %s10597_s10  ;;  %v13657_v35 = vpop.permute.xlu1 %2106 }
 0x37b   : >> { %v13659_v60 = vpop.permute.xlu0 %2104  ;;  %2254 = vrot.lane.b32.xlu1 %v11860_v2, %s10597_s10 }
 0x37d   : >> { %2252 = vrot.lane.b32.xlu0 %v18790_v4, %s10597_s10  ;;  %v13665_v40 = vpop.permute.xlu1 %2110 }
 0x37f   : >> { %v13667_v26 = vpop.permute.xlu0 %2108  ;;  %2258 = vrot.lane.b32.xlu1 %v18677_v48, %s10597_s10 }
 0x381   : >> { %2256 = vrot.lane.b32.xlu0 %v18793_v29, %s10597_s10  ;;  %v13673_v20 = vpop.permute.xlu1 %2114 }
 0x383   : >> { %v13675_v47 = vpop.permute.xlu0 %2112  ;;  %2262 = vrot.lane.b32.xlu1 %v11872_v14, %s10597_s10 }
 0x385   : >> { %2260 = vrot.lane.b32.xlu0 %v18796_v42, %s10597_s10  ;;  %v13681_v4 = vpop.permute.xlu1 %2118 }
 0x386   : >> { %18884 = vst [vmem:[#allocation355_spill] sm:$0xff] %v13681_v4 }
 0x387   : >> { %v13683_v2 = vpop.permute.xlu0 %2116  ;;  %2266 = vrot.lane.b32.xlu1 %v18683_v7, %s10597_s10 }
 0x388   : >> { %18885 = vst [vmem:[#allocation295_spill] sm:$0xff] %v13683_v2 }
 0x389   : >> { %2264 = vrot.lane.b32.xlu0 %v18799_v6, %s10597_s10  ;;  %v13689_v29 = vpop.permute.xlu1 %2122 }
 0x38a   : >> { %18886 = vst [vmem:[#allocation376_spill] sm:$0xff] %v13689_v29  ;;  %v18898_v29 = vld [vmem:[#allocation299_spill] sm:$0xff] }
 0x38b   : >> { %v13691_v48 = vpop.permute.xlu0 %2120  ;;  %2270 = vrot.lane.b32.xlu1 %v18682_v9, %s10597_s10 }
 0x38c   : >> { %18887 = vst [vmem:[#allocation354_spill] sm:$0xff] %v13691_v48 }
 0x38d   : >> { %2268 = vrot.lane.b32.xlu0 %v18802_v36, %s10597_s10  ;;  %v13697_v42 = vpop.permute.xlu1 %2126 }
 0x38e   : >> { %18888 = vst [vmem:[#allocation356_spill] sm:$0xff] %v13697_v42 }
 0x38f   : >> { %v13699_v14 = vpop.permute.xlu0 %2124  ;;  %2274 = vrot.lane.b32.xlu1 %v18689_v44, %s10597_s10  ;;  %v18894_v44 = vld [vmem:[#allocation379_spill] sm:$0xff] }
 0x390   : >> { %18889 = vst [vmem:[#allocation357_spill] sm:$0xff] %v13699_v14 }
 0x391   : >> { %2272 = vrot.lane.b32.xlu0 %v18805_v11, %s10597_s10  ;;  %v13705_v6 = vpop.permute.xlu1 %2130 }
 0x392   : >> { %18890 = vst [vmem:[#allocation294_spill] sm:$0xff] %v13705_v6  ;;  %v18895_v6 = vld [vmem:[#allocation204_spill] sm:$0xff] }
 0x393   : >> { %v13707_v7 = vpop.permute.xlu0 %2128  ;;  %2278 = vrot.lane.b32.xlu1 %v18687_v1, %s10597_s10  ;;  %v18896_v1 = vld [vmem:[#allocation380_spill] sm:$0xff] }
 0x394   : >> { %18891 = vst [vmem:[#allocation375_spill] sm:$0xff] %v13707_v7  ;;  %v13723_v7 = vrot.slane %v18895_v6, %v18894_v44 }
 0x395   : >> { %2276 = vrot.lane.b32.xlu0 %v18808_v30, %s10597_s10  ;;  %v13713_v36 = vpop.permute.xlu1 %2134  ;;  %v13727_v30 = vrot.slane %v18895_v6, %v18896_v1  ;;  %v1869_v6 = vsel %vm1868_vm4, %v13332_v0, %v13330_v21 }
 0x396   : >> { %18892 = vst [vmem:[#allocation359_spill] sm:$0xff] %v13713_v36 }
 0x397   : >> { %v13715_v9 = vpop.permute.xlu0 %2132  ;;  %2282 = vrot.lane.b32.xlu1 %v18695_v45, %s10597_s10 }
 0x398   : >> { %18893 = vst [vmem:[#allocation298_spill] sm:$0xff] %v13715_v9  ;;  %v18897_v9 = vld [vmem:[#allocation203_spill] sm:$0xff] }
 0x399   : >> { %2280 = vrot.lane.b32.xlu0 %v18811_v54, %s10597_s10  ;;  %v2171_v11 = vpop.permute.xlu1 %2170  ;;  %v13731_v42 = vrot.slane %v18897_v9, %v18894_v44  ;;  %v13735_v45 = vrot.slane %v18897_v9, %v18896_v1  ;;  %v1965_v44 = vsel %vm1868_vm4, %v13203_v50, %v13332_v0  ;;  %v18899_v9 = vld [vmem:[#allocation267_spill] sm:$0xff] }
 0x39b   : >> { %v2169_v36 = vpop.permute.xlu0 %2168  ;;  %2286 = vrot.lane.b32.xlu1 %v18694_v18, %s10597_s10  ;;  %v2008_v4 = vmul.f32 %v13731_v42, %v1965_v44  ;;  %v2009_v50 = vmul.f32 %v13735_v45, %v1869_v6 }
 0x39c   : >> { %v2297_v54 = vsel %vm2296_vm3, %v2169_v36, %v2171_v11  ;;  %v2393_v14 = vsel %vm2296_vm3, %v13595_v38, %v2169_v36  ;;  %v1870_v11 = vsel %vm1868_vm4, %v13340_v57, %v18899_v9  ;;  %v18900_v38 = vld [vmem:[#allocation300_spill] sm:$0xff] }
 0x39d   : >> { %2284 = vrot.lane.b32.xlu0 %v18898_v29, %s10597_s10  ;;  %v1966_v36 = vsel %vm1868_vm4, %v18900_v38, %v13340_v57  ;;  %v2175_v18 = vpop.permute.xlu1 %2174  ;;  %v2436_v1 = vmul.f32 %v13723_v7, %v2393_v14  ;;  %v2437_v21 = vmul.f32 %v13727_v30, %v2297_v54  ;;  %v2011_v57 = vmul.f32 %v13735_v45, %v1870_v11  ;;  %v18901_v11 = vld [vmem:[#allocation236_spill] sm:$0xff] }
 0x39e   : >> { %v2010_v9 = vmul.f32 %v13731_v42, %v1966_v36 }
 0x39f   : >> { %v2173_v48 = vpop.permute.xlu0 %2172  ;;  %2290 = vrot.lane.b32.xlu1 %v11924_v8, %s10597_s10  ;;  %v2500_v44 = vadd.f32 %v2436_v1, %v2008_v4  ;;  %v18903_v8 = vld [vmem:[#allocation271_spill] sm:$0xff] }
 0x3a0   : >> { %v2298_v0 = vsel %vm2296_vm3, %v2173_v48, %v2175_v18  ;;  %v2394_v29 = vsel %vm2296_vm3, %v13593_v39, %v2173_v48  ;;  %v2501_v18 = vadd.f32 %v2437_v21, %v2009_v50  ;;  %v18905_v50 = vld [vmem:[#allocation303_spill] sm:$0xff] }
 0x3a1   : >> { %v2438_v14 = vmul.f32 %v13723_v7, %v2394_v29  ;;  %v2439_v54 = vmul.f32 %v13727_v30, %v2298_v0  ;;  %2288 = vrot.lane.b32.xlu0 %v12240_v10, %s10597_s10  ;;  %v2179_v6 = vpop.permute.xlu1 %2178  ;;  %v18902_v29 = vld [vmem:[#allocation323_spill] sm:$0xff]  ;;  %v18904_v10 = vld [vmem:[#allocation253_spill] sm:$0xff] }
 0x3a2   : >> { %v1871_v0 = vsel %vm1868_vm4, %v18903_v8, %v18902_v29  ;;  %v1967_v1 = vsel %vm1868_vm4, %v18904_v10, %v18903_v8 }
 0x3a3   : >> { %v2502_v38 = vadd.f32 %v2438_v14, %v2010_v9  ;;  %v2503_v2 = vadd.f32 %v2439_v54, %v2011_v57  ;;  %v2177_v48 = vpop.permute.xlu0 %2176  ;;  %2294 = vrot.lane.b32.xlu1 %v18901_v11, %s10597_s10  ;;  %v18906_v9 = vld [vmem:[#allocation322_spill] sm:$0xff]  ;;  %v18907_v57 = vld [vmem:[#allocation324_spill] sm:$0xff]  ;;  %v18908_v14 = vld [vmem:[#allocation301_spill] sm:$0xff] }
 0x3a4   : >> { %v2299_v39 = vsel %vm2296_vm3, %v2177_v48, %v2179_v6  ;;  %v2395_v36 = vsel %vm2296_vm3, %v13603_v63, %v2177_v48  ;;  %v1872_v63 = vsel %vm1868_vm4, %v18907_v57, %v18906_v9  ;;  %v1968_v54 = vsel %vm1868_vm4, %v18908_v14, %v18907_v57 }
 0x3a5   : >> { %v2564_v4 = vpack.c.bf16 %v2502_v38, %v2500_v44  ;;  %v2565_v21 = vpack.c.bf16 %v2503_v2, %v2501_v18  ;;  %2292 = vrot.lane.b32.xlu0 %v18905_v50, %s10597_s10  ;;  %v2183_v6 = vpop.permute.xlu1 %2182  ;;  %v2440_v48 = vmul.f32 %v13723_v7, %v2395_v36  ;;  %v2441_v10 = vmul.f32 %v13727_v30, %v2299_v39  ;;  %v18911_v50 = vld [vmem:[#allocation252_spill] sm:$0xff] }
 0x3a6   : >> { %v2012_v2 = vmul.f32 %v13731_v42, %v1967_v1  ;;  %v2013_v44 = vmul.f32 %v13735_v45, %v1871_v0  ;;  %v2014_v29 = vmul.f32 %v13731_v42, %v1968_v54  ;;  %v2015_v36 = vmul.f32 %v13735_v45, %v1872_v63  ;;  %v18909_v1 = vld [vmem:[#allocation207_spill] sm:$0xff] }
 0x3a7   : >> { %2597 = vst.msk [vmem:[#allocation2 + $0x108] sm:$0xff] %vm1612_vm2, %v2565_v21  ;;  %v2181_v8 = vpop.permute.xlu0 %2180  ;;  %2630 = vrot.lane.b32.xlu1 %v11756_v13, %s10598_s4  ;;  %v9730_v13 = vld [vmem:[%s11736_s22 + $0x730] sm:$0xff] }
 0x3a8   : >> { %v2300_v18 = vsel %vm2296_vm3, %v2181_v8, %v2183_v6  ;;  %v2396_v38 = vsel %vm2296_vm3, %v13601_v37, %v2181_v8  ;;  %v2504_v9 = vadd.f32 %v2440_v48, %v2012_v2  ;;  %v2505_v57 = vadd.f32 %v2441_v10, %v2013_v44  ;;  %v18910_v8 = vld [vmem:[#allocation270_spill] sm:$0xff]  ;;  %v18913_v44 = vld [vmem:[#allocation327_spill] sm:$0xff] }
 0x3a9   : >> { %v2442_v39 = vmul.f32 %v13723_v7, %v2396_v38  ;;  %v2443_v21 = vmul.f32 %v13727_v30, %v2300_v18  ;;  %2628 = vrot.lane.b32.xlu0 %v18909_v1, %s10598_s4  ;;  %v2187_v0 = vpop.permute.xlu1 %2186  ;;  %v1969_v11 = vsel %vm1868_vm4, %v18911_v50, %v18910_v8  ;;  %v18912_v18 = vld [vmem:[#allocation325_spill] sm:$0xff]  ;;  %v18914_v38 = vld [vmem:[#allocation274_spill] sm:$0xff] }
 0x3aa   : >> { %v1873_v48 = vsel %vm1868_vm4, %v18910_v8, %v18912_v18  ;;  %v1874_v50 = vsel %vm1868_vm4, %v18914_v38, %v18913_v44 }
 0x3ab   : >> { %v2506_v14 = vadd.f32 %v2442_v39, %v2014_v29  ;;  %v2507_v37 = vadd.f32 %v2443_v21, %v2015_v36  ;;  %v2185_v6 = vpop.permute.xlu0 %2184  ;;  %2634 = vrot.lane.b32.xlu1 %v11752_v43, %s10598_s4  ;;  %v18915_v29 = vld [vmem:[#allocation256_spill] sm:$0xff]  ;;  %v2016_v21 = vmul.f32 %v13731_v42, %v1969_v11  ;;  %v2019_v8 = vmul.f32 %v13735_v45, %v1874_v50 }
 0x3ac   : >> { %v2301_v54 = vsel %vm2296_vm3, %v2185_v6, %v2187_v0  ;;  %v2397_v63 = vsel %vm2296_vm3, %v13611_v12, %v2185_v6  ;;  %v1970_v12 = vsel %vm1868_vm4, %v18915_v29, %v18914_v38  ;;  %v18916_v38 = vld [vmem:[#allocation328_spill] sm:$0xff]  ;;  %v18917_v29 = vld [vmem:[#allocation305_spill] sm:$0xff] }
 0x3ad   : >> { %v2566_v10 = vpack.c.bf16 %v2506_v14, %v2504_v9  ;;  %v2567_v2 = vpack.c.bf16 %v2507_v37, %v2505_v57  ;;  %2632 = vrot.lane.b32.xlu0 %v11741_v22, %s10598_s4  ;;  %v2191_v36 = vpop.permute.xlu1 %2190  ;;  %v2444_v0 = vmul.f32 %v13723_v7, %v2397_v63  ;;  %v2445_v9 = vmul.f32 %v13727_v30, %v2301_v54  ;;  %v9666_v22 = vld [vmem:[%s11736_s22 + $0x530] sm:$0xff] }
 0x3ae   : >> { %v3153_v39 = vld [vmem:[#allocation2 + $0x108] sm:$0xff]  ;;  %v2017_v14 = vmul.f32 %v13735_v45, %v1873_v48  ;;  %v2018_v11 = vmul.f32 %v13731_v42, %v1970_v12 }
 0x3af   : >> { %2599 = vst.msk [vmem:[#allocation2 + $0x118] sm:$0xff] %vm1612_vm2, %v2567_v2  ;;  %4529 = vmatprep.subr.bf16.mxu0 %v3153_v39  ;;  %v2189_v57 = vpop.permute.xlu0 %2188  ;;  %2638 = vrot.lane.b32.xlu1 %v11764_v49, %s10598_s4  ;;  %v2508_v48 = vadd.f32 %v2444_v0, %v2016_v21  ;;  %v18918_v39 = vld [vmem:[#allocation326_spill] sm:$0xff]  ;;  %v9726_v49 = vld [vmem:[%s11736_s22 + $0x710] sm:$0xff] }
 0x3b0   : >> { %v2302_v37 = vsel %vm2296_vm3, %v2189_v57, %v2191_v36  ;;  %v2398_v6 = vsel %vm2296_vm3, %v13609_v51, %v2189_v57  ;;  %4530 = vmatpush1.bf16.msra.mxu0 %v2564_v4  ;;  %v2509_v2 = vadd.f32 %v2445_v9, %v2017_v14  ;;  %v1971_v36 = vsel %vm1868_vm4, %v18917_v29, %v18916_v38  ;;  %v18919_v57 = vld [vmem:[#allocation329_spill] sm:$0xff] }
 0x3b1   : >> { %v2446_v63 = vmul.f32 %v13723_v7, %v2398_v6  ;;  %v2447_v54 = vmul.f32 %v13727_v30, %v2302_v37  ;;  %2636 = vrot.lane.b32.xlu0 %v11768_v28, %s10598_s4  ;;  %v2195_v18 = vpop.permute.xlu1 %2194  ;;  %v1875_v21 = vsel %vm1868_vm4, %v18916_v38, %v18918_v39  ;;  %v18920_v14 = vld [vmem:[#allocation273_spill] sm:$0xff]  ;;  %v18921_v6 = vld [vmem:[#allocation304_spill] sm:$0xff] }
 0x3b2   : >> { %v1876_v37 = vsel %vm1868_vm4, %v18920_v14, %v18919_v57  ;;  %v18923_v57 = vld [vmem:[#allocation307_spill] sm:$0xff] }
 0x3b3   : >> { %v2510_v44 = vadd.f32 %v2446_v63, %v2018_v11  ;;  %v2511_v51 = vadd.f32 %v2447_v54, %v2019_v8  ;;  %v2193_v4 = vpop.permute.xlu0 %2192  ;;  %2642 = vrot.lane.b32.xlu1 %v11776_v55, %s10598_s4  ;;  %v2020_v63 = vmul.f32 %v13731_v42, %v1971_v36  ;;  %v2023_v38 = vmul.f32 %v13735_v45, %v1876_v37 }
 0x3b4   : >> { %v2303_v12 = vsel %vm2296_vm3, %v2193_v4, %v2195_v18  ;;  %v2399_v50 = vsel %vm2296_vm3, %v13619_v27, %v2193_v4  ;;  %v1972_v27 = vsel %vm1868_vm4, %v18921_v6, %v18920_v14 }
 0x3b5   : >> { %v2568_v0 = vpack.c.bf16 %v2510_v44, %v2508_v48  ;;  %v2569_v9 = vpack.c.bf16 %v2511_v51, %v2509_v2  ;;  %2640 = vrot.lane.b32.xlu0 %v11780_v16, %s10598_s4  ;;  %v2199_v11 = vpop.permute.xlu1 %2198  ;;  %v2448_v54 = vmul.f32 %v13723_v7, %v2399_v50  ;;  %v2449_v18 = vmul.f32 %v13727_v30, %v2303_v12  ;;  %v9662_v16 = vld [vmem:[%s11736_s22 + $0x510] sm:$0xff] }
 0x3b6   : >> { %v3155_v8 = vld [vmem:[#allocation2 + $0x118] sm:$0xff]  ;;  %v2021_v2 = vmul.f32 %v13735_v45, %v1875_v21  ;;  %v2022_v4 = vmul.f32 %v13731_v42, %v1972_v27  ;;  %v18924_v27 = vld [vmem:[#allocation362_spill] sm:$0xff] }
 0x3b7   : >> { %2601 = vst.msk [vmem:[#allocation2 + $0x128] sm:$0xff] %vm1612_vm2, %v2569_v9  ;;  %4531 = vmatprep.subr.bf16.mxu0 %v3155_v8  ;;  %v2197_v48 = vpop.permute.xlu0 %2196  ;;  %2646 = vrot.lane.b32.xlu1 %v11788_v61, %s10598_s4  ;;  %v2512_v50 = vadd.f32 %v2448_v54, %v2020_v63  ;;  %v18922_v9 = vld [vmem:[#allocation331_spill] sm:$0xff]  ;;  %v18925_v54 = vld [vmem:[#allocation277_spill] sm:$0xff] }
 0x3b8   : >> { %v2304_v44 = vsel %vm2296_vm3, %v2197_v48, %v2199_v11  ;;  %v2400_v51 = vsel %vm2296_vm3, %v13617_v32, %v2197_v48  ;;  %4532 = vmatpush1.bf16.msra.mxu0 %v2566_v10  ;;  %v2513_v39 = vadd.f32 %v2449_v18, %v2021_v2  ;;  %v1973_v14 = vsel %vm1868_vm4, %v18923_v57, %v18922_v9  ;;  %v18926_v18 = vld [vmem:[#allocation364_spill] sm:$0xff]  ;;  %v18927_v2 = vld [vmem:[#allocation255_spill] sm:$0xff] }
 0x3b9   : >> { %v2450_v29 = vmul.f32 %v13723_v7, %v2400_v51  ;;  %v2451_v36 = vmul.f32 %v13727_v30, %v2304_v44  ;;  %2644 = vrot.lane.b32.xlu0 %v11792_v31, %s10598_s4  ;;  %v2203_v12 = vpop.permute.xlu1 %2202  ;;  %v1877_v11 = vsel %vm1868_vm4, %v18922_v9, %v18924_v27  ;;  %v1878_v48 = vsel %vm1868_vm4, %v18926_v18, %v18925_v54  ;;  %v18928_v27 = vld [vmem:[#allocation332_spill] sm:$0xff]  ;;  %v9722_v61 = vld [vmem:[%s11736_s22 + $0x6f0] sm:$0xff] }
 0x3bb   : >> { %v2514_v21 = vadd.f32 %v2450_v29, %v2022_v4  ;;  %v2515_v32 = vadd.f32 %v2451_v36, %v2023_v38  ;;  %v2201_v10 = vpop.permute.xlu0 %2200  ;;  %2650 = vrot.lane.b32.xlu1 %v11800_v62, %s10598_s4  ;;  %v2024_v4 = vmul.f32 %v13731_v42, %v1973_v14 }
 0x3bc   : >> { %v2305_v6 = vsel %vm2296_vm3, %v2201_v10, %v2203_v12  ;;  %v2401_v37 = vsel %vm2296_vm3, %v13627_v15, %v2201_v10  ;;  %v1974_v15 = vsel %vm1868_vm4, %v18927_v2, %v18926_v18  ;;  %v2025_v12 = vmul.f32 %v13735_v45, %v1877_v11  ;;  %v18929_v11 = vld [vmem:[#allocation306_spill] sm:$0xff] }
 0x3bd   : >> { %v2570_v8 = vpack.c.bf16 %v2514_v21, %v2512_v50  ;;  %v2571_v63 = vpack.c.bf16 %v2515_v32, %v2513_v39  ;;  %2648 = vrot.lane.b32.xlu0 %v11804_v46, %s10598_s4  ;;  %v2207_v44 = vpop.permute.xlu1 %2206  ;;  %v2452_v38 = vmul.f32 %v13723_v7, %v2401_v37  ;;  %v2453_v29 = vmul.f32 %v13727_v30, %v2305_v6  ;;  %v9658_v46 = vld [vmem:[%s11736_s22 + $0x4f0] sm:$0xff] }
 0x3be   : >> { %v3157_v51 = vld [vmem:[#allocation2 + $0x128] sm:$0xff]  ;;  %v2026_v21 = vmul.f32 %v13731_v42, %v1974_v15  ;;  %v2027_v32 = vmul.f32 %v13735_v45, %v1878_v48 }
 0x3bf   : >> { %2603 = vst.msk [vmem:[#allocation2 + $0x138] sm:$0xff] %vm1612_vm2, %v2571_v63  ;;  %4533 = vmatprep.subr.bf16.mxu0 %v3157_v51  ;;  %v2205_v36 = vpop.permute.xlu0 %2204  ;;  %2654 = vrot.lane.b32.xlu1 %v11812_v53, %s10598_s4  ;;  %v13911_v14 = vadd.f32 %v2452_v38, %v2024_v4  ;;  %v2517_v6 = vadd.f32 %v2453_v29, %v2025_v12  ;;  %v18930_v48 = vld [vmem:[#allocation330_spill] sm:$0xff]  ;;  %v18931_v51 = vld [vmem:[#allocation333_spill] sm:$0xff]  ;;  %v18932_v4 = vld [vmem:[#allocation276_spill] sm:$0xff] }
 0x3c0   : >> { %v2306_v50 = vsel %vm2296_vm3, %v2205_v36, %v2207_v44  ;;  %v2402_v39 = vsel %vm2296_vm3, %v13625_v23, %v2205_v36  ;;  %4534 = vmatpush1.bf16.msra.mxu0 %v2568_v0  ;;  %v1975_v63 = vsel %vm1868_vm4, %v18929_v11, %v18928_v27  ;;  %v1879_v2 = vsel %vm1868_vm4, %v18928_v27, %v18930_v48  ;;  %v9693_v27 = vld [vmem:[%s11736_s22 + $0x608] sm:$0xff]  ;;  %v18934_v11 = vld [vmem:[#allocation363_spill] sm:$0xff]  ;;  %v9628_v48 = vld [vmem:[%s11736_s22 + $0x400] sm:$0xff] }
 0x3c1   : >> { %v2454_v10 = vmul.f32 %v13723_v7, %v2402_v39  ;;  %v2455_v9 = vmul.f32 %v13727_v30, %v2306_v50  ;;  %2652 = vrot.lane.b32.xlu0 %v11816_v52, %s10598_s4  ;;  %v2211_v57 = vpop.permute.xlu1 %2210  ;;  %v1880_v38 = vsel %vm1868_vm4, %v18932_v4, %v18931_v51  ;;  %v2028_v50 = vmul.f32 %v13731_v42, %v1975_v63  ;;  %v18935_v63 = vld [vmem:[#allocation335_spill] sm:$0xff]  ;;  %v9719_v53 = vld [vmem:[%s11736_s22 + $0x6d8] sm:$0xff] }
 0x3c2   : >> { %v9654_v52 = vld [vmem:[%s11736_s22 + $0x4d0] sm:$0xff] }
 0x3c3   : >> { %v13913_v23 = vadd.f32 %v2454_v10, %v2026_v21  ;;  %v2519_v0 = vadd.f32 %v2455_v9, %v2027_v32  ;;  %v2209_v37 = vpop.permute.xlu0 %2208  ;;  %2658 = vrot.lane.b32.xlu1 %v11824_v41, %s10598_s4  ;;  %v2029_v10 = vmul.f32 %v13735_v45, %v1879_v2  ;;  %v9692_v2 = vld [vmem:[%s11736_s22 + $0x600] sm:$0xff] }
 0x3c4   : >> { %v2307_v54 = vsel %vm2296_vm3, %v2209_v37, %v2211_v57  ;;  %v2403_v18 = vsel %vm2296_vm3, %v13635_v34, %v2209_v37  ;;  %v18933_v34 = vld [vmem:[#allocation259_spill] sm:$0xff]  ;;  %v9629_v37 = vld [vmem:[%s11736_s22 + $0x408] sm:$0xff] }
 0x3c5   : >> { %v2572_v15 = vpack.c.bf16 %v13913_v23, %v13911_v14  ;;  %v2573_v44 = vpack.c.bf16 %v2519_v0, %v2517_v6  ;;  %2656 = vrot.lane.b32.xlu0 %v11828_v58, %s10598_s4  ;;  %v1976_v29 = vsel %vm1868_vm4, %v18933_v34, %v18932_v4  ;;  %v2215_v36 = vpop.permute.xlu1 %2214  ;;  %v2456_v39 = vmul.f32 %v13723_v7, %v2403_v18 }
 0x3c6   : >> { %v3159_v12 = vld [vmem:[#allocation2 + $0x138] sm:$0xff]  ;;  %v2457_v21 = vmul.f32 %v13727_v30, %v2307_v54  ;;  %v2030_v14 = vmul.f32 %v13731_v42, %v1976_v29  ;;  %v2031_v6 = vmul.f32 %v13735_v45, %v1880_v38  ;;  %v18937_v29 = vld [vmem:[#allocation366_spill] sm:$0xff] }
 0x3c7   : >> { %2605 = vst.msk [vmem:[#allocation2 + $0x148] sm:$0xff] %vm1612_vm2, %v2573_v44  ;;  %4535 = vmatprep.subr.bf16.mxu0 %v3159_v12  ;;  %v2213_v32 = vpop.permute.xlu0 %2212  ;;  %2662 = vrot.lane.b32.xlu1 %v11836_v5, %s10598_s4  ;;  %v13962_v44 = vadd.f32 %v2456_v39, %v2028_v50  ;;  %v13974_v50 = vadd.f32 %v9693_v27, %v9629_v37  ;;  %v9630_v27 = vld [vmem:[%s11736_s22 + $0x410] sm:$0xff]  ;;  %v19024_v5 = vld [vmem:[#allocation382_spill] sm:$0xff] }
 0x3c8   : >> { %v2308_v9 = vsel %vm2296_vm3, %v2213_v32, %v2215_v36  ;;  %v2404_v57 = vsel %vm2296_vm3, %v13633_v19, %v2213_v32  ;;  %4536 = vmatpush1.bf16.msra.mxu0 %v2570_v8  ;;  %v1881_v19 = vsel %vm1868_vm4, %v18935_v63, %v18934_v11  ;;  %v18936_v8 = vld [vmem:[#allocation309_spill] sm:$0xff]  ;;  %v2521_v51 = vadd.f32 %v2457_v21, %v2029_v10  ;;  %v18938_v36 = vld [vmem:[#allocation308_spill] sm:$0xff]  ;;  %v9694_v11 = vld [vmem:[%s11736_s22 + $0x610] sm:$0xff] }
 0x3c9   : >> { %v2458_v23 = vmul.f32 %v13723_v7, %v2404_v57  ;;  %v2459_v0 = vmul.f32 %v13727_v30, %v2308_v9  ;;  %2660 = vrot.lane.b32.xlu0 %v11840_v56, %s10598_s4  ;;  %v1977_v54 = vsel %vm1868_vm4, %v18936_v8, %v18935_v63  ;;  %v2219_v18 = vpop.permute.xlu1 %2218  ;;  %v1978_v12 = vsel %vm1868_vm4, %v18938_v36, %v18937_v29  ;;  %v9631_v57 = vld [vmem:[%s11736_s22 + $0x418] sm:$0xff] }
 0x3ca   : >> { %v13980_v10 = vadd.f32 %v9692_v2, %v9628_v48  ;;  %v2033_v63 = vmul.f32 %v13735_v45, %v1881_v19  ;;  %v2034_v8 = vmul.f32 %v13731_v42, %v1978_v12 }
 0x3cb   : >> { %v13964_v4 = vadd.f32 %v2458_v23, %v2030_v14  ;;  %v2523_v38 = vadd.f32 %v2459_v0, %v2031_v6  ;;  %v2217_v34 = vpop.permute.xlu0 %2216  ;;  %2666 = vrot.lane.b32.xlu1 %v11848_v17, %s10598_s4  ;;  %v9695_v14 = vld [vmem:[%s11736_s22 + $0x618] sm:$0xff]  ;;  %v2032_v6 = vmul.f32 %v13731_v42, %v1977_v54  ;;  %v9714_v17 = vld [vmem:[%s11736_s22 + $0x6b0] sm:$0xff] }
 0x3cc   : >> { %v2309_v32 = vsel %vm2296_vm3, %v2217_v34, %v2219_v18  ;;  %v2405_v9 = vsel %vm2296_vm3, %v13643_v33, %v2217_v34  ;;  %v18939_v23 = vld [vmem:[#allocation280_spill] sm:$0xff]  ;;  %v14000_v19 = vadd.f32 %v9695_v14, %v9631_v57  ;;  %v14007_v34 = vadd.f32 %v9694_v11, %v9630_v27  ;;  %v18943_v27 = vld [vmem:[#allocation337_spill] sm:$0xff]  ;;  %v18944_v11 = vld [vmem:[#allocation279_spill] sm:$0xff] }
 0x3cd   : >> { %v2574_v39 = vpack.c.bf16 %v13964_v4, %v13962_v44  ;;  %v2575_v21 = vpack.c.bf16 %v2523_v38, %v2521_v51  ;;  %2664 = vrot.lane.b32.xlu0 %v11852_v59, %s10598_s4  ;;  %v1882_v33 = vsel %vm1868_vm4, %v18937_v29, %v18939_v23  ;;  %v2223_v0 = vpop.permute.xlu1 %2222  ;;  %v2460_v18 = vmul.f32 %v13723_v7, %v2405_v9  ;;  %v18940_v9 = vld [vmem:[#allocation336_spill] sm:$0xff] }
 0x3ce   : >> { %v3161_v37 = vld [vmem:[#allocation2 + $0x148] sm:$0xff]  ;;  %v2461_v48 = vmul.f32 %v13727_v30, %v2309_v32  ;;  %v2035_v51 = vmul.f32 %v13735_v45, %v1882_v33 }
 0x3cf   : >> { %2607 = vst.msk [vmem:[#allocation2 + $0x158] sm:$0xff] %vm1612_vm2, %v2575_v21  ;;  %4537 = vmatprep.subr.bf16.mxu0 %v3161_v37  ;;  %v2221_v54 = vpop.permute.xlu0 %2220  ;;  %5723 = vrot.lane.b32.xlu1 %v13974_v50, %s10591_s23  ;;  %v2524_v36 = vadd.f32 %v2460_v18, %v2032_v6  ;;  %v18941_v21 = vld [vmem:[#allocation311_spill] sm:$0xff]  ;;  %v18942_v33 = vld [vmem:[#allocation334_spill] sm:$0xff] }
 0x3d0   : >> { %v2310_v2 = vsel %vm2296_vm3, %v2221_v54, %v2223_v0  ;;  %v2406_v44 = vsel %vm2296_vm3, %v13641_v3, %v2221_v54  ;;  %4538 = vmatpush1.bf16.msra.mxu0 %v2572_v15  ;;  %v2525_v3 = vadd.f32 %v2461_v48, %v2033_v63  ;;  %v1979_v57 = vsel %vm1868_vm4, %v18941_v21, %v18940_v9 }
 0x3d1   : >> { %v2462_v4 = vmul.f32 %v13723_v7, %v2406_v44  ;;  %v2463_v38 = vmul.f32 %v13727_v30, %v2310_v2  ;;  %5721 = vrot.lane.b32.xlu0 %v13980_v10, %s10591_s23  ;;  %v2227_v29 = vpop.permute.xlu1 %2226  ;;  %v1883_v6 = vsel %vm1868_vm4, %v18940_v9, %v18942_v33  ;;  %v1884_v63 = vsel %vm1868_vm4, %v18944_v11, %v18943_v27  ;;  %v18948_v27 = vld [vmem:[#allocation365_spill] sm:$0xff] }
 0x3d2   : >> { %v2036_v54 = vmul.f32 %v13731_v42, %v1979_v57 }
 0x3d3   : >> { %v2526_v15 = vadd.f32 %v2462_v4, %v2034_v8  ;;  %v2527_v12 = vadd.f32 %v2463_v38, %v2035_v51  ;;  %v2225_v32 = vpop.permute.xlu0 %2224  ;;  %5727 = vrot.lane.b32.xlu1 %v14000_v19, %s10591_s23  ;;  %v18945_v8 = vld [vmem:[#allocation258_spill] sm:$0xff]  ;;  %v2037_v4 = vmul.f32 %v13735_v45, %v1883_v6 }
 0x3d4   : >> { %v2311_v14 = vsel %vm2296_vm3, %v2225_v32, %v2227_v29  ;;  %v2407_v23 = vsel %vm2296_vm3, %v13651_v24, %v2225_v32  ;;  %v1980_v24 = vsel %vm1868_vm4, %v18945_v8, %v18944_v11 }
 0x3d5   : >> { %v2576_v0 = vpack.c.bf16 %v2526_v15, %v2524_v36  ;;  %v2577_v37 = vpack.c.bf16 %v2527_v12, %v2525_v3  ;;  %5725 = vrot.lane.b32.xlu0 %v14007_v34, %s10591_s23  ;;  %v2231_v18 = vpop.permute.xlu1 %2230  ;;  %v2464_v2 = vmul.f32 %v13723_v7, %v2407_v23  ;;  %v2465_v44 = vmul.f32 %v13727_v30, %v2311_v14  ;;  %v18946_v14 = vld [vmem:[#allocation339_spill] sm:$0xff]  ;;  %v18947_v23 = vld [vmem:[#allocation310_spill] sm:$0xff] }
 0x3d6   : >> { %v3163_v48 = vld [vmem:[#allocation2 + $0x158] sm:$0xff]  ;;  %v2038_v36 = vmul.f32 %v13731_v42, %v1980_v24  ;;  %v2039_v3 = vmul.f32 %v13735_v45, %v1884_v63  ;;  %v1981_v33 = vsel %vm1868_vm4, %v18947_v23, %v18946_v14  ;;  %v1885_v11 = vsel %vm1868_vm4, %v18946_v14, %v18948_v27  ;;  %v18949_v24 = vld [vmem:[#allocation283_spill] sm:$0xff] }
 0x3d7   : >> { %2609 = vst.msk [vmem:[#allocation2 + $0x168] sm:$0xff] %vm1612_vm2, %v2577_v37  ;;  %4539 = vmatprep.subr.bf16.mxu0 %v3163_v48  ;;  %v2229_v51 = vpop.permute.xlu0 %2228  ;;  %6139 = vrot.lane.b32.xlu1 %v13974_v50, %s10593_s27  ;;  %v14044_v9 = vadd.f32 %v2464_v2, %v2036_v54  ;;  %v2529_v21 = vadd.f32 %v2465_v44, %v2037_v4  ;;  %v18953_v14 = vld [vmem:[#allocation340_spill] sm:$0xff] }
 0x3d8   : >> { %v2312_v38 = vsel %vm2296_vm3, %v2229_v51, %v2231_v18  ;;  %v2408_v29 = vsel %vm2296_vm3, %v13649_v25, %v2229_v51  ;;  %4540 = vmatpush1.bf16.msra.mxu0 %v2574_v39  ;;  %v18950_v18 = vld [vmem:[#allocation368_spill] sm:$0xff]  ;;  %v2040_v51 = vmul.f32 %v13731_v42, %v1981_v33 }
 0x3d9   : >> { %v2466_v15 = vmul.f32 %v13723_v7, %v2408_v29  ;;  %v2467_v12 = vmul.f32 %v13727_v30, %v2312_v38  ;;  %6137 = vrot.lane.b32.xlu0 %v13980_v10, %s10593_s27  ;;  %v2235_v32 = vpop.permute.xlu1 %2234  ;;  %v1886_v48 = vsel %vm1868_vm4, %v18950_v18, %v18949_v24 }
 0x3db   : >> { %v14046_v25 = vadd.f32 %v2466_v15, %v2038_v36  ;;  %v2531_v39 = vadd.f32 %v2467_v12, %v2039_v3  ;;  %v2233_v57 = vpop.permute.xlu0 %2232  ;;  %6143 = vrot.lane.b32.xlu1 %v14000_v19, %s10593_s27  ;;  %v2041_v36 = vmul.f32 %v13735_v45, %v1885_v11 }
 0x3dc   : >> { %v2313_v6 = vsel %vm2296_vm3, %v2233_v57, %v2235_v32  ;;  %v2409_v37 = vsel %vm2296_vm3, %v13659_v60, %v2233_v57  ;;  %v18951_v60 = vld [vmem:[#allocation262_spill] sm:$0xff]  ;;  %v2043_v32 = vmul.f32 %v13735_v45, %v1886_v48 }
 0x3dd   : >> { %v2578_v63 = vpack.c.bf16 %v14046_v25, %v14044_v9  ;;  %v2579_v8 = vpack.c.bf16 %v2531_v39, %v2529_v21  ;;  %6141 = vrot.lane.b32.xlu0 %v14007_v34, %s10593_s27  ;;  %v1982_v54 = vsel %vm1868_vm4, %v18951_v60, %v18950_v18  ;;  %v2239_v2 = vpop.permute.xlu1 %2238  ;;  %v2468_v4 = vmul.f32 %v13723_v7, %v2409_v37  ;;  %v9633_v25 = vld [vmem:[%s11736_s22 + $0x428] sm:$0xff]  ;;  %v9696_v37 = vld [vmem:[%s11736_s22 + $0x620] sm:$0xff]  ;;  %v18956_v60 = vld [vmem:[#allocation312_spill] sm:$0xff] }
 0x3de   : >> { %v3165_v44 = vld [vmem:[#allocation2 + $0x168] sm:$0xff]  ;;  %v2469_v38 = vmul.f32 %v13727_v30, %v2313_v6  ;;  %v2042_v12 = vmul.f32 %v13731_v42, %v1982_v54  ;;  %v9632_v6 = vld [vmem:[%s11736_s22 + $0x420] sm:$0xff] }
 0x3df   : >> { %2611 = vst.msk [vmem:[#allocation2 + $0x178] sm:$0xff] %vm1612_vm2, %v2579_v8  ;;  %4541 = vmatprep.subr.bf16.mxu0 %v3165_v44  ;;  %v2237_v29 = vpop.permute.xlu0 %2236  ;;  %5595 = vrot.lane.b32.xlu1 %v14000_v19, %s10590_s9  ;;  %v9697_v39 = vld [vmem:[%s11736_s22 + $0x628] sm:$0xff]  ;;  %v14095_v27 = vadd.f32 %v2468_v4, %v2040_v51 }
 0x3e0   : >> { %v2314_v3 = vsel %vm2296_vm3, %v2237_v29, %v2239_v2  ;;  %v2410_v15 = vsel %vm2296_vm3, %v13657_v35, %v2237_v29  ;;  %4542 = vmatpush1.bf16.msra.mxu0 %v2576_v0  ;;  %v18952_v57 = vld [vmem:[#allocation338_spill] sm:$0xff]  ;;  %v18954_v0 = vld [vmem:[#allocation313_spill] sm:$0xff]  ;;  %v2533_v11 = vadd.f32 %v2469_v38, %v2041_v36  ;;  %v14107_v51 = vadd.f32 %v9697_v39, %v9633_v25  ;;  %v9635_v36 = vld [vmem:[%s11736_s22 + $0x438] sm:$0xff] }
 0x3e1   : >> { %v2470_v9 = vmul.f32 %v13723_v7, %v2410_v15  ;;  %v2471_v21 = vmul.f32 %v13727_v30, %v2314_v3  ;;  %5593 = vrot.lane.b32.xlu0 %v13974_v50, %s10590_s9  ;;  %v1887_v35 = vsel %vm1868_vm4, %v18953_v14, %v18952_v57  ;;  %v1983_v23 = vsel %vm1868_vm4, %v18954_v0, %v18953_v14  ;;  %v2243_v33 = vpop.permute.xlu1 %2242  ;;  %v18955_v48 = vld [vmem:[#allocation282_spill] sm:$0xff]  ;;  %v9699_v3 = vld [vmem:[%s11736_s22 + $0x638] sm:$0xff]  ;;  %v9698_v25 = vld [vmem:[%s11736_s22 + $0x630] sm:$0xff] }
 0x3e2   : >> { %v1984_v54 = vsel %vm1868_vm4, %v18956_v60, %v18955_v48  ;;  %v14113_v29 = vadd.f32 %v9696_v37, %v9632_v6  ;;  %v2044_v15 = vmul.f32 %v13731_v42, %v1983_v23  ;;  %v2045_v39 = vmul.f32 %v13735_v45, %v1887_v35 }
 0x3e3   : >> { %v14097_v8 = vadd.f32 %v2470_v9, %v2042_v12  ;;  %v2535_v24 = vadd.f32 %v2471_v21, %v2043_v32  ;;  %v2241_v18 = vpop.permute.xlu0 %2240  ;;  %6043 = vrot.lane.b32.xlu1 %v14000_v19, %s10592_s26  ;;  %v18957_v12 = vld [vmem:[#allocation341_spill] sm:$0xff]  ;;  %v9634_v21 = vld [vmem:[%s11736_s22 + $0x430] sm:$0xff]  ;;  %v2046_v57 = vmul.f32 %v13731_v42, %v1984_v54  ;;  %v14133_v35 = vadd.f32 %v9699_v3, %v9635_v36 }
 0x3e4   : >> { %v2315_v2 = vsel %vm2296_vm3, %v2241_v18, %v2243_v33  ;;  %v2411_v44 = vsel %vm2296_vm3, %v13667_v26, %v2241_v18  ;;  %v1888_v26 = vsel %vm1868_vm4, %v18955_v48, %v18957_v12  ;;  %v18958_v54 = vld [vmem:[#allocation343_spill] sm:$0xff] }
 0x3e5   : >> { %v2580_v4 = vpack.c.bf16 %v14097_v8, %v14095_v27  ;;  %v2581_v38 = vpack.c.bf16 %v2535_v24, %v2533_v11  ;;  %6041 = vrot.lane.b32.xlu0 %v13974_v50, %s10592_s26  ;;  %v2247_v32 = vpop.permute.xlu1 %2246  ;;  %v2472_v14 = vmul.f32 %v13723_v7, %v2411_v44  ;;  %v2473_v0 = vmul.f32 %v13727_v30, %v2315_v2  ;;  %v18959_v2 = vld [vmem:[#allocation315_spill] sm:$0xff] }
 0x3e6   : >> { %v3167_v9 = vld [vmem:[#allocation2 + $0x178] sm:$0xff]  ;;  %v2047_v37 = vmul.f32 %v13735_v45, %v1888_v26  ;;  %v14140_v8 = vadd.f32 %v9698_v25, %v9634_v21  ;;  %v1985_v44 = vsel %vm1868_vm4, %v18959_v2, %v18958_v54  ;;  %v18960_v3 = vld [vmem:[#allocation367_spill] sm:$0xff]  ;;  %v18963_v25 = vld [vmem:[#allocation261_spill] sm:$0xff] }
 0x3e7   : >> { %2613 = vst.msk [vmem:[#allocation2 + $0x188] sm:$0xff] %vm1612_vm2, %v2581_v38  ;;  %4543 = vmatprep.subr.bf16.mxu0 %v3167_v9  ;;  %v2245_v23 = vpop.permute.xlu0 %2244  ;;  %5731 = vrot.lane.b32.xlu1 %v14107_v51, %s10591_s23  ;;  %v2536_v18 = vadd.f32 %v2472_v14, %v2044_v15  ;;  %v1889_v15 = vsel %vm1868_vm4, %v18958_v54, %v18960_v3  ;;  %v18962_v9 = vld [vmem:[#allocation342_spill] sm:$0xff]  ;;  %v18964_v2 = vld [vmem:[#allocation345_spill] sm:$0xff]  ;;  %v18966_v3 = vld [vmem:[#allocation295_spill] sm:$0xff] }
 0x3e8   : >> { %v2316_v33 = vsel %vm2296_vm3, %v2245_v23, %v2247_v32  ;;  %v2412_v6 = vsel %vm2296_vm3, %v13665_v40, %v2245_v23  ;;  %4544 = vmatpush1.bf16.msra.mxu0 %v2578_v63  ;;  %v2537_v40 = vadd.f32 %v2473_v0, %v2045_v39  ;;  %v18961_v32 = vld [vmem:[#allocation286_spill] sm:$0xff]  ;;  %v2048_v14 = vmul.f32 %v13731_v42, %v1985_v44 }
 0x3e9   : >> { %v2474_v27 = vmul.f32 %v13723_v7, %v2412_v6  ;;  %v2475_v11 = vmul.f32 %v13727_v30, %v2316_v33  ;;  %5729 = vrot.lane.b32.xlu0 %v14113_v29, %s10591_s23  ;;  %v2251_v24 = vpop.permute.xlu1 %2250  ;;  %v1890_v21 = vsel %vm1868_vm4, %v18962_v9, %v18961_v32  ;;  %v2049_v6 = vmul.f32 %v13735_v45, %v1889_v15  ;;  %v18965_v44 = vld [vmem:[#allocation314_spill] sm:$0xff] }
 0x3eb   : >> { %v2538_v63 = vadd.f32 %v2474_v27, %v2046_v57  ;;  %v2539_v48 = vadd.f32 %v2475_v11, %v2047_v37  ;;  %v2249_v60 = vpop.permute.xlu0 %2248  ;;  %5735 = vrot.lane.b32.xlu1 %v14133_v35, %s10591_s23 }
 0x3ec   : >> { %v2317_v38 = vsel %vm2296_vm3, %v2249_v60, %v2251_v24  ;;  %v2413_v36 = vsel %vm2296_vm3, %v13675_v47, %v2249_v60  ;;  %v1986_v47 = vsel %vm1868_vm4, %v18963_v25, %v18962_v9  ;;  %v2051_v24 = vmul.f32 %v13735_v45, %v1890_v21  ;;  %v18968_v25 = vld [vmem:[#allocation285_spill] sm:$0xff] }
 0x3ed   : >> { %v2582_v12 = vpack.c.bf16 %v2538_v63, %v2536_v18  ;;  %v2583_v26 = vpack.c.bf16 %v2539_v48, %v2537_v40  ;;  %5733 = vrot.lane.b32.xlu0 %v14140_v8, %s10591_s23  ;;  %v2255_v39 = vpop.permute.xlu1 %2254  ;;  %v2476_v0 = vmul.f32 %v13723_v7, %v2413_v36  ;;  %v2477_v23 = vmul.f32 %v13727_v30, %v2317_v38 }
 0x3ee   : >> { %v3169_v57 = vld [vmem:[#allocation2 + $0x188] sm:$0xff]  ;;  %v2050_v11 = vmul.f32 %v13731_v42, %v1986_v47  ;;  %v1987_v38 = vsel %vm1868_vm4, %v18965_v44, %v18964_v2  ;;  %v18969_v47 = vld [vmem:[#allocation369_spill] sm:$0xff] }
 0x3ef   : >> { %2615 = vst.msk [vmem:[#allocation2 + $0x198] sm:$0xff] %vm1612_vm2, %v2583_v26  ;;  %4545 = vmatprep.subr.bf16.mxu0 %v3169_v57  ;;  %v2253_v33 = vpop.permute.xlu0 %2252  ;;  %6147 = vrot.lane.b32.xlu1 %v14107_v51, %s10593_s27  ;;  %v14177_v48 = vadd.f32 %v2476_v0, %v2048_v14  ;;  %v2541_v60 = vadd.f32 %v2477_v23, %v2049_v6  ;;  %v18967_v26 = vld [vmem:[#allocation344_spill] sm:$0xff]  ;;  %v18970_v57 = vld [vmem:[#allocation265_spill] sm:$0xff] }
 0x3f0   : >> { %v2318_v37 = vsel %vm2296_vm3, %v2253_v33, %v2255_v39  ;;  %v2414_v27 = vsel %vm2296_vm3, %v13673_v20, %v2253_v33  ;;  %4546 = vmatpush1.bf16.msra.mxu0 %v2580_v4  ;;  %v1891_v32 = vsel %vm1868_vm4, %v18964_v2, %v18967_v26  ;;  %v1892_v39 = vsel %vm1868_vm4, %v18969_v47, %v18968_v25  ;;  %v18972_v2 = vld [vmem:[#allocation347_spill] sm:$0xff]  ;;  %v18973_v44 = vld [vmem:[#allocation289_spill] sm:$0xff] }
 0x3f1   : >> { %v2478_v18 = vmul.f32 %v13723_v7, %v2414_v27  ;;  %v2479_v40 = vmul.f32 %v13727_v30, %v2318_v37  ;;  %6145 = vrot.lane.b32.xlu0 %v14113_v29, %s10593_s27  ;;  %v2259_v63 = vpop.permute.xlu1 %2258  ;;  %v1988_v14 = vsel %vm1868_vm4, %v18970_v57, %v18969_v47  ;;  %v2052_v33 = vmul.f32 %v13731_v42, %v1987_v38  ;;  %v18974_v38 = vld [vmem:[#allocation317_spill] sm:$0xff]  ;;  %v18975_v57 = vld [vmem:[#allocation346_spill] sm:$0xff] }
 0x3f2   : >> { %v9700_v26 = vld [vmem:[%s11736_s22 + $0x640] sm:$0xff] }
 0x3f3   : >> { %v14179_v20 = vadd.f32 %v2478_v18, %v2050_v11  ;;  %v2543_v4 = vadd.f32 %v2479_v40, %v2051_v24  ;;  %v2257_v54 = vpop.permute.xlu0 %2256  ;;  %6151 = vrot.lane.b32.xlu1 %v14133_v35, %s10593_s27  ;;  %v2053_v11 = vmul.f32 %v13735_v45, %v1891_v32  ;;  %v18971_v18 = vld [vmem:[#allocation355_spill] sm:$0xff] }
 0x3f4   : >> { %v2319_v36 = vsel %vm2296_vm3, %v2257_v54, %v2259_v63  ;;  %v2415_v15 = vsel %vm2296_vm3, %v18966_v3, %v2257_v54  ;;  %v2054_v63 = vmul.f32 %v13731_v42, %v1988_v14  ;;  %v9701_v54 = vld [vmem:[%s11736_s22 + $0x648] sm:$0xff]  ;;  %v18976_v14 = vld [vmem:[#allocation316_spill] sm:$0xff] }
 0x3f5   : >> { %v2584_v9 = vpack.c.bf16 %v14179_v20, %v14177_v48  ;;  %v2585_v21 = vpack.c.bf16 %v2543_v4, %v2541_v60  ;;  %6149 = vrot.lane.b32.xlu0 %v14140_v8, %s10593_s27  ;;  %v2263_v0 = vpop.permute.xlu1 %2262  ;;  %v2480_v6 = vmul.f32 %v13723_v7, %v2415_v15  ;;  %v2481_v37 = vmul.f32 %v13727_v30, %v2319_v36  ;;  %v9637_v4 = vld [vmem:[%s11736_s22 + $0x448] sm:$0xff]  ;;  %v9636_v15 = vld [vmem:[%s11736_s22 + $0x440] sm:$0xff] }
 0x3f6   : >> { %v3171_v23 = vld [vmem:[#allocation2 + $0x198] sm:$0xff]  ;;  %v2055_v48 = vmul.f32 %v13735_v45, %v1892_v39  ;;  %v1989_v36 = vsel %vm1868_vm4, %v18974_v38, %v18973_v44 }
 0x3f7   : >> { %2617 = vst.msk [vmem:[#allocation2 + $0x1a8] sm:$0xff] %vm1612_vm2, %v2585_v21  ;;  %4547 = vmatprep.subr.bf16.mxu0 %v3171_v23  ;;  %v2261_v27 = vpop.permute.xlu0 %2260  ;;  %5599 = vrot.lane.b32.xlu1 %v14133_v35, %s10590_s9  ;;  %v14228_v32 = vadd.f32 %v2480_v6, %v2052_v33  ;;  %v2545_v21 = vadd.f32 %v2481_v37, %v2053_v11 }
 0x3f8   : >> { %v2320_v24 = vsel %vm2296_vm3, %v2261_v27, %v2263_v0  ;;  %v2416_v40 = vsel %vm2296_vm3, %v18971_v18, %v2261_v27  ;;  %4548 = vmatpush1.bf16.msra.mxu0 %v2582_v12  ;;  %v1893_v12 = vsel %vm1868_vm4, %v18973_v44, %v18972_v2  ;;  %v1990_v0 = vsel %vm1868_vm4, %v18976_v14, %v18975_v57  ;;  %v18977_v27 = vld [vmem:[#allocation354_spill] sm:$0xff]  ;;  %v9639_v18 = vld [vmem:[%s11736_s22 + $0x458] sm:$0xff]  ;;  %v9702_v2 = vld [vmem:[%s11736_s22 + $0x650] sm:$0xff] }
 0x3f9   : >> { %v2482_v60 = vmul.f32 %v13723_v7, %v2416_v40  ;;  %v2483_v20 = vmul.f32 %v13727_v30, %v2320_v24  ;;  %5597 = vrot.lane.b32.xlu0 %v14107_v51, %s10590_s9  ;;  %v2267_v3 = vpop.permute.xlu1 %2266  ;;  %v14240_v33 = vadd.f32 %v9701_v54, %v9637_v4  ;;  %v14246_v11 = vadd.f32 %v9700_v26, %v9636_v15  ;;  %v9703_v40 = vld [vmem:[%s11736_s22 + $0x658] sm:$0xff]  ;;  %v9638_v54 = vld [vmem:[%s11736_s22 + $0x450] sm:$0xff] }
 0x3fa   : >> { %v2057_v44 = vmul.f32 %v13735_v45, %v1893_v12  ;;  %v2058_v38 = vmul.f32 %v13731_v42, %v1990_v0  ;;  %v14266_v12 = vadd.f32 %v9703_v40, %v9639_v18  ;;  %v18981_v18 = vld [vmem:[#allocation319_spill] sm:$0xff] }
 0x3fb   : >> { %v14230_v25 = vadd.f32 %v2482_v60, %v2054_v63  ;;  %v2547_v47 = vadd.f32 %v2483_v20, %v2055_v48  ;;  %v2265_v39 = vpop.permute.xlu0 %2264  ;;  %6047 = vrot.lane.b32.xlu1 %v14133_v35, %s10592_s26  ;;  %v2056_v63 = vmul.f32 %v13731_v42, %v1989_v36  ;;  %v18978_v48 = vld [vmem:[#allocation372_spill] sm:$0xff] }
 0x3fc   : >> { %v2321_v23 = vsel %vm2296_vm3, %v2265_v39, %v2267_v3  ;;  %v2417_v24 = vsel %vm2296_vm3, %v18977_v27, %v2265_v39  ;;  %v1894_v60 = vsel %vm1868_vm4, %v18975_v57, %v18978_v48  ;;  %v14273_v57 = vadd.f32 %v9702_v2, %v9638_v54 }
 0x3fd   : >> { %v2586_v6 = vpack.c.bf16 %v14230_v25, %v14228_v32  ;;  %v2587_v37 = vpack.c.bf16 %v2547_v47, %v2545_v21  ;;  %6045 = vrot.lane.b32.xlu0 %v14107_v51, %s10592_s26  ;;  %v2271_v20 = vpop.permute.xlu1 %2270  ;;  %v2484_v3 = vmul.f32 %v13723_v7, %v2417_v24  ;;  %v2485_v15 = vmul.f32 %v13727_v30, %v2321_v23  ;;  %v18979_v32 = vld [vmem:[#allocation376_spill] sm:$0xff] }
 0x3fe   : >> { %v3173_v4 = vld [vmem:[#allocation2 + $0x1a8] sm:$0xff]  ;;  %v2059_v25 = vmul.f32 %v13735_v45, %v1894_v60  ;;  %v18982_v60 = vld [vmem:[#allocation357_spill] sm:$0xff] }
 0x3ff   : >> { %2619 = vst.msk [vmem:[#allocation2 + $0x1b8] sm:$0xff] %vm1612_vm2, %v2587_v37  ;;  %4549 = vmatprep.subr.bf16.mxu0 %v3173_v4  ;;  %v2269_v36 = vpop.permute.xlu0 %2268  ;;  %5739 = vrot.lane.b32.xlu1 %v14240_v33, %s10591_s23  ;;  %v2548_v0 = vadd.f32 %v2484_v3, %v2056_v63  ;;  %v2549_v23 = vadd.f32 %v2485_v15, %v2057_v44  ;;  %v18980_v37 = vld [vmem:[#allocation349_spill] sm:$0xff]  ;;  %v18983_v4 = vld [vmem:[#allocation348_spill] sm:$0xff] }
 0x400   : >> { %v2322_v26 = vsel %vm2296_vm3, %v2269_v36, %v2271_v20  ;;  %v2418_v21 = vsel %vm2296_vm3, %v18979_v32, %v2269_v36  ;;  %4550 = vmatpush1.bf16.msra.mxu0 %v2584_v9  ;;  %v1991_v40 = vsel %vm1868_vm4, %v18981_v18, %v18980_v37  ;;  %v1895_v63 = vsel %vm1868_vm4, %v18980_v37, %v18983_v4  ;;  %v18984_v44 = vld [vmem:[#allocation288_spill] sm:$0xff] }
 0x401   : >> { %v2486_v47 = vmul.f32 %v13723_v7, %v2418_v21  ;;  %v2487_v39 = vmul.f32 %v13727_v30, %v2322_v26  ;;  %5737 = vrot.lane.b32.xlu0 %v14246_v11, %s10591_s23  ;;  %v2275_v14 = vpop.permute.xlu1 %2274  ;;  %v18986_v15 = vld [vmem:[#allocation264_spill] sm:$0xff]  ;;  %v2060_v21 = vmul.f32 %v13731_v42, %v1991_v40 }
 0x403   : >> { %v2550_v9 = vadd.f32 %v2486_v47, %v2058_v38  ;;  %v2551_v27 = vadd.f32 %v2487_v39, %v2059_v25  ;;  %v2273_v24 = vpop.permute.xlu0 %2272  ;;  %5743 = vrot.lane.b32.xlu1 %v14266_v12, %s10591_s23  ;;  %v18985_v38 = vld [vmem:[#allocation371_spill] sm:$0xff] }
 0x404   : >> { %v2323_v48 = vsel %vm2296_vm3, %v2273_v24, %v2275_v14  ;;  %v2419_v20 = vsel %vm2296_vm3, %v18982_v60, %v2273_v24  ;;  %v1896_v3 = vsel %vm1868_vm4, %v18985_v38, %v18984_v44  ;;  %v1992_v36 = vsel %vm1868_vm4, %v18986_v15, %v18985_v38 }
 0x405   : >> { %v2588_v54 = vpack.c.bf16 %v2550_v9, %v2548_v0  ;;  %v2589_v2 = vpack.c.bf16 %v2551_v27, %v2549_v23  ;;  %5741 = vrot.lane.b32.xlu0 %v14273_v57, %s10591_s23  ;;  %v2279_v26 = vpop.permute.xlu1 %2278  ;;  %v2488_v25 = vmul.f32 %v13723_v7, %v2419_v20  ;;  %v2489_v47 = vmul.f32 %v13727_v30, %v2323_v48  ;;  %v18987_v23 = vld [vmem:[#allocation356_spill] sm:$0xff] }
 0x406   : >> { %v3175_v32 = vld [vmem:[#allocation2 + $0x1b8] sm:$0xff]  ;;  %v2061_v14 = vmul.f32 %v13735_v45, %v1895_v63  ;;  %v2062_v27 = vmul.f32 %v13731_v42, %v1992_v36  ;;  %v2063_v24 = vmul.f32 %v13735_v45, %v1896_v3  ;;  %v18990_v3 = vld [vmem:[#allocation375_spill] sm:$0xff] }
 0x407   : >> { %2621 = vst.msk [vmem:[#allocation2 + $0x1c8] sm:$0xff] %vm1612_vm2, %v2589_v2  ;;  %4551 = vmatprep.subr.bf16.mxu0 %v3175_v32  ;;  %v2277_v39 = vpop.permute.xlu0 %2276  ;;  %6155 = vrot.lane.b32.xlu1 %v14240_v33, %s10593_s27  ;;  %v14310_v48 = vadd.f32 %v2488_v25, %v2060_v21  ;;  %v18988_v63 = vld [vmem:[#allocation292_spill] sm:$0xff]  ;;  %v18989_v2 = vld [vmem:[#allocation318_spill] sm:$0xff]  ;;  %v18991_v36 = vld [vmem:[#allocation351_spill] sm:$0xff] }
 0x408   : >> { %v2324_v0 = vsel %vm2296_vm3, %v2277_v39, %v2279_v26  ;;  %v2420_v9 = vsel %vm2296_vm3, %v18987_v23, %v2277_v39  ;;  %4552 = vmatpush1.bf16.msra.mxu0 %v2586_v6  ;;  %v2553_v60 = vadd.f32 %v2489_v47, %v2061_v14  ;;  %v1993_v44 = vsel %vm1868_vm4, %v18989_v2, %v18988_v63  ;;  %v18992_v25 = vld [vmem:[#allocation374_spill] sm:$0xff]  ;;  %v18994_v14 = vld [vmem:[#allocation268_spill] sm:$0xff] }
 0x409   : >> { %v2490_v37 = vmul.f32 %v13723_v7, %v2420_v9  ;;  %v2491_v18 = vmul.f32 %v13727_v30, %v2324_v0  ;;  %6153 = vrot.lane.b32.xlu0 %v14246_v11, %s10593_s27  ;;  %v2283_v40 = vpop.permute.xlu1 %2282  ;;  %v1897_v26 = vsel %vm1868_vm4, %v18988_v63, %v18991_v36  ;;  %v18993_v47 = vld [vmem:[#allocation350_spill] sm:$0xff]  ;;  %v18998_v36 = vld [vmem:[#allocation321_spill] sm:$0xff] }
 0x40a   : >> { %v1898_v39 = vsel %vm1868_vm4, %v18993_v47, %v18992_v25  ;;  %v1994_v0 = vsel %vm1868_vm4, %v18994_v14, %v18993_v47  ;;  %v9640_v25 = vld [vmem:[%s11736_s22 + $0x460] sm:$0xff] }
 0x40b   : >> { %v14312_v20 = vadd.f32 %v2490_v37, %v2062_v27  ;;  %v2555_v6 = vadd.f32 %v2491_v18, %v2063_v24  ;;  %v2281_v4 = vpop.permute.xlu0 %2280  ;;  %6159 = vrot.lane.b32.xlu1 %v14266_v12, %s10593_s27  ;;  %v2064_v27 = vmul.f32 %v13731_v42, %v1993_v44  ;;  %v9641_v44 = vld [vmem:[%s11736_s22 + $0x468] sm:$0xff]  ;;  %v9704_v47 = vld [vmem:[%s11736_s22 + $0x660] sm:$0xff] }
 0x40c   : >> { %v2325_v38 = vsel %vm2296_vm3, %v2281_v4, %v2283_v40  ;;  %v2421_v15 = vsel %vm2296_vm3, %v18990_v3, %v2281_v4  ;;  %v2065_v40 = vmul.f32 %v13735_v45, %v1897_v26  ;;  %v2067_v4 = vmul.f32 %v13735_v45, %v1898_v39  ;;  %v18996_v3 = vld [vmem:[#allocation352_spill] sm:$0xff] }
 0x40d   : >> { %v2590_v32 = vpack.c.bf16 %v14312_v20, %v14310_v48  ;;  %v2591_v21 = vpack.c.bf16 %v2555_v6, %v2553_v60  ;;  %6157 = vrot.lane.b32.xlu0 %v14273_v57, %s10593_s27  ;;  %v2287_v23 = vpop.permute.xlu1 %2286  ;;  %v2492_v24 = vmul.f32 %v13723_v7, %v2421_v15  ;;  %v2493_v37 = vmul.f32 %v13727_v30, %v2325_v38  ;;  %v18995_v60 = vld [vmem:[#allocation294_spill] sm:$0xff]  ;;  %v18997_v15 = vld [vmem:[#allocation353_spill] sm:$0xff] }
 0x40e   : >> { %v3177_v9 = vld [vmem:[#allocation2 + $0x1c8] sm:$0xff]  ;;  %v2066_v6 = vmul.f32 %v13731_v42, %v1994_v0  ;;  %v1995_v26 = vsel %vm1868_vm4, %v18998_v36, %v18997_v15 }
 0x40f   : >> { %2623 = vst.msk [vmem:[#allocation2 + $0x1d8] sm:$0xff] %vm1612_vm2, %v2591_v21  ;;  %4553 = vmatprep.subr.bf16.mxu0 %v3177_v9  ;;  %v2285_v18 = vpop.permute.xlu0 %2284  ;;  %5603 = vrot.lane.b32.xlu1 %v14266_v12, %s10590_s9  ;;  %v9705_v38 = vld [vmem:[%s11736_s22 + $0x668] sm:$0xff]  ;;  %v2556_v39 = vadd.f32 %v2492_v24, %v2064_v27  ;;  %v2557_v14 = vadd.f32 %v2493_v37, %v2065_v40  ;;  %v9643_v40 = vld [vmem:[%s11736_s22 + $0x478] sm:$0xff] }
 0x410   : >> { %v2326_v48 = vsel %vm2296_vm3, %v2285_v18, %v2287_v23  ;;  %v2422_v20 = vsel %vm2296_vm3, %v18995_v60, %v2285_v18  ;;  %4554 = vmatpush1.bf16.msra.mxu0 %v2588_v54  ;;  %v1899_v54 = vsel %vm1868_vm4, %v18997_v15, %v18996_v3  ;;  %v18999_v18 = vld [vmem:[#allocation373_spill] sm:$0xff]  ;;  %v19001_v3 = vld [vmem:[#allocation298_spill] sm:$0xff]  ;;  %v14369_v36 = vadd.f32 %v9705_v38, %v9641_v44  ;;  %v9706_v44 = vld [vmem:[%s11736_s22 + $0x670] sm:$0xff] }
 0x411   : >> { %v2494_v63 = vmul.f32 %v13723_v7, %v2422_v20  ;;  %v2495_v2 = vmul.f32 %v13727_v30, %v2326_v48  ;;  %5601 = vrot.lane.b32.xlu0 %v14240_v33, %s10590_s9  ;;  %v2291_v21 = vpop.permute.xlu1 %2290  ;;  %v19000_v48 = vld [vmem:[#allocation320_spill] sm:$0xff]  ;;  %v14373_v37 = vadd.f32 %v9704_v47, %v9640_v25  ;;  %v2069_v38 = vmul.f32 %v13735_v45, %v1899_v54 }
 0x412   : >> { %v1996_v60 = vsel %vm1868_vm4, %v19000_v48, %v18999_v18  ;;  %v9642_v48 = vld [vmem:[%s11736_s22 + $0x470] sm:$0xff] }
 0x413   : >> { %v2558_v0 = vadd.f32 %v2494_v63, %v2066_v6  ;;  %v2559_v23 = vadd.f32 %v2495_v2, %v2067_v4  ;;  %v2289_v9 = vpop.permute.xlu0 %2288  ;;  %6051 = vrot.lane.b32.xlu1 %v14266_v12, %s10592_s26  ;;  %v9707_v6 = vld [vmem:[%s11736_s22 + $0x678] sm:$0xff]  ;;  %v2068_v4 = vmul.f32 %v13731_v42, %v1995_v26  ;;  %v19002_v63 = vld [vmem:[#allocation291_spill] sm:$0xff] }
 0x414   : >> { %v2327_v20 = vsel %vm2296_vm3, %v2289_v9, %v2291_v21  ;;  %v2423_v15 = vsel %vm2296_vm3, %v19001_v3, %v2289_v9  ;;  %v1900_v2 = vsel %vm1868_vm4, %v18999_v18, %v19002_v63  ;;  %v14393_v54 = vadd.f32 %v9707_v6, %v9643_v40 }
 0x415   : >> { %v2592_v27 = vpack.c.bf16 %v2558_v0, %v2556_v39  ;;  %v2593_v24 = vpack.c.bf16 %v2559_v23, %v2557_v14  ;;  %6049 = vrot.lane.b32.xlu0 %v14240_v33, %s10592_s26  ;;  %v2295_v21 = vpop.permute.xlu1 %2294  ;;  %v2070_v39 = vmul.f32 %v13731_v42, %v1996_v60  ;;  %v2496_v25 = vmul.f32 %v13723_v7, %v2423_v15  ;;  %v19003_v0 = vld [vmem:[#allocation359_spill] sm:$0xff] }
 0x416   : >> { %v3179_v9 = vld [vmem:[#allocation2 + $0x1d8] sm:$0xff]  ;;  %v2497_v47 = vmul.f32 %v13727_v30, %v2327_v20  ;;  %v2071_v18 = vmul.f32 %v13735_v45, %v1900_v2  ;;  %v14400_v20 = vadd.f32 %v9706_v44, %v9642_v48 }
 0x417   : >> { %2625 = vst.msk [vmem:[#allocation2 + $0x1e8] sm:$0xff] %vm1612_vm2, %v2593_v24  ;;  %4555 = vmatprep.subr.bf16.mxu0 %v3179_v9  ;;  %v2293_v26 = vpop.permute.xlu0 %2292  ;;  %5747 = vrot.lane.b32.xlu1 %v14369_v36, %s10591_s23  ;;  %v2560_v24 = vadd.f32 %v2496_v25, %v2068_v4 }
 0x418   : >> { %v2328_v14 = vsel %vm2296_vm3, %v2293_v26, %v2295_v21  ;;  %v2424_v23 = vsel %vm2296_vm3, %v19003_v0, %v2293_v26  ;;  %4556 = vmatpush1.bf16.msra.mxu0 %v2590_v32  ;;  %v2561_v32 = vadd.f32 %v2497_v47, %v2069_v38  ;;  %v9645_v47 = vld [vmem:[%s11736_s22 + $0x488] sm:$0xff]  ;;  %v9644_v0 = vld [vmem:[%s11736_s22 + $0x480] sm:$0xff] }
 0x419   : >> { %v2498_v60 = vmul.f32 %v13723_v7, %v2424_v23  ;;  %v2499_v3 = vmul.f32 %v13727_v30, %v2328_v14  ;;  %5745 = vrot.lane.b32.xlu0 %v14373_v37, %s10591_s23  ;;  %v14402_v15 = vpop.permute.xlu1 %2630  ;;  %v9709_v26 = vld [vmem:[%s11736_s22 + $0x688] sm:$0xff]  ;;  %v9708_v23 = vld [vmem:[%s11736_s22 + $0x680] sm:$0xff] }
 0x41a   : >> { %19004 = vst [vmem:[#allocation378_spill] sm:$0xff] %v14402_v15  ;;  %v9718_v15 = vld [vmem:[%s11736_s22 + $0x6d0] sm:$0xff] }
 0x41b   : >> { %v2562_v63 = vadd.f32 %v2498_v60, %v2070_v39  ;;  %v2563_v21 = vadd.f32 %v2499_v3, %v2071_v18  ;;  %v14404_v9 = vpop.permute.xlu0 %2628  ;;  %5751 = vrot.lane.b32.xlu1 %v14393_v54, %s10591_s23  ;;  %v14445_v60 = vadd.f32 %v9709_v26, %v9645_v47  ;;  %v14449_v3 = vadd.f32 %v9708_v23, %v9644_v0 }
 0x41c   : >> { %19005 = vst [vmem:[#allocation358_spill] sm:$0xff] %v14404_v9 }
 0x41d   : >> { %v2594_v40 = vpack.c.bf16 %v2562_v63, %v2560_v24  ;;  %v2595_v6 = vpack.c.bf16 %v2563_v21, %v2561_v32  ;;  %5749 = vrot.lane.b32.xlu0 %v14400_v20, %s10591_s23  ;;  %v14410_v2 = vpop.permute.xlu1 %2634  ;;  %v9647_v24 = vld [vmem:[%s11736_s22 + $0x498] sm:$0xff]  ;;  %v9646_v21 = vld [vmem:[%s11736_s22 + $0x490] sm:$0xff] }
 0x41e   : >> { %19006 = vst [vmem:[#allocation360_spill] sm:$0xff] %v14410_v2  ;;  %v3181_v48 = vld [vmem:[#allocation2 + $0x1e8] sm:$0xff]  ;;  %v9711_v32 = vld [vmem:[%s11736_s22 + $0x698] sm:$0xff] }
 0x41f   : >> { %2627 = vst.msk [vmem:[#allocation2 + $0x1f8] sm:$0xff] %vm1612_vm2, %v2595_v6  ;;  %4557 = vmatprep.subr.bf16.mxu0 %v3181_v48  ;;  %v14413_v4 = vpop.permute.xlu0 %2632  ;;  %6163 = vrot.lane.b32.xlu1 %v14369_v36, %s10593_s27  ;;  %v14461_v48 = vadd.f32 %v9711_v32, %v9647_v24 }
 0x420   : >> { %19007 = vst [vmem:[#allocation361_spill] sm:$0xff] %v14413_v4  ;;  %4558 = vmatpush1.bf16.msra.mxu0 %v2592_v27  ;;  %v9655_v4 = vld [vmem:[%s11736_s22 + $0x4d8] sm:$0xff] }
 0x421   : >> { %6161 = vrot.lane.b32.xlu0 %v14373_v37, %s10593_s27  ;;  %v14419_v44 = vpop.permute.xlu1 %2638 }
 0x422   : >> { %19008 = vst [vmem:[#allocation297_spill] sm:$0xff] %v14419_v44 }
 0x423   : >> { %v14421_v38 = vpop.permute.xlu0 %2636  ;;  %6167 = vrot.lane.b32.xlu1 %v14393_v54, %s10593_s27 }
 0x424   : >> { %19009 = vst [vmem:[#allocation377_spill] sm:$0xff] %v14421_v38 }
 0x425   : >> { %6165 = vrot.lane.b32.xlu0 %v14400_v20, %s10593_s27  ;;  %v14427_v39 = vpop.permute.xlu1 %2642 }
 0x426   : >> { %19010 = vst [vmem:[#allocation267_spill] sm:$0xff] %v14427_v39  ;;  %v3183_v27 = vld [vmem:[#allocation2 + $0x1f8] sm:$0xff] }
 0x427   : >> { %4559 = vmatprep.subr.bf16.mxu0 %v3183_v27  ;;  %v14429_v25 = vpop.permute.xlu0 %2640  ;;  %5607 = vrot.lane.b32.xlu1 %v14393_v54, %s10590_s9 }
 0x428   : >> { %19011 = vst [vmem:[#allocation300_spill] sm:$0xff] %v14429_v25  ;;  %4560 = vmatpush1.bf16.msra.mxu0 %v2594_v40  ;;  %v9710_v40 = vld [vmem:[%s11736_s22 + $0x690] sm:$0xff] }
 0x429   : >> { %5605 = vrot.lane.b32.xlu0 %v14369_v36, %s10590_s9  ;;  %v14437_v14 = vpop.permute.xlu1 %2646  ;;  %v14465_v27 = vadd.f32 %v9710_v40, %v9646_v21 }
 0x42a   : >> { %19012 = vst [vmem:[#allocation323_spill] sm:$0xff] %v14437_v14 }
 0x42b   : >> { %v14441_v18 = vpop.permute.xlu0 %2644  ;;  %6055 = vrot.lane.b32.xlu1 %v14393_v54, %s10592_s26 }
 0x42c   : >> { %19013 = vst [vmem:[#allocation271_spill] sm:$0xff] %v14441_v18  ;;  %v9650_v18 = vld [vmem:[%s11736_s22 + $0x4b0] sm:$0xff] }
 0x42d   : >> { %6053 = vrot.lane.b32.xlu0 %v14369_v36, %s10592_s26  ;;  %v14453_v63 = vpop.permute.xlu1 %2650 }
 0x42e   : >> { %19014 = vst [vmem:[#allocation253_spill] sm:$0xff] %v14453_v63  ;;  %v9651_v63 = vld [vmem:[%s11736_s22 + $0x4b8] sm:$0xff] }
 0x42f   : >> { %v14457_v6 = vpop.permute.xlu0 %2648  ;;  %5755 = vrot.lane.b32.xlu1 %v14445_v60, %s10591_s23 }
 0x430   : >> { %19015 = vst [vmem:[#allocation322_spill] sm:$0xff] %v14457_v6  ;;  %v9715_v6 = vld [vmem:[%s11736_s22 + $0x6b8] sm:$0xff] }
 0x431   : >> { %5753 = vrot.lane.b32.xlu0 %v14449_v3, %s10591_s23  ;;  %v14467_v47 = vpop.permute.xlu1 %2654  ;;  %v14517_v39 = vadd.f32 %v9715_v6, %v9651_v63 }
 0x432   : >> { %19016 = vst [vmem:[#allocation324_spill] sm:$0xff] %v14467_v47  ;;  %v9712_v47 = vld [vmem:[%s11736_s22 + $0x6a0] sm:$0xff] }
 0x433   : >> { %v14469_v26 = vpop.permute.xlu0 %2652  ;;  %5759 = vrot.lane.b32.xlu1 %v14461_v48, %s10591_s23 }
 0x434   : >> { %19017 = vst [vmem:[#allocation301_spill] sm:$0xff] %v14469_v26 }
 0x435   : >> { %5757 = vrot.lane.b32.xlu0 %v14465_v27, %s10591_s23  ;;  %v14475_v0 = vpop.permute.xlu1 %2658 }
 0x436   : >> { %19018 = vst [vmem:[#allocation270_spill] sm:$0xff] %v14475_v0 }
 0x437   : >> { %v14477_v23 = vpop.permute.xlu0 %2656  ;;  %6171 = vrot.lane.b32.xlu1 %v14445_v60, %s10593_s27 }
 0x438   : >> { %19019 = vst [vmem:[#allocation252_spill] sm:$0xff] %v14477_v23  ;;  %v9648_v23 = vld [vmem:[%s11736_s22 + $0x4a0] sm:$0xff] }
 0x439   : >> { %6169 = vrot.lane.b32.xlu0 %v14449_v3, %s10593_s27  ;;  %v14483_v24 = vpop.permute.xlu1 %2662 }
 0x43a   : >> { %19020 = vst [vmem:[#allocation325_spill] sm:$0xff] %v14483_v24  ;;  %v9649_v24 = vld [vmem:[%s11736_s22 + $0x4a8] sm:$0xff] }
 0x43b   : >> { %v14485_v32 = vpop.permute.xlu0 %2660  ;;  %6175 = vrot.lane.b32.xlu1 %v14461_v48, %s10593_s27 }
 0x43c   : >> { %19021 = vst [vmem:[#allocation327_spill] sm:$0xff] %v14485_v32  ;;  %v9713_v32 = vld [vmem:[%s11736_s22 + $0x6a8] sm:$0xff] }
 0x43d   : >> { %6173 = vrot.lane.b32.xlu0 %v14465_v27, %s10593_s27  ;;  %v14491_v21 = vpop.permute.xlu1 %2666 }
 0x43e   : >> { %19022 = vst [vmem:[#allocation274_spill] sm:$0xff] %v14491_v21  ;;  %v14505_v21 = vadd.f32 %v9713_v32, %v9649_v24  ;;  %v14521_v24 = vadd.f32 %v9714_v17, %v9650_v18  ;;  %v19025_v18 = vld [vmem:[#allocation384_spill] sm:$0xff] }
 0x43f   : >> { %v14493_v40 = vpop.permute.xlu0 %2664  ;;  %5611 = vrot.lane.b32.xlu1 %v14461_v48, %s10590_s9 }
 0x440   : >> { %19023 = vst [vmem:[#allocation256_spill] sm:$0xff] %v14493_v40  ;;  %v14509_v40 = vadd.f32 %v9712_v47, %v9648_v23 }
 0x441   : >> { %5609 = vrot.lane.b32.xlu0 %v14445_v60, %s10590_s9  ;;  %v5724_v0 = vpop.permute.xlu1 %5723 }
 0x443   : >> { %v5722_v26 = vpop.permute.xlu0 %5721  ;;  %6059 = vrot.lane.b32.xlu1 %v14461_v48, %s10592_s26 }
 0x444   : >> { %v5849_v23 = vsel %vm883_vm1, %v5722_v26, %v5724_v0 }
 0x445   : >> { %6057 = vrot.lane.b32.xlu0 %v14445_v60, %s10592_s26  ;;  %v5728_v14 = vpop.permute.xlu1 %5727 }
 0x447   : >> { %v5726_v59 = vpop.permute.xlu0 %5725  ;;  %5763 = vrot.lane.b32.xlu1 %v14505_v21, %s10591_s23 }
 0x448   : >> { %v5850_v63 = vsel %vm883_vm1, %v5726_v59, %v5728_v14 }
 0x449   : >> { %5761 = vrot.lane.b32.xlu0 %v14509_v40, %s10591_s23  ;;  %v6140_v32 = vpop.permute.xlu1 %6139  ;;  %v5980_v38 = vmul.f32 %v5850_v63, %v19025_v18 }
 0x44b   : >> { %v6138_v25 = vpop.permute.xlu0 %6137  ;;  %5767 = vrot.lane.b32.xlu1 %v14517_v39, %s10591_s23 }
 0x44c   : >> { %v6265_v47 = vsel %vm1311_vm0, %v6138_v25, %v6140_v32  ;;  %v5978_v32 = vmul.f32 %v5849_v23, %v19025_v18 }
 0x44d   : >> { %5765 = vrot.lane.b32.xlu0 %v14521_v24, %s10591_s23  ;;  %v6144_v6 = vpop.permute.xlu1 %6143  ;;  %v6394_v56 = vmul.f32 %v6265_v47, %v19024_v5 }
 0x44f   : >> { %v6142_v44 = vpop.permute.xlu0 %6141  ;;  %6179 = vrot.lane.b32.xlu1 %v14505_v21, %s10593_s27  ;;  %v6458_v14 = vadd.f32 %v6394_v56, %v5978_v32  ;;  %v19027_v32 = vld [vmem:[#allocation381_spill] sm:$0xff] }
 0x450   : >> { %v6266_v17 = vsel %vm1311_vm0, %v6142_v44, %v6144_v6 }
 0x451   : >> { %v6396_v41 = vmul.f32 %v6266_v17, %v19024_v5  ;;  %6177 = vrot.lane.b32.xlu0 %v14509_v40, %s10593_s27  ;;  %v5596_v0 = vpop.permute.xlu1 %5595 }
 0x452   : >> { %v5946_v6 = vsel %vm883_vm1, %v5596_v0, %v5726_v59 }
 0x453   : >> { %v6460_v58 = vadd.f32 %v6396_v41, %v5980_v38  ;;  %v5594_v2 = vpop.permute.xlu0 %5593  ;;  %6183 = vrot.lane.b32.xlu1 %v14517_v39, %s10593_s27  ;;  %v19026_v38 = vld [vmem:[#allocation383_spill] sm:$0xff] }
 0x454   : >> { %v5945_v23 = vsel %vm883_vm1, %v5594_v2, %v5722_v26  ;;  %v5979_v17 = vmul.f32 %v5946_v6, %v19026_v38  ;;  %v9717_v26 = vld [vmem:[%s11736_s22 + $0x6c8] sm:$0xff]  ;;  %v9652_v6 = vld [vmem:[%s11736_s22 + $0x4c0] sm:$0xff] }
 0x455   : >> { %v6522_v47 = vpack.c.bf16 %v6460_v58, %v6458_v14  ;;  %6181 = vrot.lane.b32.xlu0 %v14521_v24, %s10593_s27  ;;  %v6044_v63 = vpop.permute.xlu1 %6043  ;;  %v5977_v59 = vmul.f32 %v5945_v23, %v19026_v38 }
 0x456   : >> { %v6362_v41 = vsel %vm1311_vm0, %v6044_v63, %v6142_v44  ;;  %v9653_v44 = vld [vmem:[%s11736_s22 + $0x4c8] sm:$0xff] }
 0x457   : >> { %6555 = vst.msk [vmem:[#allocation2 + $0x308] sm:$0xff] %vm1612_vm2, %v6522_v47  ;;  %v6042_v56 = vpop.permute.xlu0 %6041  ;;  %v6395_v58 = vmul.f32 %v6362_v41, %v19027_v32  ;;  %5615 = vrot.lane.b32.xlu1 %v14517_v39, %s10590_s9  ;;  %v14562_v23 = vadd.f32 %v9717_v26, %v9653_v44  ;;  %v14578_v44 = vadd.f32 %v9718_v15, %v9654_v52 }
 0x458   : >> { %v6361_v14 = vsel %vm1311_vm0, %v6042_v56, %v6138_v25  ;;  %v9716_v25 = vld [vmem:[%s11736_s22 + $0x6c0] sm:$0xff] }
 0x459   : >> { %v6393_v2 = vmul.f32 %v6361_v14, %v19027_v32  ;;  %5613 = vrot.lane.b32.xlu0 %v14505_v21, %s10590_s9  ;;  %v6459_v0 = vadd.f32 %v6395_v58, %v5979_v17  ;;  %v5732_v47 = vpop.permute.xlu1 %5731  ;;  %v14566_v14 = vadd.f32 %v9716_v25, %v9652_v6 }
 0x45b   : >> { %v6457_v63 = vadd.f32 %v6393_v2, %v5977_v59  ;;  %v5730_v41 = vpop.permute.xlu0 %5729  ;;  %6063 = vrot.lane.b32.xlu1 %v14517_v39, %s10592_s26  ;;  %v14574_v2 = vadd.f32 %v9719_v53, %v9655_v4 }
 0x45c   : >> { %v5851_v25 = vsel %vm883_vm1, %v5730_v41, %v5732_v47 }
 0x45d   : >> { %v6521_v56 = vpack.c.bf16 %v6459_v0, %v6457_v63  ;;  %6061 = vrot.lane.b32.xlu0 %v14505_v21, %s10592_s26  ;;  %v5736_v17 = vpop.permute.xlu1 %5735  ;;  %v5982_v15 = vmul.f32 %v5851_v25, %v19025_v18 }
 0x45e   : >> { %v8027_v58 = vld [vmem:[#allocation2 + $0x308] sm:$0xff] }
 0x45f   : >> { %8122 = vmatprep.subr.bf16.mxu1 %v8027_v58  ;;  %v5734_v59 = vpop.permute.xlu0 %5733  ;;  %5771 = vrot.lane.b32.xlu1 %v14562_v23, %s10591_s23 }
 0x460   : >> { %8123 = vmatpush1.bf16.msra.mxu1 %v6521_v56  ;;  %v5852_v53 = vsel %vm883_vm1, %v5734_v59, %v5736_v17 }
 0x461   : >> { %5769 = vrot.lane.b32.xlu0 %v14566_v14, %s10591_s23  ;;  %v6148_v26 = vpop.permute.xlu1 %6147  ;;  %v5984_v58 = vmul.f32 %v5852_v53, %v19025_v18 }
 0x463   : >> { %v6146_v0 = vpop.permute.xlu0 %6145  ;;  %5775 = vrot.lane.b32.xlu1 %v14574_v2, %s10591_s23 }
 0x464   : >> { %v6267_v6 = vsel %vm1311_vm0, %v6146_v0, %v6148_v26 }
 0x465   : >> { %5773 = vrot.lane.b32.xlu0 %v14578_v44, %s10591_s23  ;;  %v6152_v4 = vpop.permute.xlu1 %6151  ;;  %v6398_v63 = vmul.f32 %v6267_v6, %v19024_v5 }
 0x467   : >> { %v6150_v56 = vpop.permute.xlu0 %6149  ;;  %6187 = vrot.lane.b32.xlu1 %v14562_v23, %s10593_s27  ;;  %v6462_v17 = vadd.f32 %v6398_v63, %v5982_v15 }
 0x468   : >> { %v6268_v52 = vsel %vm1311_vm0, %v6150_v56, %v6152_v4 }
 0x469   : >> { %v6400_v26 = vmul.f32 %v6268_v52, %v19024_v5  ;;  %6185 = vrot.lane.b32.xlu0 %v14566_v14, %s10593_s27  ;;  %v5600_v47 = vpop.permute.xlu1 %5599 }
 0x46a   : >> { %v5948_v4 = vsel %vm883_vm1, %v5600_v47, %v5734_v59 }
 0x46b   : >> { %v6464_v9 = vadd.f32 %v6400_v26, %v5984_v58  ;;  %v5598_v62 = vpop.permute.xlu0 %5597  ;;  %6191 = vrot.lane.b32.xlu1 %v14574_v2, %s10593_s27  ;;  %v5983_v15 = vmul.f32 %v5948_v4, %v19026_v38 }
 0x46c   : >> { %v5947_v25 = vsel %vm883_vm1, %v5598_v62, %v5730_v41  ;;  %v9657_v41 = vld [vmem:[%s11736_s22 + $0x4e8] sm:$0xff] }
 0x46d   : >> { %v6524_v6 = vpack.c.bf16 %v6464_v9, %v6462_v17  ;;  %6189 = vrot.lane.b32.xlu0 %v14578_v44, %s10593_s27  ;;  %v6048_v53 = vpop.permute.xlu1 %6047  ;;  %v5981_v59 = vmul.f32 %v5947_v25, %v19026_v38  ;;  %v9656_v17 = vld [vmem:[%s11736_s22 + $0x4e0] sm:$0xff] }
 0x46e   : >> { %v6364_v63 = vsel %vm1311_vm0, %v6048_v53, %v6150_v56  ;;  %v9721_v56 = vld [vmem:[%s11736_s22 + $0x6e8] sm:$0xff] }
 0x46f   : >> { %6557 = vst.msk [vmem:[#allocation2 + $0x318] sm:$0xff] %vm1612_vm2, %v6524_v6  ;;  %v6046_v52 = vpop.permute.xlu0 %6045  ;;  %v6399_v9 = vmul.f32 %v6364_v63, %v19027_v32  ;;  %5619 = vrot.lane.b32.xlu1 %v14574_v2, %s10590_s9  ;;  %v14619_v25 = vadd.f32 %v9721_v56, %v9657_v41  ;;  %v14635_v41 = vadd.f32 %v9722_v61, %v9658_v46 }
 0x470   : >> { %v6363_v58 = vsel %vm1311_vm0, %v6046_v52, %v6146_v0  ;;  %v9720_v0 = vld [vmem:[%s11736_s22 + $0x6e0] sm:$0xff]  ;;  %v9659_v52 = vld [vmem:[%s11736_s22 + $0x4f8] sm:$0xff] }
 0x471   : >> { %v6397_v62 = vmul.f32 %v6363_v58, %v19027_v32  ;;  %5617 = vrot.lane.b32.xlu0 %v14562_v23, %s10590_s9  ;;  %v6463_v26 = vadd.f32 %v6399_v9, %v5983_v15  ;;  %v5740_v47 = vpop.permute.xlu1 %5739  ;;  %v14623_v63 = vadd.f32 %v9720_v0, %v9656_v17  ;;  %v9723_v58 = vld [vmem:[%s11736_s22 + $0x6f8] sm:$0xff] }
 0x473   : >> { %v6461_v6 = vadd.f32 %v6397_v62, %v5981_v59  ;;  %v5738_v4 = vpop.permute.xlu0 %5737  ;;  %6067 = vrot.lane.b32.xlu1 %v14574_v2, %s10592_s26  ;;  %v14631_v62 = vadd.f32 %v9723_v58, %v9659_v52 }
 0x474   : >> { %v5853_v0 = vsel %vm883_vm1, %v5738_v4, %v5740_v47 }
 0x475   : >> { %v6523_v53 = vpack.c.bf16 %v6463_v26, %v6461_v6  ;;  %6065 = vrot.lane.b32.xlu0 %v14562_v23, %s10592_s26  ;;  %v5744_v15 = vpop.permute.xlu1 %5743  ;;  %v5986_v46 = vmul.f32 %v5853_v0, %v19025_v18 }
 0x476   : >> { %v8029_v9 = vld [vmem:[#allocation2 + $0x318] sm:$0xff] }
 0x477   : >> { %8124 = vmatprep.subr.bf16.mxu1 %v8029_v9  ;;  %v5742_v59 = vpop.permute.xlu0 %5741  ;;  %5779 = vrot.lane.b32.xlu1 %v14619_v25, %s10591_s23 }
 0x478   : >> { %8125 = vmatpush1.bf16.msra.mxu1 %v6523_v53  ;;  %v5854_v6 = vsel %vm883_vm1, %v5742_v59, %v5744_v15 }
 0x479   : >> { %5777 = vrot.lane.b32.xlu0 %v14623_v63, %s10591_s23  ;;  %v6156_v56 = vpop.permute.xlu1 %6155  ;;  %v5988_v9 = vmul.f32 %v5854_v6, %v19025_v18 }
 0x47b   : >> { %v6154_v26 = vpop.permute.xlu0 %6153  ;;  %5783 = vrot.lane.b32.xlu1 %v14631_v62, %s10591_s23 }
 0x47c   : >> { %v6269_v17 = vsel %vm1311_vm0, %v6154_v26, %v6156_v56 }
 0x47d   : >> { %5781 = vrot.lane.b32.xlu0 %v14635_v41, %s10591_s23  ;;  %v6160_v53 = vpop.permute.xlu1 %6159  ;;  %v6402_v52 = vmul.f32 %v6269_v17, %v19024_v5 }
 0x47f   : >> { %v6158_v58 = vpop.permute.xlu0 %6157  ;;  %6195 = vrot.lane.b32.xlu1 %v14619_v25, %s10593_s27  ;;  %v6466_v15 = vadd.f32 %v6402_v52, %v5986_v46 }
 0x480   : >> { %v6270_v61 = vsel %vm1311_vm0, %v6158_v58, %v6160_v53 }
 0x481   : >> { %v6404_v56 = vmul.f32 %v6270_v61, %v19024_v5  ;;  %6193 = vrot.lane.b32.xlu0 %v14623_v63, %s10593_s27  ;;  %v5604_v47 = vpop.permute.xlu1 %5603 }
 0x482   : >> { %v5950_v53 = vsel %vm883_vm1, %v5604_v47, %v5742_v59 }
 0x483   : >> { %v6468_v31 = vadd.f32 %v6404_v56, %v5988_v9  ;;  %v5602_v55 = vpop.permute.xlu0 %5601  ;;  %6199 = vrot.lane.b32.xlu1 %v14631_v62, %s10593_s27  ;;  %v5987_v46 = vmul.f32 %v5950_v53, %v19026_v38 }
 0x484   : >> { %v5949_v0 = vsel %vm883_vm1, %v5602_v55, %v5738_v4  ;;  %v9661_v4 = vld [vmem:[%s11736_s22 + $0x508] sm:$0xff] }
 0x485   : >> { %v6526_v17 = vpack.c.bf16 %v6468_v31, %v6466_v15  ;;  %6197 = vrot.lane.b32.xlu0 %v14635_v41, %s10593_s27  ;;  %v6052_v6 = vpop.permute.xlu1 %6051  ;;  %v5985_v59 = vmul.f32 %v5949_v0, %v19026_v38  ;;  %v9660_v15 = vld [vmem:[%s11736_s22 + $0x500] sm:$0xff] }
 0x486   : >> { %v6366_v52 = vsel %vm1311_vm0, %v6052_v6, %v6158_v58  ;;  %v9725_v58 = vld [vmem:[%s11736_s22 + $0x708] sm:$0xff] }
 0x487   : >> { %6559 = vst.msk [vmem:[#allocation2 + $0x328] sm:$0xff] %vm1612_vm2, %v6526_v17  ;;  %v6050_v61 = vpop.permute.xlu0 %6049  ;;  %v6403_v31 = vmul.f32 %v6366_v52, %v19027_v32  ;;  %5623 = vrot.lane.b32.xlu1 %v14631_v62, %s10590_s9  ;;  %v14676_v0 = vadd.f32 %v9725_v58, %v9661_v4  ;;  %v14692_v4 = vadd.f32 %v9726_v49, %v9662_v16 }
 0x488   : >> { %v6365_v9 = vsel %vm1311_vm0, %v6050_v61, %v6154_v26  ;;  %v9724_v26 = vld [vmem:[%s11736_s22 + $0x700] sm:$0xff]  ;;  %v9663_v61 = vld [vmem:[%s11736_s22 + $0x518] sm:$0xff] }
 0x489   : >> { %v6401_v55 = vmul.f32 %v6365_v9, %v19027_v32  ;;  %5621 = vrot.lane.b32.xlu0 %v14619_v25, %s10590_s9  ;;  %v6467_v56 = vadd.f32 %v6403_v31, %v5987_v46  ;;  %v5748_v47 = vpop.permute.xlu1 %5747  ;;  %v14680_v52 = vadd.f32 %v9724_v26, %v9660_v15  ;;  %v9727_v9 = vld [vmem:[%s11736_s22 + $0x718] sm:$0xff]  ;;  %19029 = vst [vmem:[#allocation305_spill] sm:$0xff] %v14692_v4 }
 0x48b   : >> { %v6465_v17 = vadd.f32 %v6401_v55, %v5985_v59  ;;  %v5746_v53 = vpop.permute.xlu0 %5745  ;;  %6071 = vrot.lane.b32.xlu1 %v14631_v62, %s10592_s26  ;;  %v14688_v55 = vadd.f32 %v9727_v9, %v9663_v61 }
 0x48c   : >> { %v5855_v26 = vsel %vm883_vm1, %v5746_v53, %v5748_v47 }
 0x48d   : >> { %v6525_v6 = vpack.c.bf16 %v6467_v56, %v6465_v17  ;;  %6069 = vrot.lane.b32.xlu0 %v14619_v25, %s10592_s26  ;;  %v5752_v46 = vpop.permute.xlu1 %5751  ;;  %19028 = vst [vmem:[#allocation328_spill] sm:$0xff] %v14688_v55  ;;  %v5990_v16 = vmul.f32 %v5855_v26, %v19025_v18 }
 0x48e   : >> { %v8031_v31 = vld [vmem:[#allocation2 + $0x328] sm:$0xff] }
 0x48f   : >> { %8126 = vmatprep.subr.bf16.mxu1 %v8031_v31  ;;  %v5750_v59 = vpop.permute.xlu0 %5749  ;;  %5787 = vrot.lane.b32.xlu1 %v14676_v0, %s10591_s23 }
 0x490   : >> { %8127 = vmatpush1.bf16.msra.mxu1 %v6525_v6  ;;  %v5856_v17 = vsel %vm883_vm1, %v5750_v59, %v5752_v46 }
 0x491   : >> { %5785 = vrot.lane.b32.xlu0 %v14680_v52, %s10591_s23  ;;  %v6164_v58 = vpop.permute.xlu1 %6163  ;;  %v5992_v31 = vmul.f32 %v5856_v17, %v19025_v18 }
 0x493   : >> { %v6162_v56 = vpop.permute.xlu0 %6161  ;;  %5791 = vrot.lane.b32.xlu1 %v14688_v55, %s10591_s23 }
 0x494   : >> { %v6271_v15 = vsel %vm1311_vm0, %v6162_v56, %v6164_v58 }
 0x495   : >> { %5789 = vrot.lane.b32.xlu0 %v14692_v4, %s10591_s23  ;;  %v6168_v6 = vpop.permute.xlu1 %6167  ;;  %v6406_v61 = vmul.f32 %v6271_v15, %v19024_v5 }
 0x497   : >> { %v6166_v9 = vpop.permute.xlu0 %6165  ;;  %6203 = vrot.lane.b32.xlu1 %v14676_v0, %s10593_s27  ;;  %v6470_v46 = vadd.f32 %v6406_v61, %v5990_v16 }
 0x498   : >> { %v6272_v49 = vsel %vm1311_vm0, %v6166_v9, %v6168_v6 }
 0x499   : >> { %v6408_v58 = vmul.f32 %v6272_v49, %v19024_v5  ;;  %6201 = vrot.lane.b32.xlu0 %v14680_v52, %s10593_s27  ;;  %v5608_v47 = vpop.permute.xlu1 %5607 }
 0x49a   : >> { %v5952_v6 = vsel %vm883_vm1, %v5608_v47, %v5750_v59 }
 0x49b   : >> { %v6472_v28 = vadd.f32 %v6408_v58, %v5992_v31  ;;  %v5606_v43 = vpop.permute.xlu0 %5605  ;;  %6207 = vrot.lane.b32.xlu1 %v14688_v55, %s10593_s27  ;;  %v5991_v16 = vmul.f32 %v5952_v6, %v19026_v38 }
 0x49c   : >> { %v5951_v26 = vsel %vm883_vm1, %v5606_v43, %v5746_v53  ;;  %v9665_v53 = vld [vmem:[%s11736_s22 + $0x528] sm:$0xff] }
 0x49d   : >> { %v6528_v15 = vpack.c.bf16 %v6472_v28, %v6470_v46  ;;  %6205 = vrot.lane.b32.xlu0 %v14692_v4, %s10593_s27  ;;  %v6056_v17 = vpop.permute.xlu1 %6055  ;;  %v5989_v59 = vmul.f32 %v5951_v26, %v19026_v38  ;;  %v9664_v46 = vld [vmem:[%s11736_s22 + $0x520] sm:$0xff] }
 0x49e   : >> { %v6368_v61 = vsel %vm1311_vm0, %v6056_v17, %v6166_v9  ;;  %v9729_v9 = vld [vmem:[%s11736_s22 + $0x728] sm:$0xff] }
 0x49f   : >> { %6561 = vst.msk [vmem:[#allocation2 + $0x338] sm:$0xff] %vm1612_vm2, %v6528_v15  ;;  %v6054_v49 = vpop.permute.xlu0 %6053  ;;  %v6407_v28 = vmul.f32 %v6368_v61, %v19027_v32  ;;  %5627 = vrot.lane.b32.xlu1 %v14688_v55, %s10590_s9  ;;  %v14733_v26 = vadd.f32 %v9729_v9, %v9665_v53  ;;  %v14749_v53 = vadd.f32 %v9730_v13, %v9666_v22 }
 0x4a0   : >> { %v6367_v31 = vsel %vm1311_vm0, %v6054_v49, %v6162_v56  ;;  %v9728_v56 = vld [vmem:[%s11736_s22 + $0x720] sm:$0xff]  ;;  %v9667_v49 = vld [vmem:[%s11736_s22 + $0x538] sm:$0xff] }
 0x4a1   : >> { %v6405_v43 = vmul.f32 %v6367_v31, %v19027_v32  ;;  %5625 = vrot.lane.b32.xlu0 %v14676_v0, %s10590_s9  ;;  %v6471_v58 = vadd.f32 %v6407_v28, %v5991_v16  ;;  %v5756_v47 = vpop.permute.xlu1 %5755  ;;  %19030 = vst [vmem:[#allocation326_spill] sm:$0xff] %v14733_v26  ;;  %v14737_v61 = vadd.f32 %v9728_v56, %v9664_v46  ;;  %v9731_v31 = vld [vmem:[%s11736_s22 + $0x738] sm:$0xff]  ;;  %19033 = vst [vmem:[#allocation304_spill] sm:$0xff] %v14749_v53 }
 0x4a3   : >> { %v6469_v15 = vadd.f32 %v6405_v43, %v5989_v59  ;;  %v5754_v6 = vpop.permute.xlu0 %5753  ;;  %6075 = vrot.lane.b32.xlu1 %v14688_v55, %s10592_s26  ;;  %19031 = vst [vmem:[#allocation329_spill] sm:$0xff] %v14737_v61  ;;  %v14745_v43 = vadd.f32 %v9731_v31, %v9667_v49 }
 0x4a4   : >> { %v5857_v56 = vsel %vm883_vm1, %v5754_v6, %v5756_v47 }
 0x4a5   : >> { %v6527_v17 = vpack.c.bf16 %v6471_v58, %v6469_v15  ;;  %6073 = vrot.lane.b32.xlu0 %v14676_v0, %s10592_s26  ;;  %v5760_v16 = vpop.permute.xlu1 %5759  ;;  %19032 = vst [vmem:[#allocation273_spill] sm:$0xff] %v14745_v43  ;;  %v5994_v13 = vmul.f32 %v5857_v56, %v19025_v18 }
 0x4a6   : >> { %v8033_v28 = vld [vmem:[#allocation2 + $0x338] sm:$0xff] }
 0x4a7   : >> { %8128 = vmatprep.subr.bf16.mxu1 %v8033_v28  ;;  %v5758_v59 = vpop.permute.xlu0 %5757  ;;  %5795 = vrot.lane.b32.xlu1 %v14733_v26, %s10591_s23 }
 0x4a8   : >> { %8129 = vmatpush1.bf16.msra.mxu1 %v6527_v17  ;;  %v5858_v15 = vsel %vm883_vm1, %v5758_v59, %v5760_v16 }
 0x4a9   : >> { %5793 = vrot.lane.b32.xlu0 %v14737_v61, %s10591_s23  ;;  %v6172_v9 = vpop.permute.xlu1 %6171  ;;  %v5996_v28 = vmul.f32 %v5858_v15, %v19025_v18 }
 0x4ab   : >> { %v6170_v58 = vpop.permute.xlu0 %6169  ;;  %5799 = vrot.lane.b32.xlu1 %v14745_v43, %s10591_s23 }
 0x4ac   : >> { %v6273_v46 = vsel %vm1311_vm0, %v6170_v58, %v6172_v9 }
 0x4ad   : >> { %5797 = vrot.lane.b32.xlu0 %v14749_v53, %s10591_s23  ;;  %v6176_v17 = vpop.permute.xlu1 %6175  ;;  %v6410_v49 = vmul.f32 %v6273_v46, %v19024_v5 }
 0x4af   : >> { %v6174_v31 = vpop.permute.xlu0 %6173  ;;  %6211 = vrot.lane.b32.xlu1 %v14733_v26, %s10593_s27  ;;  %v6474_v16 = vadd.f32 %v6410_v49, %v5994_v13 }
 0x4b0   : >> { %v6274_v22 = vsel %vm1311_vm0, %v6174_v31, %v6176_v17 }
 0x4b1   : >> { %v6412_v9 = vmul.f32 %v6274_v22, %v19024_v5  ;;  %6209 = vrot.lane.b32.xlu0 %v14737_v61, %s10593_s27  ;;  %v5612_v47 = vpop.permute.xlu1 %5611  ;;  %v9734_v61 = vld [vmem:[%s11736_s22 + $0x750] sm:$0xff] }
 0x4b2   : >> { %v5954_v17 = vsel %vm883_vm1, %v5612_v47, %v5758_v59 }
 0x4b3   : >> { %v6476_v1 = vadd.f32 %v6412_v9, %v5996_v28  ;;  %v5610_v4 = vpop.permute.xlu0 %5609  ;;  %6215 = vrot.lane.b32.xlu1 %v14745_v43, %s10593_s27  ;;  %v5995_v13 = vmul.f32 %v5954_v17, %v19026_v38 }
 0x4b4   : >> { %v5953_v56 = vsel %vm883_vm1, %v5610_v4, %v5754_v6  ;;  %v9669_v6 = vld [vmem:[%s11736_s22 + $0x548] sm:$0xff] }
 0x4b5   : >> { %v6530_v46 = vpack.c.bf16 %v6476_v1, %v6474_v16  ;;  %6213 = vrot.lane.b32.xlu0 %v14749_v53, %s10593_s27  ;;  %v6060_v15 = vpop.permute.xlu1 %6059  ;;  %v5993_v59 = vmul.f32 %v5953_v56, %v19026_v38  ;;  %v9668_v16 = vld [vmem:[%s11736_s22 + $0x540] sm:$0xff]  ;;  %v9670_v53 = vld [vmem:[%s11736_s22 + $0x550] sm:$0xff] }
 0x4b6   : >> { %v6370_v49 = vsel %vm1311_vm0, %v6060_v15, %v6174_v31  ;;  %v9733_v31 = vld [vmem:[%s11736_s22 + $0x748] sm:$0xff] }
 0x4b7   : >> { %6563 = vst.msk [vmem:[#allocation2 + $0x348] sm:$0xff] %vm1612_vm2, %v6530_v46  ;;  %v6058_v22 = vpop.permute.xlu0 %6057  ;;  %v6411_v1 = vmul.f32 %v6370_v49, %v19027_v32  ;;  %5631 = vrot.lane.b32.xlu1 %v14745_v43, %s10590_s9  ;;  %v14790_v56 = vadd.f32 %v9733_v31, %v9669_v6  ;;  %v14806_v6 = vadd.f32 %v9734_v61, %v9670_v53 }
 0x4b8   : >> { %v6369_v28 = vsel %vm1311_vm0, %v6058_v22, %v6170_v58  ;;  %v9732_v58 = vld [vmem:[%s11736_s22 + $0x740] sm:$0xff]  ;;  %v9671_v22 = vld [vmem:[%s11736_s22 + $0x558] sm:$0xff] }
 0x4b9   : >> { %v6409_v4 = vmul.f32 %v6369_v28, %v19027_v32  ;;  %5629 = vrot.lane.b32.xlu0 %v14733_v26, %s10590_s9  ;;  %v6475_v9 = vadd.f32 %v6411_v1, %v5995_v13  ;;  %v5764_v47 = vpop.permute.xlu1 %5763  ;;  %19034 = vst [vmem:[#allocation331_spill] sm:$0xff] %v14790_v56  ;;  %v14794_v49 = vadd.f32 %v9732_v58, %v9668_v16  ;;  %v9735_v28 = vld [vmem:[%s11736_s22 + $0x758] sm:$0xff]  ;;  %19037 = vst [vmem:[#allocation277_spill] sm:$0xff] %v14806_v6 }
 0x4bb   : >> { %v6473_v46 = vadd.f32 %v6409_v4, %v5993_v59  ;;  %v5762_v17 = vpop.permute.xlu0 %5761  ;;  %6079 = vrot.lane.b32.xlu1 %v14745_v43, %s10592_s26  ;;  %19035 = vst [vmem:[#allocation307_spill] sm:$0xff] %v14794_v49  ;;  %v14802_v4 = vadd.f32 %v9735_v28, %v9671_v22 }
 0x4bc   : >> { %v5859_v58 = vsel %vm883_vm1, %v5762_v17, %v5764_v47 }
 0x4bd   : >> { %v6529_v15 = vpack.c.bf16 %v6475_v9, %v6473_v46  ;;  %6077 = vrot.lane.b32.xlu0 %v14733_v26, %s10592_s26  ;;  %v5768_v13 = vpop.permute.xlu1 %5767  ;;  %19036 = vst [vmem:[#allocation362_spill] sm:$0xff] %v14802_v4  ;;  %v5998_v53 = vmul.f32 %v5859_v58, %v19025_v18 }
 0x4be   : >> { %v8035_v1 = vld [vmem:[#allocation2 + $0x348] sm:$0xff] }
 0x4bf   : >> { %8130 = vmatprep.subr.bf16.mxu1 %v8035_v1  ;;  %v5766_v59 = vpop.permute.xlu0 %5765  ;;  %5803 = vrot.lane.b32.xlu1 %v14790_v56, %s10591_s23 }
 0x4c0   : >> { %8131 = vmatpush1.bf16.msra.mxu1 %v6529_v15  ;;  %v5860_v46 = vsel %vm883_vm1, %v5766_v59, %v5768_v13 }
 0x4c1   : >> { %5801 = vrot.lane.b32.xlu0 %v14794_v49, %s10591_s23  ;;  %v6180_v31 = vpop.permute.xlu1 %6179  ;;  %v6000_v1 = vmul.f32 %v5860_v46, %v19025_v18 }
 0x4c3   : >> { %v6178_v9 = vpop.permute.xlu0 %6177  ;;  %5807 = vrot.lane.b32.xlu1 %v14802_v4, %s10591_s23 }
 0x4c4   : >> { %v6275_v16 = vsel %vm1311_vm0, %v6178_v9, %v6180_v31 }
 0x4c5   : >> { %5805 = vrot.lane.b32.xlu0 %v14806_v6, %s10591_s23  ;;  %v6184_v15 = vpop.permute.xlu1 %6183  ;;  %v6414_v22 = vmul.f32 %v6275_v16, %v19024_v5 }
 0x4c7   : >> { %v6182_v28 = vpop.permute.xlu0 %6181  ;;  %6219 = vrot.lane.b32.xlu1 %v14790_v56, %s10593_s27  ;;  %v6478_v13 = vadd.f32 %v6414_v22, %v5998_v53 }
 0x4c8   : >> { %v6276_v61 = vsel %vm1311_vm0, %v6182_v28, %v6184_v15 }
 0x4c9   : >> { %v6416_v31 = vmul.f32 %v6276_v61, %v19024_v5  ;;  %6217 = vrot.lane.b32.xlu0 %v14794_v49, %s10593_s27  ;;  %v5616_v47 = vpop.permute.xlu1 %5615  ;;  %v9738_v49 = vld [vmem:[%s11736_s22 + $0x770] sm:$0xff] }
 0x4ca   : >> { %v5956_v15 = vsel %vm883_vm1, %v5616_v47, %v5766_v59 }
 0x4cb   : >> { %v6480_v43 = vadd.f32 %v6416_v31, %v6000_v1  ;;  %v5614_v26 = vpop.permute.xlu0 %5613  ;;  %6223 = vrot.lane.b32.xlu1 %v14802_v4, %s10593_s27  ;;  %v5999_v53 = vmul.f32 %v5956_v15, %v19026_v38 }
 0x4cc   : >> { %v5955_v58 = vsel %vm883_vm1, %v5614_v26, %v5762_v17  ;;  %v9673_v17 = vld [vmem:[%s11736_s22 + $0x568] sm:$0xff] }
 0x4cd   : >> { %v6532_v16 = vpack.c.bf16 %v6480_v43, %v6478_v13  ;;  %6221 = vrot.lane.b32.xlu0 %v14806_v6, %s10593_s27  ;;  %v6064_v46 = vpop.permute.xlu1 %6063  ;;  %v5997_v59 = vmul.f32 %v5955_v58, %v19026_v38  ;;  %v9672_v13 = vld [vmem:[%s11736_s22 + $0x560] sm:$0xff]  ;;  %v9674_v6 = vld [vmem:[%s11736_s22 + $0x570] sm:$0xff] }
 0x4ce   : >> { %v6372_v22 = vsel %vm1311_vm0, %v6064_v46, %v6182_v28  ;;  %v9737_v28 = vld [vmem:[%s11736_s22 + $0x768] sm:$0xff] }
 0x4cf   : >> { %6565 = vst.msk [vmem:[#allocation2 + $0x358] sm:$0xff] %vm1612_vm2, %v6532_v16  ;;  %v6062_v61 = vpop.permute.xlu0 %6061  ;;  %v6415_v43 = vmul.f32 %v6372_v22, %v19027_v32  ;;  %5635 = vrot.lane.b32.xlu1 %v14802_v4, %s10590_s9  ;;  %v14847_v58 = vadd.f32 %v9737_v28, %v9673_v17  ;;  %v14863_v17 = vadd.f32 %v9738_v49, %v9674_v6 }
 0x4d0   : >> { %v6371_v1 = vsel %vm1311_vm0, %v6062_v61, %v6178_v9  ;;  %v9736_v9 = vld [vmem:[%s11736_s22 + $0x760] sm:$0xff]  ;;  %v9675_v61 = vld [vmem:[%s11736_s22 + $0x578] sm:$0xff] }
 0x4d1   : >> { %v6413_v26 = vmul.f32 %v6371_v1, %v19027_v32  ;;  %5633 = vrot.lane.b32.xlu0 %v14790_v56, %s10590_s9  ;;  %v6479_v31 = vadd.f32 %v6415_v43, %v5999_v53  ;;  %v5772_v47 = vpop.permute.xlu1 %5771  ;;  %19038 = vst [vmem:[#allocation364_spill] sm:$0xff] %v14847_v58  ;;  %v14851_v22 = vadd.f32 %v9736_v9, %v9672_v13  ;;  %v9739_v1 = vld [vmem:[%s11736_s22 + $0x778] sm:$0xff]  ;;  %19041 = vst [vmem:[#allocation306_spill] sm:$0xff] %v14863_v17 }
 0x4d3   : >> { %v6477_v16 = vadd.f32 %v6413_v26, %v5997_v59  ;;  %v5770_v15 = vpop.permute.xlu0 %5769  ;;  %6083 = vrot.lane.b32.xlu1 %v14802_v4, %s10592_s26  ;;  %19039 = vst [vmem:[#allocation255_spill] sm:$0xff] %v14851_v22  ;;  %v14859_v26 = vadd.f32 %v9739_v1, %v9675_v61 }
 0x4d4   : >> { %v5861_v9 = vsel %vm883_vm1, %v5770_v15, %v5772_v47 }
 0x4d5   : >> { %v6531_v46 = vpack.c.bf16 %v6479_v31, %v6477_v16  ;;  %6081 = vrot.lane.b32.xlu0 %v14790_v56, %s10592_s26  ;;  %v5776_v53 = vpop.permute.xlu1 %5775  ;;  %19040 = vst [vmem:[#allocation332_spill] sm:$0xff] %v14859_v26  ;;  %v6002_v6 = vmul.f32 %v5861_v9, %v19025_v18 }
 0x4d6   : >> { %v8037_v43 = vld [vmem:[#allocation2 + $0x358] sm:$0xff] }
 0x4d7   : >> { %8132 = vmatprep.subr.bf16.mxu1 %v8037_v43  ;;  %v5774_v59 = vpop.permute.xlu0 %5773  ;;  %5811 = vrot.lane.b32.xlu1 %v14847_v58, %s10591_s23 }
 0x4d8   : >> { %8133 = vmatpush1.bf16.msra.mxu1 %v6531_v46  ;;  %v5862_v16 = vsel %vm883_vm1, %v5774_v59, %v5776_v53 }
 0x4d9   : >> { %5809 = vrot.lane.b32.xlu0 %v14851_v22, %s10591_s23  ;;  %v6188_v28 = vpop.permute.xlu1 %6187  ;;  %v6004_v43 = vmul.f32 %v5862_v16, %v19025_v18 }
 0x4db   : >> { %v6186_v31 = vpop.permute.xlu0 %6185  ;;  %5815 = vrot.lane.b32.xlu1 %v14859_v26, %s10591_s23 }
 0x4dc   : >> { %v6277_v13 = vsel %vm1311_vm0, %v6186_v31, %v6188_v28 }
 0x4dd   : >> { %5813 = vrot.lane.b32.xlu0 %v14863_v17, %s10591_s23  ;;  %v6192_v46 = vpop.permute.xlu1 %6191  ;;  %v6418_v61 = vmul.f32 %v6277_v13, %v19024_v5 }
 0x4df   : >> { %v6190_v1 = vpop.permute.xlu0 %6189  ;;  %6227 = vrot.lane.b32.xlu1 %v14847_v58, %s10593_s27  ;;  %v6482_v53 = vadd.f32 %v6418_v61, %v6002_v6 }
 0x4e0   : >> { %v6278_v49 = vsel %vm1311_vm0, %v6190_v1, %v6192_v46 }
 0x4e1   : >> { %v6420_v28 = vmul.f32 %v6278_v49, %v19024_v5  ;;  %6225 = vrot.lane.b32.xlu0 %v14851_v22, %s10593_s27  ;;  %v5620_v47 = vpop.permute.xlu1 %5619  ;;  %v9742_v22 = vld [vmem:[%s11736_s22 + $0x790] sm:$0xff] }
 0x4e2   : >> { %v5958_v46 = vsel %vm883_vm1, %v5620_v47, %v5774_v59 }
 0x4e3   : >> { %v6484_v4 = vadd.f32 %v6420_v28, %v6004_v43  ;;  %v5618_v56 = vpop.permute.xlu0 %5617  ;;  %6231 = vrot.lane.b32.xlu1 %v14859_v26, %s10593_s27  ;;  %v6003_v6 = vmul.f32 %v5958_v46, %v19026_v38 }
 0x4e4   : >> { %v5957_v9 = vsel %vm883_vm1, %v5618_v56, %v5770_v15  ;;  %v9677_v15 = vld [vmem:[%s11736_s22 + $0x588] sm:$0xff] }
 0x4e5   : >> { %v6534_v13 = vpack.c.bf16 %v6484_v4, %v6482_v53  ;;  %6229 = vrot.lane.b32.xlu0 %v14863_v17, %s10593_s27  ;;  %v6068_v16 = vpop.permute.xlu1 %6067  ;;  %v6001_v59 = vmul.f32 %v5957_v9, %v19026_v38  ;;  %v9676_v53 = vld [vmem:[%s11736_s22 + $0x580] sm:$0xff]  ;;  %v9678_v17 = vld [vmem:[%s11736_s22 + $0x590] sm:$0xff] }
 0x4e6   : >> { %v6374_v61 = vsel %vm1311_vm0, %v6068_v16, %v6190_v1  ;;  %v9741_v1 = vld [vmem:[%s11736_s22 + $0x788] sm:$0xff] }
 0x4e7   : >> { %6567 = vst.msk [vmem:[#allocation2 + $0x368] sm:$0xff] %vm1612_vm2, %v6534_v13  ;;  %v6066_v49 = vpop.permute.xlu0 %6065  ;;  %v6419_v4 = vmul.f32 %v6374_v61, %v19027_v32  ;;  %5639 = vrot.lane.b32.xlu1 %v14859_v26, %s10590_s9  ;;  %v14904_v9 = vadd.f32 %v9741_v1, %v9677_v15  ;;  %v14920_v15 = vadd.f32 %v9742_v22, %v9678_v17 }
 0x4e8   : >> { %v6373_v43 = vsel %vm1311_vm0, %v6066_v49, %v6186_v31  ;;  %v9740_v31 = vld [vmem:[%s11736_s22 + $0x780] sm:$0xff]  ;;  %v9679_v49 = vld [vmem:[%s11736_s22 + $0x598] sm:$0xff] }
 0x4e9   : >> { %v6417_v56 = vmul.f32 %v6373_v43, %v19027_v32  ;;  %5637 = vrot.lane.b32.xlu0 %v14847_v58, %s10590_s9  ;;  %v6483_v28 = vadd.f32 %v6419_v4, %v6003_v6  ;;  %v5780_v47 = vpop.permute.xlu1 %5779  ;;  %19042 = vst [vmem:[#allocation330_spill] sm:$0xff] %v14904_v9  ;;  %v14908_v61 = vadd.f32 %v9740_v31, %v9676_v53  ;;  %v9743_v43 = vld [vmem:[%s11736_s22 + $0x798] sm:$0xff]  ;;  %19045 = vst [vmem:[#allocation259_spill] sm:$0xff] %v14920_v15 }
 0x4eb   : >> { %v6481_v13 = vadd.f32 %v6417_v56, %v6001_v59  ;;  %v5778_v46 = vpop.permute.xlu0 %5777  ;;  %6087 = vrot.lane.b32.xlu1 %v14859_v26, %s10592_s26  ;;  %19043 = vst [vmem:[#allocation333_spill] sm:$0xff] %v14908_v61  ;;  %v14916_v56 = vadd.f32 %v9743_v43, %v9679_v49 }
 0x4ec   : >> { %v5863_v31 = vsel %vm883_vm1, %v5778_v46, %v5780_v47 }
 0x4ed   : >> { %v6533_v16 = vpack.c.bf16 %v6483_v28, %v6481_v13  ;;  %6085 = vrot.lane.b32.xlu0 %v14847_v58, %s10592_s26  ;;  %v5784_v6 = vpop.permute.xlu1 %5783  ;;  %19044 = vst [vmem:[#allocation276_spill] sm:$0xff] %v14916_v56  ;;  %v6006_v17 = vmul.f32 %v5863_v31, %v19025_v18 }
 0x4ee   : >> { %v8039_v4 = vld [vmem:[#allocation2 + $0x368] sm:$0xff] }
 0x4ef   : >> { %8134 = vmatprep.subr.bf16.mxu1 %v8039_v4  ;;  %v5782_v59 = vpop.permute.xlu0 %5781  ;;  %5819 = vrot.lane.b32.xlu1 %v14904_v9, %s10591_s23 }
 0x4f0   : >> { %8135 = vmatpush1.bf16.msra.mxu1 %v6533_v16  ;;  %v5864_v13 = vsel %vm883_vm1, %v5782_v59, %v5784_v6 }
 0x4f1   : >> { %5817 = vrot.lane.b32.xlu0 %v14908_v61, %s10591_s23  ;;  %v6196_v1 = vpop.permute.xlu1 %6195  ;;  %v6008_v4 = vmul.f32 %v5864_v13, %v19025_v18 }
 0x4f3   : >> { %v6194_v28 = vpop.permute.xlu0 %6193  ;;  %5823 = vrot.lane.b32.xlu1 %v14916_v56, %s10591_s23 }
 0x4f4   : >> { %v6279_v53 = vsel %vm1311_vm0, %v6194_v28, %v6196_v1 }
 0x4f5   : >> { %5821 = vrot.lane.b32.xlu0 %v14920_v15, %s10591_s23  ;;  %v6200_v16 = vpop.permute.xlu1 %6199  ;;  %v6422_v49 = vmul.f32 %v6279_v53, %v19024_v5 }
 0x4f7   : >> { %v6198_v43 = vpop.permute.xlu0 %6197  ;;  %6235 = vrot.lane.b32.xlu1 %v14904_v9, %s10593_s27  ;;  %v6486_v6 = vadd.f32 %v6422_v49, %v6006_v17 }
 0x4f8   : >> { %v6280_v22 = vsel %vm1311_vm0, %v6198_v43, %v6200_v16 }
 0x4f9   : >> { %v6424_v1 = vmul.f32 %v6280_v22, %v19024_v5  ;;  %6233 = vrot.lane.b32.xlu0 %v14908_v61, %s10593_s27  ;;  %v5624_v47 = vpop.permute.xlu1 %5623  ;;  %v9746_v61 = vld [vmem:[%s11736_s22 + $0x7b0] sm:$0xff] }
 0x4fa   : >> { %v5960_v16 = vsel %vm883_vm1, %v5624_v47, %v5782_v59 }
 0x4fb   : >> { %v6488_v26 = vadd.f32 %v6424_v1, %v6008_v4  ;;  %v5622_v58 = vpop.permute.xlu0 %5621  ;;  %6239 = vrot.lane.b32.xlu1 %v14916_v56, %s10593_s27  ;;  %v6007_v17 = vmul.f32 %v5960_v16, %v19026_v38 }
 0x4fc   : >> { %v5959_v31 = vsel %vm883_vm1, %v5622_v58, %v5778_v46  ;;  %v9681_v46 = vld [vmem:[%s11736_s22 + $0x5a8] sm:$0xff] }
 0x4fd   : >> { %v6536_v53 = vpack.c.bf16 %v6488_v26, %v6486_v6  ;;  %6237 = vrot.lane.b32.xlu0 %v14920_v15, %s10593_s27  ;;  %v6072_v13 = vpop.permute.xlu1 %6071  ;;  %v6005_v59 = vmul.f32 %v5959_v31, %v19026_v38  ;;  %v9680_v6 = vld [vmem:[%s11736_s22 + $0x5a0] sm:$0xff]  ;;  %v9682_v15 = vld [vmem:[%s11736_s22 + $0x5b0] sm:$0xff] }
 0x4fe   : >> { %v6376_v49 = vsel %vm1311_vm0, %v6072_v13, %v6198_v43  ;;  %v9745_v43 = vld [vmem:[%s11736_s22 + $0x7a8] sm:$0xff] }
 0x4ff   : >> { %6569 = vst.msk [vmem:[#allocation2 + $0x378] sm:$0xff] %vm1612_vm2, %v6536_v53  ;;  %v6070_v22 = vpop.permute.xlu0 %6069  ;;  %v6423_v26 = vmul.f32 %v6376_v49, %v19027_v32  ;;  %5643 = vrot.lane.b32.xlu1 %v14916_v56, %s10590_s9  ;;  %v14961_v31 = vadd.f32 %v9745_v43, %v9681_v46  ;;  %v14977_v46 = vadd.f32 %v9746_v61, %v9682_v15 }
 0x500   : >> { %v6375_v4 = vsel %vm1311_vm0, %v6070_v22, %v6194_v28  ;;  %v9744_v28 = vld [vmem:[%s11736_s22 + $0x7a0] sm:$0xff]  ;;  %v9683_v22 = vld [vmem:[%s11736_s22 + $0x5b8] sm:$0xff] }
 0x501   : >> { %v6421_v58 = vmul.f32 %v6375_v4, %v19027_v32  ;;  %5641 = vrot.lane.b32.xlu0 %v14904_v9, %s10590_s9  ;;  %v6487_v1 = vadd.f32 %v6423_v26, %v6007_v17  ;;  %v5788_v47 = vpop.permute.xlu1 %5787  ;;  %19046 = vst [vmem:[#allocation363_spill] sm:$0xff] %v14961_v31  ;;  %v14965_v49 = vadd.f32 %v9744_v28, %v9680_v6  ;;  %v9747_v4 = vld [vmem:[%s11736_s22 + $0x7b8] sm:$0xff]  ;;  %19049 = vst [vmem:[#allocation366_spill] sm:$0xff] %v14977_v46 }
 0x503   : >> { %v6485_v53 = vadd.f32 %v6421_v58, %v6005_v59  ;;  %v5786_v16 = vpop.permute.xlu0 %5785  ;;  %6091 = vrot.lane.b32.xlu1 %v14916_v56, %s10592_s26  ;;  %19047 = vst [vmem:[#allocation335_spill] sm:$0xff] %v14965_v49  ;;  %v14973_v58 = vadd.f32 %v9747_v4, %v9683_v22 }
 0x504   : >> { %v5865_v28 = vsel %vm883_vm1, %v5786_v16, %v5788_v47 }
 0x505   : >> { %v6535_v13 = vpack.c.bf16 %v6487_v1, %v6485_v53  ;;  %6089 = vrot.lane.b32.xlu0 %v14904_v9, %s10592_s26  ;;  %v5792_v17 = vpop.permute.xlu1 %5791  ;;  %19048 = vst [vmem:[#allocation309_spill] sm:$0xff] %v14973_v58  ;;  %v6010_v15 = vmul.f32 %v5865_v28, %v19025_v18 }
 0x506   : >> { %v8041_v26 = vld [vmem:[#allocation2 + $0x378] sm:$0xff] }
 0x507   : >> { %8136 = vmatprep.subr.bf16.mxu1 %v8041_v26  ;;  %v5790_v59 = vpop.permute.xlu0 %5789  ;;  %5827 = vrot.lane.b32.xlu1 %v14961_v31, %s10591_s23 }
 0x508   : >> { %8137 = vmatpush1.bf16.msra.mxu1 %v6535_v13  ;;  %v5866_v53 = vsel %vm883_vm1, %v5790_v59, %v5792_v17 }
 0x509   : >> { %5825 = vrot.lane.b32.xlu0 %v14965_v49, %s10591_s23  ;;  %v6204_v43 = vpop.permute.xlu1 %6203  ;;  %v6012_v26 = vmul.f32 %v5866_v53, %v19025_v18 }
 0x50b   : >> { %v6202_v1 = vpop.permute.xlu0 %6201  ;;  %5831 = vrot.lane.b32.xlu1 %v14973_v58, %s10591_s23 }
 0x50c   : >> { %v6281_v6 = vsel %vm1311_vm0, %v6202_v1, %v6204_v43 }
 0x50d   : >> { %5829 = vrot.lane.b32.xlu0 %v14977_v46, %s10591_s23  ;;  %v6208_v13 = vpop.permute.xlu1 %6207  ;;  %v6426_v22 = vmul.f32 %v6281_v6, %v19024_v5 }
 0x50f   : >> { %v6206_v4 = vpop.permute.xlu0 %6205  ;;  %6243 = vrot.lane.b32.xlu1 %v14961_v31, %s10593_s27  ;;  %v6490_v17 = vadd.f32 %v6426_v22, %v6010_v15 }
 0x510   : >> { %v6282_v61 = vsel %vm1311_vm0, %v6206_v4, %v6208_v13 }
 0x511   : >> { %v6428_v43 = vmul.f32 %v6282_v61, %v19024_v5  ;;  %6241 = vrot.lane.b32.xlu0 %v14965_v49, %s10593_s27  ;;  %v5628_v47 = vpop.permute.xlu1 %5627  ;;  %v9750_v49 = vld [vmem:[%s11736_s22 + $0x7d0] sm:$0xff] }
 0x512   : >> { %v5962_v13 = vsel %vm883_vm1, %v5628_v47, %v5790_v59 }
 0x513   : >> { %v6492_v56 = vadd.f32 %v6428_v43, %v6012_v26  ;;  %v5626_v9 = vpop.permute.xlu0 %5625  ;;  %6247 = vrot.lane.b32.xlu1 %v14973_v58, %s10593_s27  ;;  %v6011_v15 = vmul.f32 %v5962_v13, %v19026_v38 }
 0x514   : >> { %v5961_v28 = vsel %vm883_vm1, %v5626_v9, %v5786_v16  ;;  %v9685_v16 = vld [vmem:[%s11736_s22 + $0x5c8] sm:$0xff] }
 0x515   : >> { %v6538_v6 = vpack.c.bf16 %v6492_v56, %v6490_v17  ;;  %6245 = vrot.lane.b32.xlu0 %v14977_v46, %s10593_s27  ;;  %v6076_v53 = vpop.permute.xlu1 %6075  ;;  %v6009_v59 = vmul.f32 %v5961_v28, %v19026_v38  ;;  %v9684_v17 = vld [vmem:[%s11736_s22 + $0x5c0] sm:$0xff]  ;;  %v9686_v46 = vld [vmem:[%s11736_s22 + $0x5d0] sm:$0xff] }
 0x516   : >> { %v6378_v22 = vsel %vm1311_vm0, %v6076_v53, %v6206_v4  ;;  %v9749_v4 = vld [vmem:[%s11736_s22 + $0x7c8] sm:$0xff] }
 0x517   : >> { %6571 = vst.msk [vmem:[#allocation2 + $0x388] sm:$0xff] %vm1612_vm2, %v6538_v6  ;;  %v6074_v61 = vpop.permute.xlu0 %6073  ;;  %v6427_v56 = vmul.f32 %v6378_v22, %v19027_v32  ;;  %5647 = vrot.lane.b32.xlu1 %v14973_v58, %s10590_s9  ;;  %v15018_v28 = vadd.f32 %v9749_v4, %v9685_v16  ;;  %v15034_v16 = vadd.f32 %v9750_v49, %v9686_v46 }
 0x518   : >> { %v6377_v26 = vsel %vm1311_vm0, %v6074_v61, %v6202_v1  ;;  %v9748_v1 = vld [vmem:[%s11736_s22 + $0x7c0] sm:$0xff]  ;;  %v9687_v61 = vld [vmem:[%s11736_s22 + $0x5d8] sm:$0xff] }
 0x519   : >> { %v6425_v9 = vmul.f32 %v6377_v26, %v19027_v32  ;;  %5645 = vrot.lane.b32.xlu0 %v14961_v31, %s10590_s9  ;;  %v6491_v43 = vadd.f32 %v6427_v56, %v6011_v15  ;;  %v5796_v47 = vpop.permute.xlu1 %5795  ;;  %19050 = vst [vmem:[#allocation308_spill] sm:$0xff] %v15018_v28  ;;  %v15022_v22 = vadd.f32 %v9748_v1, %v9684_v17  ;;  %v9751_v26 = vld [vmem:[%s11736_s22 + $0x7d8] sm:$0xff]  ;;  %19053 = vst [vmem:[#allocation311_spill] sm:$0xff] %v15034_v16 }
 0x51b   : >> { %v6489_v6 = vadd.f32 %v6425_v9, %v6009_v59  ;;  %v5794_v13 = vpop.permute.xlu0 %5793  ;;  %6095 = vrot.lane.b32.xlu1 %v14973_v58, %s10592_s26  ;;  %19051 = vst [vmem:[#allocation280_spill] sm:$0xff] %v15022_v22  ;;  %v15030_v9 = vadd.f32 %v9751_v26, %v9687_v61 }
 0x51c   : >> { %v5867_v1 = vsel %vm883_vm1, %v5794_v13, %v5796_v47 }
 0x51d   : >> { %v6537_v53 = vpack.c.bf16 %v6491_v43, %v6489_v6  ;;  %6093 = vrot.lane.b32.xlu0 %v14961_v31, %s10592_s26  ;;  %v5800_v15 = vpop.permute.xlu1 %5799  ;;  %19052 = vst [vmem:[#allocation336_spill] sm:$0xff] %v15030_v9  ;;  %v6014_v46 = vmul.f32 %v5867_v1, %v19025_v18 }
 0x51e   : >> { %v8043_v56 = vld [vmem:[#allocation2 + $0x388] sm:$0xff] }
 0x51f   : >> { %8138 = vmatprep.subr.bf16.mxu1 %v8043_v56  ;;  %v5798_v59 = vpop.permute.xlu0 %5797  ;;  %5835 = vrot.lane.b32.xlu1 %v15018_v28, %s10591_s23 }
 0x520   : >> { %8139 = vmatpush1.bf16.msra.mxu1 %v6537_v53  ;;  %v5868_v6 = vsel %vm883_vm1, %v5798_v59, %v5800_v15 }
 0x521   : >> { %5833 = vrot.lane.b32.xlu0 %v15022_v22, %s10591_s23  ;;  %v6212_v4 = vpop.permute.xlu1 %6211  ;;  %v6016_v56 = vmul.f32 %v5868_v6, %v19025_v18 }
 0x523   : >> { %v6210_v43 = vpop.permute.xlu0 %6209  ;;  %5839 = vrot.lane.b32.xlu1 %v15030_v9, %s10591_s23 }
 0x524   : >> { %v6283_v17 = vsel %vm1311_vm0, %v6210_v43, %v6212_v4 }
 0x525   : >> { %5837 = vrot.lane.b32.xlu0 %v15034_v16, %s10591_s23  ;;  %v6216_v53 = vpop.permute.xlu1 %6215  ;;  %v6430_v61 = vmul.f32 %v6283_v17, %v19024_v5 }
 0x527   : >> { %v6214_v26 = vpop.permute.xlu0 %6213  ;;  %6251 = vrot.lane.b32.xlu1 %v15018_v28, %s10593_s27  ;;  %v6494_v15 = vadd.f32 %v6430_v61, %v6014_v46 }
 0x528   : >> { %v6284_v49 = vsel %vm1311_vm0, %v6214_v26, %v6216_v53 }
 0x529   : >> { %v6432_v4 = vmul.f32 %v6284_v49, %v19024_v5  ;;  %6249 = vrot.lane.b32.xlu0 %v15022_v22, %s10593_s27  ;;  %v5632_v47 = vpop.permute.xlu1 %5631  ;;  %v9754_v22 = vld [vmem:[%s11736_s22 + $0x7f0] sm:$0xff] }
 0x52a   : >> { %v5964_v53 = vsel %vm883_vm1, %v5632_v47, %v5798_v59 }
 0x52b   : >> { %v6496_v58 = vadd.f32 %v6432_v4, %v6016_v56  ;;  %v5630_v31 = vpop.permute.xlu0 %5629  ;;  %6255 = vrot.lane.b32.xlu1 %v15030_v9, %s10593_s27  ;;  %v6015_v46 = vmul.f32 %v5964_v53, %v19026_v38 }
 0x52c   : >> { %v5963_v1 = vsel %vm883_vm1, %v5630_v31, %v5794_v13  ;;  %v9689_v13 = vld [vmem:[%s11736_s22 + $0x5e8] sm:$0xff] }
 0x52d   : >> { %v6540_v17 = vpack.c.bf16 %v6496_v58, %v6494_v15  ;;  %6253 = vrot.lane.b32.xlu0 %v15034_v16, %s10593_s27  ;;  %v6080_v6 = vpop.permute.xlu1 %6079  ;;  %v6013_v59 = vmul.f32 %v5963_v1, %v19026_v38  ;;  %v9688_v15 = vld [vmem:[%s11736_s22 + $0x5e0] sm:$0xff]  ;;  %v9690_v16 = vld [vmem:[%s11736_s22 + $0x5f0] sm:$0xff] }
 0x52e   : >> { %v6380_v61 = vsel %vm1311_vm0, %v6080_v6, %v6214_v26  ;;  %v9753_v26 = vld [vmem:[%s11736_s22 + $0x7e8] sm:$0xff] }
 0x52f   : >> { %6573 = vst.msk [vmem:[#allocation2 + $0x398] sm:$0xff] %vm1612_vm2, %v6540_v17  ;;  %v6078_v49 = vpop.permute.xlu0 %6077  ;;  %v6431_v58 = vmul.f32 %v6380_v61, %v19027_v32  ;;  %5651 = vrot.lane.b32.xlu1 %v15030_v9, %s10590_s9  ;;  %v15075_v1 = vadd.f32 %v9753_v26, %v9689_v13  ;;  %v15091_v13 = vadd.f32 %v9754_v22, %v9690_v16 }
 0x530   : >> { %v6379_v56 = vsel %vm1311_vm0, %v6078_v49, %v6210_v43  ;;  %v9752_v43 = vld [vmem:[%s11736_s22 + $0x7e0] sm:$0xff]  ;;  %v9691_v49 = vld [vmem:[%s11736_s22 + $0x5f8] sm:$0xff] }
 0x531   : >> { %v6429_v31 = vmul.f32 %v6379_v56, %v19027_v32  ;;  %5649 = vrot.lane.b32.xlu0 %v15018_v28, %s10590_s9  ;;  %v6495_v4 = vadd.f32 %v6431_v58, %v6015_v46  ;;  %v5804_v47 = vpop.permute.xlu1 %5803  ;;  %v15079_v61 = vadd.f32 %v9752_v43, %v9688_v15  ;;  %v9755_v56 = vld [vmem:[%s11736_s22 + $0x7f8] sm:$0xff] }
 0x533   : >> { %v6493_v17 = vadd.f32 %v6429_v31, %v6013_v59  ;;  %v5802_v53 = vpop.permute.xlu0 %5801  ;;  %6099 = vrot.lane.b32.xlu1 %v15030_v9, %s10592_s26  ;;  %19054 = vst [vmem:[#allocation334_spill] sm:$0xff] %v15079_v61  ;;  %v15087_v31 = vadd.f32 %v9755_v56, %v9691_v49 }
 0x534   : >> { %v5869_v43 = vsel %vm883_vm1, %v5802_v53, %v5804_v47 }
 0x535   : >> { %v6539_v6 = vpack.c.bf16 %v6495_v4, %v6493_v17  ;;  %6097 = vrot.lane.b32.xlu0 %v15018_v28, %s10592_s26  ;;  %v5808_v46 = vpop.permute.xlu1 %5807  ;;  %v6018_v16 = vmul.f32 %v5869_v43, %v19025_v18 }
 0x536   : >> { %v8045_v58 = vld [vmem:[#allocation2 + $0x398] sm:$0xff] }
 0x537   : >> { %8140 = vmatprep.subr.bf16.mxu1 %v8045_v58  ;;  %v5806_v59 = vpop.permute.xlu0 %5805  ;;  %5843 = vrot.lane.b32.xlu1 %v15075_v1, %s10591_s23 }
 0x538   : >> { %8141 = vmatpush1.bf16.msra.mxu1 %v6539_v6  ;;  %v5870_v17 = vsel %vm883_vm1, %v5806_v59, %v5808_v46 }
 0x539   : >> { %5841 = vrot.lane.b32.xlu0 %v15079_v61, %s10591_s23  ;;  %v6220_v26 = vpop.permute.xlu1 %6219  ;;  %v6020_v58 = vmul.f32 %v5870_v17, %v19025_v18 }
 0x53b   : >> { %v6218_v4 = vpop.permute.xlu0 %6217  ;;  %5847 = vrot.lane.b32.xlu1 %v15087_v31, %s10591_s23 }
 0x53c   : >> { %v6285_v15 = vsel %vm1311_vm0, %v6218_v4, %v6220_v26 }
 0x53d   : >> { %5845 = vrot.lane.b32.xlu0 %v15091_v13, %s10591_s23  ;;  %v6224_v6 = vpop.permute.xlu1 %6223  ;;  %v6434_v49 = vmul.f32 %v6285_v15, %v19024_v5  ;;  %s9326_s23 = sshll.u32 (%p395_p6), %s11725_s17, 4  ;;  %s17567_s23 = int_to_ptr.vmem [resolvable:$true] %s9326_s23 }
 0x53e   : > { %p10518_p9 = scmp.lt.s32.totalorder (%p395_p6), %s17567_s23, %s10516_s19 }
 0x53f   : >> { %v6222_v56 = vpop.permute.xlu0 %6221  ;;  %6259 = vrot.lane.b32.xlu1 %v15075_v1, %s10593_s27  ;;  %v6498_v46 = vadd.f32 %v6434_v49, %v6018_v16 }
 0x540   : >> { %v6286_v22 = vsel %vm1311_vm0, %v6222_v56, %v6224_v6 }
 0x541   : >> { %v6436_v26 = vmul.f32 %v6286_v22, %v19024_v5  ;;  %6257 = vrot.lane.b32.xlu0 %v15079_v61, %s10593_s27  ;;  %v5636_v47 = vpop.permute.xlu1 %5635 }
 0x542   : >> { %v5966_v6 = vsel %vm883_vm1, %v5636_v47, %v5806_v59 }
 0x543   : >> { %v6500_v9 = vadd.f32 %v6436_v26, %v6020_v58  ;;  %v5634_v28 = vpop.permute.xlu0 %5633  ;;  %6263 = vrot.lane.b32.xlu1 %v15087_v31, %s10593_s27  ;;  %v6019_v49 = vmul.f32 %v5966_v6, %v19026_v38 }
 0x544   : >> { %v5965_v43 = vsel %vm883_vm1, %v5634_v28, %v5802_v53 }
 0x545   : >> { %v6542_v15 = vpack.c.bf16 %v6500_v9, %v6498_v46  ;;  %6261 = vrot.lane.b32.xlu0 %v15091_v13, %s10593_s27  ;;  %v6084_v17 = vpop.permute.xlu1 %6083  ;;  %v6017_v9 = vmul.f32 %v5965_v43, %v19026_v38  ;;  %s10511_s27 = scalar_lea.vmem (%p395_p6), %s17567_s23, 262144 }
 0x546   : >> { %v6382_v22 = vsel %vm1311_vm0, %v6084_v17, %v6222_v56  ;;  %p10512_p10 = scmp.ne.s32.totalorder (%p395_p6), %s17567_s23, %s10511_s27  ;;  %p10519_p13 = scmp.lt.s32.totalorder (%p395_p6), %s10517_s16, %s10511_s27 }
 0x547   : >> { %6575 = vst.msk [vmem:[#allocation2 + $0x3a8] sm:$0xff] %vm1612_vm2, %v6542_v15  ;;  %v6082_v61 = vpop.permute.xlu0 %6081  ;;  %v6435_v16 = vmul.f32 %v6382_v22, %v19027_v32  ;;  %5655 = vrot.lane.b32.xlu1 %v15087_v31, %s10590_s9 }
 0x548   : >> { %v6381_v58 = vsel %vm1311_vm0, %v6082_v61, %v6218_v4  ;;  %p10513_p12 = pnand (%p395_p6), %p10512_p10, %p19382_p11  ;;  %p10520_p1 = por (%p395_p6), %p10519_p13, %p10518_p9 }
 0x549   : >> { %v6433_v59 = vmul.f32 %v6381_v58, %v19027_v32  ;;  %5653 = vrot.lane.b32.xlu0 %v15075_v1, %s10590_s9  ;;  %v6499_v28 = vadd.f32 %v6435_v16, %v6019_v49  ;;  %v5812_v53 = vpop.permute.xlu1 %5811  ;;  %s17564_s9 = scalar_lea.hbm (%p395_p6), %s17613_s3, %s9900_s8 }
 0x54a   : > { %p10514_p8 = pneg (%p395_p6), %p10513_p12 }
 0x54b   : >> { %v6497_v56 = vadd.f32 %v6433_v59, %v6017_v9  ;;  %v5810_v26 = vpop.permute.xlu0 %5809  ;;  %6103 = vrot.lane.b32.xlu1 %v15087_v31, %s10592_s26 }
 0x54c   : >> { %v5871_v17 = vsel %vm883_vm1, %v5810_v26, %v5812_v53  ;;  %p10521_p3 = pnand (%p395_p6), %p10520_p1, %p10514_p8 }
 0x54d   : >> { %v6541_v47 = vpack.c.bf16 %v6499_v28, %v6497_v56  ;;  %6101 = vrot.lane.b32.xlu0 %v15075_v1, %s10592_s26  ;;  %v5816_v61 = vpop.permute.xlu1 %5815  ;;  %v6022_v59 = vmul.f32 %v5871_v17, %v19025_v18  ;;  %s9312_s26 = scalar_lea.sflag (%p395_p6), [#allocation5], %s10726_s5 }
 0x54e   : >> { %v8047_v4 = vld [vmem:[#allocation2 + $0x3a8] sm:$0xff] }
 0x54f   : >> { %8142 = vmatprep.subr.bf16.mxu1 %v8047_v4  ;;  %v5814_v46 = vpop.permute.xlu0 %5813  ;;  %6684 = vrot.lane.b32.xlu1 %v13974_v50, %s10595_s29 }
 0x550   : >> { %8143 = vmatpush1.bf16.msra.mxu1 %v6541_v47  ;;  %v5872_v22 = vsel %vm883_vm1, %v5814_v46, %v5816_v61 }
 0x551   : >> { %6682 = vrot.lane.b32.xlu0 %v13980_v10, %s10595_s29  ;;  %v6228_v15 = vpop.permute.xlu1 %6227  ;;  %v6024_v28 = vmul.f32 %v5872_v22, %v19025_v18 }
 0x553   : >> { %v6226_v6 = vpop.permute.xlu0 %6225  ;;  %6688 = vrot.lane.b32.xlu1 %v14000_v19, %s10595_s29 }
 0x554   : >> { %v6287_v43 = vsel %vm1311_vm0, %v6226_v6, %v6228_v15 }
 0x555   : >> { %6686 = vrot.lane.b32.xlu0 %v14007_v34, %s10595_s29  ;;  %v6232_v49 = vpop.permute.xlu1 %6231  ;;  %v6438_v16 = vmul.f32 %v6287_v43, %v19024_v5 }
 0x557   : >> { %v6230_v58 = vpop.permute.xlu0 %6229  ;;  %7100 = vrot.lane.b32.xlu1 %v13974_v50, %s10597_s10  ;;  %v6502_v47 = vadd.f32 %v6438_v16, %v6022_v59 }
 0x558   : >> { %v6288_v9 = vsel %vm1311_vm0, %v6230_v58, %v6232_v49 }
 0x559   : >> { %v6440_v56 = vmul.f32 %v6288_v9, %v19024_v5  ;;  %7098 = vrot.lane.b32.xlu0 %v13980_v10, %s10597_s10  ;;  %v5640_v53 = vpop.permute.xlu1 %5639 }
 0x55a   : >> { %v5968_v43 = vsel %vm883_vm1, %v5640_v53, %v5814_v46 }
 0x55b   : >> { %v6504_v61 = vadd.f32 %v6440_v56, %v6024_v28  ;;  %v5638_v4 = vpop.permute.xlu0 %5637  ;;  %7104 = vrot.lane.b32.xlu1 %v14000_v19, %s10597_s10  ;;  %v6023_v16 = vmul.f32 %v5968_v43, %v19026_v38 }
 0x55c   : >> { %v5967_v17 = vsel %vm883_vm1, %v5638_v4, %v5810_v26 }
 0x55d   : >> { %v6544_v15 = vpack.c.bf16 %v6504_v61, %v6502_v47  ;;  %7102 = vrot.lane.b32.xlu0 %v14007_v34, %s10597_s10  ;;  %v6088_v22 = vpop.permute.xlu1 %6087  ;;  %v6021_v46 = vmul.f32 %v5967_v17, %v19026_v38 }
 0x55e   : >> { %v6384_v49 = vsel %vm1311_vm0, %v6088_v22, %v6230_v58 }
 0x55f   : >> { %6577 = vst.msk [vmem:[#allocation2 + $0x3b8] sm:$0xff] %vm1612_vm2, %v6544_v15  ;;  %v6086_v9 = vpop.permute.xlu0 %6085  ;;  %v6439_v59 = vmul.f32 %v6384_v49, %v19027_v32  ;;  %6588 = vrot.lane.b32.xlu1 %v14000_v19, %s10594_s28 }
 0x560   : >> { %v6383_v28 = vsel %vm1311_vm0, %v6086_v9, %v6226_v6 }
 0x561   : >> { %v6437_v56 = vmul.f32 %v6383_v28, %v19027_v32  ;;  %6586 = vrot.lane.b32.xlu0 %v13974_v50, %s10594_s28  ;;  %v6503_v26 = vadd.f32 %v6439_v59, %v6023_v16  ;;  %v5820_v53 = vpop.permute.xlu1 %5819 }
 0x563   : >> { %v6501_v58 = vadd.f32 %v6437_v56, %v6021_v46  ;;  %v5818_v47 = vpop.permute.xlu0 %5817  ;;  %7004 = vrot.lane.b32.xlu1 %v14000_v19, %s10596_s30 }
 0x564   : >> { %v5873_v49 = vsel %vm883_vm1, %v5818_v47, %v5820_v53 }
 0x565   : >> { %v6543_v61 = vpack.c.bf16 %v6503_v26, %v6501_v58  ;;  %7002 = vrot.lane.b32.xlu0 %v13974_v50, %s10596_s30  ;;  %v5824_v6 = vpop.permute.xlu1 %5823  ;;  %v6026_v56 = vmul.f32 %v5873_v49, %v19025_v18 }
 0x566   : >> { %v8049_v4 = vld [vmem:[#allocation2 + $0x3b8] sm:$0xff] }
 0x567   : >> { %8144 = vmatprep.subr.bf16.mxu1 %v8049_v4  ;;  %v5822_v15 = vpop.permute.xlu0 %5821  ;;  %6692 = vrot.lane.b32.xlu1 %v14107_v51, %s10595_s29 }
 0x568   : >> { %8145 = vmatpush1.bf16.msra.mxu1 %v6543_v61  ;;  %v5874_v9 = vsel %vm883_vm1, %v5822_v15, %v5824_v6 }
 0x569   : >> { %6690 = vrot.lane.b32.xlu0 %v14113_v29, %s10595_s29  ;;  %v6236_v43 = vpop.permute.xlu1 %6235  ;;  %v6028_v26 = vmul.f32 %v5874_v9, %v19025_v18 }
 0x56b   : >> { %v6234_v17 = vpop.permute.xlu0 %6233  ;;  %6696 = vrot.lane.b32.xlu1 %v14133_v35, %s10595_s29 }
 0x56c   : >> { %v6289_v22 = vsel %vm1311_vm0, %v6234_v17, %v6236_v43 }
 0x56d   : >> { %6694 = vrot.lane.b32.xlu0 %v14140_v8, %s10595_s29  ;;  %v6240_v16 = vpop.permute.xlu1 %6239  ;;  %v6442_v59 = vmul.f32 %v6289_v22, %v19024_v5 }
 0x56f   : >> { %v6238_v28 = vpop.permute.xlu0 %6237  ;;  %7108 = vrot.lane.b32.xlu1 %v14107_v51, %s10597_s10  ;;  %v6506_v61 = vadd.f32 %v6442_v59, %v6026_v56 }
 0x570   : >> { %v6290_v46 = vsel %vm1311_vm0, %v6238_v28, %v6240_v16 }
 0x571   : >> { %v6444_v58 = vmul.f32 %v6290_v46, %v19024_v5  ;;  %7106 = vrot.lane.b32.xlu0 %v14113_v29, %s10597_s10  ;;  %v5644_v53 = vpop.permute.xlu1 %5643 }
 0x572   : >> { %v5970_v22 = vsel %vm883_vm1, %v5644_v53, %v5822_v15 }
 0x573   : >> { %v6508_v6 = vadd.f32 %v6444_v58, %v6028_v26  ;;  %v5642_v4 = vpop.permute.xlu0 %5641  ;;  %7112 = vrot.lane.b32.xlu1 %v14133_v35, %s10597_s10  ;;  %v6027_v59 = vmul.f32 %v5970_v22, %v19026_v38 }
 0x574   : >> { %v5969_v49 = vsel %vm883_vm1, %v5642_v4, %v5818_v47 }
 0x575   : >> { %v6546_v43 = vpack.c.bf16 %v6508_v6, %v6506_v61  ;;  %7110 = vrot.lane.b32.xlu0 %v14140_v8, %s10597_s10  ;;  %v6092_v9 = vpop.permute.xlu1 %6091  ;;  %v6025_v15 = vmul.f32 %v5969_v49, %v19026_v38 }
 0x576   : >> { %v6386_v16 = vsel %vm1311_vm0, %v6092_v9, %v6238_v28 }
 0x577   : >> { %6579 = vst.msk [vmem:[#allocation2 + $0x3c8] sm:$0xff] %vm1612_vm2, %v6546_v43  ;;  %v6090_v46 = vpop.permute.xlu0 %6089  ;;  %v6443_v56 = vmul.f32 %v6386_v16, %v19027_v32  ;;  %6592 = vrot.lane.b32.xlu1 %v14133_v35, %s10594_s28 }
 0x578   : >> { %v6385_v26 = vsel %vm1311_vm0, %v6090_v46, %v6234_v17 }
 0x579   : >> { %v6441_v58 = vmul.f32 %v6385_v26, %v19027_v32  ;;  %6590 = vrot.lane.b32.xlu0 %v14107_v51, %s10594_s28  ;;  %v6507_v47 = vadd.f32 %v6443_v56, %v6027_v59  ;;  %v5828_v53 = vpop.permute.xlu1 %5827 }
 0x57b   : >> { %v6505_v28 = vadd.f32 %v6441_v58, %v6025_v15  ;;  %v5826_v61 = vpop.permute.xlu0 %5825  ;;  %7008 = vrot.lane.b32.xlu1 %v14133_v35, %s10596_s30 }
 0x57c   : >> { %v5875_v16 = vsel %vm883_vm1, %v5826_v61, %v5828_v53 }
 0x57d   : >> { %v6545_v6 = vpack.c.bf16 %v6507_v47, %v6505_v28  ;;  %7006 = vrot.lane.b32.xlu0 %v14107_v51, %s10596_s30  ;;  %v5832_v17 = vpop.permute.xlu1 %5831  ;;  %v6030_v58 = vmul.f32 %v5875_v16, %v19025_v18 }
 0x57e   : >> { %v8051_v4 = vld [vmem:[#allocation2 + $0x3c8] sm:$0xff] }
 0x57f   : >> { %8146 = vmatprep.subr.bf16.mxu1 %v8051_v4  ;;  %v5830_v43 = vpop.permute.xlu0 %5829  ;;  %6700 = vrot.lane.b32.xlu1 %v14240_v33, %s10595_s29 }
 0x580   : >> { %8147 = vmatpush1.bf16.msra.mxu1 %v6545_v6  ;;  %v5876_v46 = vsel %vm883_vm1, %v5830_v43, %v5832_v17 }
 0x581   : >> { %6698 = vrot.lane.b32.xlu0 %v14246_v11, %s10595_s29  ;;  %v6244_v22 = vpop.permute.xlu1 %6243  ;;  %v6032_v47 = vmul.f32 %v5876_v46, %v19025_v18 }
 0x583   : >> { %v6242_v49 = vpop.permute.xlu0 %6241  ;;  %6704 = vrot.lane.b32.xlu1 %v14266_v12, %s10595_s29 }
 0x584   : >> { %v6291_v9 = vsel %vm1311_vm0, %v6242_v49, %v6244_v22 }
 0x585   : >> { %6702 = vrot.lane.b32.xlu0 %v14273_v57, %s10595_s29  ;;  %v6248_v59 = vpop.permute.xlu1 %6247  ;;  %v6446_v56 = vmul.f32 %v6291_v9, %v19024_v5 }
 0x587   : >> { %v6246_v26 = vpop.permute.xlu0 %6245  ;;  %7116 = vrot.lane.b32.xlu1 %v14240_v33, %s10597_s10  ;;  %v6510_v6 = vadd.f32 %v6446_v56, %v6030_v58 }
 0x588   : >> { %v6292_v15 = vsel %vm1311_vm0, %v6246_v26, %v6248_v59 }
 0x589   : >> { %v6448_v28 = vmul.f32 %v6292_v15, %v19024_v5  ;;  %7114 = vrot.lane.b32.xlu0 %v14246_v11, %s10597_s10  ;;  %v5648_v53 = vpop.permute.xlu1 %5647 }
 0x58a   : >> { %v5972_v9 = vsel %vm883_vm1, %v5648_v53, %v5830_v43 }
 0x58b   : >> { %v6512_v17 = vadd.f32 %v6448_v28, %v6032_v47  ;;  %v5646_v4 = vpop.permute.xlu0 %5645  ;;  %7120 = vrot.lane.b32.xlu1 %v14266_v12, %s10597_s10  ;;  %v6031_v56 = vmul.f32 %v5972_v9, %v19026_v38 }
 0x58c   : >> { %v5971_v16 = vsel %vm883_vm1, %v5646_v4, %v5826_v61 }
 0x58d   : >> { %v6548_v22 = vpack.c.bf16 %v6512_v17, %v6510_v6  ;;  %7118 = vrot.lane.b32.xlu0 %v14273_v57, %s10597_s10  ;;  %v6096_v46 = vpop.permute.xlu1 %6095  ;;  %v6029_v43 = vmul.f32 %v5971_v16, %v19026_v38 }
 0x58e   : >> { %v6388_v59 = vsel %vm1311_vm0, %v6096_v46, %v6246_v26 }
 0x58f   : >> { %6581 = vst.msk [vmem:[#allocation2 + $0x3d8] sm:$0xff] %vm1612_vm2, %v6548_v22  ;;  %v6094_v15 = vpop.permute.xlu0 %6093  ;;  %v6447_v58 = vmul.f32 %v6388_v59, %v19027_v32  ;;  %6596 = vrot.lane.b32.xlu1 %v14266_v12, %s10594_s28 }
 0x590   : >> { %v6387_v47 = vsel %vm1311_vm0, %v6094_v15, %v6242_v49 }
 0x591   : >> { %v6445_v28 = vmul.f32 %v6387_v47, %v19027_v32  ;;  %6594 = vrot.lane.b32.xlu0 %v14240_v33, %s10594_s28  ;;  %v6511_v61 = vadd.f32 %v6447_v58, %v6031_v56  ;;  %v5836_v53 = vpop.permute.xlu1 %5835 }
 0x593   : >> { %v6509_v26 = vadd.f32 %v6445_v28, %v6029_v43  ;;  %v5834_v6 = vpop.permute.xlu0 %5833  ;;  %7012 = vrot.lane.b32.xlu1 %v14266_v12, %s10596_s30 }
 0x594   : >> { %v5877_v59 = vsel %vm883_vm1, %v5834_v6, %v5836_v53 }
 0x595   : >> { %v6547_v17 = vpack.c.bf16 %v6511_v61, %v6509_v26  ;;  %7010 = vrot.lane.b32.xlu0 %v14240_v33, %s10596_s30  ;;  %v5840_v49 = vpop.permute.xlu1 %5839  ;;  %v6034_v28 = vmul.f32 %v5877_v59, %v19025_v18 }
 0x596   : >> { %v8053_v4 = vld [vmem:[#allocation2 + $0x3d8] sm:$0xff] }
 0x597   : >> { %8148 = vmatprep.subr.bf16.mxu1 %v8053_v4  ;;  %v5838_v22 = vpop.permute.xlu0 %5837  ;;  %6708 = vrot.lane.b32.xlu1 %v14369_v36, %s10595_s29 }
 0x598   : >> { %8149 = vmatpush1.bf16.msra.mxu1 %v6547_v17  ;;  %v5878_v15 = vsel %vm883_vm1, %v5838_v22, %v5840_v49 }
 0x599   : >> { %6706 = vrot.lane.b32.xlu0 %v14373_v37, %s10595_s29  ;;  %v6252_v9 = vpop.permute.xlu1 %6251  ;;  %v6036_v61 = vmul.f32 %v5878_v15, %v19025_v18 }
 0x59b   : >> { %v6250_v16 = vpop.permute.xlu0 %6249  ;;  %6712 = vrot.lane.b32.xlu1 %v14393_v54, %s10595_s29 }
 0x59c   : >> { %v6293_v46 = vsel %vm1311_vm0, %v6250_v16, %v6252_v9 }
 0x59d   : >> { %6710 = vrot.lane.b32.xlu0 %v14400_v20, %s10595_s29  ;;  %v6256_v56 = vpop.permute.xlu1 %6255  ;;  %v6450_v58 = vmul.f32 %v6293_v46, %v19024_v5 }
 0x59f   : >> { %v6254_v47 = vpop.permute.xlu0 %6253  ;;  %7124 = vrot.lane.b32.xlu1 %v14369_v36, %s10597_s10  ;;  %v6514_v17 = vadd.f32 %v6450_v58, %v6034_v28 }
 0x5a0   : >> { %v6294_v43 = vsel %vm1311_vm0, %v6254_v47, %v6256_v56 }
 0x5a1   : >> { %v6452_v26 = vmul.f32 %v6294_v43, %v19024_v5  ;;  %7122 = vrot.lane.b32.xlu0 %v14373_v37, %s10597_s10  ;;  %v5652_v53 = vpop.permute.xlu1 %5651 }
 0x5a2   : >> { %v5974_v46 = vsel %vm883_vm1, %v5652_v53, %v5838_v22 }
 0x5a3   : >> { %v6516_v49 = vadd.f32 %v6452_v26, %v6036_v61  ;;  %v5650_v4 = vpop.permute.xlu0 %5649  ;;  %7128 = vrot.lane.b32.xlu1 %v14393_v54, %s10597_s10  ;;  %v6035_v58 = vmul.f32 %v5974_v46, %v19026_v38 }
 0x5a4   : >> { %v5973_v59 = vsel %vm883_vm1, %v5650_v4, %v5834_v6 }
 0x5a5   : >> { %v6550_v9 = vpack.c.bf16 %v6516_v49, %v6514_v17  ;;  %7126 = vrot.lane.b32.xlu0 %v14400_v20, %s10597_s10  ;;  %v6100_v15 = vpop.permute.xlu1 %6099  ;;  %v6033_v22 = vmul.f32 %v5973_v59, %v19026_v38 }
 0x5a6   : >> { %v6390_v56 = vsel %vm1311_vm0, %v6100_v15, %v6254_v47 }
 0x5a7   : >> { %6583 = vst.msk [vmem:[#allocation2 + $0x3e8] sm:$0xff] %vm1612_vm2, %v6550_v9  ;;  %v6098_v43 = vpop.permute.xlu0 %6097  ;;  %v6451_v28 = vmul.f32 %v6390_v56, %v19027_v32  ;;  %6600 = vrot.lane.b32.xlu1 %v14393_v54, %s10594_s28 }
 0x5a8   : >> { %v6389_v61 = vsel %vm1311_vm0, %v6098_v43, %v6250_v16 }
 0x5a9   : >> { %v6449_v26 = vmul.f32 %v6389_v61, %v19027_v32  ;;  %6598 = vrot.lane.b32.xlu0 %v14369_v36, %s10594_s28  ;;  %v6515_v6 = vadd.f32 %v6451_v28, %v6035_v58  ;;  %v5844_v53 = vpop.permute.xlu1 %5843 }
 0x5ab   : >> { %v6513_v47 = vadd.f32 %v6449_v26, %v6033_v22  ;;  %v5842_v17 = vpop.permute.xlu0 %5841  ;;  %7016 = vrot.lane.b32.xlu1 %v14393_v54, %s10596_s30 }
 0x5ac   : >> { %v5879_v56 = vsel %vm883_vm1, %v5842_v17, %v5844_v53 }
 0x5ad   : >> { %v6549_v49 = vpack.c.bf16 %v6515_v6, %v6513_v47  ;;  %7014 = vrot.lane.b32.xlu0 %v14369_v36, %s10596_s30  ;;  %v5848_v16 = vpop.permute.xlu1 %5847  ;;  %v6038_v26 = vmul.f32 %v5879_v56, %v19025_v18 }
 0x5ae   : >> { %v8055_v4 = vld [vmem:[#allocation2 + $0x3e8] sm:$0xff] }
 0x5af   : >> { %8150 = vmatprep.subr.bf16.mxu1 %v8055_v4  ;;  %v5846_v9 = vpop.permute.xlu0 %5845  ;;  %6716 = vrot.lane.b32.xlu1 %v14445_v60, %s10595_s29 }
 0x5b0   : >> { %8151 = vmatpush1.bf16.msra.mxu1 %v6549_v49  ;;  %v5880_v43 = vsel %vm883_vm1, %v5846_v9, %v5848_v16 }
 0x5b1   : >> { %6714 = vrot.lane.b32.xlu0 %v14449_v3, %s10595_s29  ;;  %v6260_v46 = vpop.permute.xlu1 %6259  ;;  %v6040_v6 = vmul.f32 %v5880_v43, %v19025_v18 }
 0x5b3   : >> { %v6258_v59 = vpop.permute.xlu0 %6257  ;;  %6720 = vrot.lane.b32.xlu1 %v14461_v48, %s10595_s29 }
 0x5b4   : >> { %v6295_v15 = vsel %vm1311_vm0, %v6258_v59, %v6260_v46 }
 0x5b5   : >> { %6718 = vrot.lane.b32.xlu0 %v14465_v27, %s10595_s29  ;;  %v6264_v58 = vpop.permute.xlu1 %6263  ;;  %v6454_v28 = vmul.f32 %v6295_v15, %v19024_v5 }
 0x5b7   : >> { %v6262_v61 = vpop.permute.xlu0 %6261  ;;  %7132 = vrot.lane.b32.xlu1 %v14445_v60, %s10597_s10  ;;  %v6518_v49 = vadd.f32 %v6454_v28, %v6038_v26 }
 0x5b8   : >> { %v6296_v22 = vsel %vm1311_vm0, %v6262_v61, %v6264_v58 }
 0x5b9   : >> { %v6456_v47 = vmul.f32 %v6296_v22, %v19024_v5  ;;  %7130 = vrot.lane.b32.xlu0 %v14449_v3, %s10597_s10  ;;  %v5656_v53 = vpop.permute.xlu1 %5655 }
 0x5ba   : >> { %v5976_v15 = vsel %vm883_vm1, %v5656_v53, %v5846_v9 }
 0x5bb   : >> { %v6520_v16 = vadd.f32 %v6456_v47, %v6040_v6  ;;  %v5654_v4 = vpop.permute.xlu0 %5653  ;;  %7136 = vrot.lane.b32.xlu1 %v14461_v48, %s10597_s10  ;;  %v6039_v58 = vmul.f32 %v5976_v15, %v19026_v38 }
 0x5bc   : >> { %v5975_v18 = vsel %vm883_vm1, %v5654_v4, %v5842_v17  ;;  %v19055_v4 = vld [vmem:[#allocation370_spill] sm:$0xff] }
 0x5bd   : >> { %v6552_v46 = vpack.c.bf16 %v6520_v16, %v6518_v49  ;;  %7134 = vrot.lane.b32.xlu0 %v14465_v27, %s10597_s10  ;;  %v6104_v56 = vpop.permute.xlu1 %6103  ;;  %v6037_v9 = vmul.f32 %v5975_v18, %v19026_v38 }
 0x5be   : >> { %v6392_v5 = vsel %vm1311_vm0, %v6104_v56, %v6262_v61 }
 0x5bf   : >> { %6585 = vst.msk [vmem:[#allocation2 + $0x3f8] sm:$0xff] %vm1612_vm2, %v6552_v46  ;;  %v6102_v43 = vpop.permute.xlu0 %6101  ;;  %v6455_v28 = vmul.f32 %v6392_v5, %v19027_v32  ;;  %6604 = vrot.lane.b32.xlu1 %v14461_v48, %s10594_s28 }
 0x5c0   : >> { %v6391_v22 = vsel %vm1311_vm0, %v6102_v43, %v6258_v59 }
 0x5c1   : >> { %v6453_v26 = vmul.f32 %v6391_v22, %v19027_v32  ;;  %6602 = vrot.lane.b32.xlu0 %v14445_v60, %s10594_s28  ;;  %v6519_v17 = vadd.f32 %v6455_v28, %v6039_v58  ;;  %v6685_v6 = vpop.permute.xlu1 %6684 }
 0x5c3   : >> { %v6517_v61 = vadd.f32 %v6453_v26, %v6037_v9  ;;  %v6683_v47 = vpop.permute.xlu0 %6682  ;;  %7020 = vrot.lane.b32.xlu1 %v14461_v48, %s10596_s30 }
 0x5c4   : >> { %v6810_v15 = vsel %vm1868_vm4, %v6683_v47, %v6685_v6 }
 0x5c5   : >> { %v6551_v53 = vpack.c.bf16 %v6519_v17, %v6517_v61  ;;  %7018 = vrot.lane.b32.xlu0 %v14445_v60, %s10596_s30  ;;  %v6689_v59 = vpop.permute.xlu1 %6688  ;;  %v6939_v28 = vmul.f32 %v6810_v15, %v13735_v45 }
 0x5c6   : >> { %v8057_v49 = vld [vmem:[#allocation2 + $0x3f8] sm:$0xff] }
 0x5c7   : >> { %8152 = vmatprep.subr.bf16.mxu1 %v8057_v49  ;;  %v6687_v38 = vpop.permute.xlu0 %6686  ;;  %6724 = vrot.lane.b32.xlu1 %v14505_v21, %s10595_s29 }
 0x5c8   : >> { %8153 = vmatpush1.bf16.msra.mxu1 %v6551_v53  ;;  %v6811_v18 = vsel %vm1868_vm4, %v6687_v38, %v6689_v59 }
 0x5c9   : >> { %6722 = vrot.lane.b32.xlu0 %v14509_v40, %s10595_s29  ;;  %v7101_v32 = vpop.permute.xlu1 %7100  ;;  %v6941_v22 = vmul.f32 %v6811_v18, %v13735_v45 }
 0x5cb   : >> { %v7099_v16 = vpop.permute.xlu0 %7098  ;;  %8155 = vmatmul.mubr.bf16.vlgmr.msra.gmra.mrb[0].mxu1 %v19055_v4  ;;  %6728 = vrot.lane.b32.xlu1 %v14517_v39, %s10595_s29 }
 0x5cc   : >> { %v7226_v46 = vsel %vm2296_vm3, %v7099_v16, %v7101_v32 }
 0x5cd   : >> { %6726 = vrot.lane.b32.xlu0 %v14521_v24, %s10595_s29  ;;  %v7105_v56 = vpop.permute.xlu1 %7104  ;;  %v7355_v5 = vmul.f32 %v7226_v46, %v13727_v30 }
 0x5cf   : >> { %v7103_v43 = vpop.permute.xlu0 %7102  ;;  %7140 = vrot.lane.b32.xlu1 %v14505_v21, %s10597_s10  ;;  %v7419_v17 = vadd.f32 %v7355_v5, %v6939_v28 }
 0x5d0   : >> { %v7227_v58 = vsel %vm2296_vm3, %v7103_v43, %v7105_v56 }
 0x5d1   : >> { %v7357_v9 = vmul.f32 %v7227_v58, %v13727_v30  ;;  %7138 = vrot.lane.b32.xlu0 %v14509_v40, %s10597_s10  ;;  %v6589_v26 = vpop.permute.xlu1 %6588 }
 0x5d2   : >> { %v6907_v59 = vsel %vm1868_vm4, %v6589_v26, %v6687_v38 }
 0x5d3   : >> { %v7421_v6 = vadd.f32 %v7357_v9, %v6941_v22  ;;  %v6587_v61 = vpop.permute.xlu0 %6586  ;;  %7144 = vrot.lane.b32.xlu1 %v14517_v39, %s10597_s10  ;;  %v6940_v15 = vmul.f32 %v6907_v59, %v13731_v42  ;;  %v19056_v22 = vld [vmem:[#allocation18_spill] sm:$0xff]  ;;  %v19057_v9 = vld [vmem:[#allocation15_spill] sm:$0xff] }
 0x5d4   : >> { %v6906_v49 = vsel %vm1868_vm4, %v6587_v61, %v6683_v47  ;;  %v9440_v26 = vcombine.high %v19057_v9, %v19056_v22 }
 0x5d5   : >> { %v7483_v53 = vpack.c.bf16 %v7421_v6, %v7419_v17  ;;  %7142 = vrot.lane.b32.xlu0 %v14521_v24, %s10597_s10  ;;  %v7005_v32 = vpop.permute.xlu1 %7004  ;;  %v6938_v38 = vmul.f32 %v6906_v49, %v13731_v42 }
 0x5d6   : >> { %v7323_v4 = vsel %vm2296_vm3, %v7005_v32, %v7103_v43  ;;  %4218 = vmatprep.mubr.bf16.mxu0 %v9440_v26  ;;  %8164 = vmatprep.mubr.bf16.mxu1 %v9440_v26  ;;  %v19058_v32 = vld [vmem:[#allocation24_spill] sm:$0xff] }
 0x5d7   : >> { %7515 = vst.msk [vmem:[#allocation2 + $0x408] sm:$0xff] %vm1612_vm2, %v7483_v53  ;;  %v7003_v46 = vpop.permute.xlu0 %7002  ;;  %v7356_v18 = vmul.f32 %v7323_v4, %v13723_v7  ;;  %6608 = vrot.lane.b32.xlu1 %v14517_v39, %s10594_s28  ;;  %v19059_v4 = vld [vmem:[#allocation21_spill] sm:$0xff] }
 0x5d8   : >> { %v7322_v56 = vsel %vm2296_vm3, %v7003_v46, %v7099_v16  ;;  %v9439_v16 = vcombine.low %v19057_v9, %v19056_v22  ;;  %v9446_v46 = vcombine.high %v19059_v4, %v19058_v32  ;;  %v19066_v22 = vld [vmem:[#allocation48_spill] sm:$0xff] }
 0x5d9   : >> { %v7354_v5 = vmul.f32 %v7322_v56, %v13723_v7  ;;  %6606 = vrot.lane.b32.xlu0 %v14505_v21, %s10594_s28  ;;  %v7420_v47 = vadd.f32 %v7356_v18, %v6940_v15  ;;  %v6693_v58 = vpop.permute.xlu1 %6692  ;;  %v9445_v18 = vcombine.low %v19059_v4, %v19058_v32 }
 0x5da   : >> { %4219 = vmatmul.mubr.bf16.gmra.mrb[4].mxu0 %v9439_v16  ;;  %8165 = vmatmul.mubr.bf16.gmra.mrb[4].mxu1 %v9439_v16 }
 0x5db   : >> { %v7418_v43 = vadd.f32 %v7354_v5, %v6938_v38  ;;  %v6691_v28 = vpop.permute.xlu0 %6690  ;;  %7024 = vrot.lane.b32.xlu1 %v14517_v39, %s10596_s30  ;;  %4228 = vmatprep.mubr.bf16.mxu0 %v9446_v46 }
 0x5dc   : >> { %v6812_v56 = vsel %vm1868_vm4, %v6691_v28, %v6693_v58  ;;  %8174 = vmatprep.mubr.bf16.mxu1 %v9446_v46 }
 0x5dd   : >> { %v7482_v17 = vpack.c.bf16 %v7420_v47, %v7418_v43  ;;  %7022 = vrot.lane.b32.xlu0 %v14505_v21, %s10596_s30  ;;  %v6697_v6 = vpop.permute.xlu1 %6696  ;;  %v6943_v16 = vmul.f32 %v6812_v56, %v13735_v45 }
 0x5de   : >> { %v8059_v61 = vld [vmem:[#allocation2 + $0x408] sm:$0xff] }
 0x5df   : >> { %8475 = vmatprep.subr.bf16.mxu1 %v8059_v61  ;;  %v6695_v53 = vpop.permute.xlu0 %6694  ;;  %6732 = vrot.lane.b32.xlu1 %v14562_v23, %s10595_s29 }
 0x5e0   : >> { %8476 = vmatpush1.bf16.msra.mxu1 %v7482_v17  ;;  %v6813_v38 = vsel %vm1868_vm4, %v6695_v53, %v6697_v6 }
 0x5e1   : >> { %6730 = vrot.lane.b32.xlu0 %v14566_v14, %s10595_s29  ;;  %v7109_v59 = vpop.permute.xlu1 %7108  ;;  %v6945_v17 = vmul.f32 %v6813_v38, %v13735_v45 }
 0x5e2   : >> { %4229 = vmatmul.mubr.bf16.gmra.mrb[8].mxu0 %v9445_v18  ;;  %8175 = vmatmul.mubr.bf16.gmra.mrb[8].mxu1 %v9445_v18  ;;  %v19061_v18 = vld [vmem:[#allocation27_spill] sm:$0xff] }
 0x5e3   : >> { %v7107_v49 = vpop.permute.xlu0 %7106  ;;  %6736 = vrot.lane.b32.xlu1 %v14574_v2, %s10595_s29 }
 0x5e4   : >> { %v7228_v15 = vsel %vm2296_vm3, %v7107_v49, %v7109_v59 }
 0x5e5   : >> { %6734 = vrot.lane.b32.xlu0 %v14578_v44, %s10595_s29  ;;  %v7113_v5 = vpop.permute.xlu1 %7112  ;;  %v7359_v47 = vmul.f32 %v7228_v15, %v13727_v30  ;;  %v19060_v15 = vld [vmem:[#allocation30_spill] sm:$0xff] }
 0x5e6   : >> { %v9452_v4 = vcombine.high %v19061_v18, %v19060_v15  ;;  %v9451_v56 = vcombine.low %v19061_v18, %v19060_v15 }
 0x5e7   : >> { %v7111_v43 = vpop.permute.xlu0 %7110  ;;  %7148 = vrot.lane.b32.xlu1 %v14562_v23, %s10597_s10  ;;  %v7423_v61 = vadd.f32 %v7359_v47, %v6943_v16 }
 0x5e8   : >> { %v7229_v26 = vsel %vm2296_vm3, %v7111_v43, %v7113_v5  ;;  %4238 = vmatprep.mubr.bf16.mxu0 %v9452_v4  ;;  %8184 = vmatprep.mubr.bf16.mxu1 %v9452_v4 }
 0x5e9   : >> { %v7361_v58 = vmul.f32 %v7229_v26, %v13727_v30  ;;  %7146 = vrot.lane.b32.xlu0 %v14566_v14, %s10597_s10  ;;  %v6593_v6 = vpop.permute.xlu1 %6592 }
 0x5ea   : >> { %v6909_v38 = vsel %vm1868_vm4, %v6593_v6, %v6695_v53  ;;  %4239 = vmatmul.mubr.bf16.gmra.mrb[12].mxu0 %v9451_v56  ;;  %8185 = vmatmul.mubr.bf16.gmra.mrb[12].mxu1 %v9451_v56  ;;  %v19062_v56 = vld [vmem:[#allocation36_spill] sm:$0xff] }
 0x5eb   : >> { %v7425_v59 = vadd.f32 %v7361_v58, %v6945_v17  ;;  %v6591_v46 = vpop.permute.xlu0 %6590  ;;  %7152 = vrot.lane.b32.xlu1 %v14574_v2, %s10597_s10  ;;  %v6944_v58 = vmul.f32 %v6909_v38, %v13731_v42 }
 0x5ec   : >> { %v6908_v47 = vsel %vm1868_vm4, %v6591_v46, %v6691_v28 }
 0x5ed   : >> { %v7485_v5 = vpack.c.bf16 %v7425_v59, %v7423_v61  ;;  %7150 = vrot.lane.b32.xlu0 %v14578_v44, %s10597_s10  ;;  %v7009_v26 = vpop.permute.xlu1 %7008  ;;  %v6942_v28 = vmul.f32 %v6908_v47, %v13731_v42 }
 0x5ee   : >> { %v7325_v16 = vsel %vm2296_vm3, %v7009_v26, %v7111_v43 }
 0x5ef   : >> { %7517 = vst.msk [vmem:[#allocation2 + $0x418] sm:$0xff] %vm1612_vm2, %v7485_v5  ;;  %v7007_v17 = vpop.permute.xlu0 %7006  ;;  %v7360_v61 = vmul.f32 %v7325_v16, %v13723_v7  ;;  %6612 = vrot.lane.b32.xlu1 %v14574_v2, %s10594_s28  ;;  %v19063_v5 = vld [vmem:[#allocation33_spill] sm:$0xff] }
 0x5f0   : >> { %v7324_v53 = vsel %vm2296_vm3, %v7007_v17, %v7107_v49  ;;  %v9458_v38 = vcombine.high %v19063_v5, %v19062_v56  ;;  %v9457_v49 = vcombine.low %v19063_v5, %v19062_v56 }
 0x5f1   : >> { %v7358_v6 = vmul.f32 %v7324_v53, %v13723_v7  ;;  %6610 = vrot.lane.b32.xlu0 %v14562_v23, %s10594_s28  ;;  %v7424_v4 = vadd.f32 %v7360_v61, %v6944_v58  ;;  %v6701_v43 = vpop.permute.xlu1 %6700  ;;  %v19064_v53 = vld [vmem:[#allocation42_spill] sm:$0xff] }
 0x5f2   : >> { %4248 = vmatprep.mubr.bf16.mxu0 %v9458_v38  ;;  %8194 = vmatprep.mubr.bf16.mxu1 %v9458_v38 }
 0x5f3   : >> { %v7422_v59 = vadd.f32 %v7358_v6, %v6942_v28  ;;  %v6699_v46 = vpop.permute.xlu0 %6698  ;;  %7028 = vrot.lane.b32.xlu1 %v14574_v2, %s10596_s30  ;;  %4249 = vmatmul.mubr.bf16.gmra.mrb[16].mxu0 %v9457_v49  ;;  %v19065_v28 = vld [vmem:[#allocation39_spill] sm:$0xff] }
 0x5f4   : >> { %8195 = vmatmul.mubr.bf16.gmra.mrb[16].mxu1 %v9457_v49  ;;  %v9464_v6 = vcombine.high %v19065_v28, %v19064_v53  ;;  %v6814_v38 = vsel %vm1868_vm4, %v6699_v46, %v6701_v43 }
 0x5f5   : >> { %v7484_v26 = vpack.c.bf16 %v7424_v4, %v7422_v59  ;;  %7026 = vrot.lane.b32.xlu0 %v14562_v23, %s10596_s30  ;;  %v6705_v47 = vpop.permute.xlu1 %6704  ;;  %v9463_v59 = vcombine.low %v19065_v28, %v19064_v53  ;;  %v6947_v9 = vmul.f32 %v6814_v38, %v13735_v45 }
 0x5f6   : >> { %v8061_v16 = vld [vmem:[#allocation2 + $0x418] sm:$0xff]  ;;  %4258 = vmatprep.mubr.bf16.mxu0 %v9464_v6  ;;  %8204 = vmatprep.mubr.bf16.mxu1 %v9464_v6 }
 0x5f7   : >> { %8477 = vmatprep.subr.bf16.mxu1 %v8061_v16  ;;  %v6703_v17 = vpop.permute.xlu0 %6702  ;;  %6740 = vrot.lane.b32.xlu1 %v14619_v25, %s10595_s29 }
 0x5f8   : >> { %8478 = vmatpush1.bf16.msra.mxu1 %v7484_v26  ;;  %v6815_v49 = vsel %vm1868_vm4, %v6703_v17, %v6705_v47 }
 0x5f9   : >> { %6738 = vrot.lane.b32.xlu0 %v14623_v63, %s10595_s29  ;;  %v7117_v58 = vpop.permute.xlu1 %7116  ;;  %v6949_v15 = vmul.f32 %v6815_v49, %v13735_v45 }
 0x5fb   : >> { %v7115_v61 = vpop.permute.xlu0 %7114  ;;  %6744 = vrot.lane.b32.xlu1 %v14631_v62, %s10595_s29  ;;  %4259 = vmatmul.mubr.bf16.gmra.mrb[20].mxu0 %v9463_v59 }
 0x5fc   : >> { %v7230_v4 = vsel %vm2296_vm3, %v7115_v61, %v7117_v58  ;;  %8205 = vmatmul.mubr.bf16.gmra.mrb[20].mxu1 %v9463_v59  ;;  %v19067_v59 = vld [vmem:[#allocation45_spill] sm:$0xff] }
 0x5fd   : >> { %6742 = vrot.lane.b32.xlu0 %v14635_v41, %s10595_s29  ;;  %v7121_v26 = vpop.permute.xlu1 %7120  ;;  %v7363_v16 = vmul.f32 %v7230_v4, %v13727_v30  ;;  %v9470_v28 = vcombine.high %v19067_v59, %v19066_v22  ;;  %v9469_v38 = vcombine.low %v19067_v59, %v19066_v22 }
 0x5ff   : >> { %v7119_v58 = vpop.permute.xlu0 %7118  ;;  %7156 = vrot.lane.b32.xlu1 %v14619_v25, %s10597_s10  ;;  %v7427_v6 = vadd.f32 %v7363_v16, %v6947_v9  ;;  %4268 = vmatprep.mubr.bf16.mxu0 %v9470_v28 }
 0x600   : >> { %v7231_v5 = vsel %vm2296_vm3, %v7119_v58, %v7121_v26  ;;  %8214 = vmatprep.mubr.bf16.mxu1 %v9470_v28 }
 0x601   : >> { %v7365_v43 = vmul.f32 %v7231_v5, %v13727_v30  ;;  %7154 = vrot.lane.b32.xlu0 %v14623_v63, %s10597_s10  ;;  %v6597_v47 = vpop.permute.xlu1 %6596 }
 0x602   : >> { %v6911_v49 = vsel %vm1868_vm4, %v6597_v47, %v6703_v17 }
 0x603   : >> { %v7429_v18 = vadd.f32 %v7365_v43, %v6949_v15  ;;  %v6595_v4 = vpop.permute.xlu0 %6594  ;;  %7160 = vrot.lane.b32.xlu1 %v14631_v62, %s10597_s10  ;;  %4269 = vmatmul.mubr.bf16.gmra.mrb[24].mxu0 %v9469_v38  ;;  %v6948_v43 = vmul.f32 %v6911_v49, %v13731_v42 }
 0x604   : >> { %v6910_v9 = vsel %vm1868_vm4, %v6595_v4, %v6699_v46  ;;  %8215 = vmatmul.mubr.bf16.gmra.mrb[24].mxu1 %v9469_v38  ;;  %v19068_v38 = vld [vmem:[#allocation54_spill] sm:$0xff] }
 0x605   : >> { %v7487_v26 = vpack.c.bf16 %v7429_v18, %v7427_v6  ;;  %7158 = vrot.lane.b32.xlu0 %v14635_v41, %s10597_s10  ;;  %v7013_v15 = vpop.permute.xlu1 %7012  ;;  %v6946_v46 = vmul.f32 %v6910_v9, %v13731_v42 }
 0x606   : >> { %v7327_v5 = vsel %vm2296_vm3, %v7013_v15, %v7119_v58 }
 0x607   : >> { %7519 = vst.msk [vmem:[#allocation2 + $0x428] sm:$0xff] %vm1612_vm2, %v7487_v26  ;;  %v7011_v16 = vpop.permute.xlu0 %7010  ;;  %v7364_v18 = vmul.f32 %v7327_v5, %v13723_v7  ;;  %6616 = vrot.lane.b32.xlu1 %v14631_v62, %s10594_s28  ;;  %v19069_v26 = vld [vmem:[#allocation51_spill] sm:$0xff] }
 0x608   : >> { %v7326_v17 = vsel %vm2296_vm3, %v7011_v16, %v7115_v61  ;;  %v9476_v49 = vcombine.high %v19069_v26, %v19068_v38  ;;  %v9475_v61 = vcombine.low %v19069_v26, %v19068_v38 }
 0x609   : >> { %v7362_v47 = vmul.f32 %v7326_v17, %v13723_v7  ;;  %6614 = vrot.lane.b32.xlu0 %v14619_v25, %s10594_s28  ;;  %v7428_v28 = vadd.f32 %v7364_v18, %v6948_v43  ;;  %v6709_v58 = vpop.permute.xlu1 %6708  ;;  %v19070_v17 = vld [vmem:[#allocation60_spill] sm:$0xff] }
 0x60a   : >> { %4278 = vmatprep.mubr.bf16.mxu0 %v9476_v49  ;;  %8224 = vmatprep.mubr.bf16.mxu1 %v9476_v49  ;;  %v19072_v49 = vld [vmem:[#allocation305_spill] sm:$0xff] }
 0x60b   : >> { %v7426_v6 = vadd.f32 %v7362_v47, %v6946_v46  ;;  %v6707_v4 = vpop.permute.xlu0 %6706  ;;  %7032 = vrot.lane.b32.xlu1 %v14631_v62, %s10596_s30  ;;  %4279 = vmatmul.mubr.bf16.gmra.mrb[28].mxu0 %v9475_v61  ;;  %v19071_v46 = vld [vmem:[#allocation57_spill] sm:$0xff] }
 0x60c   : >> { %8225 = vmatmul.mubr.bf16.gmra.mrb[28].mxu1 %v9475_v61  ;;  %v9482_v47 = vcombine.high %v19071_v46, %v19070_v17  ;;  %v6816_v61 = vsel %vm1868_vm4, %v6707_v4, %v6709_v58 }
 0x60d   : >> { %v7486_v15 = vpack.c.bf16 %v7428_v28, %v7426_v6  ;;  %7030 = vrot.lane.b32.xlu0 %v14619_v25, %s10596_s30  ;;  %v6713_v9 = vpop.permute.xlu1 %6712  ;;  %v9481_v6 = vcombine.low %v19071_v46, %v19070_v17  ;;  %v6951_v17 = vmul.f32 %v6816_v61, %v13735_v45  ;;  %v19073_v46 = vld [vmem:[#allocation66_spill] sm:$0xff] }
 0x60e   : >> { %v8063_v5 = vld [vmem:[#allocation2 + $0x428] sm:$0xff]  ;;  %4288 = vmatprep.mubr.bf16.mxu0 %v9482_v47  ;;  %8234 = vmatprep.mubr.bf16.mxu1 %v9482_v47 }
 0x60f   : >> { %8479 = vmatprep.subr.bf16.mxu1 %v8063_v5  ;;  %v6711_v16 = vpop.permute.xlu0 %6710  ;;  %6748 = vrot.lane.b32.xlu1 %v14676_v0, %s10595_s29 }
 0x610   : >> { %8480 = vmatpush1.bf16.msra.mxu1 %v7486_v15  ;;  %v6817_v15 = vsel %vm1868_vm4, %v6711_v16, %v6713_v9 }
 0x611   : >> { %6746 = vrot.lane.b32.xlu0 %v14680_v52, %s10595_s29  ;;  %v7125_v43 = vpop.permute.xlu1 %7124  ;;  %v6953_v32 = vmul.f32 %v6817_v15, %v13735_v45 }
 0x613   : >> { %v7123_v18 = vpop.permute.xlu0 %7122  ;;  %6752 = vrot.lane.b32.xlu1 %v14688_v55, %s10595_s29  ;;  %4289 = vmatmul.mubr.bf16.gmra.mrb[32].mxu0 %v9481_v6 }
 0x614   : >> { %v7232_v28 = vsel %vm2296_vm3, %v7123_v18, %v7125_v43  ;;  %8235 = vmatmul.mubr.bf16.gmra.mrb[32].mxu1 %v9481_v6  ;;  %v19074_v6 = vld [vmem:[#allocation63_spill] sm:$0xff] }
 0x615   : >> { %6750 = vrot.lane.b32.xlu0 %v19072_v49, %s10595_s29  ;;  %v7129_v5 = vpop.permute.xlu1 %7128  ;;  %v7367_v22 = vmul.f32 %v7232_v28, %v13727_v30  ;;  %v9488_v53 = vcombine.high %v19074_v6, %v19073_v46  ;;  %v9487_v61 = vcombine.low %v19074_v6, %v19073_v46  ;;  %v19081_v6 = vld [vmem:[#allocation273_spill] sm:$0xff] }
 0x617   : >> { %v7127_v43 = vpop.permute.xlu0 %7126  ;;  %7164 = vrot.lane.b32.xlu1 %v14676_v0, %s10597_s10  ;;  %v7431_v47 = vadd.f32 %v7367_v22, %v6951_v17  ;;  %4298 = vmatprep.mubr.bf16.mxu0 %v9488_v53 }
 0x618   : >> { %v7233_v26 = vsel %vm2296_vm3, %v7127_v43, %v7129_v5  ;;  %8244 = vmatprep.mubr.bf16.mxu1 %v9488_v53 }
 0x619   : >> { %v7369_v58 = vmul.f32 %v7233_v26, %v13727_v30  ;;  %7162 = vrot.lane.b32.xlu0 %v14680_v52, %s10597_s10  ;;  %v6601_v9 = vpop.permute.xlu1 %6600 }
 0x61a   : >> { %v6913_v15 = vsel %vm1868_vm4, %v6601_v9, %v6711_v16 }
 0x61b   : >> { %v7433_v38 = vadd.f32 %v7369_v58, %v6953_v32  ;;  %v6599_v28 = vpop.permute.xlu0 %6598  ;;  %7168 = vrot.lane.b32.xlu1 %v14688_v55, %s10597_s10  ;;  %4299 = vmatmul.mubr.bf16.gmra.mrb[36].mxu0 %v9487_v61  ;;  %v6952_v58 = vmul.f32 %v6913_v15, %v13731_v42 }
 0x61c   : >> { %v6912_v22 = vsel %vm1868_vm4, %v6599_v28, %v6707_v4  ;;  %8245 = vmatmul.mubr.bf16.gmra.mrb[36].mxu1 %v9487_v61  ;;  %v19075_v61 = vld [vmem:[#allocation72_spill] sm:$0xff] }
 0x61d   : >> { %v7489_v5 = vpack.c.bf16 %v7433_v38, %v7431_v47  ;;  %7166 = vrot.lane.b32.xlu0 %v19072_v49, %s10597_s10  ;;  %v7017_v32 = vpop.permute.xlu1 %7016  ;;  %v6950_v4 = vmul.f32 %v6912_v22, %v13731_v42  ;;  %v19083_v49 = vld [vmem:[#allocation84_spill] sm:$0xff] }
 0x61e   : >> { %v7329_v26 = vsel %vm2296_vm3, %v7017_v32, %v7127_v43 }
 0x61f   : >> { %7521 = vst.msk [vmem:[#allocation2 + $0x438] sm:$0xff] %vm1612_vm2, %v7489_v5  ;;  %v7015_v17 = vpop.permute.xlu0 %7014  ;;  %v7368_v38 = vmul.f32 %v7329_v26, %v13723_v7  ;;  %6620 = vrot.lane.b32.xlu1 %v14688_v55, %s10594_s28  ;;  %v19076_v5 = vld [vmem:[#allocation69_spill] sm:$0xff] }
 0x620   : >> { %v7328_v16 = vsel %vm2296_vm3, %v7015_v17, %v7123_v18  ;;  %v9494_v15 = vcombine.high %v19076_v5, %v19075_v61  ;;  %v9493_v18 = vcombine.low %v19076_v5, %v19075_v61 }
 0x621   : >> { %v7366_v9 = vmul.f32 %v7328_v16, %v13723_v7  ;;  %6618 = vrot.lane.b32.xlu0 %v14676_v0, %s10594_s28  ;;  %v7432_v53 = vadd.f32 %v7368_v38, %v6952_v58  ;;  %v6717_v43 = vpop.permute.xlu1 %6716  ;;  %v19077_v58 = vld [vmem:[#allocation326_spill] sm:$0xff]  ;;  %v19078_v38 = vld [vmem:[#allocation329_spill] sm:$0xff] }
 0x622   : >> { %4308 = vmatprep.mubr.bf16.mxu0 %v9494_v15  ;;  %8254 = vmatprep.mubr.bf16.mxu1 %v9494_v15 }
 0x623   : >> { %v7430_v47 = vadd.f32 %v7366_v9, %v6950_v4  ;;  %v6715_v28 = vpop.permute.xlu0 %6714  ;;  %7036 = vrot.lane.b32.xlu1 %v14688_v55, %s10596_s30  ;;  %4309 = vmatmul.mubr.bf16.gmra.mrb[40].mxu0 %v9493_v18  ;;  %v19079_v9 = vld [vmem:[#allocation78_spill] sm:$0xff] }
 0x624   : >> { %8255 = vmatmul.mubr.bf16.gmra.mrb[40].mxu1 %v9493_v18  ;;  %v19082_v18 = vld [vmem:[#allocation304_spill] sm:$0xff] }
 0x625   : >> { %v7488_v32 = vpack.c.bf16 %v7432_v53, %v7430_v47  ;;  %7034 = vrot.lane.b32.xlu0 %v14676_v0, %s10596_s30  ;;  %v6721_v22 = vpop.permute.xlu1 %6720  ;;  %v19080_v53 = vld [vmem:[#allocation75_spill] sm:$0xff] }
 0x626   : >> { %v8065_v26 = vld [vmem:[#allocation2 + $0x438] sm:$0xff]  ;;  %v9500_v47 = vcombine.high %v19080_v53, %v19079_v9  ;;  %v9499_v15 = vcombine.low %v19080_v53, %v19079_v9 }
 0x627   : >> { %8481 = vmatprep.subr.bf16.mxu1 %v8065_v26  ;;  %v6719_v17 = vpop.permute.xlu0 %6718  ;;  %6756 = vrot.lane.b32.xlu1 %v19077_v58, %s10595_s29 }
 0x628   : >> { %8482 = vmatpush1.bf16.msra.mxu1 %v7488_v32  ;;  %4318 = vmatprep.mubr.bf16.mxu0 %v9500_v47  ;;  %v6818_v32 = vsel %vm1868_vm4, %v6715_v28, %v6717_v43  ;;  %v6819_v26 = vsel %vm1868_vm4, %v6719_v17, %v6721_v22 }
 0x629   : >> { %6754 = vrot.lane.b32.xlu0 %v19078_v38, %s10595_s29  ;;  %v7133_v16 = vpop.permute.xlu1 %7132  ;;  %8264 = vmatprep.mubr.bf16.mxu1 %v9500_v47  ;;  %v6955_v9 = vmul.f32 %v6818_v32, %v13735_v45  ;;  %v6957_v53 = vmul.f32 %v6819_v26, %v13735_v45 }
 0x62b   : >> { %v7131_v4 = vpop.permute.xlu0 %7130  ;;  %6760 = vrot.lane.b32.xlu1 %v19081_v6, %s10595_s29  ;;  %4319 = vmatmul.mubr.bf16.gmra.mrb[44].mxu0 %v9499_v15 }
 0x62c   : >> { %v7234_v5 = vsel %vm2296_vm3, %v7131_v4, %v7133_v16  ;;  %8265 = vmatmul.mubr.bf16.gmra.mrb[44].mxu1 %v9499_v15  ;;  %v19084_v15 = vld [vmem:[#allocation81_spill] sm:$0xff] }
 0x62d   : >> { %6758 = vrot.lane.b32.xlu0 %v19082_v18, %s10595_s29  ;;  %v7137_v46 = vpop.permute.xlu1 %7136  ;;  %v7371_v56 = vmul.f32 %v7234_v5, %v13727_v30  ;;  %v9506_v55 = vcombine.high %v19084_v15, %v19083_v49 }
 0x62f   : >> { %v7135_v16 = vpop.permute.xlu0 %7134  ;;  %7172 = vrot.lane.b32.xlu1 %v19077_v58, %s10597_s10  ;;  %v7435_v47 = vadd.f32 %v7371_v56, %v6955_v9  ;;  %4328 = vmatprep.mubr.bf16.mxu0 %v9506_v55 }
 0x630   : >> { %v7235_v59 = vsel %vm2296_vm3, %v7135_v16, %v7137_v46  ;;  %v9505_v46 = vcombine.low %v19084_v15, %v19083_v49  ;;  %8274 = vmatprep.mubr.bf16.mxu1 %v9506_v55 }
 0x631   : >> { %v7373_v43 = vmul.f32 %v7235_v59, %v13727_v30  ;;  %7170 = vrot.lane.b32.xlu0 %v19078_v38, %s10597_s10  ;;  %v6605_v22 = vpop.permute.xlu1 %6604  ;;  %v19093_v38 = vld [vmem:[#allocation102_spill] sm:$0xff] }
 0x632   : >> { %v6915_v26 = vsel %vm1868_vm4, %v6605_v22, %v6719_v17 }
 0x633   : >> { %v7437_v61 = vadd.f32 %v7373_v43, %v6957_v53  ;;  %v6603_v5 = vpop.permute.xlu0 %6602  ;;  %7176 = vrot.lane.b32.xlu1 %v19081_v6, %s10597_s10  ;;  %4329 = vmatmul.mubr.bf16.gmra.mrb[48].mxu0 %v9505_v46  ;;  %v6956_v43 = vmul.f32 %v6915_v26, %v13731_v42 }
 0x634   : >> { %v6914_v56 = vsel %vm1868_vm4, %v6603_v5, %v6715_v28  ;;  %8275 = vmatmul.mubr.bf16.gmra.mrb[48].mxu1 %v9505_v46  ;;  %v19085_v46 = vld [vmem:[#allocation90_spill] sm:$0xff] }
 0x635   : >> { %v7491_v32 = vpack.c.bf16 %v7437_v61, %v7435_v47  ;;  %7174 = vrot.lane.b32.xlu0 %v19082_v18, %s10597_s10  ;;  %v7021_v59 = vpop.permute.xlu1 %7020  ;;  %v6954_v28 = vmul.f32 %v6914_v56, %v13731_v42 }
 0x636   : >> { %v7331_v9 = vsel %vm2296_vm3, %v7021_v59, %v7135_v16 }
 0x637   : >> { %7523 = vst.msk [vmem:[#allocation2 + $0x448] sm:$0xff] %vm1612_vm2, %v7491_v32  ;;  %v7019_v53 = vpop.permute.xlu0 %7018  ;;  %v7372_v61 = vmul.f32 %v7331_v9, %v13723_v7  ;;  %6624 = vrot.lane.b32.xlu1 %v19081_v6, %s10594_s28  ;;  %v19086_v32 = vld [vmem:[#allocation87_spill] sm:$0xff] }
 0x638   : >> { %v7330_v17 = vsel %vm2296_vm3, %v7019_v53, %v7131_v4  ;;  %v9512_v26 = vcombine.high %v19086_v32, %v19085_v46  ;;  %v9511_v4 = vcombine.low %v19086_v32, %v19085_v46  ;;  %v19091_v32 = vld [vmem:[#allocation362_spill] sm:$0xff] }
 0x639   : >> { %v7370_v22 = vmul.f32 %v7330_v17, %v13723_v7  ;;  %6622 = vrot.lane.b32.xlu0 %v19077_v58, %s10594_s28  ;;  %v7436_v55 = vadd.f32 %v7372_v61, %v6956_v43  ;;  %v6725_v16 = vpop.permute.xlu1 %6724  ;;  %v19087_v43 = vld [vmem:[#allocation331_spill] sm:$0xff] }
 0x63a   : >> { %4338 = vmatprep.mubr.bf16.mxu0 %v9512_v26  ;;  %8284 = vmatprep.mubr.bf16.mxu1 %v9512_v26  ;;  %v19088_v61 = vld [vmem:[#allocation307_spill] sm:$0xff] }
 0x63b   : >> { %v7434_v47 = vadd.f32 %v7370_v22, %v6954_v28  ;;  %v6723_v5 = vpop.permute.xlu0 %6722  ;;  %7040 = vrot.lane.b32.xlu1 %v19081_v6, %s10596_s30  ;;  %4339 = vmatmul.mubr.bf16.gmra.mrb[52].mxu0 %v9511_v4  ;;  %v19089_v22 = vld [vmem:[#allocation96_spill] sm:$0xff] }
 0x63c   : >> { %8285 = vmatmul.mubr.bf16.gmra.mrb[52].mxu1 %v9511_v4  ;;  %v19092_v4 = vld [vmem:[#allocation277_spill] sm:$0xff] }
 0x63d   : >> { %v7490_v59 = vpack.c.bf16 %v7436_v55, %v7434_v47  ;;  %7038 = vrot.lane.b32.xlu0 %v19077_v58, %s10596_s30  ;;  %v6729_v56 = vpop.permute.xlu1 %6728  ;;  %v19090_v55 = vld [vmem:[#allocation93_spill] sm:$0xff] }
 0x63e   : >> { %v8067_v9 = vld [vmem:[#allocation2 + $0x448] sm:$0xff]  ;;  %v9518_v47 = vcombine.high %v19090_v55, %v19089_v22  ;;  %v9517_v26 = vcombine.low %v19090_v55, %v19089_v22 }
 0x63f   : >> { %8483 = vmatprep.subr.bf16.mxu1 %v8067_v9  ;;  %v6727_v53 = vpop.permute.xlu0 %6726  ;;  %6764 = vrot.lane.b32.xlu1 %v19087_v43, %s10595_s29 }
 0x640   : >> { %8484 = vmatpush1.bf16.msra.mxu1 %v7490_v59  ;;  %4348 = vmatprep.mubr.bf16.mxu0 %v9518_v47  ;;  %v6820_v59 = vsel %vm1868_vm4, %v6723_v5, %v6725_v16  ;;  %v6821_v9 = vsel %vm1868_vm4, %v6727_v53, %v6729_v56 }
 0x641   : >> { %6762 = vrot.lane.b32.xlu0 %v19088_v61, %s10595_s29  ;;  %v7141_v17 = vpop.permute.xlu1 %7140  ;;  %8294 = vmatprep.mubr.bf16.mxu1 %v9518_v47  ;;  %v6959_v22 = vmul.f32 %v6820_v59, %v13735_v45  ;;  %v6961_v55 = vmul.f32 %v6821_v9, %v13735_v45 }
 0x643   : >> { %v7139_v28 = vpop.permute.xlu0 %7138  ;;  %6768 = vrot.lane.b32.xlu1 %v19091_v32, %s10595_s29  ;;  %4349 = vmatmul.mubr.bf16.gmra.mrb[56].mxu0 %v9517_v26 }
 0x644   : >> { %v7236_v15 = vsel %vm2296_vm3, %v7139_v28, %v7141_v17  ;;  %8295 = vmatmul.mubr.bf16.gmra.mrb[56].mxu1 %v9517_v26  ;;  %v19094_v26 = vld [vmem:[#allocation99_spill] sm:$0xff] }
 0x645   : >> { %6766 = vrot.lane.b32.xlu0 %v19092_v4, %s10595_s29  ;;  %v7145_v46 = vpop.permute.xlu1 %7144  ;;  %v7375_v49 = vmul.f32 %v7236_v15, %v13727_v30  ;;  %v9524_v58 = vcombine.high %v19094_v26, %v19093_v38 }
 0x647   : >> { %v7143_v17 = vpop.permute.xlu0 %7142  ;;  %7180 = vrot.lane.b32.xlu1 %v19087_v43, %s10597_s10  ;;  %v7439_v47 = vadd.f32 %v7375_v49, %v6959_v22  ;;  %4358 = vmatprep.mubr.bf16.mxu0 %v9524_v58 }
 0x648   : >> { %v7237_v18 = vsel %vm2296_vm3, %v7143_v17, %v7145_v46  ;;  %v9523_v46 = vcombine.low %v19094_v26, %v19093_v38  ;;  %8304 = vmatprep.mubr.bf16.mxu1 %v9524_v58  ;;  %v19101_v38 = vld [vmem:[#allocation332_spill] sm:$0xff] }
 0x649   : >> { %v7377_v16 = vmul.f32 %v7237_v18, %v13727_v30  ;;  %7178 = vrot.lane.b32.xlu0 %v19088_v61, %s10597_s10  ;;  %v6609_v56 = vpop.permute.xlu1 %6608  ;;  %v19103_v61 = vld [vmem:[#allocation120_spill] sm:$0xff] }
 0x64a   : >> { %v6917_v9 = vsel %vm1868_vm4, %v6609_v56, %v6727_v53 }
 0x64b   : >> { %v7441_v6 = vadd.f32 %v7377_v16, %v6961_v55  ;;  %v6607_v15 = vpop.permute.xlu0 %6606  ;;  %7184 = vrot.lane.b32.xlu1 %v19091_v32, %s10597_s10  ;;  %4359 = vmatmul.mubr.bf16.gmra.mrb[60].mxu0 %v9523_v46  ;;  %v6960_v16 = vmul.f32 %v6917_v9, %v13731_v42 }
 0x64c   : >> { %v6916_v49 = vsel %vm1868_vm4, %v6607_v15, %v6723_v5  ;;  %8305 = vmatmul.mubr.bf16.gmra.mrb[60].mxu1 %v9523_v46  ;;  %v19095_v46 = vld [vmem:[#allocation108_spill] sm:$0xff] }
 0x64d   : >> { %v7493_v59 = vpack.c.bf16 %v7441_v6, %v7439_v47  ;;  %7182 = vrot.lane.b32.xlu0 %v19092_v4, %s10597_s10  ;;  %v7025_v18 = vpop.permute.xlu1 %7024  ;;  %v6958_v5 = vmul.f32 %v6916_v49, %v13731_v42 }
 0x64e   : >> { %v7333_v22 = vsel %vm2296_vm3, %v7025_v18, %v7143_v17 }
 0x64f   : >> { %7525 = vst.msk [vmem:[#allocation2 + $0x458] sm:$0xff] %vm1612_vm2, %v7493_v59  ;;  %v7023_v55 = vpop.permute.xlu0 %7022  ;;  %v7376_v6 = vmul.f32 %v7333_v22, %v13723_v7  ;;  %6628 = vrot.lane.b32.xlu1 %v19091_v32, %s10594_s28  ;;  %v19096_v59 = vld [vmem:[#allocation105_spill] sm:$0xff] }
 0x650   : >> { %v7332_v53 = vsel %vm2296_vm3, %v7023_v55, %v7139_v28  ;;  %v9530_v9 = vcombine.high %v19096_v59, %v19095_v46  ;;  %v9529_v28 = vcombine.low %v19096_v59, %v19095_v46 }
 0x651   : >> { %v7374_v56 = vmul.f32 %v7332_v53, %v13723_v7  ;;  %6626 = vrot.lane.b32.xlu0 %v19087_v43, %s10594_s28  ;;  %v7440_v58 = vadd.f32 %v7376_v6, %v6960_v16  ;;  %v6733_v17 = vpop.permute.xlu1 %6732  ;;  %v19097_v16 = vld [vmem:[#allocation364_spill] sm:$0xff]  ;;  %v19098_v6 = vld [vmem:[#allocation255_spill] sm:$0xff] }
 0x652   : >> { %4368 = vmatprep.mubr.bf16.mxu0 %v9530_v9  ;;  %8314 = vmatprep.mubr.bf16.mxu1 %v9530_v9 }
 0x653   : >> { %v7438_v47 = vadd.f32 %v7374_v56, %v6958_v5  ;;  %v6731_v15 = vpop.permute.xlu0 %6730  ;;  %7044 = vrot.lane.b32.xlu1 %v19091_v32, %s10596_s30  ;;  %4369 = vmatmul.mubr.bf16.gmra.mrb[64].mxu0 %v9529_v28  ;;  %v19099_v56 = vld [vmem:[#allocation114_spill] sm:$0xff] }
 0x654   : >> { %8315 = vmatmul.mubr.bf16.gmra.mrb[64].mxu1 %v9529_v28  ;;  %v19102_v28 = vld [vmem:[#allocation306_spill] sm:$0xff] }
 0x655   : >> { %v7492_v18 = vpack.c.bf16 %v7440_v58, %v7438_v47  ;;  %7042 = vrot.lane.b32.xlu0 %v19087_v43, %s10596_s30  ;;  %v6737_v49 = vpop.permute.xlu1 %6736  ;;  %v19100_v58 = vld [vmem:[#allocation111_spill] sm:$0xff] }
 0x656   : >> { %v8069_v22 = vld [vmem:[#allocation2 + $0x458] sm:$0xff]  ;;  %v9536_v47 = vcombine.high %v19100_v58, %v19099_v56  ;;  %v9535_v9 = vcombine.low %v19100_v58, %v19099_v56 }
 0x657   : >> { %8485 = vmatprep.subr.bf16.mxu1 %v8069_v22  ;;  %v6735_v55 = vpop.permute.xlu0 %6734  ;;  %6772 = vrot.lane.b32.xlu1 %v19097_v16, %s10595_s29 }
 0x658   : >> { %8486 = vmatpush1.bf16.msra.mxu1 %v7492_v18  ;;  %4378 = vmatprep.mubr.bf16.mxu0 %v9536_v47  ;;  %v6822_v18 = vsel %vm1868_vm4, %v6731_v15, %v6733_v17  ;;  %v6823_v22 = vsel %vm1868_vm4, %v6735_v55, %v6737_v49 }
 0x659   : >> { %6770 = vrot.lane.b32.xlu0 %v19098_v6, %s10595_s29  ;;  %v7149_v53 = vpop.permute.xlu1 %7148  ;;  %8324 = vmatprep.mubr.bf16.mxu1 %v9536_v47  ;;  %v6963_v56 = vmul.f32 %v6822_v18, %v13735_v45  ;;  %v6965_v58 = vmul.f32 %v6823_v22, %v13735_v45 }
 0x65b   : >> { %v7147_v5 = vpop.permute.xlu0 %7146  ;;  %6776 = vrot.lane.b32.xlu1 %v19101_v38, %s10595_s29  ;;  %4379 = vmatmul.mubr.bf16.gmra.mrb[68].mxu0 %v9535_v9 }
 0x65c   : >> { %v7238_v26 = vsel %vm2296_vm3, %v7147_v5, %v7149_v53  ;;  %8325 = vmatmul.mubr.bf16.gmra.mrb[68].mxu1 %v9535_v9  ;;  %v19104_v9 = vld [vmem:[#allocation117_spill] sm:$0xff] }
 0x65d   : >> { %6774 = vrot.lane.b32.xlu0 %v19102_v28, %s10595_s29  ;;  %v7153_v46 = vpop.permute.xlu1 %7152  ;;  %v7379_v59 = vmul.f32 %v7238_v26, %v13727_v30  ;;  %v9542_v43 = vcombine.high %v19104_v9, %v19103_v61 }
 0x65f   : >> { %v7151_v53 = vpop.permute.xlu0 %7150  ;;  %7188 = vrot.lane.b32.xlu1 %v19097_v16, %s10597_s10  ;;  %v7443_v47 = vadd.f32 %v7379_v59, %v6963_v56  ;;  %4388 = vmatprep.mubr.bf16.mxu0 %v9542_v43 }
 0x660   : >> { %v7239_v4 = vsel %vm2296_vm3, %v7151_v53, %v7153_v46  ;;  %v9541_v46 = vcombine.low %v19104_v9, %v19103_v61  ;;  %8334 = vmatprep.mubr.bf16.mxu1 %v9542_v43 }
 0x661   : >> { %v7381_v17 = vmul.f32 %v7239_v4, %v13727_v30  ;;  %7186 = vrot.lane.b32.xlu0 %v19098_v6, %s10597_s10  ;;  %v6613_v49 = vpop.permute.xlu1 %6612  ;;  %v19113_v6 = vld [vmem:[#allocation138_spill] sm:$0xff] }
 0x662   : >> { %v6919_v22 = vsel %vm1868_vm4, %v6613_v49, %v6735_v55 }
 0x663   : >> { %v7445_v32 = vadd.f32 %v7381_v17, %v6965_v58  ;;  %v6611_v26 = vpop.permute.xlu0 %6610  ;;  %7192 = vrot.lane.b32.xlu1 %v19101_v38, %s10597_s10  ;;  %4389 = vmatmul.mubr.bf16.gmra.mrb[72].mxu0 %v9541_v46  ;;  %v6964_v17 = vmul.f32 %v6919_v22, %v13731_v42 }
 0x664   : >> { %v6918_v4 = vsel %vm1868_vm4, %v6611_v26, %v6731_v15  ;;  %8335 = vmatmul.mubr.bf16.gmra.mrb[72].mxu1 %v9541_v46  ;;  %v19105_v46 = vld [vmem:[#allocation126_spill] sm:$0xff] }
 0x665   : >> { %v7495_v18 = vpack.c.bf16 %v7445_v32, %v7443_v47  ;;  %7190 = vrot.lane.b32.xlu0 %v19102_v28, %s10597_s10  ;;  %v7029_v59 = vpop.permute.xlu1 %7028  ;;  %v6962_v15 = vmul.f32 %v6918_v4, %v13731_v42 }
 0x666   : >> { %v7335_v56 = vsel %vm2296_vm3, %v7029_v59, %v7151_v53 }
 0x667   : >> { %7527 = vst.msk [vmem:[#allocation2 + $0x468] sm:$0xff] %vm1612_vm2, %v7495_v18  ;;  %v7027_v58 = vpop.permute.xlu0 %7026  ;;  %v7380_v32 = vmul.f32 %v7335_v56, %v13723_v7  ;;  %6632 = vrot.lane.b32.xlu1 %v19101_v38, %s10594_s28  ;;  %v19106_v18 = vld [vmem:[#allocation123_spill] sm:$0xff] }
 0x668   : >> { %v7334_v55 = vsel %vm2296_vm3, %v7027_v58, %v7147_v5  ;;  %v9548_v22 = vcombine.high %v19106_v18, %v19105_v46  ;;  %v9547_v5 = vcombine.low %v19106_v18, %v19105_v46  ;;  %v19111_v18 = vld [vmem:[#allocation276_spill] sm:$0xff] }
 0x669   : >> { %v7378_v49 = vmul.f32 %v7334_v55, %v13723_v7  ;;  %6630 = vrot.lane.b32.xlu0 %v19097_v16, %s10594_s28  ;;  %v7444_v43 = vadd.f32 %v7380_v32, %v6964_v17  ;;  %v6741_v53 = vpop.permute.xlu1 %6740  ;;  %v19107_v17 = vld [vmem:[#allocation330_spill] sm:$0xff]  ;;  %v19108_v32 = vld [vmem:[#allocation333_spill] sm:$0xff] }
 0x66a   : >> { %4398 = vmatprep.mubr.bf16.mxu0 %v9548_v22  ;;  %8344 = vmatprep.mubr.bf16.mxu1 %v9548_v22 }
 0x66b   : >> { %v7442_v47 = vadd.f32 %v7378_v49, %v6962_v15  ;;  %v6739_v26 = vpop.permute.xlu0 %6738  ;;  %7048 = vrot.lane.b32.xlu1 %v19101_v38, %s10596_s30  ;;  %4399 = vmatmul.mubr.bf16.gmra.mrb[76].mxu0 %v9547_v5  ;;  %v19109_v49 = vld [vmem:[#allocation132_spill] sm:$0xff] }
 0x66c   : >> { %8345 = vmatmul.mubr.bf16.gmra.mrb[76].mxu1 %v9547_v5  ;;  %v19112_v5 = vld [vmem:[#allocation259_spill] sm:$0xff] }
 0x66d   : >> { %v7494_v59 = vpack.c.bf16 %v7444_v43, %v7442_v47  ;;  %7046 = vrot.lane.b32.xlu0 %v19097_v16, %s10596_s30  ;;  %v6745_v4 = vpop.permute.xlu1 %6744  ;;  %v19110_v43 = vld [vmem:[#allocation129_spill] sm:$0xff] }
 0x66e   : >> { %v8071_v56 = vld [vmem:[#allocation2 + $0x468] sm:$0xff]  ;;  %v9554_v47 = vcombine.high %v19110_v43, %v19109_v49  ;;  %v9553_v22 = vcombine.low %v19110_v43, %v19109_v49 }
 0x66f   : >> { %8487 = vmatprep.subr.bf16.mxu1 %v8071_v56  ;;  %v6743_v58 = vpop.permute.xlu0 %6742  ;;  %6780 = vrot.lane.b32.xlu1 %v19107_v17, %s10595_s29 }
 0x670   : >> { %8488 = vmatpush1.bf16.msra.mxu1 %v7494_v59  ;;  %4408 = vmatprep.mubr.bf16.mxu0 %v9554_v47  ;;  %v6824_v59 = vsel %vm1868_vm4, %v6739_v26, %v6741_v53  ;;  %v6825_v56 = vsel %vm1868_vm4, %v6743_v58, %v6745_v4 }
 0x671   : >> { %6778 = vrot.lane.b32.xlu0 %v19108_v32, %s10595_s29  ;;  %v7157_v55 = vpop.permute.xlu1 %7156  ;;  %8354 = vmatprep.mubr.bf16.mxu1 %v9554_v47  ;;  %v6967_v43 = vmul.f32 %v6824_v59, %v13735_v45  ;;  %v6969_v49 = vmul.f32 %v6825_v56, %v13735_v45 }
 0x673   : >> { %v7155_v15 = vpop.permute.xlu0 %7154  ;;  %6784 = vrot.lane.b32.xlu1 %v19111_v18, %s10595_s29  ;;  %4409 = vmatmul.mubr.bf16.gmra.mrb[80].mxu0 %v9553_v22 }
 0x674   : >> { %v7240_v9 = vsel %vm2296_vm3, %v7155_v15, %v7157_v55  ;;  %8355 = vmatmul.mubr.bf16.gmra.mrb[80].mxu1 %v9553_v22  ;;  %v19114_v22 = vld [vmem:[#allocation135_spill] sm:$0xff] }
 0x675   : >> { %6782 = vrot.lane.b32.xlu0 %v19112_v5, %s10595_s29  ;;  %v7161_v46 = vpop.permute.xlu1 %7160  ;;  %v7383_v61 = vmul.f32 %v7240_v9, %v13727_v30  ;;  %v9560_v16 = vcombine.high %v19114_v22, %v19113_v6 }
 0x677   : >> { %v7159_v55 = vpop.permute.xlu0 %7158  ;;  %7196 = vrot.lane.b32.xlu1 %v19107_v17, %s10597_s10  ;;  %v7447_v47 = vadd.f32 %v7383_v61, %v6967_v43  ;;  %4418 = vmatprep.mubr.bf16.mxu0 %v9560_v16 }
 0x678   : >> { %v7241_v28 = vsel %vm2296_vm3, %v7159_v55, %v7161_v46  ;;  %v9559_v46 = vcombine.low %v19114_v22, %v19113_v6  ;;  %8364 = vmatprep.mubr.bf16.mxu1 %v9560_v16  ;;  %v19121_v22 = vld [vmem:[#allocation309_spill] sm:$0xff] }
 0x679   : >> { %v7385_v53 = vmul.f32 %v7241_v28, %v13727_v30  ;;  %7194 = vrot.lane.b32.xlu0 %v19108_v32, %s10597_s10  ;;  %v6617_v4 = vpop.permute.xlu1 %6616  ;;  %v19123_v32 = vld [vmem:[#allocation156_spill] sm:$0xff] }
 0x67a   : >> { %v6921_v56 = vsel %vm1868_vm4, %v6617_v4, %v6743_v58 }
 0x67b   : >> { %v7449_v38 = vadd.f32 %v7385_v53, %v6969_v49  ;;  %v6615_v9 = vpop.permute.xlu0 %6614  ;;  %7200 = vrot.lane.b32.xlu1 %v19111_v18, %s10597_s10  ;;  %4419 = vmatmul.mubr.bf16.gmra.mrb[84].mxu0 %v9559_v46  ;;  %v6968_v53 = vmul.f32 %v6921_v56, %v13731_v42 }
 0x67c   : >> { %v6920_v61 = vsel %vm1868_vm4, %v6615_v9, %v6739_v26  ;;  %8365 = vmatmul.mubr.bf16.gmra.mrb[84].mxu1 %v9559_v46  ;;  %v19115_v46 = vld [vmem:[#allocation144_spill] sm:$0xff] }
 0x67d   : >> { %v7497_v59 = vpack.c.bf16 %v7449_v38, %v7447_v47  ;;  %7198 = vrot.lane.b32.xlu0 %v19112_v5, %s10597_s10  ;;  %v7033_v28 = vpop.permute.xlu1 %7032  ;;  %v6966_v26 = vmul.f32 %v6920_v61, %v13731_v42 }
 0x67e   : >> { %v7337_v49 = vsel %vm2296_vm3, %v7033_v28, %v7159_v55 }
 0x67f   : >> { %7529 = vst.msk [vmem:[#allocation2 + $0x478] sm:$0xff] %vm1612_vm2, %v7497_v59  ;;  %v7031_v43 = vpop.permute.xlu0 %7030  ;;  %v7384_v38 = vmul.f32 %v7337_v49, %v13723_v7  ;;  %6636 = vrot.lane.b32.xlu1 %v19111_v18, %s10594_s28  ;;  %v19116_v59 = vld [vmem:[#allocation141_spill] sm:$0xff] }
 0x680   : >> { %v7336_v58 = vsel %vm2296_vm3, %v7031_v43, %v7155_v15  ;;  %v9566_v56 = vcombine.high %v19116_v59, %v19115_v46  ;;  %v9565_v15 = vcombine.low %v19116_v59, %v19115_v46 }
 0x681   : >> { %v7382_v4 = vmul.f32 %v7336_v58, %v13723_v7  ;;  %6634 = vrot.lane.b32.xlu0 %v19107_v17, %s10594_s28  ;;  %v7448_v16 = vadd.f32 %v7384_v38, %v6968_v53  ;;  %v6749_v55 = vpop.permute.xlu1 %6748  ;;  %v19117_v53 = vld [vmem:[#allocation363_spill] sm:$0xff] }
 0x682   : >> { %4428 = vmatprep.mubr.bf16.mxu0 %v9566_v56  ;;  %8374 = vmatprep.mubr.bf16.mxu1 %v9566_v56  ;;  %v19118_v38 = vld [vmem:[#allocation335_spill] sm:$0xff] }
 0x683   : >> { %v7446_v47 = vadd.f32 %v7382_v4, %v6966_v26  ;;  %v6747_v9 = vpop.permute.xlu0 %6746  ;;  %7052 = vrot.lane.b32.xlu1 %v19111_v18, %s10596_s30  ;;  %4429 = vmatmul.mubr.bf16.gmra.mrb[88].mxu0 %v9565_v15  ;;  %v19119_v4 = vld [vmem:[#allocation150_spill] sm:$0xff] }
 0x684   : >> { %8375 = vmatmul.mubr.bf16.gmra.mrb[88].mxu1 %v9565_v15  ;;  %v19122_v15 = vld [vmem:[#allocation366_spill] sm:$0xff] }
 0x685   : >> { %v7496_v28 = vpack.c.bf16 %v7448_v16, %v7446_v47  ;;  %7050 = vrot.lane.b32.xlu0 %v19107_v17, %s10596_s30  ;;  %v6753_v61 = vpop.permute.xlu1 %6752  ;;  %v19120_v16 = vld [vmem:[#allocation147_spill] sm:$0xff] }
 0x686   : >> { %v8073_v49 = vld [vmem:[#allocation2 + $0x478] sm:$0xff]  ;;  %v9572_v47 = vcombine.high %v19120_v16, %v19119_v4  ;;  %v9571_v56 = vcombine.low %v19120_v16, %v19119_v4 }
 0x687   : >> { %8489 = vmatprep.subr.bf16.mxu1 %v8073_v49  ;;  %v6751_v43 = vpop.permute.xlu0 %6750  ;;  %6788 = vrot.lane.b32.xlu1 %v19117_v53, %s10595_s29 }
 0x688   : >> { %8490 = vmatpush1.bf16.msra.mxu1 %v7496_v28  ;;  %4438 = vmatprep.mubr.bf16.mxu0 %v9572_v47  ;;  %v6826_v28 = vsel %vm1868_vm4, %v6747_v9, %v6749_v55  ;;  %v6827_v49 = vsel %vm1868_vm4, %v6751_v43, %v6753_v61 }
 0x689   : >> { %6786 = vrot.lane.b32.xlu0 %v19118_v38, %s10595_s29  ;;  %v7165_v58 = vpop.permute.xlu1 %7164  ;;  %8384 = vmatprep.mubr.bf16.mxu1 %v9572_v47  ;;  %v6971_v4 = vmul.f32 %v6826_v28, %v13735_v45  ;;  %v6973_v16 = vmul.f32 %v6827_v49, %v13735_v45 }
 0x68b   : >> { %v7163_v26 = vpop.permute.xlu0 %7162  ;;  %6792 = vrot.lane.b32.xlu1 %v19121_v22, %s10595_s29  ;;  %4439 = vmatmul.mubr.bf16.gmra.mrb[92].mxu0 %v9571_v56 }
 0x68c   : >> { %v7242_v6 = vsel %vm2296_vm3, %v7163_v26, %v7165_v58  ;;  %8385 = vmatmul.mubr.bf16.gmra.mrb[92].mxu1 %v9571_v56  ;;  %v19124_v56 = vld [vmem:[#allocation153_spill] sm:$0xff] }
 0x68d   : >> { %6790 = vrot.lane.b32.xlu0 %v19122_v15, %s10595_s29  ;;  %v7169_v46 = vpop.permute.xlu1 %7168  ;;  %v7387_v59 = vmul.f32 %v7242_v6, %v13727_v30  ;;  %v9578_v17 = vcombine.high %v19124_v56, %v19123_v32 }
 0x68f   : >> { %v7167_v58 = vpop.permute.xlu0 %7166  ;;  %7204 = vrot.lane.b32.xlu1 %v19117_v53, %s10597_s10  ;;  %v7451_v47 = vadd.f32 %v7387_v59, %v6971_v4  ;;  %4448 = vmatprep.mubr.bf16.mxu0 %v9578_v17 }
 0x690   : >> { %v7243_v5 = vsel %vm2296_vm3, %v7167_v58, %v7169_v46  ;;  %v9577_v46 = vcombine.low %v19124_v56, %v19123_v32  ;;  %8394 = vmatprep.mubr.bf16.mxu1 %v9578_v17  ;;  %v19131_v32 = vld [vmem:[#allocation336_spill] sm:$0xff] }
 0x691   : >> { %v7389_v55 = vmul.f32 %v7243_v5, %v13727_v30  ;;  %7202 = vrot.lane.b32.xlu0 %v19118_v38, %s10597_s10  ;;  %v6621_v61 = vpop.permute.xlu1 %6620  ;;  %v19133_v38 = vld [vmem:[#allocation174_spill] sm:$0xff] }
 0x692   : >> { %v6923_v49 = vsel %vm1868_vm4, %v6621_v61, %v6751_v43 }
 0x693   : >> { %v7453_v18 = vadd.f32 %v7389_v55, %v6973_v16  ;;  %v6619_v6 = vpop.permute.xlu0 %6618  ;;  %7208 = vrot.lane.b32.xlu1 %v19121_v22, %s10597_s10  ;;  %4449 = vmatmul.mubr.bf16.gmra.mrb[96].mxu0 %v9577_v46  ;;  %v6972_v55 = vmul.f32 %v6923_v49, %v13731_v42 }
 0x694   : >> { %v6922_v5 = vsel %vm1868_vm4, %v6619_v6, %v6747_v9  ;;  %8395 = vmatmul.mubr.bf16.gmra.mrb[96].mxu1 %v9577_v46  ;;  %v19125_v46 = vld [vmem:[#allocation162_spill] sm:$0xff] }
 0x695   : >> { %v7499_v28 = vpack.c.bf16 %v7453_v18, %v7451_v47  ;;  %7206 = vrot.lane.b32.xlu0 %v19122_v15, %s10597_s10  ;;  %v7037_v59 = vpop.permute.xlu1 %7036  ;;  %v6970_v9 = vmul.f32 %v6922_v5, %v13731_v42 }
 0x696   : >> { %v7339_v4 = vsel %vm2296_vm3, %v7037_v59, %v7167_v58 }
 0x697   : >> { %7531 = vst.msk [vmem:[#allocation2 + $0x488] sm:$0xff] %vm1612_vm2, %v7499_v28  ;;  %v7035_v16 = vpop.permute.xlu0 %7034  ;;  %v7388_v18 = vmul.f32 %v7339_v4, %v13723_v7  ;;  %6640 = vrot.lane.b32.xlu1 %v19121_v22, %s10594_s28  ;;  %v19126_v28 = vld [vmem:[#allocation159_spill] sm:$0xff] }
 0x698   : >> { %v7338_v43 = vsel %vm2296_vm3, %v7035_v16, %v7163_v26  ;;  %v9584_v49 = vcombine.high %v19126_v28, %v19125_v46  ;;  %v9583_v26 = vcombine.low %v19126_v28, %v19125_v46 }
 0x699   : >> { %v7386_v61 = vmul.f32 %v7338_v43, %v13723_v7  ;;  %6638 = vrot.lane.b32.xlu0 %v19117_v53, %s10594_s28  ;;  %v7452_v17 = vadd.f32 %v7388_v18, %v6972_v55  ;;  %v6757_v58 = vpop.permute.xlu1 %6756  ;;  %v19127_v55 = vld [vmem:[#allocation308_spill] sm:$0xff] }
 0x69a   : >> { %4458 = vmatprep.mubr.bf16.mxu0 %v9584_v49  ;;  %8404 = vmatprep.mubr.bf16.mxu1 %v9584_v49  ;;  %v19128_v18 = vld [vmem:[#allocation280_spill] sm:$0xff] }
 0x69b   : >> { %v7450_v47 = vadd.f32 %v7386_v61, %v6970_v9  ;;  %v6755_v6 = vpop.permute.xlu0 %6754  ;;  %7056 = vrot.lane.b32.xlu1 %v19121_v22, %s10596_s30  ;;  %4459 = vmatmul.mubr.bf16.gmra.mrb[100].mxu0 %v9583_v26  ;;  %v19129_v61 = vld [vmem:[#allocation168_spill] sm:$0xff] }
 0x69c   : >> { %8405 = vmatmul.mubr.bf16.gmra.mrb[100].mxu1 %v9583_v26  ;;  %v19132_v26 = vld [vmem:[#allocation311_spill] sm:$0xff] }
 0x69d   : >> { %v7498_v59 = vpack.c.bf16 %v7452_v17, %v7450_v47  ;;  %7054 = vrot.lane.b32.xlu0 %v19117_v53, %s10596_s30  ;;  %v6761_v5 = vpop.permute.xlu1 %6760  ;;  %v19130_v17 = vld [vmem:[#allocation165_spill] sm:$0xff] }
 0x69e   : >> { %v8075_v4 = vld [vmem:[#allocation2 + $0x488] sm:$0xff]  ;;  %v9590_v47 = vcombine.high %v19130_v17, %v19129_v61  ;;  %v9589_v49 = vcombine.low %v19130_v17, %v19129_v61 }
 0x69f   : >> { %8491 = vmatprep.subr.bf16.mxu1 %v8075_v4  ;;  %v6759_v16 = vpop.permute.xlu0 %6758  ;;  %6796 = vrot.lane.b32.xlu1 %v19127_v55, %s10595_s29 }
 0x6a0   : >> { %8492 = vmatpush1.bf16.msra.mxu1 %v7498_v59  ;;  %4468 = vmatprep.mubr.bf16.mxu0 %v9590_v47  ;;  %v6828_v59 = vsel %vm1868_vm4, %v6755_v6, %v6757_v58  ;;  %v6829_v4 = vsel %vm1868_vm4, %v6759_v16, %v6761_v5 }
 0x6a1   : >> { %6794 = vrot.lane.b32.xlu0 %v19128_v18, %s10595_s29  ;;  %v7173_v43 = vpop.permute.xlu1 %7172  ;;  %8414 = vmatprep.mubr.bf16.mxu1 %v9590_v47  ;;  %v6975_v17 = vmul.f32 %v6828_v59, %v13735_v45  ;;  %v6977_v61 = vmul.f32 %v6829_v4, %v13735_v45 }
 0x6a3   : >> { %v7171_v9 = vpop.permute.xlu0 %7170  ;;  %6800 = vrot.lane.b32.xlu1 %v19131_v32, %s10595_s29  ;;  %4469 = vmatmul.mubr.bf16.gmra.mrb[104].mxu0 %v9589_v49 }
 0x6a4   : >> { %v7244_v28 = vsel %vm2296_vm3, %v7171_v9, %v7173_v43  ;;  %8415 = vmatmul.mubr.bf16.gmra.mrb[104].mxu1 %v9589_v49  ;;  %v19134_v49 = vld [vmem:[#allocation171_spill] sm:$0xff] }
 0x6a5   : >> { %6798 = vrot.lane.b32.xlu0 %v19132_v26, %s10595_s29  ;;  %v7177_v46 = vpop.permute.xlu1 %7176  ;;  %v7391_v56 = vmul.f32 %v7244_v28, %v13727_v30  ;;  %v9596_v53 = vcombine.high %v19134_v49, %v19133_v38 }
 0x6a7   : >> { %v7175_v43 = vpop.permute.xlu0 %7174  ;;  %7212 = vrot.lane.b32.xlu1 %v19127_v55, %s10597_s10  ;;  %v7455_v47 = vadd.f32 %v7391_v56, %v6975_v17  ;;  %4478 = vmatprep.mubr.bf16.mxu0 %v9596_v53 }
 0x6a8   : >> { %v7245_v15 = vsel %vm2296_vm3, %v7175_v43, %v7177_v46  ;;  %v9595_v46 = vcombine.low %v19134_v49, %v19133_v38  ;;  %8424 = vmatprep.mubr.bf16.mxu1 %v9596_v53 }
 0x6a9   : >> { %v7393_v58 = vmul.f32 %v7245_v15, %v13727_v30  ;;  %7210 = vrot.lane.b32.xlu0 %v19128_v18, %s10597_s10  ;;  %v6625_v5 = vpop.permute.xlu1 %6624 }
 0x6aa   : >> { %v6925_v4 = vsel %vm1868_vm4, %v6625_v5, %v6759_v16 }
 0x6ab   : >> { %v7457_v22 = vadd.f32 %v7393_v58, %v6977_v61  ;;  %v6623_v28 = vpop.permute.xlu0 %6622  ;;  %7216 = vrot.lane.b32.xlu1 %v19131_v32, %s10597_s10  ;;  %4479 = vmatmul.mubr.bf16.gmra.mrb[108].mxu0 %v9595_v46  ;;  %v6976_v58 = vmul.f32 %v6925_v4, %v13731_v42 }
 0x6ac   : >> { %v6924_v15 = vsel %vm1868_vm4, %v6623_v28, %v6755_v6  ;;  %8425 = vmatmul.mubr.bf16.gmra.mrb[108].mxu1 %v9595_v46  ;;  %v19135_v46 = vld [vmem:[#allocation180_spill] sm:$0xff] }
 0x6ad   : >> { %v7501_v59 = vpack.c.bf16 %v7457_v22, %v7455_v47  ;;  %7214 = vrot.lane.b32.xlu0 %v19132_v26, %s10597_s10  ;;  %v7041_v56 = vpop.permute.xlu1 %7040  ;;  %v6974_v6 = vmul.f32 %v6924_v15, %v13731_v42 }
 0x6ae   : >> { %v7341_v61 = vsel %vm2296_vm3, %v7041_v56, %v7175_v43 }
 0x6af   : >> { %7533 = vst.msk [vmem:[#allocation2 + $0x498] sm:$0xff] %vm1612_vm2, %v7501_v59  ;;  %v7039_v17 = vpop.permute.xlu0 %7038  ;;  %v7392_v22 = vmul.f32 %v7341_v61, %v13723_v7  ;;  %6644 = vrot.lane.b32.xlu1 %v19131_v32, %s10594_s28  ;;  %v19136_v59 = vld [vmem:[#allocation177_spill] sm:$0xff] }
 0x6b0   : >> { %v7340_v16 = vsel %vm2296_vm3, %v7039_v17, %v7171_v9  ;;  %v9602_v4 = vcombine.high %v19136_v59, %v19135_v46  ;;  %v9601_v9 = vcombine.low %v19136_v59, %v19135_v46 }
 0x6b1   : >> { %v7390_v5 = vmul.f32 %v7340_v16, %v13723_v7  ;;  %6642 = vrot.lane.b32.xlu0 %v19127_v55, %s10594_s28  ;;  %v7456_v53 = vadd.f32 %v7392_v22, %v6976_v58  ;;  %v6765_v43 = vpop.permute.xlu1 %6764  ;;  %v19137_v58 = vld [vmem:[#allocation334_spill] sm:$0xff] }
 0x6b2   : >> { %4488 = vmatprep.mubr.bf16.mxu0 %v9602_v4  ;;  %8434 = vmatprep.mubr.bf16.mxu1 %v9602_v4 }
 0x6b3   : >> { %v7454_v47 = vadd.f32 %v7390_v5, %v6974_v6  ;;  %v6763_v28 = vpop.permute.xlu0 %6762  ;;  %7060 = vrot.lane.b32.xlu1 %v19131_v32, %s10596_s30  ;;  %4489 = vmatmul.mubr.bf16.gmra.mrb[112].mxu0 %v9601_v9  ;;  %v19138_v6 = vld [vmem:[#allocation186_spill] sm:$0xff]  ;;  %v19139_v5 = vld [vmem:[#allocation183_spill] sm:$0xff] }
 0x6b4   : >> { %8435 = vmatmul.mubr.bf16.gmra.mrb[112].mxu1 %v9601_v9  ;;  %v9607_v4 = vcombine.low %v19139_v5, %v19138_v6  ;;  %v6830_v9 = vsel %vm1868_vm4, %v6763_v28, %v6765_v43 }
 0x6b5   : >> { %v7500_v56 = vpack.c.bf16 %v7456_v53, %v7454_v47  ;;  %7058 = vrot.lane.b32.xlu0 %v19127_v55, %s10596_s30  ;;  %v6769_v15 = vpop.permute.xlu1 %6768  ;;  %v9608_v53 = vcombine.high %v19139_v5, %v19138_v6  ;;  %v6979_v5 = vmul.f32 %v6830_v9, %v13735_v45 }
 0x6b6   : >> { %v8077_v61 = vld [vmem:[#allocation2 + $0x498] sm:$0xff] }
 0x6b7   : >> { %8493 = vmatprep.subr.bf16.mxu1 %v8077_v61  ;;  %v6767_v17 = vpop.permute.xlu0 %6766  ;;  %6804 = vrot.lane.b32.xlu1 %v15075_v1, %s10595_s29 }
 0x6b8   : >> { %8494 = vmatpush1.bf16.msra.mxu1 %v7500_v56  ;;  %4498 = vmatprep.mubr.bf16.mxu0 %v9608_v53  ;;  %v6831_v56 = vsel %vm1868_vm4, %v6767_v17, %v6769_v15 }
 0x6b9   : >> { %6802 = vrot.lane.b32.xlu0 %v19137_v58, %s10595_s29  ;;  %v7181_v22 = vpop.permute.xlu1 %7180  ;;  %8444 = vmatprep.mubr.bf16.mxu1 %v9608_v53  ;;  %v6981_v6 = vmul.f32 %v6831_v56, %v13735_v45 }
 0x6bb   : >> { %v7179_v16 = vpop.permute.xlu0 %7178  ;;  %6808 = vrot.lane.b32.xlu1 %v15087_v31, %s10595_s29  ;;  %4499 = vmatmul.mubr.bf16.gmra.mrb[116].mxu0 %v9607_v4 }
 0x6bc   : >> { %v7246_v47 = vsel %vm2296_vm3, %v7179_v16, %v7181_v22  ;;  %8445 = vmatmul.mubr.bf16.gmra.mrb[116].mxu1 %v9607_v4  ;;  %v19140_v4 = vld [vmem:[#allocation192_spill] sm:$0xff] }
 0x6bd   : >> { %6806 = vrot.lane.b32.xlu0 %v15091_v13, %s10595_s29  ;;  %v7185_v61 = vpop.permute.xlu1 %7184  ;;  %v7395_v38 = vmul.f32 %v7246_v47, %v13727_v30 }
 0x6bf   : >> { %v7183_v22 = vpop.permute.xlu0 %7182  ;;  %7220 = vrot.lane.b32.xlu1 %v15075_v1, %s10597_s10  ;;  %v7459_v53 = vadd.f32 %v7395_v38, %v6979_v5 }
 0x6c0   : >> { %v7247_v46 = vsel %vm2296_vm3, %v7183_v22, %v7185_v61  ;;  %v19141_v61 = vld [vmem:[#allocation189_spill] sm:$0xff] }
 0x6c1   : >> { %v7397_v43 = vmul.f32 %v7247_v46, %v13727_v30  ;;  %7218 = vrot.lane.b32.xlu0 %v19137_v58, %s10597_s10  ;;  %v6629_v15 = vpop.permute.xlu1 %6628  ;;  %v9614_v59 = vcombine.high %v19141_v61, %v19140_v4  ;;  %v9613_v46 = vcombine.low %v19141_v61, %v19140_v4 }
 0x6c2   : >> { %v6927_v9 = vsel %vm1868_vm4, %v6629_v15, %v6767_v17 }
 0x6c3   : >> { %v7461_v49 = vadd.f32 %v7397_v43, %v6981_v6  ;;  %v6627_v47 = vpop.permute.xlu0 %6626  ;;  %7224 = vrot.lane.b32.xlu1 %v15087_v31, %s10597_s10  ;;  %4508 = vmatprep.mubr.bf16.mxu0 %v9614_v59 }
 0x6c4   : >> { %v6926_v56 = vsel %vm1868_vm4, %v6627_v47, %v6763_v28  ;;  %8454 = vmatprep.mubr.bf16.mxu1 %v9614_v59  ;;  %4509 = vmatmul.mubr.bf16.gmra.mrb[120].mxu0 %v9613_v46  ;;  %v19142_v47 = vld [vmem:[#allocation198_spill] sm:$0xff] }
 0x6c5   : >> { %v7503_v26 = vpack.c.bf16 %v7461_v49, %v7459_v53  ;;  %7222 = vrot.lane.b32.xlu0 %v15091_v13, %s10597_s10  ;;  %v7045_v38 = vpop.permute.xlu1 %7044  ;;  %8455 = vmatmul.mubr.bf16.gmra.mrb[120].mxu1 %v9613_v46  ;;  %v6980_v49 = vmul.f32 %v6927_v9, %v13731_v42  ;;  %v6978_v28 = vmul.f32 %v6926_v56, %v13731_v42  ;;  %v19143_v9 = vld [vmem:[#allocation195_spill] sm:$0xff] }
 0x6c6   : >> { %v7343_v6 = vsel %vm2296_vm3, %v7045_v38, %v7183_v22  ;;  %v9620_v46 = vcombine.high %v19143_v9, %v19142_v47 }
 0x6c7   : >> { %7535 = vst.msk [vmem:[#allocation2 + $0x4a8] sm:$0xff] %vm1612_vm2, %v7503_v26  ;;  %v7043_v5 = vpop.permute.xlu0 %7042  ;;  %v7396_v17 = vmul.f32 %v7343_v6, %v13723_v7  ;;  %6648 = vrot.lane.b32.xlu1 %v15087_v31, %s10594_s28 }
 0x6c8   : >> { %v7342_v43 = vsel %vm2296_vm3, %v7043_v5, %v7179_v16  ;;  %v9619_v16 = vcombine.low %v19143_v9, %v19142_v47  ;;  %4518 = vmatprep.mubr.bf16.mxu0 %v9620_v46  ;;  %8464 = vmatprep.mubr.bf16.mxu1 %v9620_v46  ;;  %v19148_v46 = vld [vmem:[#allocation209_spill] sm:$0xff] }
 0x6c9   : >> { %v7394_v59 = vmul.f32 %v7342_v43, %v13723_v7  ;;  %6646 = vrot.lane.b32.xlu0 %v15075_v1, %s10594_s28  ;;  %v7460_v26 = vadd.f32 %v7396_v17, %v6980_v49  ;;  %v6773_v22 = vpop.permute.xlu1 %6772  ;;  %v19144_v49 = vld [vmem:[#allocation207_spill] sm:$0xff]  ;;  %v19145_v17 = vld [vmem:[#allocation238_spill] sm:$0xff] }
 0x6cb   : >> { %v7458_v15 = vadd.f32 %v7394_v59, %v6978_v28  ;;  %v6771_v53 = vpop.permute.xlu0 %6770  ;;  %7064 = vrot.lane.b32.xlu1 %v15087_v31, %s10596_s30  ;;  %v19146_v59 = vld [vmem:[#allocation13_spill] sm:$0xff] }
 0x6cc   : >> { %4519 = vmatmul.mubr.bf16.gmra.mrb[124].mxu0 %v9619_v16 }
 0x6cd   : >> { %v7502_v38 = vpack.c.bf16 %v7460_v26, %v7458_v15  ;;  %7062 = vrot.lane.b32.xlu0 %v15075_v1, %s10596_s30  ;;  %v6777_v56 = vpop.permute.xlu1 %6776  ;;  %8465 = vmatmul.mubr.bf16.gmra.mrb[124].mxu1 %v9619_v16  ;;  %v19147_v26 = vld [vmem:[#allocation10_spill] sm:$0xff]  ;;  %v6832_v16 = vsel %vm1868_vm4, %v6771_v53, %v6773_v22 }
 0x6ce   : >> { %v8079_v6 = vld [vmem:[#allocation2 + $0x4a8] sm:$0xff]  ;;  %v9436_v15 = vcombine.high %v19147_v26, %v19146_v59 }
 0x6cf   : >> { %8495 = vmatprep.subr.bf16.mxu1 %v8079_v6  ;;  %v6775_v5 = vpop.permute.xlu0 %6774  ;;  %2726 = vrot.lane.b32.xlu1 %v19144_v49, %s10599_s6  ;;  %v15922_v6 = vcombine.low %v19147_v26, %v19146_v59  ;;  %v6983_v26 = vmul.f32 %v6832_v16, %v13735_v45 }
 0x6d0   : >> { %8496 = vmatpush1.bf16.msra.mxu1 %v7502_v38  ;;  %v19149_v38 = vld [vmem:[#allocation239_spill] sm:$0xff]  ;;  %4561 = vmatprep.mubr.bf16.mxu0 %v9436_v15  ;;  %v6833_v49 = vsel %vm1868_vm4, %v6775_v5, %v6777_v56 }
 0x6d1   : >> { %2724 = vrot.lane.b32.xlu0 %v19145_v17, %s10599_s6  ;;  %v7189_v43 = vpop.permute.xlu1 %7188  ;;  %8507 = vmatprep.mubr.bf16.mxu1 %v9436_v15 }
 0x6d3   : >> { %v7187_v28 = vpop.permute.xlu0 %7186  ;;  %2730 = vrot.lane.b32.xlu1 %v19148_v46, %s10599_s6 }
 0x6d4   : >> { %v7248_v4 = vsel %vm2296_vm3, %v7187_v28, %v7189_v43  ;;  %4562 = vmatmul.mubr.bf16.vlgmr.msra.gmra.mrb[0].mxu0 %v15922_v6 }
 0x6d5   : >> { %2728 = vrot.lane.b32.xlu0 %v19149_v38, %s10599_s6  ;;  %v7193_v17 = vpop.permute.xlu1 %7192  ;;  %v7399_v9 = vmul.f32 %v7248_v4, %v13727_v30  ;;  %v6985_v38 = vmul.f32 %v6833_v49, %v13735_v45 }
 0x6d7   : >> { %v7191_v43 = vpop.permute.xlu0 %7190  ;;  %7644 = vrot.lane.b32.xlu1 %v13974_v50, %s10599_s6  ;;  %v7463_v15 = vadd.f32 %v7399_v9, %v6983_v26 }
 0x6d8   : >> { %v7249_v46 = vsel %vm2296_vm3, %v7191_v43, %v7193_v17 }
 0x6d9   : >> { %v7401_v22 = vmul.f32 %v7249_v46, %v13727_v30  ;;  %7642 = vrot.lane.b32.xlu0 %v13980_v10, %s10599_s6  ;;  %v6633_v56 = vpop.permute.xlu1 %6632 }
 0x6da   : >> { %v6929_v59 = vsel %vm1868_vm4, %v6633_v56, %v6775_v5 }
 0x6db   : >> { %v7465_v4 = vadd.f32 %v7401_v22, %v6985_v38  ;;  %v6631_v47 = vpop.permute.xlu0 %6630  ;;  %7648 = vrot.lane.b32.xlu1 %v14000_v19, %s10599_s6  ;;  %v6984_v9 = vmul.f32 %v6929_v59, %v13731_v42  ;;  %v19150_v59 = vld [vmem:[#allocation206_spill] sm:$0xff] }
 0x6dc   : >> { %v6928_v16 = vsel %vm1868_vm4, %v6631_v47, %v6771_v53 }
 0x6dd   : >> { %v7505_v17 = vpack.c.bf16 %v7465_v4, %v7463_v15  ;;  %7646 = vrot.lane.b32.xlu0 %v14007_v34, %s10599_s6  ;;  %v7049_v49 = vpop.permute.xlu1 %7048  ;;  %v6982_v5 = vmul.f32 %v6928_v16, %v13731_v42 }
 0x6de   : >> { %v7345_v10 = vsel %vm2296_vm3, %v7049_v49, %v7191_v43 }
 0x6df   : >> { %7537 = vst.msk [vmem:[#allocation2 + $0x4b8] sm:$0xff] %vm1612_vm2, %v7505_v17  ;;  %v7047_v46 = vpop.permute.xlu0 %7046  ;;  %v7400_v26 = vmul.f32 %v7345_v10, %v13723_v7  ;;  %7548 = vrot.lane.b32.xlu1 %v14000_v19, %s10598_s4  ;;  %v19152_v17 = vld [vmem:[#allocation208_spill] sm:$0xff] }
 0x6e0   : >> { %v7344_v38 = vsel %vm2296_vm3, %v7047_v46, %v7187_v28  ;;  %v19151_v28 = vld [vmem:[#allocation240_spill] sm:$0xff] }
 0x6e1   : >> { %v7398_v34 = vmul.f32 %v7344_v38, %v13723_v7  ;;  %7546 = vrot.lane.b32.xlu0 %v13974_v50, %s10598_s4  ;;  %v7464_v53 = vadd.f32 %v7400_v26, %v6984_v9  ;;  %v6781_v47 = vpop.permute.xlu1 %6780  ;;  %v19153_v50 = vld [vmem:[#allocation241_spill] sm:$0xff] }
 0x6e3   : >> { %v7462_v43 = vadd.f32 %v7398_v34, %v6982_v5  ;;  %v6779_v22 = vpop.permute.xlu0 %6778  ;;  %2734 = vrot.lane.b32.xlu1 %v19150_v59, %s10599_s6 }
 0x6e4   : >> { %v6834_v46 = vsel %vm1868_vm4, %v6779_v22, %v6781_v47 }
 0x6e5   : >> { %v7504_v56 = vpack.c.bf16 %v7464_v53, %v7462_v43  ;;  %2732 = vrot.lane.b32.xlu0 %v19151_v28, %s10599_s6  ;;  %v6785_v15 = vpop.permute.xlu1 %6784  ;;  %v6987_v53 = vmul.f32 %v6834_v46, %v13735_v45 }
 0x6e6   : >> { %v8081_v19 = vld [vmem:[#allocation2 + $0x4b8] sm:$0xff] }
 0x6e7   : >> { %8497 = vmatprep.subr.bf16.mxu1 %v8081_v19  ;;  %v6783_v4 = vpop.permute.xlu0 %6782  ;;  %2738 = vrot.lane.b32.xlu1 %v19152_v17, %s10599_s6 }
 0x6e8   : >> { %8498 = vmatpush1.bf16.msra.mxu1 %v7504_v56  ;;  %v6835_v9 = vsel %vm1868_vm4, %v6783_v4, %v6785_v15 }
 0x6e9   : >> { %2736 = vrot.lane.b32.xlu0 %v19153_v50, %s10599_s6  ;;  %v7197_v16 = vpop.permute.xlu1 %7196  ;;  %v6989_v43 = vmul.f32 %v6835_v9, %v13735_v45  ;;  %v19154_v9 = vld [vmem:[#allocation211_spill] sm:$0xff] }
 0x6eb   : >> { %v7195_v49 = vpop.permute.xlu0 %7194  ;;  %7652 = vrot.lane.b32.xlu1 %v14107_v51, %s10599_s6 }
 0x6ec   : >> { %v7250_v10 = vsel %vm2296_vm3, %v7195_v49, %v7197_v16 }
 0x6ed   : >> { %7650 = vrot.lane.b32.xlu0 %v14113_v29, %s10599_s6  ;;  %v7201_v26 = vpop.permute.xlu1 %7200  ;;  %v7403_v38 = vmul.f32 %v7250_v10, %v13727_v30 }
 0x6ef   : >> { %v7199_v5 = vpop.permute.xlu0 %7198  ;;  %7656 = vrot.lane.b32.xlu1 %v14133_v35, %s10599_s6  ;;  %v7467_v47 = vadd.f32 %v7403_v38, %v6987_v53  ;;  %v19156_v53 = vld [vmem:[#allocation210_spill] sm:$0xff] }
 0x6f0   : >> { %v7251_v34 = vsel %vm2296_vm3, %v7199_v5, %v7201_v26 }
 0x6f1   : >> { %v7405_v59 = vmul.f32 %v7251_v34, %v13727_v30  ;;  %7654 = vrot.lane.b32.xlu0 %v14140_v8, %s10599_s6  ;;  %v6637_v29 = vpop.permute.xlu1 %6636 }
 0x6f2   : >> { %v6931_v19 = vsel %vm1868_vm4, %v6637_v29, %v6783_v4 }
 0x6f3   : >> { %v7469_v56 = vadd.f32 %v7405_v59, %v6989_v43  ;;  %v6635_v28 = vpop.permute.xlu0 %6634  ;;  %7552 = vrot.lane.b32.xlu1 %v14133_v35, %s10598_s4  ;;  %v6988_v10 = vmul.f32 %v6931_v19, %v13731_v42 }
 0x6f4   : >> { %v6930_v17 = vsel %vm1868_vm4, %v6635_v28, %v6779_v22  ;;  %v19155_v22 = vld [vmem:[#allocation242_spill] sm:$0xff] }
 0x6f5   : >> { %v7507_v15 = vpack.c.bf16 %v7469_v56, %v7467_v47  ;;  %7550 = vrot.lane.b32.xlu0 %v14107_v51, %s10598_s4  ;;  %v7053_v50 = vpop.permute.xlu1 %7052  ;;  %v6986_v4 = vmul.f32 %v6930_v17, %v13731_v42 }
 0x6f6   : >> { %v7347_v8 = vsel %vm2296_vm3, %v7053_v50, %v7199_v5 }
 0x6f7   : >> { %7539 = vst.msk [vmem:[#allocation2 + $0x4c8] sm:$0xff] %vm1612_vm2, %v7507_v15  ;;  %v7051_v16 = vpop.permute.xlu0 %7050  ;;  %v7404_v46 = vmul.f32 %v7347_v8, %v13723_v7  ;;  %2742 = vrot.lane.b32.xlu1 %v19154_v9, %s10599_s6 }
 0x6f8   : >> { %v7346_v35 = vsel %vm2296_vm3, %v7051_v16, %v7195_v49  ;;  %v19157_v49 = vld [vmem:[#allocation243_spill] sm:$0xff] }
 0x6f9   : >> { %v7402_v51 = vmul.f32 %v7346_v35, %v13723_v7  ;;  %2740 = vrot.lane.b32.xlu0 %v19155_v22, %s10599_s6  ;;  %v7468_v26 = vadd.f32 %v7404_v46, %v6988_v10  ;;  %v6789_v38 = vpop.permute.xlu1 %6788  ;;  %v19158_v22 = vld [vmem:[#allocation213_spill] sm:$0xff] }
 0x6fb   : >> { %v7466_v5 = vadd.f32 %v7402_v51, %v6986_v4  ;;  %v6787_v34 = vpop.permute.xlu0 %6786  ;;  %2746 = vrot.lane.b32.xlu1 %v19156_v53, %s10599_s6 }
 0x6fc   : >> { %v6836_v19 = vsel %vm1868_vm4, %v6787_v34, %v6789_v38 }
 0x6fd   : >> { %v7506_v43 = vpack.c.bf16 %v7468_v26, %v7466_v5  ;;  %2744 = vrot.lane.b32.xlu0 %v19157_v49, %s10599_s6  ;;  %v6793_v59 = vpop.permute.xlu1 %6792  ;;  %v6991_v10 = vmul.f32 %v6836_v19, %v13735_v45 }
 0x6fe   : >> { %v8083_v29 = vld [vmem:[#allocation2 + $0x4c8] sm:$0xff] }
 0x6ff   : >> { %8499 = vmatprep.subr.bf16.mxu1 %v8083_v29  ;;  %v6791_v47 = vpop.permute.xlu0 %6790  ;;  %7660 = vrot.lane.b32.xlu1 %v14240_v33, %s10599_s6 }
 0x700   : >> { %8500 = vmatpush1.bf16.msra.mxu1 %v7506_v43  ;;  %v6837_v17 = vsel %vm1868_vm4, %v6791_v47, %v6793_v59 }
 0x701   : >> { %7658 = vrot.lane.b32.xlu0 %v14246_v11, %s10599_s6  ;;  %v7205_v56 = vpop.permute.xlu1 %7204  ;;  %v6993_v46 = vmul.f32 %v6837_v17, %v13735_v45 }
 0x703   : >> { %v7203_v28 = vpop.permute.xlu0 %7202  ;;  %7664 = vrot.lane.b32.xlu1 %v14266_v12, %s10599_s6 }
 0x704   : >> { %v7252_v15 = vsel %vm2296_vm3, %v7203_v28, %v7205_v56  ;;  %v19160_v56 = vld [vmem:[#allocation212_spill] sm:$0xff] }
 0x705   : >> { %7662 = vrot.lane.b32.xlu0 %v14273_v57, %s10599_s6  ;;  %v7209_v50 = vpop.permute.xlu1 %7208  ;;  %v7407_v8 = vmul.f32 %v7252_v15, %v13727_v30 }
 0x707   : >> { %v7207_v16 = vpop.permute.xlu0 %7206  ;;  %7556 = vrot.lane.b32.xlu1 %v14266_v12, %s10598_s4  ;;  %v7471_v9 = vadd.f32 %v7407_v8, %v6991_v10  ;;  %v19159_v12 = vld [vmem:[#allocation244_spill] sm:$0xff] }
 0x708   : >> { %v7253_v11 = vsel %vm2296_vm3, %v7207_v16, %v7209_v50 }
 0x709   : >> { %v7409_v35 = vmul.f32 %v7253_v11, %v13727_v30  ;;  %7554 = vrot.lane.b32.xlu0 %v14240_v33, %s10598_s4  ;;  %v6641_v57 = vpop.permute.xlu1 %6640 }
 0x70a   : >> { %v6933_v38 = vsel %vm1868_vm4, %v6641_v57, %v6791_v47 }
 0x70b   : >> { %v7473_v4 = vadd.f32 %v7409_v35, %v6993_v46  ;;  %v6639_v51 = vpop.permute.xlu0 %6638  ;;  %2750 = vrot.lane.b32.xlu1 %v19158_v22, %s10599_s6  ;;  %v6992_v49 = vmul.f32 %v6933_v38, %v13731_v42 }
 0x70c   : >> { %v6932_v5 = vsel %vm1868_vm4, %v6639_v51, %v6787_v34  ;;  %v19161_v34 = vld [vmem:[#allocation245_spill] sm:$0xff] }
 0x70d   : >> { %v7509_v26 = vpack.c.bf16 %v7473_v4, %v7471_v9  ;;  %2748 = vrot.lane.b32.xlu0 %v19159_v12, %s10599_s6  ;;  %v7057_v53 = vpop.permute.xlu1 %7056  ;;  %v6990_v47 = vmul.f32 %v6932_v5, %v13731_v42  ;;  %v19164_v5 = vld [vmem:[#allocation19_spill] sm:$0xff] }
 0x70e   : >> { %v7349_v33 = vsel %vm2296_vm3, %v7057_v53, %v7207_v16  ;;  %v19165_v53 = vld [vmem:[#allocation16_spill] sm:$0xff] }
 0x70f   : >> { %7541 = vst.msk [vmem:[#allocation2 + $0x4d8] sm:$0xff] %vm1612_vm2, %v7509_v26  ;;  %v7055_v43 = vpop.permute.xlu0 %7054  ;;  %v7408_v59 = vmul.f32 %v7349_v33, %v13723_v7  ;;  %2754 = vrot.lane.b32.xlu1 %v19160_v56, %s10599_s6  ;;  %v19162_v26 = vld [vmem:[#allocation215_spill] sm:$0xff]  ;;  %v16063_v33 = vcombine.high %v19165_v53, %v19164_v5 }
 0x710   : >> { %v7348_v29 = vsel %vm2296_vm3, %v7055_v43, %v7203_v28 }
 0x711   : >> { %v7406_v15 = vmul.f32 %v7348_v29, %v13723_v7  ;;  %2752 = vrot.lane.b32.xlu0 %v19161_v34, %s10599_s6  ;;  %v7472_v19 = vadd.f32 %v7408_v59, %v6992_v49  ;;  %v6797_v17 = vpop.permute.xlu1 %6796  ;;  %v16067_v49 = vcombine.low %v19165_v53, %v19164_v5  ;;  %4571 = vmatprep.mubr.bf16.mxu0 %v16063_v33  ;;  %v19236_v5 = vld [vmem:[#allocation272_spill] sm:$0xff] }
 0x713   : >> { %v7470_v50 = vadd.f32 %v7406_v15, %v6990_v47  ;;  %v6795_v8 = vpop.permute.xlu0 %6794  ;;  %7668 = vrot.lane.b32.xlu1 %v14369_v36, %s10599_s6  ;;  %v19166_v47 = vld [vmem:[#allocation214_spill] sm:$0xff]  ;;  %4572 = vmatmul.mubr.bf16.gmra.mrb[4].mxu0 %v16067_v49 }
 0x715   : >> { %v7508_v16 = vpack.c.bf16 %v7472_v19, %v7470_v50  ;;  %7666 = vrot.lane.b32.xlu0 %v14373_v37, %s10599_s6  ;;  %v6801_v28 = vpop.permute.xlu1 %6800  ;;  %v6838_v37 = vsel %vm1868_vm4, %v6795_v8, %v6797_v17  ;;  %v19167_v19 = vld [vmem:[#allocation247_spill] sm:$0xff] }
 0x716   : >> { %v8085_v11 = vld [vmem:[#allocation2 + $0x4d8] sm:$0xff]  ;;  %v6995_v38 = vmul.f32 %v6838_v37, %v13735_v45 }
 0x717   : >> { %8501 = vmatprep.subr.bf16.mxu1 %v8085_v11  ;;  %v6799_v10 = vpop.permute.xlu0 %6798  ;;  %7672 = vrot.lane.b32.xlu1 %v14393_v54, %s10599_s6 }
 0x718   : >> { %8502 = vmatpush1.bf16.msra.mxu1 %v7508_v16  ;;  %v6839_v9 = vsel %vm1868_vm4, %v6799_v10, %v6801_v28 }
 0x719   : >> { %7670 = vrot.lane.b32.xlu0 %v14400_v20, %s10599_s6  ;;  %v7213_v46 = vpop.permute.xlu1 %7212 }
 0x71b   : >> { %v7211_v35 = vpop.permute.xlu0 %7210  ;;  %7560 = vrot.lane.b32.xlu1 %v14393_v54, %s10598_s4  ;;  %v6997_v54 = vmul.f32 %v6839_v9, %v13735_v45  ;;  %v19169_v9 = vld [vmem:[#allocation22_spill] sm:$0xff] }
 0x71c   : >> { %v7254_v57 = vsel %vm2296_vm3, %v7211_v35, %v7213_v46 }
 0x71d   : >> { %7558 = vrot.lane.b32.xlu0 %v14369_v36, %s10598_s4  ;;  %v7217_v4 = vpop.permute.xlu1 %7216  ;;  %v7411_v51 = vmul.f32 %v7254_v57, %v13727_v30  ;;  %v19163_v36 = vld [vmem:[#allocation246_spill] sm:$0xff] }
 0x71f   : >> { %v7215_v22 = vpop.permute.xlu0 %7214  ;;  %2758 = vrot.lane.b32.xlu1 %v19162_v26, %s10599_s6  ;;  %v7475_v59 = vadd.f32 %v7411_v51, %v6995_v38 }
 0x720   : >> { %v7255_v20 = vsel %vm2296_vm3, %v7215_v22, %v7217_v4 }
 0x721   : >> { %v7413_v12 = vmul.f32 %v7255_v20, %v13727_v30  ;;  %2756 = vrot.lane.b32.xlu0 %v19163_v36, %s10599_s6  ;;  %v6645_v43 = vpop.permute.xlu1 %6644  ;;  %v19170_v36 = vld [vmem:[#allocation31_spill] sm:$0xff] }
 0x722   : >> { %v6935_v34 = vsel %vm1868_vm4, %v6645_v43, %v6799_v10  ;;  %v19171_v43 = vld [vmem:[#allocation28_spill] sm:$0xff] }
 0x723   : >> { %v7477_v29 = vadd.f32 %v7413_v12, %v6997_v54  ;;  %v6643_v56 = vpop.permute.xlu0 %6642  ;;  %2762 = vrot.lane.b32.xlu1 %v19166_v47, %s10599_s6  ;;  %v6996_v11 = vmul.f32 %v6935_v34, %v13731_v42 }
 0x724   : >> { %v6934_v17 = vsel %vm1868_vm4, %v6643_v56, %v6795_v8  ;;  %v19168_v8 = vld [vmem:[#allocation25_spill] sm:$0xff]  ;;  %v16112_v56 = vcombine.low %v19171_v43, %v19170_v36 }
 0x725   : >> { %v7511_v15 = vpack.c.bf16 %v7477_v29, %v7475_v59  ;;  %2760 = vrot.lane.b32.xlu0 %v19167_v19, %s10599_s6  ;;  %v7061_v50 = vpop.permute.xlu1 %7060  ;;  %v6994_v10 = vmul.f32 %v6934_v17, %v13731_v42  ;;  %v16090_v4 = vcombine.high %v19169_v9, %v19168_v8  ;;  %v16094_v20 = vcombine.low %v19169_v9, %v19168_v8 }
 0x726   : >> { %v7351_v16 = vsel %vm2296_vm3, %v7061_v50, %v7215_v22  ;;  %v16108_v59 = vcombine.high %v19171_v43, %v19170_v36 }
 0x727   : >> { %7543 = vst.msk [vmem:[#allocation2 + $0x4e8] sm:$0xff] %vm1612_vm2, %v7511_v15  ;;  %v7059_v28 = vpop.permute.xlu0 %7058  ;;  %v7412_v46 = vmul.f32 %v7351_v16, %v13723_v7  ;;  %7676 = vrot.lane.b32.xlu1 %v14445_v60, %s10599_s6  ;;  %4581 = vmatprep.mubr.bf16.mxu0 %v16090_v4 }
 0x728   : >> { %v7350_v57 = vsel %vm2296_vm3, %v7059_v28, %v7211_v35  ;;  %4582 = vmatmul.mubr.bf16.gmra.mrb[8].mxu0 %v16094_v20  ;;  %v19174_v28 = vld [vmem:[#allocation216_spill] sm:$0xff] }
 0x729   : >> { %v7410_v37 = vmul.f32 %v7350_v57, %v13723_v7  ;;  %7674 = vrot.lane.b32.xlu0 %v14449_v3, %s10599_s6  ;;  %v7476_v51 = vadd.f32 %v7412_v46, %v6996_v11  ;;  %v6805_v22 = vpop.permute.xlu1 %6804  ;;  %4591 = vmatprep.mubr.bf16.mxu0 %v16108_v59 }
 0x72b   : >> { %v7474_v35 = vadd.f32 %v7410_v37, %v6994_v10  ;;  %v6803_v26 = vpop.permute.xlu0 %6802  ;;  %7680 = vrot.lane.b32.xlu1 %v14461_v48, %s10599_s6  ;;  %v19175_v10 = vld [vmem:[#allocation249_spill] sm:$0xff] }
 0x72c   : >> { %v6840_v15 = vsel %vm1868_vm4, %v6803_v26, %v6805_v22  ;;  %v19176_v37 = vld [vmem:[#allocation37_spill] sm:$0xff] }
 0x72d   : >> { %v7510_v3 = vpack.c.bf16 %v7476_v51, %v7474_v35  ;;  %7678 = vrot.lane.b32.xlu0 %v14465_v27, %s10599_s6  ;;  %v6809_v38 = vpop.permute.xlu1 %6808  ;;  %v6999_v11 = vmul.f32 %v6840_v15, %v13735_v45  ;;  %v19177_v51 = vld [vmem:[#allocation34_spill] sm:$0xff] }
 0x72e   : >> { %v8087_v54 = vld [vmem:[#allocation2 + $0x4e8] sm:$0xff]  ;;  %v16134_v22 = vcombine.high %v19177_v51, %v19176_v37 }
 0x72f   : >> { %8503 = vmatprep.subr.bf16.mxu1 %v8087_v54  ;;  %v6807_v12 = vpop.permute.xlu0 %6806  ;;  %7564 = vrot.lane.b32.xlu1 %v14461_v48, %s10598_s4  ;;  %v19172_v48 = vld [vmem:[#allocation217_spill] sm:$0xff] }
 0x730   : >> { %8504 = vmatpush1.bf16.msra.mxu1 %v7510_v3  ;;  %4592 = vmatmul.mubr.bf16.gmra.mrb[12].mxu0 %v16112_v56  ;;  %v6841_v34 = vsel %vm1868_vm4, %v6807_v12, %v6809_v38  ;;  %v16138_v3 = vcombine.low %v19177_v51, %v19176_v37 }
 0x731   : >> { %7562 = vrot.lane.b32.xlu0 %v14445_v60, %s10598_s4  ;;  %v7221_v29 = vpop.permute.xlu1 %7220  ;;  %v19173_v60 = vld [vmem:[#allocation248_spill] sm:$0xff]  ;;  %v7001_v46 = vmul.f32 %v6841_v34, %v13735_v45  ;;  %4601 = vmatprep.mubr.bf16.mxu0 %v16134_v22 }
 0x733   : >> { %v7219_v27 = vpop.permute.xlu0 %7218  ;;  %2766 = vrot.lane.b32.xlu1 %v19172_v48, %s10599_s6 }
 0x734   : >> { %v7256_v47 = vsel %vm2296_vm3, %v7219_v27, %v7221_v29 }
 0x735   : >> { %2764 = vrot.lane.b32.xlu0 %v19173_v60, %s10599_s6  ;;  %v7225_v19 = vpop.permute.xlu1 %7224  ;;  %v7415_v17 = vmul.f32 %v7256_v47, %v13727_v30 }
 0x737   : >> { %v7223_v50 = vpop.permute.xlu0 %7222  ;;  %2770 = vrot.lane.b32.xlu1 %v19174_v28, %s10599_s6  ;;  %v7479_v38 = vadd.f32 %v7415_v17, %v6999_v11 }
 0x738   : >> { %v7257_v16 = vsel %vm2296_vm3, %v7223_v50, %v7225_v19  ;;  %4602 = vmatmul.mubr.bf16.gmra.mrb[16].mxu0 %v16138_v3 }
 0x739   : >> { %v7417_v57 = vmul.f32 %v7257_v16, %v13727_v30  ;;  %2768 = vrot.lane.b32.xlu0 %v19175_v10, %s10599_s6  ;;  %v6649_v35 = vpop.permute.xlu1 %6648  ;;  %v19179_v16 = vld [vmem:[#allocation40_spill] sm:$0xff] }
 0x73a   : >> { %v6937_v30 = vsel %vm1868_vm4, %v6649_v35, %v6807_v12  ;;  %v19182_v35 = vld [vmem:[#allocation380_spill] sm:$0xff] }
 0x73b   : >> { %v7481_v54 = vadd.f32 %v7417_v57, %v7001_v46  ;;  %v6647_v29 = vpop.permute.xlu0 %6646  ;;  %7684 = vrot.lane.b32.xlu1 %v14505_v21, %s10599_s6  ;;  %v7000_v34 = vmul.f32 %v6937_v30, %v13731_v42 }
 0x73c   : >> { %v6936_v47 = vsel %vm1868_vm4, %v6647_v29, %v6803_v26  ;;  %v19178_v26 = vld [vmem:[#allocation43_spill] sm:$0xff] }
 0x73d   : >> { %v7513_v45 = vpack.c.bf16 %v7481_v54, %v7479_v38  ;;  %7682 = vrot.lane.b32.xlu0 %v14509_v40, %s10599_s6  ;;  %v7065_v48 = vpop.permute.xlu1 %7064  ;;  %v6998_v12 = vmul.f32 %v6936_v47, %v13731_v42  ;;  %v19180_v42 = vld [vmem:[#allocation379_spill] sm:$0xff]  ;;  %v19183_v54 = vld [vmem:[#allocation358_spill] sm:$0xff] }
 0x73e   : >> { %v7353_v60 = vsel %vm2296_vm3, %v7065_v48, %v7223_v50  ;;  %v16161_v50 = vcombine.high %v19179_v16, %v19178_v26 }
 0x73f   : >> { %7545 = vst.msk [vmem:[#allocation2 + $0x4f8] sm:$0xff] %vm1612_vm2, %v7513_v45  ;;  %v7063_v15 = vpop.permute.xlu0 %7062  ;;  %v7416_v19 = vmul.f32 %v7353_v60, %v13723_v7  ;;  %7688 = vrot.lane.b32.xlu1 %v14517_v39, %s10599_s6 }
 0x740   : >> { %v7352_v17 = vsel %vm2296_vm3, %v7063_v15, %v7219_v27  ;;  %v16165_v27 = vcombine.low %v19179_v16, %v19178_v26  ;;  %4611 = vmatprep.mubr.bf16.mxu0 %v16161_v50  ;;  %v19184_v15 = vld [vmem:[#allocation378_spill] sm:$0xff]  ;;  %v19279_v26 = vld [vmem:[#allocation276_spill] sm:$0xff] }
 0x741   : >> { %v7414_v40 = vmul.f32 %v7352_v17, %v13723_v7  ;;  %7686 = vrot.lane.b32.xlu0 %v14521_v24, %s10599_s6  ;;  %v7480_v28 = vadd.f32 %v7416_v19, %v7000_v34  ;;  %v2727_v11 = vpop.permute.xlu1 %2726  ;;  %v19181_v7 = vld [vmem:[#allocation205_spill] sm:$0xff]  ;;  %v19185_v19 = vld [vmem:[#allocation219_spill] sm:$0xff] }
 0x742   : >> { %v16170_v10 = vrot.slane %v19181_v7, %v19180_v42  ;;  %4612 = vmatmul.mubr.bf16.gmra.mrb[20].mxu0 %v16165_v27  ;;  %v16177_v38 = vrot.slane %v19181_v7, %v19182_v35  ;;  %v19238_v7 = vld [vmem:[#allocation106_spill] sm:$0xff] }
 0x743   : >> { %v7478_v46 = vadd.f32 %v7414_v40, %v6998_v12  ;;  %v2725_v57 = vpop.permute.xlu0 %2724  ;;  %7568 = vrot.lane.b32.xlu1 %v14517_v39, %s10598_s4  ;;  %v19186_v40 = vld [vmem:[#allocation250_spill] sm:$0xff] }
 0x744   : >> { %v2949_v29 = vsel %vm2852_vm5, %v19183_v54, %v2725_v57  ;;  %v2853_v45 = vsel %vm2852_vm5, %v2725_v57, %v2727_v11  ;;  %v19188_v11 = vld [vmem:[#allocation46_spill] sm:$0xff] }
 0x745   : >> { %v7512_v24 = vpack.c.bf16 %v7480_v28, %v7478_v46  ;;  %7566 = vrot.lane.b32.xlu0 %v14505_v21, %s10598_s4  ;;  %v2731_v30 = vpop.permute.xlu1 %2730  ;;  %v2992_v39 = vmul.f32 %v16170_v10, %v2949_v29  ;;  %v2993_v17 = vmul.f32 %v16177_v38, %v2853_v45  ;;  %v19187_v28 = vld [vmem:[#allocation49_spill] sm:$0xff]  ;;  %v19189_v29 = vld [vmem:[#allocation218_spill] sm:$0xff]  ;;  %v19190_v45 = vld [vmem:[#allocation251_spill] sm:$0xff] }
 0x746   : >> { %v8089_v47 = vld [vmem:[#allocation2 + $0x4f8] sm:$0xff]  ;;  %v16197_v46 = vcombine.high %v19188_v11, %v19187_v28  ;;  %v16201_v42 = vcombine.low %v19188_v11, %v19187_v28 }
 0x747   : >> { %8505 = vmatprep.subr.bf16.mxu1 %v8089_v47  ;;  %v2729_v48 = vpop.permute.xlu0 %2728  ;;  %2774 = vrot.lane.b32.xlu1 %v19185_v19, %s10599_s6 }
 0x748   : >> { %v2854_v60 = vsel %vm2852_vm5, %v2729_v48, %v2731_v30  ;;  %v2950_v34 = vsel %vm2852_vm5, %v19184_v15, %v2729_v48  ;;  %8506 = vmatpush1.bf16.msra.mxu1 %v7512_v24  ;;  %4621 = vmatprep.mubr.bf16.mxu0 %v16197_v46  ;;  %v19192_v15 = vld [vmem:[#allocation52_spill] sm:$0xff] }
 0x749   : >> { %v2994_v21 = vmul.f32 %v16170_v10, %v2950_v34  ;;  %v2995_v12 = vmul.f32 %v16177_v38, %v2854_v60  ;;  %2772 = vrot.lane.b32.xlu0 %v19186_v40, %s10599_s6  ;;  %v7645_v57 = vpop.permute.xlu1 %7644  ;;  %v19191_v60 = vld [vmem:[#allocation55_spill] sm:$0xff] }
 0x74a   : >> { %4622 = vmatmul.mubr.bf16.gmra.mrb[24].mxu0 %v16201_v42  ;;  %v16222_v34 = vcombine.high %v19192_v15, %v19191_v60  ;;  %v16229_v40 = vcombine.low %v19192_v15, %v19191_v60 }
 0x74b   : >> { %v3056_v35 = vpack.c.bf16 %v2994_v21, %v2992_v39  ;;  %v3057_v24 = vpack.c.bf16 %v2995_v12, %v2993_v17  ;;  %v7643_v54 = vpop.permute.xlu0 %7642  ;;  %8508 = vmatmul.mubr.bf16.vlgmr.msra.gmra.mrb[0].mxu1 %v15922_v6  ;;  %2778 = vrot.lane.b32.xlu1 %v19189_v29, %s10599_s6 }
 0x74c   : >> { %8517 = vmatprep.mubr.bf16.mxu1 %v16063_v33  ;;  %v7770_v30 = vsel %vm2852_vm5, %v7643_v54, %v7645_v57  ;;  %4631 = vmatprep.mubr.bf16.mxu0 %v16222_v34 }
 0x74d   : >> { %3089 = vst.msk [vmem:[#allocation2 + $0x208] sm:$0xff] %vm1612_vm2, %v3057_v24  ;;  %2776 = vrot.lane.b32.xlu0 %v19190_v45, %s10599_s6  ;;  %v7649_v47 = vpop.permute.xlu1 %7648  ;;  %v7899_v39 = vmul.f32 %v7770_v30, %v16177_v38 }
 0x74f   : >> { %v7647_v48 = vpop.permute.xlu0 %7646  ;;  %7692 = vrot.lane.b32.xlu1 %v14562_v23, %s10599_s6 }
 0x750   : >> { %v7771_v6 = vsel %vm2852_vm5, %v7647_v48, %v7649_v47  ;;  %v19194_v47 = vld [vmem:[#allocation61_spill] sm:$0xff] }
 0x751   : >> { %v7901_v33 = vmul.f32 %v7771_v6, %v16177_v38  ;;  %7690 = vrot.lane.b32.xlu0 %v14566_v14, %s10599_s6  ;;  %v7549_v19 = vpop.permute.xlu1 %7548 }
 0x752   : >> { %v7867_v21 = vsel %vm2852_vm5, %v7549_v19, %v7647_v48  ;;  %4632 = vmatmul.mubr.bf16.gmra.mrb[28].mxu0 %v16229_v40  ;;  %v19195_v48 = vld [vmem:[#allocation58_spill] sm:$0xff]  ;;  %v19196_v19 = vld [vmem:[#allocation360_spill] sm:$0xff] }
 0x753   : >> { %v7963_v17 = vpack.c.bf16 %v7901_v33, %v7899_v39  ;;  %v7547_v12 = vpop.permute.xlu0 %7546  ;;  %8518 = vmatmul.mubr.bf16.gmra.mrb[4].mxu1 %v16067_v49  ;;  %v7900_v57 = vmul.f32 %v7867_v21, %v16170_v10  ;;  %7696 = vrot.lane.b32.xlu1 %v14574_v2, %s10599_s6  ;;  %v16249_v6 = vcombine.high %v19195_v48, %v19194_v47  ;;  %v19197_v21 = vld [vmem:[#allocation221_spill] sm:$0xff] }
 0x754   : >> { %v7866_v14 = vsel %vm2852_vm5, %v7547_v12, %v7643_v54  ;;  %v3185_v24 = vld [vmem:[#allocation2 + $0x208] sm:$0xff]  ;;  %8527 = vmatprep.mubr.bf16.mxu1 %v16090_v4  ;;  %v19193_v54 = vld [vmem:[#allocation361_spill] sm:$0xff] }
 0x755   : >> { %7995 = vst.msk [vmem:[#allocation2 + $0x508] sm:$0xff] %vm1612_vm2, %v7963_v17  ;;  %v7898_v49 = vmul.f32 %v7866_v14, %v16170_v10  ;;  %7694 = vrot.lane.b32.xlu0 %v14578_v44, %s10599_s6  ;;  %4882 = vmatprep.subr.bf16.mxu0 %v3185_v24  ;;  %v2735_v29 = vpop.permute.xlu1 %2734  ;;  %v19198_v24 = vld [vmem:[#allocation254_spill] sm:$0xff] }
 0x756   : >> { %4883 = vmatpush1.bf16.msra.mxu0 %v3056_v35  ;;  %4641 = vmatprep.mubr.bf16.mxu0 %v16249_v6 }
 0x757   : >> { %v7962_v45 = vpack.c.bf16 %v7900_v57, %v7898_v49  ;;  %v2733_v30 = vpop.permute.xlu0 %2732  ;;  %7572 = vrot.lane.b32.xlu1 %v14574_v2, %s10598_s4  ;;  %v16256_v2 = vcombine.low %v19195_v48, %v19194_v47 }
 0x758   : >> { %v2951_v4 = vsel %vm2852_vm5, %v19193_v54, %v2733_v30  ;;  %v2855_v44 = vsel %vm2852_vm5, %v2733_v30, %v2735_v29 }
 0x759   : >> { %7570 = vrot.lane.b32.xlu0 %v14562_v23, %s10598_s4  ;;  %v2739_v35 = vpop.permute.xlu1 %2738  ;;  %v2996_v33 = vmul.f32 %v16170_v10, %v2951_v4  ;;  %v19199_v4 = vld [vmem:[#allocation220_spill] sm:$0xff] }
 0x75a   : >> { %4642 = vmatmul.mubr.bf16.gmra.mrb[32].mxu0 %v16256_v2 }
 0x75b   : >> { %v2737_v39 = vpop.permute.xlu0 %2736  ;;  %8528 = vmatmul.mubr.bf16.gmra.mrb[8].mxu1 %v16094_v20  ;;  %2782 = vrot.lane.b32.xlu1 %v19197_v21, %s10599_s6  ;;  %v2997_v20 = vmul.f32 %v16177_v38, %v2855_v44  ;;  %v19201_v44 = vld [vmem:[#allocation67_spill] sm:$0xff] }
 0x75c   : >> { %v2856_v23 = vsel %vm2852_vm5, %v2737_v39, %v2739_v35  ;;  %v2952_v17 = vsel %vm2852_vm5, %v19196_v19, %v2737_v39  ;;  %v8091_v12 = vld [vmem:[#allocation2 + $0x508] sm:$0xff]  ;;  %8537 = vmatprep.mubr.bf16.mxu1 %v16108_v59  ;;  %v19200_v59 = vld [vmem:[#allocation257_spill] sm:$0xff]  ;;  %v19202_v35 = vld [vmem:[#allocation64_spill] sm:$0xff] }
 0x75d   : >> { %v2998_v57 = vmul.f32 %v16170_v10, %v2952_v17  ;;  %v2999_v14 = vmul.f32 %v16177_v38, %v2856_v23  ;;  %2780 = vrot.lane.b32.xlu0 %v19198_v24, %s10599_s6  ;;  %8828 = vmatprep.subr.bf16.mxu1 %v8091_v12  ;;  %v7653_v49 = vpop.permute.xlu1 %7652  ;;  %v16278_v39 = vcombine.high %v19202_v35, %v19201_v44 }
 0x75e   : >> { %8829 = vmatpush1.bf16.msra.mxu1 %v7962_v45  ;;  %v16285_v19 = vcombine.low %v19202_v35, %v19201_v44 }
 0x75f   : >> { %v3058_v29 = vpack.c.bf16 %v2998_v57, %v2996_v33  ;;  %v3059_v30 = vpack.c.bf16 %v2999_v14, %v2997_v20  ;;  %v7651_v54 = vpop.permute.xlu0 %7650  ;;  %2786 = vrot.lane.b32.xlu1 %v19199_v4, %s10599_s6  ;;  %4651 = vmatprep.mubr.bf16.mxu0 %v16278_v39  ;;  %v19204_v4 = vld [vmem:[#allocation70_spill] sm:$0xff] }
 0x760   : >> { %v7772_v23 = vsel %vm2852_vm5, %v7651_v54, %v7653_v49 }
 0x761   : >> { %3091 = vst.msk [vmem:[#allocation2 + $0x218] sm:$0xff] %vm1612_vm2, %v3059_v30  ;;  %2784 = vrot.lane.b32.xlu0 %v19200_v59, %s10599_s6  ;;  %v7657_v45 = vpop.permute.xlu1 %7656  ;;  %v7903_v21 = vmul.f32 %v7772_v23, %v16177_v38 }
 0x762   : >> { %4652 = vmatmul.mubr.bf16.gmra.mrb[36].mxu0 %v16285_v19 }
 0x763   : >> { %v7655_v33 = vpop.permute.xlu0 %7654  ;;  %8538 = vmatmul.mubr.bf16.gmra.mrb[12].mxu1 %v16112_v56  ;;  %7700 = vrot.lane.b32.xlu1 %v14619_v25, %s10599_s6 }
 0x764   : >> { %v7773_v17 = vsel %vm2852_vm5, %v7655_v33, %v7657_v45  ;;  %8547 = vmatprep.mubr.bf16.mxu1 %v16134_v22 }
 0x765   : >> { %v7905_v12 = vmul.f32 %v7773_v17, %v16177_v38  ;;  %7698 = vrot.lane.b32.xlu0 %v14623_v63, %s10599_s6  ;;  %v7553_v56 = vpop.permute.xlu1 %7552  ;;  %v19203_v63 = vld [vmem:[#allocation73_spill] sm:$0xff] }
 0x766   : >> { %v7869_v57 = vsel %vm2852_vm5, %v7553_v56, %v7655_v33  ;;  %v16307_v59 = vcombine.high %v19204_v4, %v19203_v63  ;;  %v16313_v33 = vcombine.low %v19204_v4, %v19203_v63  ;;  %v19205_v17 = vld [vmem:[#allocation377_spill] sm:$0xff] }
 0x767   : >> { %v7965_v20 = vpack.c.bf16 %v7905_v12, %v7903_v21  ;;  %v7551_v14 = vpop.permute.xlu0 %7550  ;;  %v7904_v24 = vmul.f32 %v7869_v57, %v16170_v10  ;;  %7704 = vrot.lane.b32.xlu1 %v14631_v62, %s10599_s6  ;;  %v19207_v57 = vld [vmem:[#allocation223_spill] sm:$0xff] }
 0x768   : >> { %v7868_v49 = vsel %vm2852_vm5, %v7551_v14, %v7651_v54  ;;  %v3187_v22 = vld [vmem:[#allocation2 + $0x218] sm:$0xff]  ;;  %4661 = vmatprep.mubr.bf16.mxu0 %v16307_v59 }
 0x769   : >> { %7997 = vst.msk [vmem:[#allocation2 + $0x518] sm:$0xff] %vm1612_vm2, %v7965_v20  ;;  %v7902_v30 = vmul.f32 %v7868_v49, %v16170_v10  ;;  %7702 = vrot.lane.b32.xlu0 %v14635_v41, %s10599_s6  ;;  %4884 = vmatprep.subr.bf16.mxu0 %v3187_v22  ;;  %v2743_v23 = vpop.permute.xlu1 %2742  ;;  %v19206_v20 = vld [vmem:[#allocation297_spill] sm:$0xff]  ;;  %v19208_v49 = vld [vmem:[#allocation260_spill] sm:$0xff]  ;;  %v19209_v22 = vld [vmem:[#allocation79_spill] sm:$0xff] }
 0x76a   : >> { %4885 = vmatpush1.bf16.msra.mxu0 %v3058_v29 }
 0x76b   : >> { %v7964_v45 = vpack.c.bf16 %v7904_v24, %v7902_v30  ;;  %v2741_v54 = vpop.permute.xlu0 %2740  ;;  %8548 = vmatmul.mubr.bf16.gmra.mrb[16].mxu1 %v16138_v3  ;;  %7576 = vrot.lane.b32.xlu1 %v14631_v62, %s10598_s4  ;;  %v19210_v30 = vld [vmem:[#allocation76_spill] sm:$0xff] }
 0x76c   : >> { %8557 = vmatprep.mubr.bf16.mxu1 %v16161_v50  ;;  %v2857_v41 = vsel %vm2852_vm5, %v2741_v54, %v2743_v23  ;;  %v2953_v29 = vsel %vm2852_vm5, %v19205_v17, %v2741_v54  ;;  %4662 = vmatmul.mubr.bf16.gmra.mrb[40].mxu0 %v16313_v33  ;;  %v16337_v23 = vcombine.high %v19210_v30, %v19209_v22 }
 0x76d   : >> { %7574 = vrot.lane.b32.xlu0 %v14619_v25, %s10598_s4  ;;  %v2747_v3 = vpop.permute.xlu1 %2746  ;;  %v3000_v12 = vmul.f32 %v16170_v10, %v2953_v29  ;;  %v3001_v56 = vmul.f32 %v16177_v38, %v2857_v41 }
 0x76e   : >> { %4671 = vmatprep.mubr.bf16.mxu0 %v16337_v23 }
 0x76f   : >> { %v2745_v21 = vpop.permute.xlu0 %2744  ;;  %2790 = vrot.lane.b32.xlu1 %v19207_v57, %s10599_s6  ;;  %v19214_v57 = vld [vmem:[#allocation82_spill] sm:$0xff] }
 0x770   : >> { %v2858_v62 = vsel %vm2852_vm5, %v2745_v21, %v2747_v3  ;;  %v2954_v50 = vsel %vm2852_vm5, %v19206_v20, %v2745_v21  ;;  %v8093_v14 = vld [vmem:[#allocation2 + $0x518] sm:$0xff]  ;;  %v16343_v3 = vcombine.low %v19210_v30, %v19209_v22  ;;  %v19211_v21 = vld [vmem:[#allocation222_spill] sm:$0xff] }
 0x771   : >> { %v3002_v24 = vmul.f32 %v16170_v10, %v2954_v50  ;;  %v3003_v25 = vmul.f32 %v16177_v38, %v2858_v62  ;;  %2788 = vrot.lane.b32.xlu0 %v19208_v49, %s10599_s6  ;;  %8830 = vmatprep.subr.bf16.mxu1 %v8093_v14  ;;  %v7661_v54 = vpop.permute.xlu1 %7660  ;;  %v19213_v50 = vld [vmem:[#allocation85_spill] sm:$0xff]  ;;  %v19264_v22 = vld [vmem:[#allocation324_spill] sm:$0xff] }
 0x772   : >> { %8831 = vmatpush1.bf16.msra.mxu1 %v7964_v45  ;;  %v19212_v45 = vld [vmem:[#allocation263_spill] sm:$0xff]  ;;  %v16362_v14 = vcombine.high %v19214_v57, %v19213_v50 }
 0x773   : >> { %v3060_v41 = vpack.c.bf16 %v3002_v24, %v3000_v12  ;;  %v3061_v17 = vpack.c.bf16 %v3003_v25, %v3001_v56  ;;  %v7659_v29 = vpop.permute.xlu0 %7658  ;;  %8558 = vmatmul.mubr.bf16.gmra.mrb[20].mxu1 %v16165_v27  ;;  %2794 = vrot.lane.b32.xlu1 %v19211_v21, %s10599_s6 }
 0x774   : >> { %8567 = vmatprep.mubr.bf16.mxu1 %v16197_v46  ;;  %v7774_v12 = vsel %vm2852_vm5, %v7659_v29, %v7661_v54  ;;  %4672 = vmatmul.mubr.bf16.gmra.mrb[44].mxu0 %v16343_v3 }
 0x775   : >> { %3093 = vst.msk [vmem:[#allocation2 + $0x228] sm:$0xff] %vm1612_vm2, %v3061_v17  ;;  %2792 = vrot.lane.b32.xlu0 %v19212_v45, %s10599_s6  ;;  %v7665_v56 = vpop.permute.xlu1 %7664  ;;  %v7907_v20 = vmul.f32 %v7774_v12, %v16177_v38  ;;  %4681 = vmatprep.mubr.bf16.mxu0 %v16362_v14  ;;  %v16369_v17 = vcombine.low %v19214_v57, %v19213_v50  ;;  %v19215_v45 = vld [vmem:[#allocation328_spill] sm:$0xff] }
 0x777   : >> { %v7663_v27 = vpop.permute.xlu0 %7662  ;;  %7708 = vrot.lane.b32.xlu1 %v14676_v0, %s10599_s6 }
 0x778   : >> { %v7775_v62 = vsel %vm2852_vm5, %v7663_v27, %v7665_v56  ;;  %v19216_v56 = vld [vmem:[#allocation305_spill] sm:$0xff] }
 0x779   : >> { %v7909_v46 = vmul.f32 %v7775_v62, %v16177_v38  ;;  %7706 = vrot.lane.b32.xlu0 %v14680_v52, %s10599_s6  ;;  %v7557_v24 = vpop.permute.xlu1 %7556 }
 0x77a   : >> { %v7871_v49 = vsel %vm2852_vm5, %v7557_v24, %v7663_v27  ;;  %v19219_v24 = vld [vmem:[#allocation88_spill] sm:$0xff] }
 0x77b   : >> { %v7967_v25 = vpack.c.bf16 %v7909_v46, %v7907_v20  ;;  %v7555_v54 = vpop.permute.xlu0 %7554  ;;  %8568 = vmatmul.mubr.bf16.gmra.mrb[24].mxu1 %v16201_v42  ;;  %v7908_v21 = vmul.f32 %v7871_v49, %v16170_v10  ;;  %7712 = vrot.lane.b32.xlu1 %v19215_v45, %s10599_s6  ;;  %v19218_v46 = vld [vmem:[#allocation91_spill] sm:$0xff] }
 0x77c   : >> { %v7870_v52 = vsel %vm2852_vm5, %v7555_v54, %v7659_v29  ;;  %v3189_v12 = vld [vmem:[#allocation2 + $0x228] sm:$0xff]  ;;  %8577 = vmatprep.mubr.bf16.mxu1 %v16222_v34  ;;  %4682 = vmatmul.mubr.bf16.gmra.mrb[48].mxu0 %v16369_v17  ;;  %v19217_v29 = vld [vmem:[#allocation300_spill] sm:$0xff] }
 0x77d   : >> { %7999 = vst.msk [vmem:[#allocation2 + $0x528] sm:$0xff] %vm1612_vm2, %v7967_v25  ;;  %v7906_v42 = vmul.f32 %v7870_v52, %v16170_v10  ;;  %7710 = vrot.lane.b32.xlu0 %v19216_v56, %s10599_s6  ;;  %4886 = vmatprep.subr.bf16.mxu0 %v3189_v12  ;;  %v2751_v27 = vpop.permute.xlu1 %2750  ;;  %v16389_v25 = vcombine.high %v19219_v24, %v19218_v46 }
 0x77e   : >> { %4887 = vmatpush1.bf16.msra.mxu0 %v3060_v41 }
 0x77f   : >> { %v7966_v62 = vpack.c.bf16 %v7908_v21, %v7906_v42  ;;  %v2749_v20 = vpop.permute.xlu0 %2748  ;;  %7580 = vrot.lane.b32.xlu1 %v19215_v45, %s10598_s4  ;;  %4691 = vmatprep.mubr.bf16.mxu0 %v16389_v25  ;;  %v16396_v21 = vcombine.low %v19219_v24, %v19218_v46  ;;  %v19220_v45 = vld [vmem:[#allocation267_spill] sm:$0xff]  ;;  %v19221_v42 = vld [vmem:[#allocation225_spill] sm:$0xff] }
 0x780   : >> { %v2955_v34 = vsel %vm2852_vm5, %v19217_v29, %v2749_v20  ;;  %v2859_v41 = vsel %vm2852_vm5, %v2749_v20, %v2751_v27  ;;  %v19222_v29 = vld [vmem:[#allocation266_spill] sm:$0xff] }
 0x781   : >> { %7578 = vrot.lane.b32.xlu0 %v14676_v0, %s10598_s4  ;;  %v2755_v49 = vpop.permute.xlu1 %2754  ;;  %v3004_v52 = vmul.f32 %v16170_v10, %v2955_v34 }
 0x783   : >> { %v2753_v54 = vpop.permute.xlu0 %2752  ;;  %8578 = vmatmul.mubr.bf16.gmra.mrb[28].mxu1 %v16229_v40  ;;  %2798 = vrot.lane.b32.xlu1 %v19221_v42, %s10599_s6  ;;  %v3005_v40 = vmul.f32 %v16177_v38, %v2859_v41  ;;  %v19223_v42 = vld [vmem:[#allocation224_spill] sm:$0xff]  ;;  %v19225_v41 = vld [vmem:[#allocation97_spill] sm:$0xff] }
 0x784   : >> { %v2860_v0 = vsel %vm2852_vm5, %v2753_v54, %v2755_v49  ;;  %v2956_v12 = vsel %vm2852_vm5, %v19220_v45, %v2753_v54  ;;  %v8095_v56 = vld [vmem:[#allocation2 + $0x528] sm:$0xff]  ;;  %8587 = vmatprep.mubr.bf16.mxu1 %v16249_v6  ;;  %4692 = vmatmul.mubr.bf16.gmra.mrb[52].mxu0 %v16396_v21  ;;  %v19224_v6 = vld [vmem:[#allocation269_spill] sm:$0xff] }
 0x785   : >> { %v3006_v27 = vmul.f32 %v16170_v10, %v2956_v12  ;;  %v3007_v20 = vmul.f32 %v16177_v38, %v2860_v0  ;;  %2796 = vrot.lane.b32.xlu0 %v19222_v29, %s10599_s6  ;;  %8832 = vmatprep.subr.bf16.mxu1 %v8095_v56  ;;  %v7669_v34 = vpop.permute.xlu1 %7668  ;;  %v19226_v0 = vld [vmem:[#allocation94_spill] sm:$0xff] }
 0x786   : >> { %8833 = vmatpush1.bf16.msra.mxu1 %v7966_v62  ;;  %v16418_v12 = vcombine.high %v19226_v0, %v19225_v41 }
 0x787   : >> { %v3062_v49 = vpack.c.bf16 %v3006_v27, %v3004_v52  ;;  %v3063_v54 = vpack.c.bf16 %v3007_v20, %v3005_v40  ;;  %v7667_v45 = vpop.permute.xlu0 %7666  ;;  %2802 = vrot.lane.b32.xlu1 %v19223_v42, %s10599_s6  ;;  %v16425_v40 = vcombine.low %v19226_v0, %v19225_v41  ;;  %v19227_v20 = vld [vmem:[#allocation326_spill] sm:$0xff] }
 0x788   : >> { %v7776_v56 = vsel %vm2852_vm5, %v7667_v45, %v7669_v34  ;;  %4701 = vmatprep.mubr.bf16.mxu0 %v16418_v12 }
 0x789   : >> { %3095 = vst.msk [vmem:[#allocation2 + $0x238] sm:$0xff] %vm1612_vm2, %v3063_v54  ;;  %2800 = vrot.lane.b32.xlu0 %v19224_v6, %s10599_s6  ;;  %v7673_v62 = vpop.permute.xlu1 %7672  ;;  %v7911_v29 = vmul.f32 %v7776_v56, %v16177_v38  ;;  %v19228_v54 = vld [vmem:[#allocation329_spill] sm:$0xff] }
 0x78b   : >> { %v7671_v52 = vpop.permute.xlu0 %7670  ;;  %8588 = vmatmul.mubr.bf16.gmra.mrb[32].mxu1 %v16256_v2  ;;  %7716 = vrot.lane.b32.xlu1 %v19227_v20, %s10599_s6 }
 0x78c   : >> { %v7777_v27 = vsel %vm2852_vm5, %v7671_v52, %v7673_v62  ;;  %8597 = vmatprep.mubr.bf16.mxu1 %v16278_v39  ;;  %4702 = vmatmul.mubr.bf16.gmra.mrb[56].mxu0 %v16425_v40  ;;  %v19229_v39 = vld [vmem:[#allocation273_spill] sm:$0xff] }
 0x78d   : >> { %v7913_v34 = vmul.f32 %v7777_v27, %v16177_v38  ;;  %7714 = vrot.lane.b32.xlu0 %v19228_v54, %s10599_s6  ;;  %v7561_v2 = vpop.permute.xlu1 %7560  ;;  %v19230_v54 = vld [vmem:[#allocation304_spill] sm:$0xff] }
 0x78e   : >> { %v7873_v6 = vsel %vm2852_vm5, %v7561_v2, %v7671_v52  ;;  %v19231_v52 = vld [vmem:[#allocation103_spill] sm:$0xff] }
 0x78f   : >> { %v7969_v42 = vpack.c.bf16 %v7913_v34, %v7911_v29  ;;  %v7559_v0 = vpop.permute.xlu0 %7558  ;;  %v7912_v62 = vmul.f32 %v7873_v6, %v16170_v10  ;;  %7720 = vrot.lane.b32.xlu1 %v19229_v39, %s10599_s6  ;;  %v19232_v29 = vld [vmem:[#allocation100_spill] sm:$0xff] }
 0x790   : >> { %v7872_v4 = vsel %vm2852_vm5, %v7559_v0, %v7667_v45  ;;  %v3191_v56 = vld [vmem:[#allocation2 + $0x238] sm:$0xff]  ;;  %v16447_v34 = vcombine.high %v19232_v29, %v19231_v52  ;;  %v16453_v0 = vcombine.low %v19232_v29, %v19231_v52 }
 0x791   : >> { %8001 = vst.msk [vmem:[#allocation2 + $0x538] sm:$0xff] %vm1612_vm2, %v7969_v42  ;;  %v7910_v27 = vmul.f32 %v7872_v4, %v16170_v10  ;;  %7718 = vrot.lane.b32.xlu0 %v19230_v54, %s10599_s6  ;;  %4888 = vmatprep.subr.bf16.mxu0 %v3191_v56  ;;  %v2759_v2 = vpop.permute.xlu1 %2758  ;;  %v19233_v42 = vld [vmem:[#allocation271_spill] sm:$0xff] }
 0x792   : >> { %4889 = vmatpush1.bf16.msra.mxu0 %v3062_v49  ;;  %4711 = vmatprep.mubr.bf16.mxu0 %v16447_v34  ;;  %v19234_v54 = vld [vmem:[#allocation323_spill] sm:$0xff] }
 0x793   : >> { %v7968_v6 = vpack.c.bf16 %v7912_v62, %v7910_v27  ;;  %v2757_v45 = vpop.permute.xlu0 %2756  ;;  %8598 = vmatmul.mubr.bf16.gmra.mrb[36].mxu1 %v16285_v19  ;;  %7584 = vrot.lane.b32.xlu1 %v19229_v39, %s10598_s4 }
 0x794   : >> { %8607 = vmatprep.mubr.bf16.mxu1 %v16307_v59  ;;  %v2861_v4 = vsel %vm2852_vm5, %v2757_v45, %v2759_v2  ;;  %v2957_v49 = vsel %vm2852_vm5, %v19233_v42, %v2757_v45  ;;  %4712 = vmatmul.mubr.bf16.gmra.mrb[60].mxu0 %v16453_v0  ;;  %v19235_v2 = vld [vmem:[#allocation227_spill] sm:$0xff] }
 0x795   : >> { %7582 = vrot.lane.b32.xlu0 %v19227_v20, %s10598_s4  ;;  %v2763_v19 = vpop.permute.xlu1 %2762  ;;  %v3008_v56 = vmul.f32 %v16170_v10, %v2957_v49  ;;  %v3009_v27 = vmul.f32 %v16177_v38, %v2861_v4  ;;  %v19237_v49 = vld [vmem:[#allocation109_spill] sm:$0xff] }
 0x796   : >> { %v16477_v4 = vcombine.high %v19238_v7, %v19237_v49 }
 0x797   : >> { %v2761_v62 = vpop.permute.xlu0 %2760  ;;  %2806 = vrot.lane.b32.xlu1 %v19235_v2, %s10599_s6 }
 0x798   : >> { %v2862_v39 = vsel %vm2852_vm5, %v2761_v62, %v2763_v19  ;;  %v2958_v59 = vsel %vm2852_vm5, %v19234_v54, %v2761_v62  ;;  %v8097_v45 = vld [vmem:[#allocation2 + $0x538] sm:$0xff]  ;;  %4721 = vmatprep.mubr.bf16.mxu0 %v16477_v4 }
 0x799   : >> { %v3010_v42 = vmul.f32 %v16170_v10, %v2958_v59  ;;  %v3011_v20 = vmul.f32 %v16177_v38, %v2862_v39  ;;  %2804 = vrot.lane.b32.xlu0 %v19236_v5, %s10599_s6  ;;  %8834 = vmatprep.subr.bf16.mxu1 %v8097_v45  ;;  %v7677_v19 = vpop.permute.xlu1 %7676  ;;  %v16483_v39 = vcombine.low %v19238_v7, %v19237_v49  ;;  %v19239_v5 = vld [vmem:[#allocation226_spill] sm:$0xff]  ;;  %v19241_v45 = vld [vmem:[#allocation331_spill] sm:$0xff] }
 0x79a   : >> { %8835 = vmatpush1.bf16.msra.mxu1 %v7968_v6  ;;  %v19240_v6 = vld [vmem:[#allocation275_spill] sm:$0xff] }
 0x79b   : >> { %v3064_v8 = vpack.c.bf16 %v3010_v42, %v3008_v56  ;;  %v3065_v62 = vpack.c.bf16 %v3011_v20, %v3009_v27  ;;  %v7675_v54 = vpop.permute.xlu0 %7674  ;;  %8608 = vmatmul.mubr.bf16.gmra.mrb[40].mxu1 %v16313_v33  ;;  %2810 = vrot.lane.b32.xlu1 %v19239_v5, %s10599_s6  ;;  %v19242_v20 = vld [vmem:[#allocation307_spill] sm:$0xff] }
 0x79c   : >> { %8617 = vmatprep.mubr.bf16.mxu1 %v16337_v23  ;;  %v7778_v56 = vsel %vm2852_vm5, %v7675_v54, %v7677_v19  ;;  %4722 = vmatmul.mubr.bf16.gmra.mrb[64].mxu0 %v16483_v39 }
 0x79d   : >> { %3097 = vst.msk [vmem:[#allocation2 + $0x248] sm:$0xff] %vm1612_vm2, %v3065_v62  ;;  %2808 = vrot.lane.b32.xlu0 %v19240_v6, %s10599_s6  ;;  %v7681_v27 = vpop.permute.xlu1 %7680  ;;  %v7915_v42 = vmul.f32 %v7778_v56, %v16177_v38  ;;  %v19243_v62 = vld [vmem:[#allocation115_spill] sm:$0xff]  ;;  %v19244_v6 = vld [vmem:[#allocation112_spill] sm:$0xff] }
 0x79e   : >> { %v16502_v7 = vcombine.high %v19244_v6, %v19243_v62  ;;  %v16509_v56 = vcombine.low %v19244_v6, %v19243_v62 }
 0x79f   : >> { %v7679_v33 = vpop.permute.xlu0 %7678  ;;  %7724 = vrot.lane.b32.xlu1 %v19241_v45, %s10599_s6 }
 0x7a0   : >> { %v7779_v59 = vsel %vm2852_vm5, %v7679_v33, %v7681_v27  ;;  %4731 = vmatprep.mubr.bf16.mxu0 %v16502_v7 }
 0x7a1   : >> { %v7917_v23 = vmul.f32 %v7779_v59, %v16177_v38  ;;  %7722 = vrot.lane.b32.xlu0 %v19242_v20, %s10599_s6  ;;  %v7565_v19 = vpop.permute.xlu1 %7564  ;;  %v19245_v20 = vld [vmem:[#allocation362_spill] sm:$0xff] }
 0x7a2   : >> { %v7875_v11 = vsel %vm2852_vm5, %v7565_v19, %v7679_v33  ;;  %v19246_v33 = vld [vmem:[#allocation277_spill] sm:$0xff] }
 0x7a3   : >> { %v7971_v9 = vpack.c.bf16 %v7917_v23, %v7915_v42  ;;  %v7563_v15 = vpop.permute.xlu0 %7562  ;;  %8618 = vmatmul.mubr.bf16.gmra.mrb[44].mxu1 %v16343_v3  ;;  %v7916_v27 = vmul.f32 %v7875_v11, %v16170_v10  ;;  %7728 = vrot.lane.b32.xlu1 %v19245_v20, %s10599_s6 }
 0x7a4   : >> { %v7874_v59 = vsel %vm2852_vm5, %v7563_v15, %v7675_v54  ;;  %v3193_v16 = vld [vmem:[#allocation2 + $0x248] sm:$0xff]  ;;  %8627 = vmatprep.mubr.bf16.mxu1 %v16362_v14  ;;  %4732 = vmatmul.mubr.bf16.gmra.mrb[68].mxu0 %v16509_v56 }
 0x7a5   : >> { %8003 = vst.msk [vmem:[#allocation2 + $0x548] sm:$0xff] %vm1612_vm2, %v7971_v9  ;;  %v7914_v3 = vmul.f32 %v7874_v59, %v16170_v10  ;;  %7726 = vrot.lane.b32.xlu0 %v19246_v33, %s10599_s6  ;;  %4890 = vmatprep.subr.bf16.mxu0 %v3193_v16  ;;  %v2767_v42 = vpop.permute.xlu1 %2766  ;;  %v19247_v15 = vld [vmem:[#allocation322_spill] sm:$0xff]  ;;  %v19248_v9 = vld [vmem:[#allocation121_spill] sm:$0xff] }
 0x7a6   : >> { %4891 = vmatpush1.bf16.msra.mxu0 %v3064_v8  ;;  %v19249_v54 = vld [vmem:[#allocation118_spill] sm:$0xff] }
 0x7a7   : >> { %v7970_v23 = vpack.c.bf16 %v7916_v27, %v7914_v3  ;;  %v2765_v11 = vpop.permute.xlu0 %2764  ;;  %2670 = vrot.lane.b32.xlu1 %v19239_v5, %s10598_s4  ;;  %v16529_v19 = vcombine.high %v19249_v54, %v19248_v9  ;;  %v16536_v5 = vcombine.low %v19249_v54, %v19248_v9  ;;  %v19250_v3 = vld [vmem:[#allocation253_spill] sm:$0xff] }
 0x7a8   : >> { %v2959_v14 = vsel %vm2852_vm5, %v19247_v15, %v2765_v11  ;;  %v2863_v8 = vsel %vm2852_vm5, %v2765_v11, %v2767_v42 }
 0x7a9   : >> { %2668 = vrot.lane.b32.xlu0 %v19235_v2, %s10598_s4  ;;  %v2771_v16 = vpop.permute.xlu1 %2770  ;;  %4741 = vmatprep.mubr.bf16.mxu0 %v16529_v19  ;;  %v3012_v59 = vmul.f32 %v16170_v10, %v2959_v14 }
 0x7ab   : >> { %v2769_v27 = vpop.permute.xlu0 %2768  ;;  %8628 = vmatmul.mubr.bf16.gmra.mrb[48].mxu1 %v16369_v17  ;;  %7588 = vrot.lane.b32.xlu1 %v19245_v20, %s10598_s4  ;;  %v3013_v17 = vmul.f32 %v16177_v38, %v2863_v8  ;;  %v19251_v20 = vld [vmem:[#allocation229_spill] sm:$0xff]  ;;  %v19253_v8 = vld [vmem:[#allocation127_spill] sm:$0xff] }
 0x7ac   : >> { %v2864_v2 = vsel %vm2852_vm5, %v2769_v27, %v2771_v16  ;;  %v2960_v33 = vsel %vm2852_vm5, %v19250_v3, %v2769_v27  ;;  %v8099_v42 = vld [vmem:[#allocation2 + $0x548] sm:$0xff]  ;;  %8637 = vmatprep.mubr.bf16.mxu1 %v16389_v25  ;;  %4742 = vmatmul.mubr.bf16.gmra.mrb[72].mxu0 %v16536_v5 }
 0x7ad   : >> { %v3014_v11 = vmul.f32 %v16170_v10, %v2960_v33  ;;  %v3015_v15 = vmul.f32 %v16177_v38, %v2864_v2  ;;  %7586 = vrot.lane.b32.xlu0 %v19241_v45, %s10598_s4  ;;  %8836 = vmatprep.subr.bf16.mxu1 %v8099_v42  ;;  %v7685_v14 = vpop.permute.xlu1 %7684  ;;  %v19252_v25 = vld [vmem:[#allocation278_spill] sm:$0xff]  ;;  %v19254_v2 = vld [vmem:[#allocation124_spill] sm:$0xff] }
 0x7ae   : >> { %8837 = vmatpush1.bf16.msra.mxu1 %v7970_v23  ;;  %v16558_v33 = vcombine.high %v19254_v2, %v19253_v8  ;;  %v16565_v42 = vcombine.low %v19254_v2, %v19253_v8 }
 0x7af   : >> { %v3066_v16 = vpack.c.bf16 %v3014_v11, %v3012_v59  ;;  %v3067_v27 = vpack.c.bf16 %v3015_v15, %v3013_v17  ;;  %v7683_v3 = vpop.permute.xlu0 %7682  ;;  %2814 = vrot.lane.b32.xlu1 %v19251_v20, %s10599_s6  ;;  %v19255_v11 = vld [vmem:[#allocation228_spill] sm:$0xff] }
 0x7b0   : >> { %v7780_v45 = vsel %vm2852_vm5, %v7683_v3, %v7685_v14  ;;  %4751 = vmatprep.mubr.bf16.mxu0 %v16558_v33 }
 0x7b1   : >> { %3099 = vst.msk [vmem:[#allocation2 + $0x258] sm:$0xff] %vm1612_vm2, %v3067_v27  ;;  %2812 = vrot.lane.b32.xlu0 %v19252_v25, %s10599_s6  ;;  %v7689_v23 = vpop.permute.xlu1 %7688  ;;  %v7919_v15 = vmul.f32 %v7780_v45, %v16177_v38  ;;  %v19256_v27 = vld [vmem:[#allocation281_spill] sm:$0xff] }
 0x7b3   : >> { %v7687_v59 = vpop.permute.xlu0 %7686  ;;  %8638 = vmatmul.mubr.bf16.gmra.mrb[52].mxu1 %v16396_v21  ;;  %2818 = vrot.lane.b32.xlu1 %v19255_v11, %s10599_s6 }
 0x7b4   : >> { %v7781_v17 = vsel %vm2852_vm5, %v7687_v59, %v7689_v23  ;;  %8647 = vmatprep.mubr.bf16.mxu1 %v16418_v12  ;;  %4752 = vmatmul.mubr.bf16.gmra.mrb[76].mxu0 %v16565_v42  ;;  %v19257_v12 = vld [vmem:[#allocation364_spill] sm:$0xff] }
 0x7b5   : >> { %v7921_v14 = vmul.f32 %v7781_v17, %v16177_v38  ;;  %2816 = vrot.lane.b32.xlu0 %v19256_v27, %s10599_s6  ;;  %v7569_v21 = vpop.permute.xlu1 %7568  ;;  %v19258_v27 = vld [vmem:[#allocation255_spill] sm:$0xff] }
 0x7b6   : >> { %v7877_v6 = vsel %vm2852_vm5, %v7569_v21, %v7687_v59  ;;  %v19259_v59 = vld [vmem:[#allocation133_spill] sm:$0xff] }
 0x7b7   : >> { %v7973_v25 = vpack.c.bf16 %v7921_v14, %v7919_v15  ;;  %v7567_v2 = vpop.permute.xlu0 %7566  ;;  %v7920_v23 = vmul.f32 %v7877_v6, %v16170_v10  ;;  %7732 = vrot.lane.b32.xlu1 %v19257_v12, %s10599_s6  ;;  %v19260_v15 = vld [vmem:[#allocation130_spill] sm:$0xff] }
 0x7b8   : >> { %v7876_v8 = vsel %vm2852_vm5, %v7567_v2, %v7683_v3  ;;  %v3195_v45 = vld [vmem:[#allocation2 + $0x258] sm:$0xff]  ;;  %v16587_v14 = vcombine.high %v19260_v15, %v19259_v59  ;;  %v16593_v2 = vcombine.low %v19260_v15, %v19259_v59 }
 0x7b9   : >> { %8005 = vst.msk [vmem:[#allocation2 + $0x558] sm:$0xff] %vm1612_vm2, %v7973_v25  ;;  %v7918_v17 = vmul.f32 %v7876_v8, %v16170_v10  ;;  %7730 = vrot.lane.b32.xlu0 %v19258_v27, %s10599_s6  ;;  %4892 = vmatprep.subr.bf16.mxu0 %v3195_v45  ;;  %v2775_v6 = vpop.permute.xlu1 %2774  ;;  %v19261_v8 = vld [vmem:[#allocation332_spill] sm:$0xff]  ;;  %v19262_v45 = vld [vmem:[#allocation301_spill] sm:$0xff] }
 0x7ba   : >> { %4893 = vmatpush1.bf16.msra.mxu0 %v3066_v16  ;;  %4761 = vmatprep.mubr.bf16.mxu0 %v16587_v14 }
 0x7bb   : >> { %v7972_v21 = vpack.c.bf16 %v7920_v23, %v7918_v17  ;;  %v2773_v3 = vpop.permute.xlu0 %2772  ;;  %8648 = vmatmul.mubr.bf16.gmra.mrb[56].mxu1 %v16425_v40  ;;  %7736 = vrot.lane.b32.xlu1 %v19261_v8, %s10599_s6  ;;  %v19263_v23 = vld [vmem:[#allocation306_spill] sm:$0xff] }
 0x7bc   : >> { %8657 = vmatprep.mubr.bf16.mxu1 %v16447_v34  ;;  %v2865_v25 = vsel %vm2852_vm5, %v2773_v3, %v2775_v6  ;;  %v2961_v16 = vsel %vm2852_vm5, %v19262_v45, %v2773_v3  ;;  %4762 = vmatmul.mubr.bf16.gmra.mrb[80].mxu0 %v16593_v2 }
 0x7bd   : >> { %7734 = vrot.lane.b32.xlu0 %v19263_v23, %s10599_s6  ;;  %v2779_v40 = vpop.permute.xlu1 %2778  ;;  %v3016_v27 = vmul.f32 %v16170_v10, %v2961_v16  ;;  %v3017_v9 = vmul.f32 %v16177_v38, %v2865_v25  ;;  %v19265_v16 = vld [vmem:[#allocation139_spill] sm:$0xff]  ;;  %v19266_v23 = vld [vmem:[#allocation136_spill] sm:$0xff] }
 0x7be   : >> { %v16617_v25 = vcombine.high %v19266_v23, %v19265_v16 }
 0x7bf   : >> { %v2777_v17 = vpop.permute.xlu0 %2776  ;;  %2674 = vrot.lane.b32.xlu1 %v19255_v11, %s10598_s4  ;;  %v16623_v11 = vcombine.low %v19266_v23, %v19265_v16 }
 0x7c0   : >> { %v2866_v15 = vsel %vm2852_vm5, %v2777_v17, %v2779_v40  ;;  %v2962_v34 = vsel %vm2852_vm5, %v19264_v22, %v2777_v17  ;;  %v8101_v6 = vld [vmem:[#allocation2 + $0x558] sm:$0xff]  ;;  %4771 = vmatprep.mubr.bf16.mxu0 %v16617_v25 }
 0x7c1   : >> { %v3018_v3 = vmul.f32 %v16170_v10, %v2962_v34  ;;  %v3019_v45 = vmul.f32 %v16177_v38, %v2866_v15  ;;  %2672 = vrot.lane.b32.xlu0 %v19251_v20, %s10598_s4  ;;  %8838 = vmatprep.subr.bf16.mxu1 %v8101_v6  ;;  %v7693_v40 = vpop.permute.xlu1 %7692  ;;  %v19269_v34 = vld [vmem:[#allocation145_spill] sm:$0xff] }
 0x7c2   : >> { %8839 = vmatpush1.bf16.msra.mxu1 %v7972_v21  ;;  %v19267_v21 = vld [vmem:[#allocation231_spill] sm:$0xff] }
 0x7c3   : >> { %v3068_v24 = vpack.c.bf16 %v3018_v3, %v3016_v27  ;;  %v3069_v22 = vpack.c.bf16 %v3019_v45, %v3017_v9  ;;  %v7691_v17 = vpop.permute.xlu0 %7690  ;;  %8658 = vmatmul.mubr.bf16.gmra.mrb[60].mxu1 %v16453_v0  ;;  %7592 = vrot.lane.b32.xlu1 %v19261_v8, %s10598_s4  ;;  %v19268_v27 = vld [vmem:[#allocation284_spill] sm:$0xff] }
 0x7c4   : >> { %8667 = vmatprep.mubr.bf16.mxu1 %v16477_v4  ;;  %v7782_v9 = vsel %vm2852_vm5, %v7691_v17, %v7693_v40  ;;  %4772 = vmatmul.mubr.bf16.gmra.mrb[84].mxu0 %v16623_v11 }
 0x7c5   : >> { %3101 = vst.msk [vmem:[#allocation2 + $0x268] sm:$0xff] %vm1612_vm2, %v3069_v22  ;;  %7590 = vrot.lane.b32.xlu0 %v19257_v12, %s10598_s4  ;;  %v7697_v20 = vpop.permute.xlu1 %7696  ;;  %v7923_v8 = vmul.f32 %v7782_v9, %v16177_v38  ;;  %v19270_v12 = vld [vmem:[#allocation142_spill] sm:$0xff] }
 0x7c6   : >> { %v16642_v6 = vcombine.high %v19270_v12, %v19269_v34  ;;  %v16649_v9 = vcombine.low %v19270_v12, %v19269_v34 }
 0x7c7   : >> { %v7695_v0 = vpop.permute.xlu0 %7694  ;;  %2822 = vrot.lane.b32.xlu1 %v19267_v21, %s10599_s6 }
 0x7c8   : >> { %v7783_v15 = vsel %vm2852_vm5, %v7695_v0, %v7697_v20  ;;  %4781 = vmatprep.mubr.bf16.mxu0 %v16642_v6 }
 0x7c9   : >> { %v7925_v4 = vmul.f32 %v7783_v15, %v16177_v38  ;;  %2820 = vrot.lane.b32.xlu0 %v19268_v27, %s10599_s6  ;;  %v7573_v3 = vpop.permute.xlu1 %7572  ;;  %v19271_v27 = vld [vmem:[#allocation230_spill] sm:$0xff] }
 0x7ca   : >> { %v7879_v40 = vsel %vm2852_vm5, %v7573_v3, %v7695_v0  ;;  %v19272_v0 = vld [vmem:[#allocation287_spill] sm:$0xff] }
 0x7cb   : >> { %v7975_v45 = vpack.c.bf16 %v7925_v4, %v7923_v8  ;;  %v7571_v22 = vpop.permute.xlu0 %7570  ;;  %8668 = vmatmul.mubr.bf16.gmra.mrb[64].mxu1 %v16483_v39  ;;  %v7924_v20 = vmul.f32 %v7879_v40, %v16170_v10  ;;  %2826 = vrot.lane.b32.xlu1 %v19271_v27, %s10599_s6  ;;  %v19274_v40 = vld [vmem:[#allocation252_spill] sm:$0xff] }
 0x7cc   : >> { %v7878_v15 = vsel %vm2852_vm5, %v7571_v22, %v7691_v17  ;;  %v3197_v16 = vld [vmem:[#allocation2 + $0x268] sm:$0xff]  ;;  %8677 = vmatprep.mubr.bf16.mxu1 %v16502_v7  ;;  %4782 = vmatmul.mubr.bf16.gmra.mrb[88].mxu0 %v16649_v9  ;;  %v19276_v22 = vld [vmem:[#allocation151_spill] sm:$0xff] }
 0x7cd   : >> { %8007 = vst.msk [vmem:[#allocation2 + $0x568] sm:$0xff] %vm1612_vm2, %v7975_v45  ;;  %v7922_v39 = vmul.f32 %v7878_v15, %v16170_v10  ;;  %2824 = vrot.lane.b32.xlu0 %v19272_v0, %s10599_s6  ;;  %4894 = vmatprep.subr.bf16.mxu0 %v3197_v16  ;;  %v2783_v8 = vpop.permute.xlu1 %2782  ;;  %v19273_v17 = vld [vmem:[#allocation330_spill] sm:$0xff]  ;;  %v19275_v45 = vld [vmem:[#allocation333_spill] sm:$0xff]  ;;  %v19277_v15 = vld [vmem:[#allocation148_spill] sm:$0xff] }
 0x7ce   : >> { %4895 = vmatpush1.bf16.msra.mxu0 %v3068_v24  ;;  %v16669_v12 = vcombine.high %v19277_v15, %v19276_v22 }
 0x7cf   : >> { %v7974_v4 = vpack.c.bf16 %v7924_v20, %v7922_v39  ;;  %v2781_v3 = vpop.permute.xlu0 %2780  ;;  %7740 = vrot.lane.b32.xlu1 %v19273_v17, %s10599_s6  ;;  %v16676_v39 = vcombine.low %v19277_v15, %v19276_v22  ;;  %v19280_v22 = vld [vmem:[#allocation259_spill] sm:$0xff] }
 0x7d0   : >> { %v2963_v7 = vsel %vm2852_vm5, %v19274_v40, %v2781_v3  ;;  %v2867_v24 = vsel %vm2852_vm5, %v2781_v3, %v2783_v8  ;;  %4791 = vmatprep.mubr.bf16.mxu0 %v16669_v12 }
 0x7d1   : >> { %7738 = vrot.lane.b32.xlu0 %v19275_v45, %s10599_s6  ;;  %v2787_v16 = vpop.permute.xlu1 %2786  ;;  %v3020_v0 = vmul.f32 %v16170_v10, %v2963_v7  ;;  %v19278_v45 = vld [vmem:[#allocation270_spill] sm:$0xff] }
 0x7d3   : >> { %v2785_v20 = vpop.permute.xlu0 %2784  ;;  %8678 = vmatmul.mubr.bf16.gmra.mrb[68].mxu1 %v16509_v56  ;;  %7744 = vrot.lane.b32.xlu1 %v19279_v26, %s10599_s6  ;;  %v3021_v56 = vmul.f32 %v16177_v38, %v2867_v24 }
 0x7d4   : >> { %v2868_v40 = vsel %vm2852_vm5, %v2785_v20, %v2787_v16  ;;  %v2964_v23 = vsel %vm2852_vm5, %v19278_v45, %v2785_v20  ;;  %v8103_v8 = vld [vmem:[#allocation2 + $0x568] sm:$0xff]  ;;  %8687 = vmatprep.mubr.bf16.mxu1 %v16529_v19  ;;  %4792 = vmatmul.mubr.bf16.gmra.mrb[92].mxu0 %v16676_v39  ;;  %v19281_v19 = vld [vmem:[#allocation157_spill] sm:$0xff] }
 0x7d5   : >> { %v3022_v3 = vmul.f32 %v16170_v10, %v2964_v23  ;;  %v3023_v15 = vmul.f32 %v16177_v38, %v2868_v40  ;;  %7742 = vrot.lane.b32.xlu0 %v19280_v22, %s10599_s6  ;;  %8840 = vmatprep.subr.bf16.mxu1 %v8103_v8  ;;  %v7701_v7 = vpop.permute.xlu1 %7700  ;;  %v19282_v23 = vld [vmem:[#allocation154_spill] sm:$0xff] }
 0x7d6   : >> { %8841 = vmatpush1.bf16.msra.mxu1 %v7974_v4  ;;  %v16698_v24 = vcombine.high %v19282_v23, %v19281_v19 }
 0x7d7   : >> { %v3070_v16 = vpack.c.bf16 %v3022_v3, %v3020_v0  ;;  %v3071_v20 = vpack.c.bf16 %v3023_v15, %v3021_v56  ;;  %v7699_v45 = vpop.permute.xlu0 %7698  ;;  %2678 = vrot.lane.b32.xlu1 %v19271_v27, %s10598_s4  ;;  %v16705_v27 = vcombine.low %v19282_v23, %v19281_v19  ;;  %v19294_v19 = vld [vmem:[#allocation166_spill] sm:$0xff] }
 0x7d8   : >> { %v7784_v22 = vsel %vm2852_vm5, %v7699_v45, %v7701_v7  ;;  %4801 = vmatprep.mubr.bf16.mxu0 %v16698_v24 }
 0x7d9   : >> { %3103 = vst.msk [vmem:[#allocation2 + $0x278] sm:$0xff] %vm1612_vm2, %v3071_v20  ;;  %2676 = vrot.lane.b32.xlu0 %v19267_v21, %s10598_s4  ;;  %v7705_v4 = vpop.permute.xlu1 %7704  ;;  %v7927_v21 = vmul.f32 %v7784_v22, %v16177_v38 }
 0x7db   : >> { %v7703_v0 = vpop.permute.xlu0 %7702  ;;  %8688 = vmatmul.mubr.bf16.gmra.mrb[72].mxu1 %v16536_v5  ;;  %7596 = vrot.lane.b32.xlu1 %v19279_v26, %s10598_s4 }
 0x7dc   : >> { %v7785_v15 = vsel %vm2852_vm5, %v7703_v0, %v7705_v4  ;;  %8697 = vmatprep.mubr.bf16.mxu1 %v16558_v33  ;;  %4802 = vmatmul.mubr.bf16.gmra.mrb[96].mxu0 %v16705_v27  ;;  %v19283_v33 = vld [vmem:[#allocation233_spill] sm:$0xff]  ;;  %v19285_v4 = vld [vmem:[#allocation163_spill] sm:$0xff] }
 0x7dd   : >> { %v7929_v40 = vmul.f32 %v7785_v15, %v16177_v38  ;;  %7594 = vrot.lane.b32.xlu0 %v19273_v17, %s10598_s4  ;;  %v7577_v5 = vpop.permute.xlu1 %7576  ;;  %v19284_v17 = vld [vmem:[#allocation290_spill] sm:$0xff] }
 0x7de   : >> { %v7881_v56 = vsel %vm2852_vm5, %v7577_v5, %v7703_v0  ;;  %v19286_v0 = vld [vmem:[#allocation160_spill] sm:$0xff] }
 0x7df   : >> { %v7977_v8 = vpack.c.bf16 %v7929_v40, %v7927_v21  ;;  %v7575_v3 = vpop.permute.xlu0 %7574  ;;  %v7928_v7 = vmul.f32 %v7881_v56, %v16170_v10  ;;  %2830 = vrot.lane.b32.xlu1 %v19283_v33, %s10599_s6  ;;  %v16727_v15 = vcombine.high %v19286_v0, %v19285_v4  ;;  %v16733_v5 = vcombine.low %v19286_v0, %v19285_v4  ;;  %v19290_v0 = vld [vmem:[#allocation325_spill] sm:$0xff]  ;;  %v19292_v4 = vld [vmem:[#allocation335_spill] sm:$0xff] }
 0x7e0   : >> { %v7880_v26 = vsel %vm2852_vm5, %v7575_v3, %v7699_v45  ;;  %v3199_v20 = vld [vmem:[#allocation2 + $0x278] sm:$0xff]  ;;  %v19288_v3 = vld [vmem:[#allocation327_spill] sm:$0xff] }
 0x7e1   : >> { %8009 = vst.msk [vmem:[#allocation2 + $0x578] sm:$0xff] %vm1612_vm2, %v7977_v8  ;;  %v7926_v22 = vmul.f32 %v7880_v26, %v16170_v10  ;;  %2828 = vrot.lane.b32.xlu0 %v19284_v17, %s10599_s6  ;;  %4896 = vmatprep.subr.bf16.mxu0 %v3199_v20  ;;  %v2791_v21 = vpop.permute.xlu1 %2790  ;;  %v19287_v8 = vld [vmem:[#allocation232_spill] sm:$0xff] }
 0x7e2   : >> { %4897 = vmatpush1.bf16.msra.mxu0 %v3070_v16  ;;  %4811 = vmatprep.mubr.bf16.mxu0 %v16727_v15 }
 0x7e3   : >> { %v7976_v40 = vpack.c.bf16 %v7928_v7, %v7926_v22  ;;  %v2789_v45 = vpop.permute.xlu0 %2788  ;;  %8698 = vmatmul.mubr.bf16.gmra.mrb[76].mxu1 %v16565_v42  ;;  %2834 = vrot.lane.b32.xlu1 %v19287_v8, %s10599_s6  ;;  %v19289_v7 = vld [vmem:[#allocation293_spill] sm:$0xff] }
 0x7e4   : >> { %8707 = vmatprep.mubr.bf16.mxu1 %v16587_v14  ;;  %v2869_v56 = vsel %vm2852_vm5, %v2789_v45, %v2791_v21  ;;  %v2965_v16 = vsel %vm2852_vm5, %v19288_v3, %v2789_v45  ;;  %4812 = vmatmul.mubr.bf16.gmra.mrb[100].mxu0 %v16733_v5  ;;  %v19291_v21 = vld [vmem:[#allocation363_spill] sm:$0xff] }
 0x7e5   : >> { %2832 = vrot.lane.b32.xlu0 %v19289_v7, %s10599_s6  ;;  %v2795_v42 = vpop.permute.xlu1 %2794  ;;  %v3024_v20 = vmul.f32 %v16170_v10, %v2965_v16  ;;  %v3025_v22 = vmul.f32 %v16177_v38, %v2869_v56  ;;  %v19293_v16 = vld [vmem:[#allocation169_spill] sm:$0xff] }
 0x7e6   : >> { %v16757_v56 = vcombine.high %v19294_v19, %v19293_v16 }
 0x7e7   : >> { %v2793_v26 = vpop.permute.xlu0 %2792  ;;  %7748 = vrot.lane.b32.xlu1 %v19291_v21, %s10599_s6 }
 0x7e8   : >> { %v2870_v17 = vsel %vm2852_vm5, %v2793_v26, %v2795_v42  ;;  %v2966_v14 = vsel %vm2852_vm5, %v19290_v0, %v2793_v26  ;;  %v8105_v45 = vld [vmem:[#allocation2 + $0x578] sm:$0xff]  ;;  %4821 = vmatprep.mubr.bf16.mxu0 %v16757_v56 }
 0x7e9   : >> { %v3026_v3 = vmul.f32 %v16170_v10, %v2966_v14  ;;  %v3027_v7 = vmul.f32 %v16177_v38, %v2870_v17  ;;  %7746 = vrot.lane.b32.xlu0 %v19292_v4, %s10599_s6  ;;  %8842 = vmatprep.subr.bf16.mxu1 %v8105_v45  ;;  %v7709_v42 = vpop.permute.xlu1 %7708  ;;  %v16763_v17 = vcombine.low %v19294_v19, %v19293_v16  ;;  %v19295_v4 = vld [vmem:[#allocation309_spill] sm:$0xff] }
 0x7ea   : >> { %8843 = vmatpush1.bf16.msra.mxu1 %v7976_v40  ;;  %v19296_v40 = vld [vmem:[#allocation366_spill] sm:$0xff] }
 0x7eb   : >> { %v3072_v23 = vpack.c.bf16 %v3026_v3, %v3024_v20  ;;  %v3073_v0 = vpack.c.bf16 %v3027_v7, %v3025_v22  ;;  %v7707_v26 = vpop.permute.xlu0 %7706  ;;  %8708 = vmatmul.mubr.bf16.gmra.mrb[80].mxu1 %v16593_v2  ;;  %7752 = vrot.lane.b32.xlu1 %v19295_v4, %s10599_s6  ;;  %v19297_v3 = vld [vmem:[#allocation175_spill] sm:$0xff]  ;;  %v19298_v7 = vld [vmem:[#allocation172_spill] sm:$0xff] }
 0x7ec   : >> { %8717 = vmatprep.mubr.bf16.mxu1 %v16617_v25  ;;  %v7786_v20 = vsel %vm2852_vm5, %v7707_v26, %v7709_v42  ;;  %4822 = vmatmul.mubr.bf16.gmra.mrb[104].mxu0 %v16763_v17 }
 0x7ed   : >> { %3105 = vst.msk [vmem:[#allocation2 + $0x288] sm:$0xff] %vm1612_vm2, %v3073_v0  ;;  %7750 = vrot.lane.b32.xlu0 %v19296_v40, %s10599_s6  ;;  %v7713_v22 = vpop.permute.xlu1 %7712  ;;  %v7931_v45 = vmul.f32 %v7786_v20, %v16177_v38  ;;  %v16782_v0 = vcombine.high %v19298_v7, %v19297_v3 }
 0x7ef   : >> { %v7711_v2 = vpop.permute.xlu0 %7710  ;;  %2682 = vrot.lane.b32.xlu1 %v19287_v8, %s10598_s4  ;;  %4831 = vmatprep.mubr.bf16.mxu0 %v16782_v0  ;;  %v16789_v8 = vcombine.low %v19298_v7, %v19297_v3  ;;  %v19306_v7 = vld [vmem:[#allocation299_spill] sm:$0xff] }
 0x7f0   : >> { %v7787_v14 = vsel %vm2852_vm5, %v7711_v2, %v7713_v22 }
 0x7f1   : >> { %v7933_v25 = vmul.f32 %v7787_v14, %v16177_v38  ;;  %2680 = vrot.lane.b32.xlu0 %v19283_v33, %s10598_s4  ;;  %v7581_v42 = vpop.permute.xlu1 %7580 }
 0x7f2   : >> { %v7883_v16 = vsel %vm2852_vm5, %v7581_v42, %v7711_v2 }
 0x7f3   : >> { %v7979_v40 = vpack.c.bf16 %v7933_v25, %v7931_v45  ;;  %v7579_v19 = vpop.permute.xlu0 %7578  ;;  %8718 = vmatmul.mubr.bf16.gmra.mrb[84].mxu1 %v16623_v11  ;;  %v7932_v20 = vmul.f32 %v7883_v16, %v16170_v10  ;;  %7600 = vrot.lane.b32.xlu1 %v19295_v4, %s10598_s4  ;;  %v19301_v4 = vld [vmem:[#allocation296_spill] sm:$0xff]  ;;  %v19302_v45 = vld [vmem:[#allocation181_spill] sm:$0xff]  ;;  %v19303_v25 = vld [vmem:[#allocation178_spill] sm:$0xff] }
 0x7f4   : >> { %v7882_v33 = vsel %vm2852_vm5, %v7579_v19, %v7707_v26  ;;  %v3201_v22 = vld [vmem:[#allocation2 + $0x288] sm:$0xff]  ;;  %8727 = vmatprep.mubr.bf16.mxu1 %v16642_v6  ;;  %4832 = vmatmul.mubr.bf16.gmra.mrb[108].mxu0 %v16789_v8  ;;  %v19299_v19 = vld [vmem:[#allocation235_spill] sm:$0xff]  ;;  %v19300_v26 = vld [vmem:[#allocation256_spill] sm:$0xff]  ;;  %v16809_v42 = vcombine.high %v19303_v25, %v19302_v45 }
 0x7f5   : >> { %8011 = vst.msk [vmem:[#allocation2 + $0x588] sm:$0xff] %vm1612_vm2, %v7979_v40  ;;  %v7930_v11 = vmul.f32 %v7882_v33, %v16170_v10  ;;  %7598 = vrot.lane.b32.xlu0 %v19291_v21, %s10598_s4  ;;  %4898 = vmatprep.subr.bf16.mxu0 %v3201_v22  ;;  %v2799_v2 = vpop.permute.xlu1 %2798 }
 0x7f6   : >> { %4899 = vmatpush1.bf16.msra.mxu0 %v3072_v23  ;;  %4841 = vmatprep.mubr.bf16.mxu0 %v16809_v42 }
 0x7f7   : >> { %v7978_v14 = vpack.c.bf16 %v7932_v20, %v7930_v11  ;;  %v2797_v16 = vpop.permute.xlu0 %2796  ;;  %2838 = vrot.lane.b32.xlu1 %v19299_v19, %s10599_s6  ;;  %v16816_v20 = vcombine.low %v19303_v25, %v19302_v45  ;;  %v19304_v11 = vld [vmem:[#allocation274_spill] sm:$0xff] }
 0x7f8   : >> { %v2967_v6 = vsel %vm2852_vm5, %v19300_v26, %v2797_v16  ;;  %v2871_v23 = vsel %vm2852_vm5, %v2797_v16, %v2799_v2 }
 0x7f9   : >> { %2836 = vrot.lane.b32.xlu0 %v19301_v4, %s10599_s6  ;;  %v2803_v21 = vpop.permute.xlu1 %2802  ;;  %v3028_v33 = vmul.f32 %v16170_v10, %v2967_v6  ;;  %v19305_v4 = vld [vmem:[#allocation234_spill] sm:$0xff] }
 0x7fb   : >> { %v2801_v40 = vpop.permute.xlu0 %2800  ;;  %8728 = vmatmul.mubr.bf16.gmra.mrb[88].mxu1 %v16649_v9  ;;  %2842 = vrot.lane.b32.xlu1 %v19305_v4, %s10599_s6  ;;  %v3029_v9 = vmul.f32 %v16177_v38, %v2871_v23  ;;  %v19308_v23 = vld [vmem:[#allocation184_spill] sm:$0xff] }
 0x7fc   : >> { %v2872_v22 = vsel %vm2852_vm5, %v2801_v40, %v2803_v21  ;;  %v2968_v26 = vsel %vm2852_vm5, %v19304_v11, %v2801_v40  ;;  %v8107_v2 = vld [vmem:[#allocation2 + $0x588] sm:$0xff]  ;;  %8737 = vmatprep.mubr.bf16.mxu1 %v16669_v12  ;;  %4842 = vmatmul.mubr.bf16.gmra.mrb[112].mxu0 %v16816_v20  ;;  %v19307_v12 = vld [vmem:[#allocation187_spill] sm:$0xff] }
 0x7fd   : >> { %v3030_v16 = vmul.f32 %v16170_v10, %v2968_v26  ;;  %v3031_v3 = vmul.f32 %v16177_v38, %v2872_v22  ;;  %2840 = vrot.lane.b32.xlu0 %v19306_v7, %s10599_s6  ;;  %8844 = vmatprep.subr.bf16.mxu1 %v8107_v2  ;;  %v7717_v6 = vpop.permute.xlu1 %7716  ;;  %v16838_v22 = vcombine.high %v19308_v23, %v19307_v12 }
 0x7fe   : >> { %8845 = vmatpush1.bf16.msra.mxu1 %v7978_v14 }
 0x7ff   : >> { %v3074_v21 = vpack.c.bf16 %v3030_v16, %v3028_v33  ;;  %v3075_v40 = vpack.c.bf16 %v3031_v3, %v3029_v9  ;;  %v7715_v11 = vpop.permute.xlu0 %7714  ;;  %7756 = vrot.lane.b32.xlu1 %v19127_v55, %s10599_s6  ;;  %4851 = vmatprep.mubr.bf16.mxu0 %v16838_v22  ;;  %v16845_v3 = vcombine.low %v19308_v23, %v19307_v12  ;;  %v19309_v9 = vld [vmem:[#allocation311_spill] sm:$0xff] }
 0x800   : >> { %v7788_v7 = vsel %vm2852_vm5, %v7715_v11, %v7717_v6 }
 0x801   : >> { %3107 = vst.msk [vmem:[#allocation2 + $0x298] sm:$0xff] %vm1612_vm2, %v3075_v40  ;;  %7754 = vrot.lane.b32.xlu0 %v19128_v18, %s10599_s6  ;;  %v7721_v14 = vpop.permute.xlu1 %7720  ;;  %v7935_v18 = vmul.f32 %v7788_v7, %v16177_v38 }
 0x803   : >> { %v7719_v33 = vpop.permute.xlu0 %7718  ;;  %8738 = vmatmul.mubr.bf16.gmra.mrb[92].mxu1 %v16676_v39  ;;  %7760 = vrot.lane.b32.xlu1 %v19131_v32, %s10599_s6 }
 0x804   : >> { %v7789_v26 = vsel %vm2852_vm5, %v7719_v33, %v7721_v14  ;;  %8747 = vmatprep.mubr.bf16.mxu1 %v16698_v24  ;;  %4852 = vmatmul.mubr.bf16.gmra.mrb[116].mxu0 %v16845_v3 }
 0x805   : >> { %v7937_v2 = vmul.f32 %v7789_v26, %v16177_v38  ;;  %7758 = vrot.lane.b32.xlu0 %v19309_v9, %s10599_s6  ;;  %v7585_v39 = vpop.permute.xlu1 %7584  ;;  %v19311_v26 = vld [vmem:[#allocation190_spill] sm:$0xff] }
 0x806   : >> { %v7885_v6 = vsel %vm2852_vm5, %v7585_v39, %v7719_v33  ;;  %v19310_v33 = vld [vmem:[#allocation193_spill] sm:$0xff] }
 0x807   : >> { %v7981_v16 = vpack.c.bf16 %v7937_v2, %v7935_v18  ;;  %v7583_v40 = vpop.permute.xlu0 %7582  ;;  %v7936_v14 = vmul.f32 %v7885_v6, %v16170_v10  ;;  %2686 = vrot.lane.b32.xlu1 %v19305_v4, %s10598_s4  ;;  %v16867_v18 = vcombine.high %v19311_v26, %v19310_v33  ;;  %v16873_v4 = vcombine.low %v19311_v26, %v19310_v33  ;;  %v19312_v39 = vld [vmem:[#allocation237_spill] sm:$0xff] }
 0x808   : >> { %v7884_v12 = vsel %vm2852_vm5, %v7583_v40, %v7715_v11  ;;  %v3203_v24 = vld [vmem:[#allocation2 + $0x298] sm:$0xff] }
 0x809   : >> { %8013 = vst.msk [vmem:[#allocation2 + $0x598] sm:$0xff] %vm1612_vm2, %v7981_v16  ;;  %v7934_v7 = vmul.f32 %v7884_v12, %v16170_v10  ;;  %2684 = vrot.lane.b32.xlu0 %v19299_v19, %s10598_s4  ;;  %4900 = vmatprep.subr.bf16.mxu0 %v3203_v24  ;;  %v2807_v2 = vpop.permute.xlu1 %2806  ;;  %v19315_v40 = vld [vmem:[#allocation196_spill] sm:$0xff] }
 0x80a   : >> { %4901 = vmatpush1.bf16.msra.mxu0 %v3074_v21  ;;  %4861 = vmatprep.mubr.bf16.mxu0 %v16867_v18 }
 0x80b   : >> { %v7980_v9 = vpack.c.bf16 %v7936_v14, %v7934_v7  ;;  %v2805_v11 = vpop.permute.xlu0 %2804  ;;  %8748 = vmatmul.mubr.bf16.gmra.mrb[96].mxu1 %v16705_v27  ;;  %7604 = vrot.lane.b32.xlu1 %v19131_v32, %s10598_s4 }
 0x80c   : >> { %8757 = vmatprep.mubr.bf16.mxu1 %v16727_v15  ;;  %v2873_v19 = vsel %vm2852_vm5, %v2805_v11, %v2807_v2  ;;  %4862 = vmatmul.mubr.bf16.gmra.mrb[120].mxu0 %v16873_v4  ;;  %v19313_v15 = vld [vmem:[#allocation302_spill] sm:$0xff] }
 0x80d   : >> { %7602 = vrot.lane.b32.xlu0 %v19127_v55, %s10598_s4  ;;  %v2811_v21 = vpop.permute.xlu1 %2810  ;;  %v3033_v6 = vmul.f32 %v16177_v38, %v2873_v19  ;;  %v19314_v55 = vld [vmem:[#allocation199_spill] sm:$0xff] }
 0x80e   : >> { %v16891_v14 = vcombine.high %v19315_v40, %v19314_v55  ;;  %v16897_v19 = vcombine.low %v19315_v40, %v19314_v55 }
 0x80f   : >> { %v2809_v12 = vpop.permute.xlu0 %2808  ;;  %2846 = vrot.lane.b32.xlu1 %v19312_v39, %s10599_s6 }
 0x810   : >> { %v2874_v27 = vsel %vm2852_vm5, %v2809_v12, %v2811_v21  ;;  %v8109_v16 = vld [vmem:[#allocation2 + $0x598] sm:$0xff]  ;;  %4871 = vmatprep.mubr.bf16.mxu0 %v16891_v14 }
 0x811   : >> { %v3035_v32 = vmul.f32 %v16177_v38, %v2874_v27  ;;  %2844 = vrot.lane.b32.xlu0 %v19313_v15, %s10599_s6  ;;  %8846 = vmatprep.subr.bf16.mxu1 %v8109_v16  ;;  %v7725_v24 = vpop.permute.xlu1 %7724  ;;  %v19316_v21 = vld [vmem:[#allocation236_spill] sm:$0xff]  ;;  %v19317_v27 = vld [vmem:[#allocation303_spill] sm:$0xff]  ;;  %v19318_v15 = vld [vmem:[#allocation14_spill] sm:$0xff] }
 0x812   : >> { %8847 = vmatpush1.bf16.msra.mxu1 %v7980_v9 }
 0x813   : >> { %v3077_v7 = vpack.c.bf16 %v3035_v32, %v3033_v6  ;;  %v7723_v2 = vpop.permute.xlu0 %7722  ;;  %8758 = vmatmul.mubr.bf16.gmra.mrb[100].mxu1 %v16733_v5  ;;  %2850 = vrot.lane.b32.xlu1 %v19316_v21, %s10599_s6 }
 0x814   : >> { %8767 = vmatprep.mubr.bf16.mxu1 %v16757_v56  ;;  %v7790_v9 = vsel %vm2852_vm5, %v7723_v2, %v7725_v24  ;;  %4872 = vmatmul.mubr.bf16.gmra.mrb[124].mxu0 %v16897_v19 }
 0x815   : >> { %3109 = vst.msk [vmem:[#allocation2 + $0x2a8] sm:$0xff] %vm1612_vm2, %v3077_v7  ;;  %2848 = vrot.lane.b32.xlu0 %v19317_v27, %s10599_s6  ;;  %v7729_v16 = vpop.permute.xlu1 %7728  ;;  %v7939_v32 = vmul.f32 %v7790_v9, %v16177_v38  ;;  %v19319_v7 = vld [vmem:[#allocation11_spill] sm:$0xff] }
 0x816   : >> { %v16916_v27 = vcombine.high %v19319_v7, %v19318_v15 }
 0x817   : >> { %v7727_v5 = vpop.permute.xlu0 %7726  ;;  %7764 = vrot.lane.b32.xlu1 %v15075_v1, %s10599_s6 }
 0x818   : >> { %v7791_v6 = vsel %vm2852_vm5, %v7727_v5, %v7729_v16  ;;  %4914 = vmatprep.mubr.bf16.mxu0 %v16916_v27 }
 0x819   : >> { %v7941_v56 = vmul.f32 %v7791_v6, %v16177_v38  ;;  %7762 = vrot.lane.b32.xlu0 %v19137_v58, %s10599_s6  ;;  %v2671_v24 = vpop.permute.xlu1 %2670 }
 0x81a   : >> { %v2970_v25 = vsel %vm2852_vm5, %v2671_v24, %v2809_v12 }
 0x81b   : >> { %v7983_v23 = vpack.c.bf16 %v7941_v56, %v7939_v32  ;;  %v2669_v26 = vpop.permute.xlu0 %2668  ;;  %8768 = vmatmul.mubr.bf16.gmra.mrb[104].mxu1 %v16763_v17  ;;  %v3034_v9 = vmul.f32 %v16170_v10, %v2970_v25  ;;  %7768 = vrot.lane.b32.xlu1 %v15087_v31, %s10599_s6 }
 0x81c   : >> { %v2969_v16 = vsel %vm2852_vm5, %v2669_v26, %v2805_v11  ;;  %v3205_v58 = vld [vmem:[#allocation2 + $0x2a8] sm:$0xff]  ;;  %8777 = vmatprep.mubr.bf16.mxu1 %v16782_v0 }
 0x81d   : >> { %8015 = vst.msk [vmem:[#allocation2 + $0x5a8] sm:$0xff] %vm1612_vm2, %v7983_v23  ;;  %v3032_v6 = vmul.f32 %v16170_v10, %v2969_v16  ;;  %7766 = vrot.lane.b32.xlu0 %v15091_v13, %s10599_s6  ;;  %4902 = vmatprep.subr.bf16.mxu0 %v3205_v58  ;;  %v7589_v17 = vpop.permute.xlu1 %7588 }
 0x81e   : >> { %v7887_v25 = vsel %vm2852_vm5, %v7589_v17, %v7727_v5 }
 0x81f   : >> { %v3076_v12 = vpack.c.bf16 %v3034_v9, %v3032_v6  ;;  %v7587_v32 = vpop.permute.xlu0 %7586  ;;  %v7940_v26 = vmul.f32 %v7887_v25, %v16170_v10  ;;  %2690 = vrot.lane.b32.xlu1 %v19316_v21, %s10598_s4 }
 0x820   : >> { %v7886_v11 = vsel %vm2852_vm5, %v7587_v32, %v7723_v2 }
 0x821   : >> { %v7938_v0 = vmul.f32 %v7886_v11, %v16170_v10  ;;  %2688 = vrot.lane.b32.xlu0 %v19312_v39, %s10598_s4  ;;  %4903 = vmatpush1.bf16.msra.mxu0 %v3076_v12  ;;  %v2815_v13 = vpop.permute.xlu1 %2814 }
 0x823   : >> { %v7982_v23 = vpack.c.bf16 %v7940_v26, %v7938_v0  ;;  %v2813_v56 = vpop.permute.xlu0 %2812  ;;  %8778 = vmatmul.mubr.bf16.gmra.mrb[108].mxu1 %v16789_v8  ;;  %7608 = vrot.lane.b32.xlu1 %v15087_v31, %s10598_s4 }
 0x824   : >> { %v8111_v5 = vld [vmem:[#allocation2 + $0x5a8] sm:$0xff]  ;;  %8787 = vmatprep.mubr.bf16.mxu1 %v16809_v42  ;;  %v2875_v2 = vsel %vm2852_vm5, %v2813_v56, %v2815_v13 }
 0x825   : >> { %7606 = vrot.lane.b32.xlu0 %v15075_v1, %s10598_s4  ;;  %8848 = vmatprep.subr.bf16.mxu1 %v8111_v5  ;;  %v2819_v21 = vpop.permute.xlu1 %2818  ;;  %v3037_v9 = vmul.f32 %v16177_v38, %v2875_v2 }
 0x826   : >> { %8849 = vmatpush1.bf16.msra.mxu1 %v7982_v23 }
 0x827   : >> { %v2817_v39 = vpop.permute.xlu0 %2816 }
 0x828   : >> { %v2876_v24 = vsel %vm2852_vm5, %v2817_v39, %v2819_v21 }
 0x829   : >> { %v3039_v8 = vmul.f32 %v16177_v38, %v2876_v24  ;;  %v7733_v16 = vpop.permute.xlu1 %7732 }
 0x82b   : >> { %v3079_v31 = vpack.c.bf16 %v3039_v8, %v3037_v9  ;;  %v7731_v58 = vpop.permute.xlu0 %7730  ;;  %8788 = vmatmul.mubr.bf16.gmra.mrb[112].mxu1 %v16816_v20 }
 0x82c   : >> { %8797 = vmatprep.mubr.bf16.mxu1 %v16838_v22  ;;  %v7792_v1 = vsel %vm2852_vm5, %v7731_v58, %v7733_v16 }
 0x82d   : >> { %3111 = vst.msk [vmem:[#allocation2 + $0x2b8] sm:$0xff] %vm1612_vm2, %v3079_v31  ;;  %v7737_v42 = vpop.permute.xlu1 %7736  ;;  %v7943_v12 = vmul.f32 %v7792_v1, %v16177_v38 }
 0x82f   : >> { %v7735_v6 = vpop.permute.xlu0 %7734 }
 0x830   : >> { %v7793_v17 = vsel %vm2852_vm5, %v7735_v6, %v7737_v42 }
 0x831   : >> { %v7945_v25 = vmul.f32 %v7793_v17, %v16177_v38  ;;  %v2675_v32 = vpop.permute.xlu1 %2674 }
 0x832   : >> { %v2972_v11 = vsel %vm2852_vm5, %v2675_v32, %v2817_v39 }
 0x833   : >> { %v7985_v26 = vpack.c.bf16 %v7945_v25, %v7943_v12  ;;  %v2673_v0 = vpop.permute.xlu0 %2672  ;;  %8798 = vmatmul.mubr.bf16.gmra.mrb[116].mxu1 %v16845_v3  ;;  %v3038_v20 = vmul.f32 %v16170_v10, %v2972_v11 }
 0x834   : >> { %v2971_v22 = vsel %vm2852_vm5, %v2673_v0, %v2813_v56  ;;  %v3207_v13 = vld [vmem:[#allocation2 + $0x2b8] sm:$0xff]  ;;  %8807 = vmatprep.mubr.bf16.mxu1 %v16867_v18 }
 0x835   : >> { %8017 = vst.msk [vmem:[#allocation2 + $0x5b8] sm:$0xff] %vm1612_vm2, %v7985_v26  ;;  %v3036_v23 = vmul.f32 %v16170_v10, %v2971_v22  ;;  %4904 = vmatprep.subr.bf16.mxu0 %v3207_v13  ;;  %v7593_v5 = vpop.permute.xlu1 %7592 }
 0x836   : >> { %v7889_v21 = vsel %vm2852_vm5, %v7593_v5, %v7735_v6 }
 0x837   : >> { %v3078_v2 = vpack.c.bf16 %v3038_v20, %v3036_v23  ;;  %v7591_v39 = vpop.permute.xlu0 %7590  ;;  %v7944_v24 = vmul.f32 %v7889_v21, %v16170_v10 }
 0x838   : >> { %v7888_v3 = vsel %vm2852_vm5, %v7591_v39, %v7731_v58 }
 0x839   : >> { %v7942_v9 = vmul.f32 %v7888_v3, %v16170_v10  ;;  %4905 = vmatpush1.bf16.msra.mxu0 %v3078_v2  ;;  %v2823_v56 = vpop.permute.xlu1 %2822 }
 0x83b   : >> { %v7984_v8 = vpack.c.bf16 %v7944_v24, %v7942_v9  ;;  %v2821_v18 = vpop.permute.xlu0 %2820  ;;  %8808 = vmatmul.mubr.bf16.gmra.mrb[120].mxu1 %v16873_v4 }
 0x83c   : >> { %v8113_v16 = vld [vmem:[#allocation2 + $0x5b8] sm:$0xff]  ;;  %8817 = vmatprep.mubr.bf16.mxu1 %v16891_v14  ;;  %v2877_v31 = vsel %vm2852_vm5, %v2821_v18, %v2823_v56 }
 0x83d   : >> { %8850 = vmatprep.subr.bf16.mxu1 %v8113_v16  ;;  %v2827_v1 = vpop.permute.xlu1 %2826  ;;  %v3041_v58 = vmul.f32 %v16177_v38, %v2877_v31 }
 0x83e   : >> { %8851 = vmatpush1.bf16.msra.mxu1 %v7984_v8 }
 0x83f   : >> { %v2825_v42 = vpop.permute.xlu0 %2824 }
 0x840   : >> { %v2878_v6 = vsel %vm2852_vm5, %v2825_v42, %v2827_v1 }
 0x841   : >> { %v3043_v17 = vmul.f32 %v16177_v38, %v2878_v6  ;;  %v7741_v12 = vpop.permute.xlu1 %7740 }
 0x843   : >> { %v3081_v25 = vpack.c.bf16 %v3043_v17, %v3041_v58  ;;  %v7739_v32 = vpop.permute.xlu0 %7738  ;;  %8818 = vmatmul.mubr.bf16.gmra.mrb[124].mxu1 %v16897_v19 }
 0x844   : >> { %8860 = vmatprep.mubr.bf16.mxu1 %v16916_v27  ;;  %v7794_v4 = vsel %vm2852_vm5, %v7739_v32, %v7741_v12 }
 0x845   : >> { %3113 = vst.msk [vmem:[#allocation2 + $0x2c8] sm:$0xff] %vm1612_vm2, %v3081_v25  ;;  %v7745_v14 = vpop.permute.xlu1 %7744  ;;  %v7947_v0 = vmul.f32 %v7794_v4, %v16177_v38 }
 0x847   : >> { %v7743_v26 = vpop.permute.xlu0 %7742 }
 0x848   : >> { %v7795_v11 = vsel %vm2852_vm5, %v7743_v26, %v7745_v14 }
 0x849   : >> { %v7949_v20 = vmul.f32 %v7795_v11, %v16177_v38  ;;  %v2679_v22 = vpop.permute.xlu1 %2678 }
 0x84a   : >> { %v2974_v23 = vsel %vm2852_vm5, %v2679_v22, %v2825_v42 }
 0x84b   : >> { %v7987_v13 = vpack.c.bf16 %v7949_v20, %v7947_v0  ;;  %v2677_v5 = vpop.permute.xlu0 %2676  ;;  %v3042_v19 = vmul.f32 %v16170_v10, %v2974_v23 }
 0x84c   : >> { %v2973_v27 = vsel %vm2852_vm5, %v2677_v5, %v2821_v18  ;;  %v3209_v2 = vld [vmem:[#allocation2 + $0x2c8] sm:$0xff] }
 0x84d   : >> { %8019 = vst.msk [vmem:[#allocation2 + $0x5c8] sm:$0xff] %vm1612_vm2, %v7987_v13  ;;  %v3040_v21 = vmul.f32 %v16170_v10, %v2973_v27  ;;  %4906 = vmatprep.subr.bf16.mxu0 %v3209_v2  ;;  %v7597_v39 = vpop.permute.xlu1 %7596 }
 0x84e   : >> { %v7891_v3 = vsel %vm2852_vm5, %v7597_v39, %v7743_v26 }
 0x84f   : >> { %v3080_v24 = vpack.c.bf16 %v3042_v19, %v3040_v21  ;;  %v7595_v9 = vpop.permute.xlu0 %7594  ;;  %v7948_v56 = vmul.f32 %v7891_v3, %v16170_v10 }
 0x850   : >> { %v7890_v8 = vsel %vm2852_vm5, %v7595_v9, %v7739_v32 }
 0x851   : >> { %v7946_v16 = vmul.f32 %v7890_v8, %v16170_v10  ;;  %4907 = vmatpush1.bf16.msra.mxu0 %v3080_v24  ;;  %v2831_v31 = vpop.permute.xlu1 %2830 }
 0x853   : >> { %v7986_v18 = vpack.c.bf16 %v7948_v56, %v7946_v16  ;;  %v2829_v1 = vpop.permute.xlu0 %2828 }
 0x854   : >> { %v8115_v42 = vld [vmem:[#allocation2 + $0x5c8] sm:$0xff]  ;;  %v2879_v6 = vsel %vm2852_vm5, %v2829_v1, %v2831_v31 }
 0x855   : >> { %8852 = vmatprep.subr.bf16.mxu1 %v8115_v42  ;;  %v2835_v58 = vpop.permute.xlu1 %2834  ;;  %v3045_v25 = vmul.f32 %v16177_v38, %v2879_v6 }
 0x856   : >> { %8853 = vmatpush1.bf16.msra.mxu1 %v7986_v18 }
 0x857   : >> { %v2833_v17 = vpop.permute.xlu0 %2832 }
 0x858   : >> { %v2880_v12 = vsel %vm2852_vm5, %v2833_v17, %v2835_v58 }
 0x859   : >> { %v3047_v4 = vmul.f32 %v16177_v38, %v2880_v12  ;;  %v7749_v32 = vpop.permute.xlu1 %7748 }
 0x85b   : >> { %v3083_v14 = vpack.c.bf16 %v3047_v4, %v3045_v25  ;;  %v7747_v26 = vpop.permute.xlu0 %7746 }
 0x85c   : >> { %v7796_v11 = vsel %vm2852_vm5, %v7747_v26, %v7749_v32 }
 0x85d   : >> { %3115 = vst.msk [vmem:[#allocation2 + $0x2d8] sm:$0xff] %vm1612_vm2, %v3083_v14  ;;  %v7753_v0 = vpop.permute.xlu1 %7752  ;;  %v7951_v13 = vmul.f32 %v7796_v11, %v16177_v38 }
 0x85f   : >> { %v7751_v20 = vpop.permute.xlu0 %7750 }
 0x860   : >> { %v7797_v22 = vsel %vm2852_vm5, %v7751_v20, %v7753_v0 }
 0x861   : >> { %v7953_v23 = vmul.f32 %v7797_v22, %v16177_v38  ;;  %v2683_v5 = vpop.permute.xlu1 %2682 }
 0x862   : >> { %v2976_v27 = vsel %vm2852_vm5, %v2683_v5, %v2833_v17 }
 0x863   : >> { %v7989_v19 = vpack.c.bf16 %v7953_v23, %v7951_v13  ;;  %v2681_v2 = vpop.permute.xlu0 %2680  ;;  %v3046_v21 = vmul.f32 %v16170_v10, %v2976_v27 }
 0x864   : >> { %v2975_v39 = vsel %vm2852_vm5, %v2681_v2, %v2829_v1  ;;  %v3211_v24 = vld [vmem:[#allocation2 + $0x2d8] sm:$0xff] }
 0x865   : >> { %8021 = vst.msk [vmem:[#allocation2 + $0x5d8] sm:$0xff] %vm1612_vm2, %v7989_v19  ;;  %v3044_v3 = vmul.f32 %v16170_v10, %v2975_v39  ;;  %4908 = vmatprep.subr.bf16.mxu0 %v3211_v24  ;;  %v7601_v9 = vpop.permute.xlu1 %7600 }
 0x866   : >> { %v7893_v8 = vsel %vm2852_vm5, %v7601_v9, %v7751_v20 }
 0x867   : >> { %v3082_v56 = vpack.c.bf16 %v3046_v21, %v3044_v3  ;;  %v7599_v16 = vpop.permute.xlu0 %7598  ;;  %v7952_v31 = vmul.f32 %v7893_v8, %v16170_v10 }
 0x868   : >> { %v7892_v18 = vsel %vm2852_vm5, %v7599_v16, %v7747_v26 }
 0x869   : >> { %v7950_v42 = vmul.f32 %v7892_v18, %v16170_v10  ;;  %4909 = vmatpush1.bf16.msra.mxu0 %v3082_v56  ;;  %v2839_v6 = vpop.permute.xlu1 %2838 }
 0x86b   : >> { %v7988_v1 = vpack.c.bf16 %v7952_v31, %v7950_v42  ;;  %v2837_v58 = vpop.permute.xlu0 %2836 }
 0x86c   : >> { %v8117_v17 = vld [vmem:[#allocation2 + $0x5d8] sm:$0xff]  ;;  %v2881_v12 = vsel %vm2852_vm5, %v2837_v58, %v2839_v6 }
 0x86d   : >> { %8854 = vmatprep.subr.bf16.mxu1 %v8117_v17  ;;  %v2843_v25 = vpop.permute.xlu1 %2842  ;;  %v3049_v14 = vmul.f32 %v16177_v38, %v2881_v12 }
 0x86e   : >> { %8855 = vmatpush1.bf16.msra.mxu1 %v7988_v1 }
 0x86f   : >> { %v2841_v4 = vpop.permute.xlu0 %2840 }
 0x870   : >> { %v2882_v32 = vsel %vm2852_vm5, %v2841_v4, %v2843_v25 }
 0x871   : >> { %v3051_v11 = vmul.f32 %v16177_v38, %v2882_v32  ;;  %v7757_v26 = vpop.permute.xlu1 %7756 }
 0x873   : >> { %v3085_v0 = vpack.c.bf16 %v3051_v11, %v3049_v14  ;;  %v7755_v20 = vpop.permute.xlu0 %7754 }
 0x874   : >> { %v7798_v22 = vsel %vm2852_vm5, %v7755_v20, %v7757_v26 }
 0x875   : >> { %3117 = vst.msk [vmem:[#allocation2 + $0x2e8] sm:$0xff] %vm1612_vm2, %v3085_v0  ;;  %v7761_v13 = vpop.permute.xlu1 %7760  ;;  %v7955_v19 = vmul.f32 %v7798_v22, %v16177_v38 }
 0x877   : >> { %v7759_v23 = vpop.permute.xlu0 %7758 }
 0x878   : >> { %v7799_v5 = vsel %vm2852_vm5, %v7759_v23, %v7761_v13 }
 0x879   : >> { %v7957_v27 = vmul.f32 %v7799_v5, %v16177_v38  ;;  %v2687_v2 = vpop.permute.xlu1 %2686 }
 0x87a   : >> { %v2978_v39 = vsel %vm2852_vm5, %v2687_v2, %v2841_v4 }
 0x87b   : >> { %v7991_v21 = vpack.c.bf16 %v7957_v27, %v7955_v19  ;;  %v2685_v24 = vpop.permute.xlu0 %2684  ;;  %v3050_v3 = vmul.f32 %v16170_v10, %v2978_v39 }
 0x87c   : >> { %v2977_v9 = vsel %vm2852_vm5, %v2685_v24, %v2837_v58  ;;  %v3213_v56 = vld [vmem:[#allocation2 + $0x2e8] sm:$0xff] }
 0x87d   : >> { %8023 = vst.msk [vmem:[#allocation2 + $0x5e8] sm:$0xff] %vm1612_vm2, %v7991_v21  ;;  %v3048_v8 = vmul.f32 %v16170_v10, %v2977_v9  ;;  %4910 = vmatprep.subr.bf16.mxu0 %v3213_v56  ;;  %v7605_v16 = vpop.permute.xlu1 %7604 }
 0x87e   : >> { %v7895_v18 = vsel %vm2852_vm5, %v7605_v16, %v7759_v23 }
 0x87f   : >> { %v3084_v31 = vpack.c.bf16 %v3050_v3, %v3048_v8  ;;  %v7603_v42 = vpop.permute.xlu0 %7602  ;;  %v7956_v6 = vmul.f32 %v7895_v18, %v16170_v10 }
 0x880   : >> { %v7894_v1 = vsel %vm2852_vm5, %v7603_v42, %v7755_v20 }
 0x881   : >> { %v7954_v17 = vmul.f32 %v7894_v1, %v16170_v10  ;;  %4911 = vmatpush1.bf16.msra.mxu0 %v3084_v31  ;;  %v2847_v12 = vpop.permute.xlu1 %2846 }
 0x883   : >> { %v7990_v58 = vpack.c.bf16 %v7956_v6, %v7954_v17  ;;  %v2845_v25 = vpop.permute.xlu0 %2844 }
 0x884   : >> { %v8119_v4 = vld [vmem:[#allocation2 + $0x5e8] sm:$0xff]  ;;  %v2883_v32 = vsel %vm2852_vm5, %v2845_v25, %v2847_v12 }
 0x885   : >> { %8856 = vmatprep.subr.bf16.mxu1 %v8119_v4  ;;  %v2851_v14 = vpop.permute.xlu1 %2850  ;;  %v3053_v0 = vmul.f32 %v16177_v38, %v2883_v32  ;;  %v19320_v4 = vld [vmem:[#allocation20_spill] sm:$0xff]  ;;  %v19321_v32 = vld [vmem:[#allocation17_spill] sm:$0xff] }
 0x886   : >> { %8857 = vmatpush1.bf16.msra.mxu1 %v7990_v58  ;;  %v9437_v58 = vcombine.low %v19319_v7, %v19318_v15 }
 0x887   : >> { %v2849_v11 = vpop.permute.xlu0 %2848 }
 0x888   : >> { %v2884_v26 = vsel %vm2852_vm5, %v2849_v11, %v2851_v14  ;;  %v9444_v14 = vcombine.high %v19321_v32, %v19320_v4 }
 0x889   : >> { %v3055_v22 = vmul.f32 %v16177_v38, %v2884_v26  ;;  %v7765_v20 = vpop.permute.xlu1 %7764 }
 0x88b   : >> { %v3087_v13 = vpack.c.bf16 %v3055_v22, %v3053_v0  ;;  %v7763_v23 = vpop.permute.xlu0 %7762  ;;  %v9443_v0 = vcombine.low %v19321_v32, %v19320_v4  ;;  %v19322_v22 = vld [vmem:[#allocation26_spill] sm:$0xff] }
 0x88c   : >> { %v7800_v5 = vsel %vm2852_vm5, %v7763_v23, %v7765_v20  ;;  %v19323_v20 = vld [vmem:[#allocation23_spill] sm:$0xff] }
 0x88d   : >> { %3119 = vst.msk [vmem:[#allocation2 + $0x2f8] sm:$0xff] %vm1612_vm2, %v3087_v13  ;;  %v7769_v19 = vpop.permute.xlu1 %7768  ;;  %v7959_v21 = vmul.f32 %v7800_v5, %v16177_v38  ;;  %v9450_v13 = vcombine.high %v19323_v20, %v19322_v22  ;;  %v19325_v5 = vld [vmem:[#allocation29_spill] sm:$0xff] }
 0x88f   : >> { %v7767_v27 = vpop.permute.xlu0 %7766 }
 0x890   : >> { %v7801_v2 = vsel %vm2852_vm5, %v7767_v27, %v7769_v19 }
 0x891   : >> { %v7961_v39 = vmul.f32 %v7801_v2, %v16177_v38  ;;  %v2691_v24 = vpop.permute.xlu1 %2690  ;;  %v19326_v2 = vld [vmem:[#allocation38_spill] sm:$0xff] }
 0x892   : >> { %v2980_v9 = vsel %vm2852_vm5, %v2691_v24, %v2849_v11 }
 0x893   : >> { %v7993_v3 = vpack.c.bf16 %v7961_v39, %v7959_v21  ;;  %v2689_v56 = vpop.permute.xlu0 %2688  ;;  %v3054_v8 = vmul.f32 %v16170_v10, %v2980_v9  ;;  %v19327_v21 = vld [vmem:[#allocation35_spill] sm:$0xff]  ;;  %v19329_v9 = vld [vmem:[#allocation41_spill] sm:$0xff] }
 0x894   : >> { %v2979_v16 = vsel %vm2852_vm5, %v2689_v56, %v2845_v25  ;;  %v3215_v31 = vld [vmem:[#allocation2 + $0x2f8] sm:$0xff]  ;;  %v9462_v39 = vcombine.high %v19327_v21, %v19326_v2  ;;  %v9461_v24 = vcombine.low %v19327_v21, %v19326_v2 }
 0x895   : >> { %8025 = vst.msk [vmem:[#allocation2 + $0x5f8] sm:$0xff] %vm1612_vm2, %v7993_v3  ;;  %v3052_v18 = vmul.f32 %v16170_v10, %v2979_v16  ;;  %4912 = vmatprep.subr.bf16.mxu0 %v3215_v31  ;;  %v7609_v42 = vpop.permute.xlu1 %7608  ;;  %v19328_v3 = vld [vmem:[#allocation44_spill] sm:$0xff]  ;;  %v19330_v16 = vld [vmem:[#allocation50_spill] sm:$0xff]  ;;  %v19331_v31 = vld [vmem:[#allocation47_spill] sm:$0xff] }
 0x896   : >> { %v7897_v1 = vsel %vm2852_vm5, %v7609_v42, %v7767_v27  ;;  %v9468_v56 = vcombine.high %v19329_v9, %v19328_v3  ;;  %v9473_v42 = vcombine.low %v19331_v31, %v19330_v16 }
 0x897   : >> { %v3086_v6 = vpack.c.bf16 %v3054_v8, %v3052_v18  ;;  %v7607_v38 = vpop.permute.xlu0 %7606  ;;  %v7960_v17 = vmul.f32 %v7897_v1, %v16170_v10  ;;  %v9467_v8 = vcombine.low %v19329_v9, %v19328_v3  ;;  %v9474_v18 = vcombine.high %v19331_v31, %v19330_v16  ;;  %v19333_v1 = vld [vmem:[#allocation53_spill] sm:$0xff] }
 0x898   : >> { %v7896_v12 = vsel %vm2852_vm5, %v7607_v38, %v7763_v23  ;;  %v19324_v23 = vld [vmem:[#allocation32_spill] sm:$0xff]  ;;  %v19349_v3 = vld [vmem:[#allocation101_spill] sm:$0xff] }
 0x899   : >> { %v7958_v25 = vmul.f32 %v7896_v12, %v16170_v10  ;;  %4913 = vmatpush1.bf16.msra.mxu0 %v3086_v6  ;;  %v9449_v10 = vcombine.low %v19323_v20, %v19322_v22  ;;  %v9456_v19 = vcombine.high %v19325_v5, %v19324_v23  ;;  %v9455_v27 = vcombine.low %v19325_v5, %v19324_v23  ;;  %v19332_v6 = vld [vmem:[#allocation56_spill] sm:$0xff]  ;;  %v19334_v12 = vld [vmem:[#allocation62_spill] sm:$0xff] }
 0x89a   : >> { %v9480_v38 = vcombine.high %v19333_v1, %v19332_v6 }
 0x89b   : >> { %v7992_v11 = vpack.c.bf16 %v7960_v17, %v7958_v25  ;;  %v9479_v17 = vcombine.low %v19333_v1, %v19332_v6  ;;  %v19347_v1 = vld [vmem:[#allocation95_spill] sm:$0xff] }
 0x89c   : >> { %v8121_v26 = vld [vmem:[#allocation2 + $0x5f8] sm:$0xff]  ;;  %4915 = vmatmul.mubr.bf16.vlgmr.msra.gmra.mrb[0].mxu0 %v9437_v58 }
 0x89d   : >> { %8858 = vmatprep.subr.bf16.mxu1 %v8121_v26  ;;  %4924 = vmatprep.mubr.bf16.mxu0 %v9444_v14  ;;  %v19337_v26 = vld [vmem:[#allocation65_spill] sm:$0xff] }
 0x89e   : >> { %8859 = vmatpush1.bf16.msra.mxu1 %v7992_v11  ;;  %v19336_v11 = vld [vmem:[#allocation68_spill] sm:$0xff] }
 0x8a1   : >> { %8861 = vmatmul.mubr.bf16.vlgmr.msra.gmra.mrb[0].mxu1 %v9437_v58  ;;  %v19335_v58 = vld [vmem:[#allocation59_spill] sm:$0xff] }
 0x8a2   : >> { %8870 = vmatprep.mubr.bf16.mxu1 %v9444_v14  ;;  %v9486_v25 = vcombine.high %v19335_v58, %v19334_v12  ;;  %v9485_v14 = vcombine.low %v19335_v58, %v19334_v12 }
 0x8a4   : >> { %4925 = vmatmul.mubr.bf16.gmra.mrb[4].mxu0 %v9443_v0 }
 0x8a5   : >> { %4934 = vmatprep.mubr.bf16.mxu0 %v9450_v13 }
 0x8a9   : >> { %8871 = vmatmul.mubr.bf16.gmra.mrb[4].mxu1 %v9443_v0  ;;  %v9492_v0 = vcombine.high %v19337_v26, %v19336_v11 }
 0x8aa   : >> { %8880 = vmatprep.mubr.bf16.mxu1 %v9450_v13  ;;  %v9491_v13 = vcombine.low %v19337_v26, %v19336_v11 }
 0x8ac   : >> { %4935 = vmatmul.mubr.bf16.gmra.mrb[8].mxu0 %v9449_v10 }
 0x8ad   : >> { %4944 = vmatprep.mubr.bf16.mxu0 %v9456_v19 }
 0x8b1   : >> { %8881 = vmatmul.mubr.bf16.gmra.mrb[8].mxu1 %v9449_v10  ;;  %v19338_v10 = vld [vmem:[#allocation74_spill] sm:$0xff] }
 0x8b2   : >> { %8890 = vmatprep.mubr.bf16.mxu1 %v9456_v19  ;;  %v19339_v19 = vld [vmem:[#allocation71_spill] sm:$0xff] }
 0x8b4   : >> { %4945 = vmatmul.mubr.bf16.gmra.mrb[12].mxu0 %v9455_v27 }
 0x8b5   : >> { %4954 = vmatprep.mubr.bf16.mxu0 %v9462_v39 }
 0x8b9   : >> { %8891 = vmatmul.mubr.bf16.gmra.mrb[12].mxu1 %v9455_v27  ;;  %v9498_v27 = vcombine.high %v19339_v19, %v19338_v10 }
 0x8ba   : >> { %8900 = vmatprep.mubr.bf16.mxu1 %v9462_v39  ;;  %v9497_v39 = vcombine.low %v19339_v19, %v19338_v10 }
 0x8bc   : >> { %4955 = vmatmul.mubr.bf16.gmra.mrb[16].mxu0 %v9461_v24 }
 0x8bd   : >> { %4964 = vmatprep.mubr.bf16.mxu0 %v9468_v56 }
 0x8c1   : >> { %8901 = vmatmul.mubr.bf16.gmra.mrb[16].mxu1 %v9461_v24  ;;  %v19340_v24 = vld [vmem:[#allocation80_spill] sm:$0xff] }
 0x8c2   : >> { %8910 = vmatprep.mubr.bf16.mxu1 %v9468_v56  ;;  %v19341_v56 = vld [vmem:[#allocation77_spill] sm:$0xff] }
 0x8c4   : >> { %4965 = vmatmul.mubr.bf16.gmra.mrb[20].mxu0 %v9467_v8 }
 0x8c5   : >> { %4974 = vmatprep.mubr.bf16.mxu0 %v9474_v18 }
 0x8c9   : >> { %8911 = vmatmul.mubr.bf16.gmra.mrb[20].mxu1 %v9467_v8  ;;  %v9504_v8 = vcombine.high %v19341_v56, %v19340_v24 }
 0x8ca   : >> { %8920 = vmatprep.mubr.bf16.mxu1 %v9474_v18  ;;  %v9503_v18 = vcombine.low %v19341_v56, %v19340_v24 }
 0x8cc   : >> { %4975 = vmatmul.mubr.bf16.gmra.mrb[24].mxu0 %v9473_v42 }
 0x8cd   : >> { %4984 = vmatprep.mubr.bf16.mxu0 %v9480_v38 }
 0x8d1   : >> { %8921 = vmatmul.mubr.bf16.gmra.mrb[24].mxu1 %v9473_v42  ;;  %v19342_v42 = vld [vmem:[#allocation86_spill] sm:$0xff] }
 0x8d2   : >> { %8930 = vmatprep.mubr.bf16.mxu1 %v9480_v38  ;;  %v19343_v38 = vld [vmem:[#allocation83_spill] sm:$0xff] }
 0x8d4   : >> { %4985 = vmatmul.mubr.bf16.gmra.mrb[28].mxu0 %v9479_v17 }
 0x8d5   : >> { %4994 = vmatprep.mubr.bf16.mxu0 %v9486_v25 }
 0x8d9   : >> { %8931 = vmatmul.mubr.bf16.gmra.mrb[28].mxu1 %v9479_v17  ;;  %v9510_v17 = vcombine.high %v19343_v38, %v19342_v42 }
 0x8da   : >> { %8940 = vmatprep.mubr.bf16.mxu1 %v9486_v25  ;;  %v9509_v25 = vcombine.low %v19343_v38, %v19342_v42 }
 0x8dc   : >> { %4995 = vmatmul.mubr.bf16.gmra.mrb[32].mxu0 %v9485_v14 }
 0x8dd   : >> { %5004 = vmatprep.mubr.bf16.mxu0 %v9492_v0 }
 0x8e1   : >> { %8941 = vmatmul.mubr.bf16.gmra.mrb[32].mxu1 %v9485_v14  ;;  %v19344_v14 = vld [vmem:[#allocation92_spill] sm:$0xff] }
 0x8e2   : >> { %8950 = vmatprep.mubr.bf16.mxu1 %v9492_v0  ;;  %v19345_v0 = vld [vmem:[#allocation89_spill] sm:$0xff] }
 0x8e4   : >> { %5005 = vmatmul.mubr.bf16.gmra.mrb[36].mxu0 %v9491_v13 }
 0x8e5   : >> { %5014 = vmatprep.mubr.bf16.mxu0 %v9498_v27 }
 0x8e9   : >> { %8951 = vmatmul.mubr.bf16.gmra.mrb[36].mxu1 %v9491_v13  ;;  %v9516_v13 = vcombine.high %v19345_v0, %v19344_v14 }
 0x8ea   : >> { %8960 = vmatprep.mubr.bf16.mxu1 %v9498_v27  ;;  %v9515_v27 = vcombine.low %v19345_v0, %v19344_v14  ;;  %v19351_v0 = vld [vmem:[#allocation107_spill] sm:$0xff] }
 0x8ec   : >> { %5015 = vmatmul.mubr.bf16.gmra.mrb[40].mxu0 %v9497_v39 }
 0x8ed   : >> { %5024 = vmatprep.mubr.bf16.mxu0 %v9504_v8 }
 0x8f1   : >> { %8961 = vmatmul.mubr.bf16.gmra.mrb[40].mxu1 %v9497_v39  ;;  %v19346_v39 = vld [vmem:[#allocation98_spill] sm:$0xff] }
 0x8f2   : >> { %8970 = vmatprep.mubr.bf16.mxu1 %v9504_v8  ;;  %v9522_v2 = vcombine.high %v19347_v1, %v19346_v39  ;;  %v9521_v8 = vcombine.low %v19347_v1, %v19346_v39  ;;  %v19353_v1 = vld [vmem:[#allocation113_spill] sm:$0xff] }
 0x8f4   : >> { %5025 = vmatmul.mubr.bf16.gmra.mrb[44].mxu0 %v9503_v18 }
 0x8f5   : >> { %5034 = vmatprep.mubr.bf16.mxu0 %v9510_v17 }
 0x8f9   : >> { %8971 = vmatmul.mubr.bf16.gmra.mrb[44].mxu1 %v9503_v18  ;;  %v19348_v18 = vld [vmem:[#allocation104_spill] sm:$0xff] }
 0x8fa   : >> { %8980 = vmatprep.mubr.bf16.mxu1 %v9510_v17  ;;  %v9528_v4 = vcombine.high %v19349_v3, %v19348_v18  ;;  %v9527_v17 = vcombine.low %v19349_v3, %v19348_v18  ;;  %v19355_v3 = vld [vmem:[#allocation119_spill] sm:$0xff] }
 0x8fc   : >> { %5035 = vmatmul.mubr.bf16.gmra.mrb[48].mxu0 %v9509_v25 }
 0x8fd   : >> { %5044 = vmatprep.mubr.bf16.mxu0 %v9516_v13 }
 0x901   : >> { %8981 = vmatmul.mubr.bf16.gmra.mrb[48].mxu1 %v9509_v25  ;;  %v19350_v25 = vld [vmem:[#allocation110_spill] sm:$0xff] }
 0x902   : >> { %8990 = vmatprep.mubr.bf16.mxu1 %v9516_v13  ;;  %v9534_v5 = vcombine.high %v19351_v0, %v19350_v25  ;;  %v9533_v13 = vcombine.low %v19351_v0, %v19350_v25  ;;  %v19357_v0 = vld [vmem:[#allocation125_spill] sm:$0xff] }
 0x904   : >> { %5045 = vmatmul.mubr.bf16.gmra.mrb[52].mxu0 %v9515_v27 }
 0x905   : >> { %5054 = vmatprep.mubr.bf16.mxu0 %v9522_v2 }
 0x909   : >> { %8991 = vmatmul.mubr.bf16.gmra.mrb[52].mxu1 %v9515_v27  ;;  %v19352_v27 = vld [vmem:[#allocation116_spill] sm:$0xff] }
 0x90a   : >> { %9000 = vmatprep.mubr.bf16.mxu1 %v9522_v2  ;;  %v9540_v6 = vcombine.high %v19353_v1, %v19352_v27  ;;  %v9539_v2 = vcombine.low %v19353_v1, %v19352_v27  ;;  %v19359_v1 = vld [vmem:[#allocation131_spill] sm:$0xff] }
 0x90c   : >> { %5055 = vmatmul.mubr.bf16.gmra.mrb[56].mxu0 %v9521_v8 }
 0x90d   : >> { %5064 = vmatprep.mubr.bf16.mxu0 %v9528_v4 }
 0x911   : >> { %9001 = vmatmul.mubr.bf16.gmra.mrb[56].mxu1 %v9521_v8  ;;  %v19354_v8 = vld [vmem:[#allocation122_spill] sm:$0xff] }
 0x912   : >> { %9010 = vmatprep.mubr.bf16.mxu1 %v9528_v4  ;;  %v9546_v7 = vcombine.high %v19355_v3, %v19354_v8  ;;  %v9545_v4 = vcombine.low %v19355_v3, %v19354_v8  ;;  %v19361_v3 = vld [vmem:[#allocation137_spill] sm:$0xff] }
 0x914   : >> { %5065 = vmatmul.mubr.bf16.gmra.mrb[60].mxu0 %v9527_v17 }
 0x915   : >> { %5074 = vmatprep.mubr.bf16.mxu0 %v9534_v5 }
 0x919   : >> { %9011 = vmatmul.mubr.bf16.gmra.mrb[60].mxu1 %v9527_v17  ;;  %v19356_v17 = vld [vmem:[#allocation128_spill] sm:$0xff] }
 0x91a   : >> { %9020 = vmatprep.mubr.bf16.mxu1 %v9534_v5  ;;  %v9552_v9 = vcombine.high %v19357_v0, %v19356_v17  ;;  %v9551_v5 = vcombine.low %v19357_v0, %v19356_v17  ;;  %v19363_v0 = vld [vmem:[#allocation143_spill] sm:$0xff] }
 0x91c   : >> { %5075 = vmatmul.mubr.bf16.gmra.mrb[64].mxu0 %v9533_v13 }
 0x91d   : >> { %5084 = vmatprep.mubr.bf16.mxu0 %v9540_v6 }
 0x921   : >> { %9021 = vmatmul.mubr.bf16.gmra.mrb[64].mxu1 %v9533_v13  ;;  %v19358_v13 = vld [vmem:[#allocation134_spill] sm:$0xff] }
 0x922   : >> { %9030 = vmatprep.mubr.bf16.mxu1 %v9540_v6  ;;  %v9558_v10 = vcombine.high %v19359_v1, %v19358_v13  ;;  %v9557_v6 = vcombine.low %v19359_v1, %v19358_v13  ;;  %v19365_v1 = vld [vmem:[#allocation149_spill] sm:$0xff] }
 0x924   : >> { %5085 = vmatmul.mubr.bf16.gmra.mrb[68].mxu0 %v9539_v2 }
 0x925   : >> { %5094 = vmatprep.mubr.bf16.mxu0 %v9546_v7 }
 0x929   : >> { %9031 = vmatmul.mubr.bf16.gmra.mrb[68].mxu1 %v9539_v2  ;;  %v19360_v2 = vld [vmem:[#allocation140_spill] sm:$0xff] }
 0x92a   : >> { %9040 = vmatprep.mubr.bf16.mxu1 %v9546_v7  ;;  %v9564_v8 = vcombine.high %v19361_v3, %v19360_v2  ;;  %v9563_v7 = vcombine.low %v19361_v3, %v19360_v2  ;;  %v19367_v2 = vld [vmem:[#allocation155_spill] sm:$0xff] }
 0x92c   : >> { %5095 = vmatmul.mubr.bf16.gmra.mrb[72].mxu0 %v9545_v4 }
 0x92d   : >> { %5104 = vmatprep.mubr.bf16.mxu0 %v9552_v9 }
 0x931   : >> { %9041 = vmatmul.mubr.bf16.gmra.mrb[72].mxu1 %v9545_v4  ;;  %v19362_v4 = vld [vmem:[#allocation146_spill] sm:$0xff] }
 0x932   : >> { %9050 = vmatprep.mubr.bf16.mxu1 %v9552_v9  ;;  %v9570_v11 = vcombine.high %v19363_v0, %v19362_v4  ;;  %v9569_v9 = vcombine.low %v19363_v0, %v19362_v4  ;;  %v19369_v0 = vld [vmem:[#allocation161_spill] sm:$0xff] }
 0x934   : >> { %5105 = vmatmul.mubr.bf16.gmra.mrb[76].mxu0 %v9551_v5 }
 0x935   : >> { %5114 = vmatprep.mubr.bf16.mxu0 %v9558_v10 }
 0x939   : >> { %9051 = vmatmul.mubr.bf16.gmra.mrb[76].mxu1 %v9551_v5  ;;  %v19364_v5 = vld [vmem:[#allocation152_spill] sm:$0xff] }
 0x93a   : >> { %9060 = vmatprep.mubr.bf16.mxu1 %v9558_v10  ;;  %v9576_v12 = vcombine.high %v19365_v1, %v19364_v5  ;;  %v9575_v10 = vcombine.low %v19365_v1, %v19364_v5  ;;  %v19370_v1 = vld [vmem:[#allocation170_spill] sm:$0xff]  ;;  %v19373_v5 = vld [vmem:[#allocation173_spill] sm:$0xff] }
 0x93c   : >> { %5115 = vmatmul.mubr.bf16.gmra.mrb[80].mxu0 %v9557_v6 }
 0x93d   : >> { %5124 = vmatprep.mubr.bf16.mxu0 %v9564_v8 }
 0x941   : >> { %9061 = vmatmul.mubr.bf16.gmra.mrb[80].mxu1 %v9557_v6  ;;  %v19366_v6 = vld [vmem:[#allocation158_spill] sm:$0xff] }
 0x942   : >> { %9070 = vmatprep.mubr.bf16.mxu1 %v9564_v8  ;;  %v9582_v3 = vcombine.high %v19367_v2, %v19366_v6  ;;  %v9581_v8 = vcombine.low %v19367_v2, %v19366_v6  ;;  %v19372_v2 = vld [vmem:[#allocation176_spill] sm:$0xff] }
 0x943   : >> { %v9600_v6 = vcombine.high %v19373_v5, %v19372_v2 }
 0x944   : >> { %5125 = vmatmul.mubr.bf16.gmra.mrb[84].mxu0 %v9563_v7 }
 0x945   : >> { %5134 = vmatprep.mubr.bf16.mxu0 %v9570_v11 }
 0x949   : >> { %9071 = vmatmul.mubr.bf16.gmra.mrb[84].mxu1 %v9563_v7  ;;  %v19368_v7 = vld [vmem:[#allocation164_spill] sm:$0xff] }
 0x94a   : >> { %9080 = vmatprep.mubr.bf16.mxu1 %v9570_v11  ;;  %v9588_v11 = vcombine.high %v19369_v0, %v19368_v7 }
 0x94c   : >> { %5135 = vmatmul.mubr.bf16.gmra.mrb[88].mxu0 %v9569_v9 }
 0x94d   : >> { %5144 = vmatprep.mubr.bf16.mxu0 %v9576_v12 }
 0x951   : >> { %9081 = vmatmul.mubr.bf16.gmra.mrb[88].mxu1 %v9569_v9  ;;  %v9587_v9 = vcombine.low %v19369_v0, %v19368_v7  ;;  %v19375_v0 = vld [vmem:[#allocation179_spill] sm:$0xff] }
 0x952   : >> { %9090 = vmatprep.mubr.bf16.mxu1 %v9576_v12  ;;  %v19371_v12 = vld [vmem:[#allocation167_spill] sm:$0xff] }
 0x953   : >> { %v9594_v4 = vcombine.high %v19371_v12, %v19370_v1 }
 0x954   : >> { %5145 = vmatmul.mubr.bf16.gmra.mrb[92].mxu0 %v9575_v10 }
 0x955   : >> { %5154 = vmatprep.mubr.bf16.mxu0 %v9582_v3 }
 0x959   : >> { %9091 = vmatmul.mubr.bf16.gmra.mrb[92].mxu1 %v9575_v10  ;;  %v9593_v10 = vcombine.low %v19371_v12, %v19370_v1 }
 0x95a   : >> { %9100 = vmatprep.mubr.bf16.mxu1 %v9582_v3 }
 0x95c   : >> { %5155 = vmatmul.mubr.bf16.gmra.mrb[96].mxu0 %v9581_v8 }
 0x95d   : >> { %5164 = vmatprep.mubr.bf16.mxu0 %v9588_v11 }
 0x961   : >> { %9101 = vmatmul.mubr.bf16.gmra.mrb[96].mxu1 %v9581_v8 }
 0x962   : >> { %9110 = vmatprep.mubr.bf16.mxu1 %v9588_v11  ;;  %v9599_v11 = vcombine.low %v19373_v5, %v19372_v2 }
 0x964   : >> { %5165 = vmatmul.mubr.bf16.gmra.mrb[100].mxu0 %v9587_v9 }
 0x965   : >> { %5174 = vmatprep.mubr.bf16.mxu0 %v9594_v4 }
 0x969   : >> { %9111 = vmatmul.mubr.bf16.gmra.mrb[100].mxu1 %v9587_v9  ;;  %v19374_v9 = vld [vmem:[#allocation182_spill] sm:$0xff] }
 0x96a   : >> { %9120 = vmatprep.mubr.bf16.mxu1 %v9594_v4  ;;  %v9606_v1 = vcombine.high %v19375_v0, %v19374_v9 }
 0x96c   : >> { %5175 = vmatmul.mubr.bf16.gmra.mrb[104].mxu0 %v9593_v10 }
 0x96d   : >> { %5184 = vmatprep.mubr.bf16.mxu0 %v9600_v6 }
 0x96f   : >> { %v4916_v3 = vpop.f32.mrb[0].mxu0 }
 0x970   : >> { %5237 = vst [vmem:[%s17153_s7] sm:$0xff] %v4916_v3  ;;  %v4918_v8 = vpop.f32.mrb[1].mxu0 }
 0x971   : >> { %5238 = vst.msk [vmem:[%s17153_s7 + $0x8] sm:$0xff] %vm1612_vm2, %v4918_v8  ;;  %9121 = vmatmul.mubr.bf16.gmra.mrb[104].mxu1 %v9593_v10  ;;  %v4920_v4 = vpop.f32.mrb[2].mxu0 }
 0x972   : >> { %5239 = vst [vmem:[%s17153_s7 + $0x10] sm:$0xff] %v4920_v4  ;;  %v4922_v7 = vpop.f32.mrb[3].mxu0  ;;  %9130 = vmatprep.mubr.bf16.mxu1 %v9600_v6 }
 0x973   : >> { %5240 = vst.msk [vmem:[%s17153_s7 + $0x18] sm:$0xff] %vm1612_vm2, %v4922_v7  ;;  %v9605_v7 = vcombine.low %v19375_v0, %v19374_v9 }
 0x974   : >> { %v8862_v3 = vpop.f32.mrb[0].mxu1  ;;  %5185 = vmatmul.mubr.bf16.gmra.mrb[108].mxu0 %v9599_v11 }
 0x975   : >> { %9758 = vst [vmem:[%s17153_s7 + $0x400] sm:$0xff] %v8862_v3  ;;  %v8864_v2 = vpop.f32.mrb[1].mxu1  ;;  %5194 = vmatprep.mubr.bf16.mxu0 %v9606_v1  ;;  %v19377_v3 = vld [vmem:[#allocation185_spill] sm:$0xff] }
 0x976   : >> { %9759 = vst.msk [vmem:[%s17153_s7 + $0x408] sm:$0xff] %vm1612_vm2, %v8864_v2  ;;  %v8866_v10 = vpop.f32.mrb[2].mxu1  ;;  %v19376_v2 = vld [vmem:[#allocation188_spill] sm:$0xff] }
 0x977   : >> { %9760 = vst [vmem:[%s17153_s7 + $0x410] sm:$0xff] %v8866_v10  ;;  %v8868_v8 = vpop.f32.mrb[3].mxu1  ;;  %v4926_v5 = vpop.f32.mrb[4].mxu0  ;;  %v9612_v10 = vcombine.high %v19377_v3, %v19376_v2 }
 0x978   : >> { %9761 = vst.msk [vmem:[%s17153_s7 + $0x418] sm:$0xff] %vm1612_vm2, %v8868_v8  ;;  %5241 = vst [vmem:[%s17153_s7 + $0x20] sm:$0xff] %v4926_v5  ;;  %v4928_v6 = vpop.f32.mrb[5].mxu0 }
 0x979   : >> { %5242 = vst.msk [vmem:[%s17153_s7 + $0x28] sm:$0xff] %vm1612_vm2, %v4928_v6  ;;  %9131 = vmatmul.mubr.bf16.gmra.mrb[108].mxu1 %v9599_v11  ;;  %v4930_v4 = vpop.f32.mrb[6].mxu0 }
 0x97a   : >> { %5243 = vst [vmem:[%s17153_s7 + $0x30] sm:$0xff] %v4930_v4  ;;  %v4932_v12 = vpop.f32.mrb[7].mxu0  ;;  %9140 = vmatprep.mubr.bf16.mxu1 %v9606_v1 }
 0x97b   : >> { %5244 = vst.msk [vmem:[%s17153_s7 + $0x38] sm:$0xff] %vm1612_vm2, %v4932_v12  ;;  %v9611_v12 = vcombine.low %v19377_v3, %v19376_v2 }
 0x97c   : >> { %v8872_v5 = vpop.f32.mrb[4].mxu1  ;;  %5195 = vmatmul.mubr.bf16.gmra.mrb[112].mxu0 %v9605_v7 }
 0x97d   : >> { %9762 = vst [vmem:[%s17153_s7 + $0x420] sm:$0xff] %v8872_v5  ;;  %v8874_v8 = vpop.f32.mrb[5].mxu1  ;;  %5204 = vmatprep.mubr.bf16.mxu0 %v9612_v10  ;;  %v19378_v5 = vld [vmem:[#allocation194_spill] sm:$0xff] }
 0x97e   : >> { %9763 = vst.msk [vmem:[%s17153_s7 + $0x428] sm:$0xff] %vm1612_vm2, %v8874_v8  ;;  %v8876_v11 = vpop.f32.mrb[6].mxu1  ;;  %v19379_v8 = vld [vmem:[#allocation191_spill] sm:$0xff] }
 0x97f   : >> { %9764 = vst [vmem:[%s17153_s7 + $0x430] sm:$0xff] %v8876_v11  ;;  %v8878_v6 = vpop.f32.mrb[7].mxu1  ;;  %v4936_v0 = vpop.f32.mrb[8].mxu0  ;;  %v9618_v11 = vcombine.high %v19379_v8, %v19378_v5 }
 0x980   : >> { %9765 = vst.msk [vmem:[%s17153_s7 + $0x438] sm:$0xff] %vm1612_vm2, %v8878_v6  ;;  %5245 = vst [vmem:[%s17153_s7 + $0x40] sm:$0xff] %v4936_v0  ;;  %v4938_v1 = vpop.f32.mrb[9].mxu0 }
 0x981   : >> { %5246 = vst.msk [vmem:[%s17153_s7 + $0x48] sm:$0xff] %vm1612_vm2, %v4938_v1  ;;  %9141 = vmatmul.mubr.bf16.gmra.mrb[112].mxu1 %v9605_v7  ;;  %v4940_v4 = vpop.f32.mrb[10].mxu0 }
 0x982   : >> { %5247 = vst [vmem:[%s17153_s7 + $0x50] sm:$0xff] %v4940_v4  ;;  %v4942_v9 = vpop.f32.mrb[11].mxu0  ;;  %9150 = vmatprep.mubr.bf16.mxu1 %v9612_v10 }
 0x983   : >> { %5248 = vst.msk [vmem:[%s17153_s7 + $0x58] sm:$0xff] %vm1612_vm2, %v4942_v9  ;;  %v9617_v9 = vcombine.low %v19379_v8, %v19378_v5 }
 0x984   : >> { %v8882_v0 = vpop.f32.mrb[8].mxu1  ;;  %5205 = vmatmul.mubr.bf16.gmra.mrb[116].mxu0 %v9611_v12 }
 0x985   : >> { %9766 = vst [vmem:[%s17153_s7 + $0x440] sm:$0xff] %v8882_v0  ;;  %v8884_v6 = vpop.f32.mrb[9].mxu1  ;;  %5214 = vmatprep.mubr.bf16.mxu0 %v9618_v11  ;;  %v19380_v0 = vld [vmem:[#allocation200_spill] sm:$0xff] }
 0x986   : >> { %9767 = vst.msk [vmem:[%s17153_s7 + $0x448] sm:$0xff] %vm1612_vm2, %v8884_v6  ;;  %v8886_v7 = vpop.f32.mrb[10].mxu1  ;;  %v19381_v6 = vld [vmem:[#allocation197_spill] sm:$0xff] }
 0x987   : >> { %9768 = vst [vmem:[%s17153_s7 + $0x450] sm:$0xff] %v8886_v7  ;;  %v8888_v1 = vpop.f32.mrb[11].mxu1  ;;  %v4946_v2 = vpop.f32.mrb[12].mxu0  ;;  %v9624_v7 = vcombine.high %v19381_v6, %v19380_v0 }
 0x988   : >> { %9769 = vst.msk [vmem:[%s17153_s7 + $0x458] sm:$0xff] %vm1612_vm2, %v8888_v1  ;;  %5249 = vst [vmem:[%s17153_s7 + $0x60] sm:$0xff] %v4946_v2  ;;  %v4948_v10 = vpop.f32.mrb[13].mxu0 }
 0x989   : >> { %5250 = vst.msk [vmem:[%s17153_s7 + $0x68] sm:$0xff] %vm1612_vm2, %v4948_v10  ;;  %9151 = vmatmul.mubr.bf16.gmra.mrb[116].mxu1 %v9611_v12  ;;  %v4950_v4 = vpop.f32.mrb[14].mxu0 }
 0x98a   : >> { %5251 = vst [vmem:[%s17153_s7 + $0x70] sm:$0xff] %v4950_v4  ;;  %v4952_v3 = vpop.f32.mrb[15].mxu0  ;;  %9160 = vmatprep.mubr.bf16.mxu1 %v9618_v11  ;;  %v9623_v11 = vcombine.low %v19381_v6, %v19380_v0 }
 0x98b   : >> { %5252 = vst.msk [vmem:[%s17153_s7 + $0x78] sm:$0xff] %vm1612_vm2, %v4952_v3 }
 0x98c   : >> { %v8892_v2 = vpop.f32.mrb[12].mxu1  ;;  %5215 = vmatmul.mubr.bf16.gmra.mrb[120].mxu0 %v9617_v9 }
 0x98d   : >> { %9770 = vst [vmem:[%s17153_s7 + $0x460] sm:$0xff] %v8892_v2  ;;  %v8894_v1 = vpop.f32.mrb[13].mxu1  ;;  %5224 = vmatprep.mubr.bf16.mxu0 %v9624_v7 }
 0x98e   : >> { %9771 = vst.msk [vmem:[%s17153_s7 + $0x468] sm:$0xff] %vm1612_vm2, %v8894_v1  ;;  %v8896_v12 = vpop.f32.mrb[14].mxu1 }
 0x98f   : >> { %9772 = vst [vmem:[%s17153_s7 + $0x470] sm:$0xff] %v8896_v12  ;;  %v8898_v10 = vpop.f32.mrb[15].mxu1  ;;  %v4956_v5 = vpop.f32.mrb[16].mxu0 }
 0x990   : >> { %9773 = vst.msk [vmem:[%s17153_s7 + $0x478] sm:$0xff] %vm1612_vm2, %v8898_v10  ;;  %5253 = vst [vmem:[%s17153_s7 + $0x80] sm:$0xff] %v4956_v5  ;;  %v4958_v3 = vpop.f32.mrb[17].mxu0 }
 0x991   : >> { %5254 = vst.msk [vmem:[%s17153_s7 + $0x88] sm:$0xff] %vm1612_vm2, %v4958_v3  ;;  %9161 = vmatmul.mubr.bf16.gmra.mrb[120].mxu1 %v9617_v9  ;;  %v4960_v4 = vpop.f32.mrb[18].mxu0 }
 0x992   : >> { %5255 = vst [vmem:[%s17153_s7 + $0x90] sm:$0xff] %v4960_v4  ;;  %v4962_v2 = vpop.f32.mrb[19].mxu0  ;;  %9170 = vmatprep.mubr.bf16.mxu1 %v9624_v7 }
 0x993   : >> { %5256 = vst.msk [vmem:[%s17153_s7 + $0x98] sm:$0xff] %vm1612_vm2, %v4962_v2 }
 0x994   : >> { %v8902_v1 = vpop.f32.mrb[16].mxu1  ;;  %5225 = vmatmul.mubr.bf16.gmra.mrb[124].mxu0 %v9623_v11 }
 0x995   : >> { %9774 = vst [vmem:[%s17153_s7 + $0x480] sm:$0xff] %v8902_v1  ;;  %v8904_v5 = vpop.f32.mrb[17].mxu1 }
 0x996   : >> { %9775 = vst.msk [vmem:[%s17153_s7 + $0x488] sm:$0xff] %vm1612_vm2, %v8904_v5  ;;  %v8906_v12 = vpop.f32.mrb[18].mxu1 }
 0x997   : >> { %9776 = vst [vmem:[%s17153_s7 + $0x490] sm:$0xff] %v8906_v12  ;;  %v8908_v9 = vpop.f32.mrb[19].mxu1  ;;  %v4966_v10 = vpop.f32.mrb[20].mxu0 }
 0x998   : >> { %9777 = vst.msk [vmem:[%s17153_s7 + $0x498] sm:$0xff] %vm1612_vm2, %v8908_v9  ;;  %5257 = vst [vmem:[%s17153_s7 + $0xa0] sm:$0xff] %v4966_v10  ;;  %v4968_v7 = vpop.f32.mrb[21].mxu0 }
 0x999   : >> { %5258 = vst.msk [vmem:[%s17153_s7 + $0xa8] sm:$0xff] %vm1612_vm2, %v4968_v7  ;;  %9171 = vmatmul.mubr.bf16.gmra.mrb[124].mxu1 %v9623_v11  ;;  %v4970_v3 = vpop.f32.mrb[22].mxu0 }
 0x99a   : >> { %5259 = vst [vmem:[%s17153_s7 + $0xb0] sm:$0xff] %v4970_v3  ;;  %v4972_v4 = vpop.f32.mrb[23].mxu0 }
 0x99b   : >> { %5260 = vst.msk [vmem:[%s17153_s7 + $0xb8] sm:$0xff] %vm1612_vm2, %v4972_v4 }
 0x99c   : >> { %v8912_v2 = vpop.f32.mrb[20].mxu1 }
 0x99d   : >> { %9778 = vst [vmem:[%s17153_s7 + $0x4a0] sm:$0xff] %v8912_v2  ;;  %v8914_v1 = vpop.f32.mrb[21].mxu1 }
 0x99e   : >> { %9779 = vst.msk [vmem:[%s17153_s7 + $0x4a8] sm:$0xff] %vm1612_vm2, %v8914_v1  ;;  %v8916_v5 = vpop.f32.mrb[22].mxu1 }
 0x99f   : >> { %9780 = vst [vmem:[%s17153_s7 + $0x4b0] sm:$0xff] %v8916_v5  ;;  %v8918_v12 = vpop.f32.mrb[23].mxu1  ;;  %v4976_v11 = vpop.f32.mrb[24].mxu0 }
 0x9a0   : >> { %9781 = vst.msk [vmem:[%s17153_s7 + $0x4b8] sm:$0xff] %vm1612_vm2, %v8918_v12  ;;  %5261 = vst [vmem:[%s17153_s7 + $0xc0] sm:$0xff] %v4976_v11  ;;  %v4978_v9 = vpop.f32.mrb[25].mxu0 }
 0x9a1   : >> { %5262 = vst.msk [vmem:[%s17153_s7 + $0xc8] sm:$0xff] %vm1612_vm2, %v4978_v9  ;;  %v4980_v10 = vpop.f32.mrb[26].mxu0 }
 0x9a2   : >> { %5263 = vst [vmem:[%s17153_s7 + $0xd0] sm:$0xff] %v4980_v10  ;;  %v4982_v7 = vpop.f32.mrb[27].mxu0 }
 0x9a3   : >> { %5264 = vst.msk [vmem:[%s17153_s7 + $0xd8] sm:$0xff] %vm1612_vm2, %v4982_v7 }
 0x9a4   : >> { %v8922_v3 = vpop.f32.mrb[24].mxu1 }
 0x9a5   : >> { %9782 = vst [vmem:[%s17153_s7 + $0x4c0] sm:$0xff] %v8922_v3  ;;  %v8924_v4 = vpop.f32.mrb[25].mxu1 }
 0x9a6   : >> { %9783 = vst.msk [vmem:[%s17153_s7 + $0x4c8] sm:$0xff] %vm1612_vm2, %v8924_v4  ;;  %v8926_v2 = vpop.f32.mrb[26].mxu1 }
 0x9a7   : >> { %9784 = vst [vmem:[%s17153_s7 + $0x4d0] sm:$0xff] %v8926_v2  ;;  %v8928_v1 = vpop.f32.mrb[27].mxu1  ;;  %v4986_v5 = vpop.f32.mrb[28].mxu0 }
 0x9a8   : >> { %9785 = vst.msk [vmem:[%s17153_s7 + $0x4d8] sm:$0xff] %vm1612_vm2, %v8928_v1  ;;  %5265 = vst [vmem:[%s17153_s7 + $0xe0] sm:$0xff] %v4986_v5  ;;  %v4988_v12 = vpop.f32.mrb[29].mxu0 }
 0x9a9   : >> { %5266 = vst.msk [vmem:[%s17153_s7 + $0xe8] sm:$0xff] %vm1612_vm2, %v4988_v12  ;;  %v4990_v11 = vpop.f32.mrb[30].mxu0 }
 0x9aa   : >> { %5267 = vst [vmem:[%s17153_s7 + $0xf0] sm:$0xff] %v4990_v11  ;;  %v4992_v9 = vpop.f32.mrb[31].mxu0 }
 0x9ab   : >> { %5268 = vst.msk [vmem:[%s17153_s7 + $0xf8] sm:$0xff] %vm1612_vm2, %v4992_v9 }
 0x9ac   : >> { %v8932_v10 = vpop.f32.mrb[28].mxu1 }
 0x9ad   : >> { %9786 = vst [vmem:[%s17153_s7 + $0x4e0] sm:$0xff] %v8932_v10  ;;  %v8934_v7 = vpop.f32.mrb[29].mxu1 }
 0x9ae   : >> { %9787 = vst.msk [vmem:[%s17153_s7 + $0x4e8] sm:$0xff] %vm1612_vm2, %v8934_v7  ;;  %v8936_v3 = vpop.f32.mrb[30].mxu1 }
 0x9af   : >> { %9788 = vst [vmem:[%s17153_s7 + $0x4f0] sm:$0xff] %v8936_v3  ;;  %v8938_v4 = vpop.f32.mrb[31].mxu1  ;;  %v4996_v2 = vpop.f32.mrb[32].mxu0 }
 0x9b0   : >> { %9789 = vst.msk [vmem:[%s17153_s7 + $0x4f8] sm:$0xff] %vm1612_vm2, %v8938_v4  ;;  %5269 = vst [vmem:[%s17153_s7 + $0x100] sm:$0xff] %v4996_v2  ;;  %v4998_v1 = vpop.f32.mrb[33].mxu0 }
 0x9b1   : >> { %5270 = vst.msk [vmem:[%s17153_s7 + $0x108] sm:$0xff] %vm1612_vm2, %v4998_v1  ;;  %v5000_v5 = vpop.f32.mrb[34].mxu0 }
 0x9b2   : >> { %5271 = vst [vmem:[%s17153_s7 + $0x110] sm:$0xff] %v5000_v5  ;;  %v5002_v12 = vpop.f32.mrb[35].mxu0 }
 0x9b3   : >> { %5272 = vst.msk [vmem:[%s17153_s7 + $0x118] sm:$0xff] %vm1612_vm2, %v5002_v12 }
 0x9b4   : >> { %v8942_v11 = vpop.f32.mrb[32].mxu1 }
 0x9b5   : >> { %9790 = vst [vmem:[%s17153_s7 + $0x500] sm:$0xff] %v8942_v11  ;;  %v8944_v9 = vpop.f32.mrb[33].mxu1 }
 0x9b6   : >> { %9791 = vst.msk [vmem:[%s17153_s7 + $0x508] sm:$0xff] %vm1612_vm2, %v8944_v9  ;;  %v8946_v10 = vpop.f32.mrb[34].mxu1 }
 0x9b7   : >> { %9792 = vst [vmem:[%s17153_s7 + $0x510] sm:$0xff] %v8946_v10  ;;  %v8948_v7 = vpop.f32.mrb[35].mxu1  ;;  %v5006_v3 = vpop.f32.mrb[36].mxu0 }
 0x9b8   : >> { %9793 = vst.msk [vmem:[%s17153_s7 + $0x518] sm:$0xff] %vm1612_vm2, %v8948_v7  ;;  %5273 = vst [vmem:[%s17153_s7 + $0x120] sm:$0xff] %v5006_v3  ;;  %v5008_v4 = vpop.f32.mrb[37].mxu0 }
 0x9b9   : >> { %5274 = vst.msk [vmem:[%s17153_s7 + $0x128] sm:$0xff] %vm1612_vm2, %v5008_v4  ;;  %v5010_v2 = vpop.f32.mrb[38].mxu0 }
 0x9ba   : >> { %5275 = vst [vmem:[%s17153_s7 + $0x130] sm:$0xff] %v5010_v2  ;;  %v5012_v1 = vpop.f32.mrb[39].mxu0 }
 0x9bb   : >> { %5276 = vst.msk [vmem:[%s17153_s7 + $0x138] sm:$0xff] %vm1612_vm2, %v5012_v1 }
 0x9bc   : >> { %v8952_v5 = vpop.f32.mrb[36].mxu1 }
 0x9bd   : >> { %9794 = vst [vmem:[%s17153_s7 + $0x520] sm:$0xff] %v8952_v5  ;;  %v8954_v12 = vpop.f32.mrb[37].mxu1 }
 0x9be   : >> { %9795 = vst.msk [vmem:[%s17153_s7 + $0x528] sm:$0xff] %vm1612_vm2, %v8954_v12  ;;  %v8956_v11 = vpop.f32.mrb[38].mxu1 }
 0x9bf   : >> { %9796 = vst [vmem:[%s17153_s7 + $0x530] sm:$0xff] %v8956_v11  ;;  %v8958_v9 = vpop.f32.mrb[39].mxu1  ;;  %v5016_v10 = vpop.f32.mrb[40].mxu0 }
 0x9c0   : >> { %9797 = vst.msk [vmem:[%s17153_s7 + $0x538] sm:$0xff] %vm1612_vm2, %v8958_v9  ;;  %5277 = vst [vmem:[%s17153_s7 + $0x140] sm:$0xff] %v5016_v10  ;;  %v5018_v7 = vpop.f32.mrb[41].mxu0 }
 0x9c1   : >> { %5278 = vst.msk [vmem:[%s17153_s7 + $0x148] sm:$0xff] %vm1612_vm2, %v5018_v7  ;;  %v5020_v3 = vpop.f32.mrb[42].mxu0 }
 0x9c2   : >> { %5279 = vst [vmem:[%s17153_s7 + $0x150] sm:$0xff] %v5020_v3  ;;  %v5022_v4 = vpop.f32.mrb[43].mxu0 }
 0x9c3   : >> { %5280 = vst.msk [vmem:[%s17153_s7 + $0x158] sm:$0xff] %vm1612_vm2, %v5022_v4 }
 0x9c4   : >> { %v8962_v2 = vpop.f32.mrb[40].mxu1 }
 0x9c5   : >> { %9798 = vst [vmem:[%s17153_s7 + $0x540] sm:$0xff] %v8962_v2  ;;  %v8964_v1 = vpop.f32.mrb[41].mxu1 }
 0x9c6   : >> { %9799 = vst.msk [vmem:[%s17153_s7 + $0x548] sm:$0xff] %vm1612_vm2, %v8964_v1  ;;  %v8966_v5 = vpop.f32.mrb[42].mxu1 }
 0x9c7   : >> { %9800 = vst [vmem:[%s17153_s7 + $0x550] sm:$0xff] %v8966_v5  ;;  %v8968_v12 = vpop.f32.mrb[43].mxu1  ;;  %v5026_v11 = vpop.f32.mrb[44].mxu0 }
 0x9c8   : >> { %9801 = vst.msk [vmem:[%s17153_s7 + $0x558] sm:$0xff] %vm1612_vm2, %v8968_v12  ;;  %5281 = vst [vmem:[%s17153_s7 + $0x160] sm:$0xff] %v5026_v11  ;;  %v5028_v9 = vpop.f32.mrb[45].mxu0 }
 0x9c9   : >> { %5282 = vst.msk [vmem:[%s17153_s7 + $0x168] sm:$0xff] %vm1612_vm2, %v5028_v9  ;;  %v5030_v10 = vpop.f32.mrb[46].mxu0 }
 0x9ca   : >> { %5283 = vst [vmem:[%s17153_s7 + $0x170] sm:$0xff] %v5030_v10  ;;  %v5032_v7 = vpop.f32.mrb[47].mxu0 }
 0x9cb   : >> { %5284 = vst.msk [vmem:[%s17153_s7 + $0x178] sm:$0xff] %vm1612_vm2, %v5032_v7 }
 0x9cc   : >> { %v8972_v3 = vpop.f32.mrb[44].mxu1 }
 0x9cd   : >> { %9802 = vst [vmem:[%s17153_s7 + $0x560] sm:$0xff] %v8972_v3  ;;  %v8974_v4 = vpop.f32.mrb[45].mxu1 }
 0x9ce   : >> { %9803 = vst.msk [vmem:[%s17153_s7 + $0x568] sm:$0xff] %vm1612_vm2, %v8974_v4  ;;  %v8976_v2 = vpop.f32.mrb[46].mxu1 }
 0x9cf   : >> { %9804 = vst [vmem:[%s17153_s7 + $0x570] sm:$0xff] %v8976_v2  ;;  %v8978_v1 = vpop.f32.mrb[47].mxu1  ;;  %v5036_v5 = vpop.f32.mrb[48].mxu0 }
 0x9d0   : >> { %9805 = vst.msk [vmem:[%s17153_s7 + $0x578] sm:$0xff] %vm1612_vm2, %v8978_v1  ;;  %5285 = vst [vmem:[%s17153_s7 + $0x180] sm:$0xff] %v5036_v5  ;;  %v5038_v12 = vpop.f32.mrb[49].mxu0 }
 0x9d1   : >> { %5286 = vst.msk [vmem:[%s17153_s7 + $0x188] sm:$0xff] %vm1612_vm2, %v5038_v12  ;;  %v5040_v11 = vpop.f32.mrb[50].mxu0 }
 0x9d2   : >> { %5287 = vst [vmem:[%s17153_s7 + $0x190] sm:$0xff] %v5040_v11  ;;  %v5042_v9 = vpop.f32.mrb[51].mxu0 }
 0x9d3   : >> { %5288 = vst.msk [vmem:[%s17153_s7 + $0x198] sm:$0xff] %vm1612_vm2, %v5042_v9 }
 0x9d4   : >> { %v8982_v10 = vpop.f32.mrb[48].mxu1 }
 0x9d5   : >> { %9806 = vst [vmem:[%s17153_s7 + $0x580] sm:$0xff] %v8982_v10  ;;  %v8984_v7 = vpop.f32.mrb[49].mxu1 }
 0x9d6   : >> { %9807 = vst.msk [vmem:[%s17153_s7 + $0x588] sm:$0xff] %vm1612_vm2, %v8984_v7  ;;  %v8986_v3 = vpop.f32.mrb[50].mxu1 }
 0x9d7   : >> { %9808 = vst [vmem:[%s17153_s7 + $0x590] sm:$0xff] %v8986_v3  ;;  %v8988_v4 = vpop.f32.mrb[51].mxu1  ;;  %v5046_v2 = vpop.f32.mrb[52].mxu0 }
 0x9d8   : >> { %9809 = vst.msk [vmem:[%s17153_s7 + $0x598] sm:$0xff] %vm1612_vm2, %v8988_v4  ;;  %5289 = vst [vmem:[%s17153_s7 + $0x1a0] sm:$0xff] %v5046_v2  ;;  %v5048_v1 = vpop.f32.mrb[53].mxu0 }
 0x9d9   : >> { %5290 = vst.msk [vmem:[%s17153_s7 + $0x1a8] sm:$0xff] %vm1612_vm2, %v5048_v1  ;;  %v5050_v5 = vpop.f32.mrb[54].mxu0 }
 0x9da   : >> { %5291 = vst [vmem:[%s17153_s7 + $0x1b0] sm:$0xff] %v5050_v5  ;;  %v5052_v12 = vpop.f32.mrb[55].mxu0 }
 0x9db   : >> { %5292 = vst.msk [vmem:[%s17153_s7 + $0x1b8] sm:$0xff] %vm1612_vm2, %v5052_v12 }
 0x9dc   : >> { %v8992_v11 = vpop.f32.mrb[52].mxu1 }
 0x9dd   : >> { %9810 = vst [vmem:[%s17153_s7 + $0x5a0] sm:$0xff] %v8992_v11  ;;  %v8994_v9 = vpop.f32.mrb[53].mxu1 }
 0x9de   : >> { %9811 = vst.msk [vmem:[%s17153_s7 + $0x5a8] sm:$0xff] %vm1612_vm2, %v8994_v9  ;;  %v8996_v10 = vpop.f32.mrb[54].mxu1 }
 0x9df   : >> { %9812 = vst [vmem:[%s17153_s7 + $0x5b0] sm:$0xff] %v8996_v10  ;;  %v8998_v7 = vpop.f32.mrb[55].mxu1  ;;  %v5056_v3 = vpop.f32.mrb[56].mxu0 }
 0x9e0   : >> { %9813 = vst.msk [vmem:[%s17153_s7 + $0x5b8] sm:$0xff] %vm1612_vm2, %v8998_v7  ;;  %5293 = vst [vmem:[%s17153_s7 + $0x1c0] sm:$0xff] %v5056_v3  ;;  %v5058_v4 = vpop.f32.mrb[57].mxu0 }
 0x9e1   : >> { %5294 = vst.msk [vmem:[%s17153_s7 + $0x1c8] sm:$0xff] %vm1612_vm2, %v5058_v4  ;;  %v5060_v2 = vpop.f32.mrb[58].mxu0 }
 0x9e2   : >> { %5295 = vst [vmem:[%s17153_s7 + $0x1d0] sm:$0xff] %v5060_v2  ;;  %v5062_v1 = vpop.f32.mrb[59].mxu0 }
 0x9e3   : >> { %5296 = vst.msk [vmem:[%s17153_s7 + $0x1d8] sm:$0xff] %vm1612_vm2, %v5062_v1 }
 0x9e4   : >> { %v9002_v5 = vpop.f32.mrb[56].mxu1 }
 0x9e5   : >> { %9814 = vst [vmem:[%s17153_s7 + $0x5c0] sm:$0xff] %v9002_v5  ;;  %v9004_v12 = vpop.f32.mrb[57].mxu1 }
 0x9e6   : >> { %9815 = vst.msk [vmem:[%s17153_s7 + $0x5c8] sm:$0xff] %vm1612_vm2, %v9004_v12  ;;  %v9006_v11 = vpop.f32.mrb[58].mxu1 }
 0x9e7   : >> { %9816 = vst [vmem:[%s17153_s7 + $0x5d0] sm:$0xff] %v9006_v11  ;;  %v9008_v9 = vpop.f32.mrb[59].mxu1  ;;  %v5066_v10 = vpop.f32.mrb[60].mxu0 }
 0x9e8   : >> { %9817 = vst.msk [vmem:[%s17153_s7 + $0x5d8] sm:$0xff] %vm1612_vm2, %v9008_v9  ;;  %5297 = vst [vmem:[%s17153_s7 + $0x1e0] sm:$0xff] %v5066_v10  ;;  %v5068_v7 = vpop.f32.mrb[61].mxu0 }
 0x9e9   : >> { %5298 = vst.msk [vmem:[%s17153_s7 + $0x1e8] sm:$0xff] %vm1612_vm2, %v5068_v7  ;;  %v5070_v3 = vpop.f32.mrb[62].mxu0 }
 0x9ea   : >> { %5299 = vst [vmem:[%s17153_s7 + $0x1f0] sm:$0xff] %v5070_v3  ;;  %v5072_v4 = vpop.f32.mrb[63].mxu0 }
 0x9eb   : >> { %5300 = vst.msk [vmem:[%s17153_s7 + $0x1f8] sm:$0xff] %vm1612_vm2, %v5072_v4 }
 0x9ec   : >> { %v9012_v2 = vpop.f32.mrb[60].mxu1 }
 0x9ed   : >> { %9818 = vst [vmem:[%s17153_s7 + $0x5e0] sm:$0xff] %v9012_v2  ;;  %v9014_v1 = vpop.f32.mrb[61].mxu1 }
 0x9ee   : >> { %9819 = vst.msk [vmem:[%s17153_s7 + $0x5e8] sm:$0xff] %vm1612_vm2, %v9014_v1  ;;  %v9016_v5 = vpop.f32.mrb[62].mxu1 }
 0x9ef   : >> { %9820 = vst [vmem:[%s17153_s7 + $0x5f0] sm:$0xff] %v9016_v5  ;;  %v9018_v12 = vpop.f32.mrb[63].mxu1  ;;  %v5076_v11 = vpop.f32.mrb[64].mxu0 }
 0x9f0   : >> { %9821 = vst.msk [vmem:[%s17153_s7 + $0x5f8] sm:$0xff] %vm1612_vm2, %v9018_v12  ;;  %5301 = vst [vmem:[%s17153_s7 + $0x200] sm:$0xff] %v5076_v11  ;;  %v5078_v9 = vpop.f32.mrb[65].mxu0 }
 0x9f1   : >> { %5302 = vst.msk [vmem:[%s17153_s7 + $0x208] sm:$0xff] %vm1612_vm2, %v5078_v9  ;;  %v5080_v10 = vpop.f32.mrb[66].mxu0 }
 0x9f2   : >> { %5303 = vst [vmem:[%s17153_s7 + $0x210] sm:$0xff] %v5080_v10  ;;  %v5082_v7 = vpop.f32.mrb[67].mxu0 }
 0x9f3   : >> { %5304 = vst.msk [vmem:[%s17153_s7 + $0x218] sm:$0xff] %vm1612_vm2, %v5082_v7 }
 0x9f4   : >> { %v9022_v3 = vpop.f32.mrb[64].mxu1 }
 0x9f5   : >> { %9822 = vst [vmem:[%s17153_s7 + $0x600] sm:$0xff] %v9022_v3  ;;  %v9024_v4 = vpop.f32.mrb[65].mxu1 }
 0x9f6   : >> { %9823 = vst.msk [vmem:[%s17153_s7 + $0x608] sm:$0xff] %vm1612_vm2, %v9024_v4  ;;  %v9026_v2 = vpop.f32.mrb[66].mxu1 }
 0x9f7   : >> { %9824 = vst [vmem:[%s17153_s7 + $0x610] sm:$0xff] %v9026_v2  ;;  %v9028_v1 = vpop.f32.mrb[67].mxu1  ;;  %v5086_v5 = vpop.f32.mrb[68].mxu0 }
 0x9f8   : >> { %9825 = vst.msk [vmem:[%s17153_s7 + $0x618] sm:$0xff] %vm1612_vm2, %v9028_v1  ;;  %5305 = vst [vmem:[%s17153_s7 + $0x220] sm:$0xff] %v5086_v5  ;;  %v5088_v12 = vpop.f32.mrb[69].mxu0 }
 0x9f9   : >> { %5306 = vst.msk [vmem:[%s17153_s7 + $0x228] sm:$0xff] %vm1612_vm2, %v5088_v12  ;;  %v5090_v11 = vpop.f32.mrb[70].mxu0 }
 0x9fa   : >> { %5307 = vst [vmem:[%s17153_s7 + $0x230] sm:$0xff] %v5090_v11  ;;  %v5092_v9 = vpop.f32.mrb[71].mxu0 }
 0x9fb   : >> { %5308 = vst.msk [vmem:[%s17153_s7 + $0x238] sm:$0xff] %vm1612_vm2, %v5092_v9 }
 0x9fc   : >> { %v9032_v10 = vpop.f32.mrb[68].mxu1 }
 0x9fd   : >> { %9826 = vst [vmem:[%s17153_s7 + $0x620] sm:$0xff] %v9032_v10  ;;  %v9034_v7 = vpop.f32.mrb[69].mxu1 }
 0x9fe   : >> { %9827 = vst.msk [vmem:[%s17153_s7 + $0x628] sm:$0xff] %vm1612_vm2, %v9034_v7  ;;  %v9036_v3 = vpop.f32.mrb[70].mxu1 }
 0x9ff   : >> { %9828 = vst [vmem:[%s17153_s7 + $0x630] sm:$0xff] %v9036_v3  ;;  %v9038_v4 = vpop.f32.mrb[71].mxu1  ;;  %v5096_v2 = vpop.f32.mrb[72].mxu0 }
 0xa00   : >> { %9829 = vst.msk [vmem:[%s17153_s7 + $0x638] sm:$0xff] %vm1612_vm2, %v9038_v4  ;;  %5309 = vst [vmem:[%s17153_s7 + $0x240] sm:$0xff] %v5096_v2  ;;  %v5098_v1 = vpop.f32.mrb[73].mxu0 }
 0xa01   : >> { %5310 = vst.msk [vmem:[%s17153_s7 + $0x248] sm:$0xff] %vm1612_vm2, %v5098_v1  ;;  %v5100_v5 = vpop.f32.mrb[74].mxu0 }
 0xa02   : >> { %5311 = vst [vmem:[%s17153_s7 + $0x250] sm:$0xff] %v5100_v5  ;;  %v5102_v12 = vpop.f32.mrb[75].mxu0 }
 0xa03   : >> { %5312 = vst.msk [vmem:[%s17153_s7 + $0x258] sm:$0xff] %vm1612_vm2, %v5102_v12 }
 0xa04   : >> { %v9042_v11 = vpop.f32.mrb[72].mxu1 }
 0xa05   : >> { %9830 = vst [vmem:[%s17153_s7 + $0x640] sm:$0xff] %v9042_v11  ;;  %v9044_v9 = vpop.f32.mrb[73].mxu1 }
 0xa06   : >> { %9831 = vst.msk [vmem:[%s17153_s7 + $0x648] sm:$0xff] %vm1612_vm2, %v9044_v9  ;;  %v9046_v10 = vpop.f32.mrb[74].mxu1 }
 0xa07   : >> { %9832 = vst [vmem:[%s17153_s7 + $0x650] sm:$0xff] %v9046_v10  ;;  %v9048_v7 = vpop.f32.mrb[75].mxu1  ;;  %v5106_v3 = vpop.f32.mrb[76].mxu0 }
 0xa08   : >> { %9833 = vst.msk [vmem:[%s17153_s7 + $0x658] sm:$0xff] %vm1612_vm2, %v9048_v7  ;;  %5313 = vst [vmem:[%s17153_s7 + $0x260] sm:$0xff] %v5106_v3  ;;  %v5108_v4 = vpop.f32.mrb[77].mxu0 }
 0xa09   : >> { %5314 = vst.msk [vmem:[%s17153_s7 + $0x268] sm:$0xff] %vm1612_vm2, %v5108_v4  ;;  %v5110_v2 = vpop.f32.mrb[78].mxu0 }
 0xa0a   : >> { %5315 = vst [vmem:[%s17153_s7 + $0x270] sm:$0xff] %v5110_v2  ;;  %v5112_v1 = vpop.f32.mrb[79].mxu0 }
 0xa0b   : >> { %5316 = vst.msk [vmem:[%s17153_s7 + $0x278] sm:$0xff] %vm1612_vm2, %v5112_v1 }
 0xa0c   : >> { %v9052_v5 = vpop.f32.mrb[76].mxu1 }
 0xa0d   : >> { %9834 = vst [vmem:[%s17153_s7 + $0x660] sm:$0xff] %v9052_v5  ;;  %v9054_v12 = vpop.f32.mrb[77].mxu1 }
 0xa0e   : >> { %9835 = vst.msk [vmem:[%s17153_s7 + $0x668] sm:$0xff] %vm1612_vm2, %v9054_v12  ;;  %v9056_v11 = vpop.f32.mrb[78].mxu1 }
 0xa0f   : >> { %9836 = vst [vmem:[%s17153_s7 + $0x670] sm:$0xff] %v9056_v11  ;;  %v9058_v9 = vpop.f32.mrb[79].mxu1  ;;  %v5116_v10 = vpop.f32.mrb[80].mxu0 }
 0xa10   : >> { %9837 = vst.msk [vmem:[%s17153_s7 + $0x678] sm:$0xff] %vm1612_vm2, %v9058_v9  ;;  %5317 = vst [vmem:[%s17153_s7 + $0x280] sm:$0xff] %v5116_v10  ;;  %v5118_v7 = vpop.f32.mrb[81].mxu0 }
 0xa11   : >> { %5318 = vst.msk [vmem:[%s17153_s7 + $0x288] sm:$0xff] %vm1612_vm2, %v5118_v7  ;;  %v5120_v3 = vpop.f32.mrb[82].mxu0 }
 0xa12   : >> { %5319 = vst [vmem:[%s17153_s7 + $0x290] sm:$0xff] %v5120_v3  ;;  %v5122_v4 = vpop.f32.mrb[83].mxu0 }
 0xa13   : >> { %5320 = vst.msk [vmem:[%s17153_s7 + $0x298] sm:$0xff] %vm1612_vm2, %v5122_v4 }
 0xa14   : >> { %v9062_v2 = vpop.f32.mrb[80].mxu1 }
 0xa15   : >> { %9838 = vst [vmem:[%s17153_s7 + $0x680] sm:$0xff] %v9062_v2  ;;  %v9064_v1 = vpop.f32.mrb[81].mxu1 }
 0xa16   : >> { %9839 = vst.msk [vmem:[%s17153_s7 + $0x688] sm:$0xff] %vm1612_vm2, %v9064_v1  ;;  %v9066_v5 = vpop.f32.mrb[82].mxu1 }
 0xa17   : >> { %9840 = vst [vmem:[%s17153_s7 + $0x690] sm:$0xff] %v9066_v5  ;;  %v9068_v12 = vpop.f32.mrb[83].mxu1  ;;  %v5126_v11 = vpop.f32.mrb[84].mxu0 }
 0xa18   : >> { %9841 = vst.msk [vmem:[%s17153_s7 + $0x698] sm:$0xff] %vm1612_vm2, %v9068_v12  ;;  %5321 = vst [vmem:[%s17153_s7 + $0x2a0] sm:$0xff] %v5126_v11  ;;  %v5128_v9 = vpop.f32.mrb[85].mxu0 }
 0xa19   : >> { %5322 = vst.msk [vmem:[%s17153_s7 + $0x2a8] sm:$0xff] %vm1612_vm2, %v5128_v9  ;;  %v5130_v10 = vpop.f32.mrb[86].mxu0 }
 0xa1a   : >> { %5323 = vst [vmem:[%s17153_s7 + $0x2b0] sm:$0xff] %v5130_v10  ;;  %v5132_v7 = vpop.f32.mrb[87].mxu0 }
 0xa1b   : >> { %5324 = vst.msk [vmem:[%s17153_s7 + $0x2b8] sm:$0xff] %vm1612_vm2, %v5132_v7 }
 0xa1c   : >> { %v9072_v3 = vpop.f32.mrb[84].mxu1 }
 0xa1d   : >> { %9842 = vst [vmem:[%s17153_s7 + $0x6a0] sm:$0xff] %v9072_v3  ;;  %v9074_v4 = vpop.f32.mrb[85].mxu1 }
 0xa1e   : >> { %9843 = vst.msk [vmem:[%s17153_s7 + $0x6a8] sm:$0xff] %vm1612_vm2, %v9074_v4  ;;  %v9076_v2 = vpop.f32.mrb[86].mxu1 }
 0xa1f   : >> { %9844 = vst [vmem:[%s17153_s7 + $0x6b0] sm:$0xff] %v9076_v2  ;;  %v9078_v1 = vpop.f32.mrb[87].mxu1  ;;  %v5136_v5 = vpop.f32.mrb[88].mxu0 }
 0xa20   : >> { %9845 = vst.msk [vmem:[%s17153_s7 + $0x6b8] sm:$0xff] %vm1612_vm2, %v9078_v1  ;;  %5325 = vst [vmem:[%s17153_s7 + $0x2c0] sm:$0xff] %v5136_v5  ;;  %v5138_v12 = vpop.f32.mrb[89].mxu0 }
 0xa21   : >> { %5326 = vst.msk [vmem:[%s17153_s7 + $0x2c8] sm:$0xff] %vm1612_vm2, %v5138_v12  ;;  %v5140_v11 = vpop.f32.mrb[90].mxu0 }
 0xa22   : >> { %5327 = vst [vmem:[%s17153_s7 + $0x2d0] sm:$0xff] %v5140_v11  ;;  %v5142_v9 = vpop.f32.mrb[91].mxu0 }
 0xa23   : >> { %5328 = vst.msk [vmem:[%s17153_s7 + $0x2d8] sm:$0xff] %vm1612_vm2, %v5142_v9 }
 0xa24   : >> { %v9082_v10 = vpop.f32.mrb[88].mxu1 }
 0xa25   : >> { %9846 = vst [vmem:[%s17153_s7 + $0x6c0] sm:$0xff] %v9082_v10  ;;  %v9084_v7 = vpop.f32.mrb[89].mxu1 }
 0xa26   : >> { %9847 = vst.msk [vmem:[%s17153_s7 + $0x6c8] sm:$0xff] %vm1612_vm2, %v9084_v7  ;;  %v9086_v3 = vpop.f32.mrb[90].mxu1 }
 0xa27   : >> { %9848 = vst [vmem:[%s17153_s7 + $0x6d0] sm:$0xff] %v9086_v3  ;;  %v9088_v4 = vpop.f32.mrb[91].mxu1  ;;  %v5146_v2 = vpop.f32.mrb[92].mxu0 }
 0xa28   : >> { %9849 = vst.msk [vmem:[%s17153_s7 + $0x6d8] sm:$0xff] %vm1612_vm2, %v9088_v4  ;;  %5329 = vst [vmem:[%s17153_s7 + $0x2e0] sm:$0xff] %v5146_v2  ;;  %v5148_v1 = vpop.f32.mrb[93].mxu0 }
 0xa29   : >> { %5330 = vst.msk [vmem:[%s17153_s7 + $0x2e8] sm:$0xff] %vm1612_vm2, %v5148_v1  ;;  %v5150_v5 = vpop.f32.mrb[94].mxu0 }
 0xa2a   : >> { %5331 = vst [vmem:[%s17153_s7 + $0x2f0] sm:$0xff] %v5150_v5  ;;  %v5152_v12 = vpop.f32.mrb[95].mxu0 }
 0xa2b   : >> { %5332 = vst.msk [vmem:[%s17153_s7 + $0x2f8] sm:$0xff] %vm1612_vm2, %v5152_v12 }
 0xa2c   : >> { %v9092_v11 = vpop.f32.mrb[92].mxu1 }
 0xa2d   : >> { %9850 = vst [vmem:[%s17153_s7 + $0x6e0] sm:$0xff] %v9092_v11  ;;  %v9094_v9 = vpop.f32.mrb[93].mxu1 }
 0xa2e   : >> { %9851 = vst.msk [vmem:[%s17153_s7 + $0x6e8] sm:$0xff] %vm1612_vm2, %v9094_v9  ;;  %v9096_v10 = vpop.f32.mrb[94].mxu1 }
 0xa2f   : >> { %9852 = vst [vmem:[%s17153_s7 + $0x6f0] sm:$0xff] %v9096_v10  ;;  %v9098_v7 = vpop.f32.mrb[95].mxu1  ;;  %v5156_v3 = vpop.f32.mrb[96].mxu0 }
 0xa30   : >> { %9853 = vst.msk [vmem:[%s17153_s7 + $0x6f8] sm:$0xff] %vm1612_vm2, %v9098_v7  ;;  %5333 = vst [vmem:[%s17153_s7 + $0x300] sm:$0xff] %v5156_v3  ;;  %v5158_v4 = vpop.f32.mrb[97].mxu0 }
 0xa31   : >> { %5334 = vst.msk [vmem:[%s17153_s7 + $0x308] sm:$0xff] %vm1612_vm2, %v5158_v4  ;;  %v5160_v2 = vpop.f32.mrb[98].mxu0 }
 0xa32   : >> { %5335 = vst [vmem:[%s17153_s7 + $0x310] sm:$0xff] %v5160_v2  ;;  %v5162_v1 = vpop.f32.mrb[99].mxu0 }
 0xa33   : >> { %5336 = vst.msk [vmem:[%s17153_s7 + $0x318] sm:$0xff] %vm1612_vm2, %v5162_v1 }
 0xa34   : >> { %v9102_v5 = vpop.f32.mrb[96].mxu1 }
 0xa35   : >> { %9854 = vst [vmem:[%s17153_s7 + $0x700] sm:$0xff] %v9102_v5  ;;  %v9104_v12 = vpop.f32.mrb[97].mxu1 }
 0xa36   : >> { %9855 = vst.msk [vmem:[%s17153_s7 + $0x708] sm:$0xff] %vm1612_vm2, %v9104_v12  ;;  %v9106_v11 = vpop.f32.mrb[98].mxu1 }
 0xa37   : >> { %9856 = vst [vmem:[%s17153_s7 + $0x710] sm:$0xff] %v9106_v11  ;;  %v9108_v9 = vpop.f32.mrb[99].mxu1  ;;  %v5166_v10 = vpop.f32.mrb[100].mxu0 }
 0xa38   : >> { %9857 = vst.msk [vmem:[%s17153_s7 + $0x718] sm:$0xff] %vm1612_vm2, %v9108_v9  ;;  %5337 = vst [vmem:[%s17153_s7 + $0x320] sm:$0xff] %v5166_v10  ;;  %v5168_v7 = vpop.f32.mrb[101].mxu0 }
 0xa39   : >> { %5338 = vst.msk [vmem:[%s17153_s7 + $0x328] sm:$0xff] %vm1612_vm2, %v5168_v7  ;;  %v5170_v3 = vpop.f32.mrb[102].mxu0 }
 0xa3a   : >> { %5339 = vst [vmem:[%s17153_s7 + $0x330] sm:$0xff] %v5170_v3  ;;  %v5172_v4 = vpop.f32.mrb[103].mxu0 }
 0xa3b   : >> { %5340 = vst.msk [vmem:[%s17153_s7 + $0x338] sm:$0xff] %vm1612_vm2, %v5172_v4 }
 0xa3c   : >> { %v9112_v2 = vpop.f32.mrb[100].mxu1 }
 0xa3d   : >> { %9858 = vst [vmem:[%s17153_s7 + $0x720] sm:$0xff] %v9112_v2  ;;  %v9114_v1 = vpop.f32.mrb[101].mxu1 }
 0xa3e   : >> { %9859 = vst.msk [vmem:[%s17153_s7 + $0x728] sm:$0xff] %vm1612_vm2, %v9114_v1  ;;  %v9116_v5 = vpop.f32.mrb[102].mxu1 }
 0xa3f   : >> { %9860 = vst [vmem:[%s17153_s7 + $0x730] sm:$0xff] %v9116_v5  ;;  %v9118_v12 = vpop.f32.mrb[103].mxu1  ;;  %v5176_v11 = vpop.f32.mrb[104].mxu0 }
 0xa40   : >> { %9861 = vst.msk [vmem:[%s17153_s7 + $0x738] sm:$0xff] %vm1612_vm2, %v9118_v12  ;;  %5341 = vst [vmem:[%s17153_s7 + $0x340] sm:$0xff] %v5176_v11  ;;  %v5178_v9 = vpop.f32.mrb[105].mxu0 }
 0xa41   : >> { %5342 = vst.msk [vmem:[%s17153_s7 + $0x348] sm:$0xff] %vm1612_vm2, %v5178_v9  ;;  %v5180_v10 = vpop.f32.mrb[106].mxu0 }
 0xa42   : >> { %5343 = vst [vmem:[%s17153_s7 + $0x350] sm:$0xff] %v5180_v10  ;;  %v5182_v7 = vpop.f32.mrb[107].mxu0 }
 0xa43   : >> { %5344 = vst.msk [vmem:[%s17153_s7 + $0x358] sm:$0xff] %vm1612_vm2, %v5182_v7 }
 0xa44   : >> { %v9122_v3 = vpop.f32.mrb[104].mxu1 }
 0xa45   : >> { %9862 = vst [vmem:[%s17153_s7 + $0x740] sm:$0xff] %v9122_v3  ;;  %v9124_v4 = vpop.f32.mrb[105].mxu1 }
 0xa46   : >> { %9863 = vst.msk [vmem:[%s17153_s7 + $0x748] sm:$0xff] %vm1612_vm2, %v9124_v4  ;;  %v9126_v2 = vpop.f32.mrb[106].mxu1 }
 0xa47   : >> { %9864 = vst [vmem:[%s17153_s7 + $0x750] sm:$0xff] %v9126_v2  ;;  %v9128_v1 = vpop.f32.mrb[107].mxu1  ;;  %v5186_v5 = vpop.f32.mrb[108].mxu0 }
 0xa48   : >> { %9865 = vst.msk [vmem:[%s17153_s7 + $0x758] sm:$0xff] %vm1612_vm2, %v9128_v1  ;;  %5345 = vst [vmem:[%s17153_s7 + $0x360] sm:$0xff] %v5186_v5  ;;  %v5188_v12 = vpop.f32.mrb[109].mxu0 }
 0xa49   : >> { %5346 = vst.msk [vmem:[%s17153_s7 + $0x368] sm:$0xff] %vm1612_vm2, %v5188_v12  ;;  %v5190_v11 = vpop.f32.mrb[110].mxu0 }
 0xa4a   : >> { %5347 = vst [vmem:[%s17153_s7 + $0x370] sm:$0xff] %v5190_v11  ;;  %v5192_v9 = vpop.f32.mrb[111].mxu0 }
 0xa4b   : >> { %5348 = vst.msk [vmem:[%s17153_s7 + $0x378] sm:$0xff] %vm1612_vm2, %v5192_v9 }
 0xa4c   : >> { %v9132_v10 = vpop.f32.mrb[108].mxu1 }
 0xa4d   : >> { %9866 = vst [vmem:[%s17153_s7 + $0x760] sm:$0xff] %v9132_v10  ;;  %v9134_v7 = vpop.f32.mrb[109].mxu1 }
 0xa4e   : >> { %9867 = vst.msk [vmem:[%s17153_s7 + $0x768] sm:$0xff] %vm1612_vm2, %v9134_v7  ;;  %v9136_v3 = vpop.f32.mrb[110].mxu1 }
 0xa4f   : >> { %9868 = vst [vmem:[%s17153_s7 + $0x770] sm:$0xff] %v9136_v3  ;;  %v9138_v4 = vpop.f32.mrb[111].mxu1  ;;  %v5196_v2 = vpop.f32.mrb[112].mxu0 }
 0xa50   : >> { %9869 = vst.msk [vmem:[%s17153_s7 + $0x778] sm:$0xff] %vm1612_vm2, %v9138_v4  ;;  %5349 = vst [vmem:[%s17153_s7 + $0x380] sm:$0xff] %v5196_v2  ;;  %v5198_v1 = vpop.f32.mrb[113].mxu0 }
 0xa51   : >> { %5350 = vst.msk [vmem:[%s17153_s7 + $0x388] sm:$0xff] %vm1612_vm2, %v5198_v1  ;;  %v5200_v5 = vpop.f32.mrb[114].mxu0 }
 0xa52   : >> { %5351 = vst [vmem:[%s17153_s7 + $0x390] sm:$0xff] %v5200_v5  ;;  %v5202_v12 = vpop.f32.mrb[115].mxu0 }
 0xa53   : >> { %5352 = vst.msk [vmem:[%s17153_s7 + $0x398] sm:$0xff] %vm1612_vm2, %v5202_v12 }
 0xa54   : >> { %v9142_v11 = vpop.f32.mrb[112].mxu1 }
 0xa55   : >> { %9870 = vst [vmem:[%s17153_s7 + $0x780] sm:$0xff] %v9142_v11  ;;  %v9144_v9 = vpop.f32.mrb[113].mxu1 }
 0xa56   : >> { %9871 = vst.msk [vmem:[%s17153_s7 + $0x788] sm:$0xff] %vm1612_vm2, %v9144_v9  ;;  %v9146_v10 = vpop.f32.mrb[114].mxu1 }
 0xa57   : >> { %9872 = vst [vmem:[%s17153_s7 + $0x790] sm:$0xff] %v9146_v10  ;;  %v9148_v7 = vpop.f32.mrb[115].mxu1  ;;  %v5206_v3 = vpop.f32.mrb[116].mxu0 }
 0xa58   : >> { %9873 = vst.msk [vmem:[%s17153_s7 + $0x798] sm:$0xff] %vm1612_vm2, %v9148_v7  ;;  %5353 = vst [vmem:[%s17153_s7 + $0x3a0] sm:$0xff] %v5206_v3  ;;  %v5208_v4 = vpop.f32.mrb[117].mxu0 }
 0xa59   : >> { %5354 = vst.msk [vmem:[%s17153_s7 + $0x3a8] sm:$0xff] %vm1612_vm2, %v5208_v4  ;;  %v5210_v2 = vpop.f32.mrb[118].mxu0 }
 0xa5a   : >> { %5355 = vst [vmem:[%s17153_s7 + $0x3b0] sm:$0xff] %v5210_v2  ;;  %v5212_v1 = vpop.f32.mrb[119].mxu0 }
 0xa5b   : >> { %5356 = vst.msk [vmem:[%s17153_s7 + $0x3b8] sm:$0xff] %vm1612_vm2, %v5212_v1 }
 0xa5c   : >> { %v9152_v5 = vpop.f32.mrb[116].mxu1 }
 0xa5d   : >> { %9874 = vst [vmem:[%s17153_s7 + $0x7a0] sm:$0xff] %v9152_v5  ;;  %v9154_v12 = vpop.f32.mrb[117].mxu1 }
 0xa5e   : >> { %9875 = vst.msk [vmem:[%s17153_s7 + $0x7a8] sm:$0xff] %vm1612_vm2, %v9154_v12  ;;  %v9156_v11 = vpop.f32.mrb[118].mxu1 }
 0xa5f   : >> { %9876 = vst [vmem:[%s17153_s7 + $0x7b0] sm:$0xff] %v9156_v11  ;;  %v9158_v9 = vpop.f32.mrb[119].mxu1  ;;  %v5216_v10 = vpop.f32.mrb[120].mxu0 }
 0xa60   : >> { %9877 = vst.msk [vmem:[%s17153_s7 + $0x7b8] sm:$0xff] %vm1612_vm2, %v9158_v9  ;;  %5357 = vst [vmem:[%s17153_s7 + $0x3c0] sm:$0xff] %v5216_v10  ;;  %v5218_v7 = vpop.f32.mrb[121].mxu0 }
 0xa61   : >> { %5358 = vst.msk [vmem:[%s17153_s7 + $0x3c8] sm:$0xff] %vm1612_vm2, %v5218_v7  ;;  %v5220_v3 = vpop.f32.mrb[122].mxu0 }
 0xa62   : >> { %5359 = vst [vmem:[%s17153_s7 + $0x3d0] sm:$0xff] %v5220_v3  ;;  %v5222_v4 = vpop.f32.mrb[123].mxu0 }
 0xa63   : >> { %5360 = vst.msk [vmem:[%s17153_s7 + $0x3d8] sm:$0xff] %vm1612_vm2, %v5222_v4 }
 0xa64   : >> { %v9162_v2 = vpop.f32.mrb[120].mxu1 }
 0xa65   : >> { %9878 = vst [vmem:[%s17153_s7 + $0x7c0] sm:$0xff] %v9162_v2  ;;  %v9164_v1 = vpop.f32.mrb[121].mxu1 }
 0xa66   : >> { %9879 = vst.msk [vmem:[%s17153_s7 + $0x7c8] sm:$0xff] %vm1612_vm2, %v9164_v1  ;;  %v9166_v5 = vpop.f32.mrb[122].mxu1 }
 0xa67   : >> { %9880 = vst [vmem:[%s17153_s7 + $0x7d0] sm:$0xff] %v9166_v5  ;;  %v9168_v12 = vpop.f32.mrb[123].mxu1  ;;  %v5226_v11 = vpop.f32.mrb[124].mxu0 }
 0xa68   : >> { %9881 = vst.msk [vmem:[%s17153_s7 + $0x7d8] sm:$0xff] %vm1612_vm2, %v9168_v12  ;;  %5361 = vst [vmem:[%s17153_s7 + $0x3e0] sm:$0xff] %v5226_v11  ;;  %v5228_v9 = vpop.f32.mrb[125].mxu0 }
 0xa69   : >> { %5362 = vst.msk [vmem:[%s17153_s7 + $0x3e8] sm:$0xff] %vm1612_vm2, %v5228_v9  ;;  %v5230_v10 = vpop.f32.mrb[126].mxu0 }
 0xa6a   : >> { %5363 = vst [vmem:[%s17153_s7 + $0x3f0] sm:$0xff] %v5230_v10  ;;  %v5232_v7 = vpop.f32.mrb[127].mxu0  ;;  %397 = sbr.rel (!%p395_p6) target bundleno = 161 (0xa1), region = 93 }
 0xa6b   : >> { %5364 = vst.msk [vmem:[%s17153_s7 + $0x3f8] sm:$0xff] %vm1612_vm2, %v5232_v7 }
 0xa6c   : >> { %v9172_v3 = vpop.f32.mrb[124].mxu1 }
 0xa6d   : >> { %9882 = vst [vmem:[%s17153_s7 + $0x7e0] sm:$0xff] %v9172_v3  ;;  %v9174_v4 = vpop.f32.mrb[125].mxu1 }
 0xa6e   : >> { %9883 = vst.msk [vmem:[%s17153_s7 + $0x7e8] sm:$0xff] %vm1612_vm2, %v9174_v4  ;;  %v9176_v2 = vpop.f32.mrb[126].mxu1 }
 0xa6f   : >> { %9884 = vst [vmem:[%s17153_s7 + $0x7f0] sm:$0xff] %v9176_v2  ;;  %v9178_v1 = vpop.f32.mrb[127].mxu1 }
 0xa70   : >> { %9885 = vst.msk [vmem:[%s17153_s7 + $0x7f8] sm:$0xff] %vm1612_vm2, %v9178_v1 }
 0xa71   : > { %10524 = shalt.err (!%p10521_p3)
}
 0xa72   : > { %s10525_s17 = scalar_lea.hbm %s17564_s9, 262144  ;;  %s10529_s30 = scalar_lea.hbm %s17613_s3, 2097152 }
 0xa73   : > { %p10526_p4 = scmp.ne.s32.totalorder %s17564_s9, %s10525_s17  ;;  %p10530_p2 = scmp.lt.u32.totalorder %s17564_s9, %s17613_s3 }
 0xa74   : > { %p10531_p7 = scmp.lt.u32.totalorder %s10529_s30, %s10525_s17  ;;  %p10533_p10 = scmp.lt.u32.totalorder %s10525_s17, %s17564_s9 }
 0xa75   : > { %p10527_p5 = pnand %p10526_p4, %p19382_p11 }
 0xa76   : > { %p10532_p6 = por %p10531_p7, %p10530_p2 }
 0xa77   : > { %p10528_p0 = pneg %p10527_p5 }
 0xa78   : > { %p10534_p12 = por %p10533_p10, %p10532_p6 }
 0xa7a   : > { %p10535_p8 = pnand %p10534_p12, %p10528_p0 }
 0xa7c   : > { %10538 = shalt.err (!%p10535_p8)
}
 0xa7d   : > { %s10601_s6 = smov 256   ;;  %s10602_s7 = smov 16  }
 0xa7e   : > { %10415 = dma.vmem_to_hbm [thread:$0]  (%p19382_p11), %s17567_s23, 262144, %s17564_s9, %s9312_s26, %s10601_s6, %s10601_s6, %s10602_s7  }
 0xa7f PF: > { %p10426_p9 = scmp.ge.s32.totalorder %s10581_s15, 2  ;;  %s9341_s8 = sand.u32 1, %s10569_s12  }
 0xa80   : > { %p19383_p13 = scmp.ne.s32.totalorder %s18247_s25, 0  ;;  %s9342_s20 = scalar_lea.sflag [#allocation5], %s9341_s8 }
 0xa82   : > { %p10422_p1 = pnand %p10426_p9, %p19383_p13 }
 0xa84   : > { %10564 = dma.done.wait (!%p10422_p1), %s9342_s20, 262144  }
 0xa85   : > { %10566 = vsyncadd (!%p10422_p1), %s9342_s20, 4294705152  ;;  %p16_p3 = scmp.ge.s32.totalorder %s10648_s18, 10   ;;  %s19384_s12 = smov %s10573_s13 }
 0xa86   : > { %s19385_s13 = smov %s10577_s14  ;;  %s19386_s14 = smov %s10660_s21 }
 0xa87   : > { %s19387_s15 = smov %s10648_s18  ;;  %18 = sbr.rel (!%p16_p3) target bundleno = 5 (0x5), region = 104 }
 0xa8e   :  { %9347 = vsyncpa [#allocation4], 1 }
 0xa8f   :  { %9349 = vsyncpa [#allocation4 + $0x1], 1 }
 0xa90   :  { %9350 = vsyncpa [#allocation5], 1 }
 0xa91   :  { %9352 = vsyncpa [#allocation5 + $0x1], 1 }

</bundles_post_ra>
